<compile_context>
chip_gen: v7x
topology: tpu7x:2x2x1
jax: 0.10.0
libtpu: 0.0.40
codegen_flags: <defaults>
</compile_context>

<pallas_src>
import math

import jax
import jax.numpy as jnp
import numpy as np
from jax.experimental import pallas as pl
from jax.experimental.pallas import tpu as pltpu


def _round_up(x, m):
    return ((x + m - 1) // m) * m


def _pad_axis(a, axis, target):
    pad = target - a.shape[axis]
    if pad <= 0:
        return a
    widths = [(0, 0)] * a.ndim
    widths[axis] = (0, pad)
    return jnp.pad(a, widths)


def _make_siren_kernel(num_sine_layers, in_features, first_layer_fma,
                       matmul_dtype):
    """Builds the fused SIREN MLP kernel (omega already folded into W, b)."""

    def kernel(x_ref, *refs):
        # refs = (w0, b0, w1, b1, ..., w_final, b_final, out_ref)
        out_ref = refs[-1]
        wb = refs[:-1]

        x = x_ref[...].astype(jnp.float32)

        if num_sine_layers > 0:
            w0 = wb[0][...]          # (in_features, hidden_pad), omega-scaled
            b0 = wb[1][...]          # (1, hidden_pad), omega-scaled
            if first_layer_fma:
                # Tiny contraction dim: a couple of broadcast-FMAs on the VPU
                # instead of an MXU matmul that would badly underfill K.
                h = b0
                for k in range(in_features):
                    h = h + x[:, k:k + 1] * w0[k:k + 1, :]
            else:
                h = jnp.dot(x.astype(matmul_dtype), w0.astype(matmul_dtype),
                            preferred_element_type=jnp.float32) + b0
            h = jnp.sin(h)

            # Remaining sine layers: MXU matmul + bias + sin (f32 accumulate).
            for layer in range(1, num_sine_layers):
                w = wb[2 * layer][...]
                b = wb[2 * layer + 1][...]
                h = jnp.sin(
                    jnp.dot(h.astype(matmul_dtype), w.astype(matmul_dtype),
                            preferred_element_type=jnp.float32) + b)
        else:
            h = x

        # Outermost linear layer (no nonlinearity, no omega scaling).
        wf = wb[-2][...]
        bf = wb[-1][...]
        out = jnp.dot(h.astype(matmul_dtype), wf.astype(matmul_dtype),
                      preferred_element_type=jnp.float32) + bf
        out_ref[...] = out.astype(out_ref.dtype)

    return kernel


def siren_forward_pallas(coords, params, *, first_omega_0, hidden_omega_0,
                         row_tile=512, matmul_dtype=jnp.float32):
    """Run the SIREN MLP (stack of SineLayers + final linear) via one fused
    Pallas kernel.

    coords: (..., in_features) float32
    params: list of (W, b) per layer; W shape (out, in), b shape (out,)
            (PyTorch nn.Linear convention).  All layers but the last are
            SineLayers; the last is a plain linear.
    Returns (out, None) mirroring SIREN.forward's (x, zs).
    """
    in_features = coords.shape[-1]
    lead_shape = coords.shape[:-1]
    x2d = coords.reshape(-1, in_features).astype(jnp.float32)
    n_rows = x2d.shape[0]

    num_sine_layers = len(params) - 1
    out_features = params[-1][0].shape[0]

    # Pre-transpose weights to (in, out), fold omega into sine layers:
    #   sin(omega * (x @ W.T + b)) == sin(x @ (omega * W.T) + omega * b)
    # and zero-pad every *hidden* dimension to a multiple of 128 lanes.
    # Padding is exact: padded pre-activations are 0, sin(0)=0, and the
    # corresponding downstream weight rows are 0, so results are unchanged.
    flat_wb = []
    for layer, (w, b) in enumerate(params):
        wt = jnp.asarray(w, jnp.float32).T           # (in, out)
        bt = jnp.asarray(b, jnp.float32)[None, :]    # (1, out)
        if layer < num_sine_layers:
            omega = first_omega_0 if layer == 0 else hidden_omega_0
            wt = wt * omega
            bt = bt * omega
            # Output of a sine layer is a hidden dim -> lane-pad to 128.
            hid_pad = _round_up(wt.shape[1], 128)
            wt = _pad_axis(wt, 1, hid_pad)
            bt = _pad_axis(bt, 1, hid_pad)
        if layer > 0 and num_sine_layers > 0:
            # Input of this layer is the previous (padded) hidden dim.
            wt = _pad_axis(wt, 0, _round_up(wt.shape[0], 128))
        flat_wb.append(wt)
        flat_wb.append(bt)

    # Effective row tile: cap so the grid has >= 2 steps when there is enough
    # work (v7x has 2 TensorCores sharding the parallel axis), keep it a
    # multiple of 8 sublanes, and pad rows instead of asserting divisibility.
    eff_tile = min(int(row_tile), max(8, _round_up(pl.cdiv(n_rows, 2), 8)))
    eff_tile = _round_up(eff_tile, 8)
    n_rows_pad = _round_up(n_rows, eff_tile)
    if n_rows_pad != n_rows:
        x2d = jnp.pad(x2d, ((0, n_rows_pad - n_rows), (0, 0)))
    grid = (n_rows_pad // eff_tile,)

    # Input: tiled along rows, full feature dim (= full array dim, so no
    # 128-lane constraint on in_features).
    in_specs = [pl.BlockSpec((eff_tile, in_features), lambda i: (i, 0))]
    # Weights / biases: full arrays, same block index every grid step
    # (grid-invariant -> no re-DMA across iterations).
    for arr in flat_wb:
        in_specs.append(pl.BlockSpec(arr.shape, lambda i: (0, 0)))

    # Output keeps its real (small) lane width: block last dim == array last
    # dim, and padding it to 128 would only add HBM writeback bytes here.
    out_specs = pl.BlockSpec((eff_tile, out_features), lambda i: (i, 0))

    first_layer_fma = in_features <= 8  # tiny K: use VPU FMAs, skip the MXU
    kernel = _make_siren_kernel(num_sine_layers, in_features, first_layer_fma,
                                matmul_dtype)

    out2d = pl.pallas_call(
        kernel,
        out_shape=jax.ShapeDtypeStruct((n_rows_pad, out_features),
                                       jnp.float32),
        grid_spec=pltpu.PrefetchScalarGridSpec(
            num_scalar_prefetch=0,
            grid=grid,
            in_specs=in_specs,
            out_specs=out_specs,
        ),
        compiler_params=pltpu.CompilerParams(
            dimension_semantics=("parallel",),
        ),
    )(x2d, *flat_wb)

    out = out2d[:n_rows].reshape(*lead_shape, out_features)
    return out, None  # zs is None (encoder_depth == -1)


def init_siren_params(key, in_features, hidden_features, hidden_layers,
                      out_features, first_omega_0, hidden_omega_0,
                      outermost_linear=True):
    """Deterministically initialize SIREN parameters (PyTorch-style bounds)."""
    params = []

    def linear_init(key, fan_in, fan_out, w_bound):
        kw, kb = jax.random.split(key)
        w = jax.random.uniform(kw, (fan_out, fan_in), jnp.float32,
                               -w_bound, w_bound)
        # nn.Linear default bias init: U(-1/sqrt(fan_in), 1/sqrt(fan_in))
        b_bound = 1.0 / math.sqrt(fan_in)
        b = jax.random.uniform(kb, (fan_out,), jnp.float32,
                               -b_bound, b_bound)
        return w, b

    n_sine = 0
    if hidden_layers != 0:
        n_sine += 1  # first SineLayer (is_first=True)
    extra = (hidden_layers - 1
             if (hidden_layers > 0 and outermost_linear) else hidden_layers)
    n_sine += max(extra, 0)

    keys = jax.random.split(key, n_sine + 1)
    k_idx = 0

    if hidden_layers != 0:
        # first layer: U(-1/in, 1/in)
        params.append(linear_init(keys[k_idx], in_features, hidden_features,
                                  1.0 / in_features))
        k_idx += 1

    for _ in range(max(extra, 0)):
        bound = math.sqrt(6.0 / hidden_features) / hidden_omega_0
        params.append(linear_init(keys[k_idx], hidden_features,
                                  hidden_features, bound))
        k_idx += 1

    # outermost linear
    const = math.sqrt(6.0 / hidden_features) / max(hidden_omega_0, 1e-12)
    params.append(linear_init(keys[k_idx], hidden_features, out_features,
                              const))
    return params


def siren_forward_ref(coords, params, *, first_omega_0, hidden_omega_0):
    """Pure-JAX reference for correctness checking (matches PyTorch module)."""
    x = coords.reshape(-1, coords.shape[-1]).astype(jnp.float32)
    for layer, (w, b) in enumerate(params[:-1]):
        omega = first_omega_0 if layer == 0 else hidden_omega_0
        x = jnp.sin(omega * (x @ w.T + b))
    wf, bf = params[-1]
    x = x @ wf.T + bf
    return x.reshape(*coords.shape[:-1], wf.shape[0])


if __name__ == "__main__":
    # Small SIREN config: 2-D coords -> 64 hidden, 3 hidden (Sine) layers,
    # 3 outputs.
    in_features = 2
    hidden_features = 64
    hidden_layers = 3
    out_features = 3
    first_omega_0 = 30.0
    hidden_omega_0 = 30.0

    key = jax.random.PRNGKey(0)
    k_param, k_coord = jax.random.split(key)

    params = init_siren_params(
        k_param, in_features, hidden_features, hidden_layers, out_features,
        first_omega_0, hidden_omega_0, outermost_linear=True)

    # coords: (B, H*W, in_features) like the SIREN usage, small shapes.
    B, HW = 2, 128
    coords = jax.random.uniform(k_coord, (B, HW, in_features), jnp.float32,
                                -1.0, 1.0)

    out, zs = siren_forward_pallas(
        coords, params,
        first_omega_0=first_omega_0, hidden_omega_0=hidden_omega_0,
        row_tile=512)  # auto-clamped to keep >= 2 grid steps at this size
    out = jax.block_until_ready(out)

    ref = siren_forward_ref(coords, params,
                            first_omega_0=first_omega_0,
                            hidden_omega_0=hidden_omega_0)
    np.testing.assert_allclose(np.asarray(out), np.asarray(ref),
                               rtol=1e-4, atol=1e-4)
    assert zs is None
    print("KERNEL_OK")
</pallas_src>

<mosaic_0001>
module attributes {stable_mosaic.version = 11 : i64} {
  func.func @kernel(%arg0: i32, %arg1: memref<128x2xf32, #tpu.memory_space<vmem>>, %arg2: memref<2x128xf32, #tpu.memory_space<vmem>>, %arg3: memref<1x128xf32, #tpu.memory_space<vmem>>, %arg4: memref<128x128xf32, #tpu.memory_space<vmem>>, %arg5: memref<1x128xf32, #tpu.memory_space<vmem>>, %arg6: memref<128x128xf32, #tpu.memory_space<vmem>>, %arg7: memref<1x128xf32, #tpu.memory_space<vmem>>, %arg8: memref<128x3xf32, #tpu.memory_space<vmem>>, %arg9: memref<1x3xf32, #tpu.memory_space<vmem>>, %arg10: memref<128x3xf32, #tpu.memory_space<vmem>>) attributes {dimension_semantics = [#tpu.dimension_semantics<parallel>], iteration_bounds = array<i64: 2>, scalar_prefetch = 0 : i64, scratch_operands = 0 : i64, tpu.core_type = #tpu.core_type<tc>, window_params = [{transform_indices = @transform_0, window_bounds = array<i64: 128, 2>}, {pipeline_mode = #tpu.pipeline_mode<synchronous>, transform_indices = @transform_1, window_bounds = array<i64: 2, 128>}, {pipeline_mode = #tpu.pipeline_mode<synchronous>, transform_indices = @transform_2, window_bounds = array<i64: 1, 128>}, {pipeline_mode = #tpu.pipeline_mode<synchronous>, transform_indices = @transform_3, window_bounds = array<i64: 128, 128>}, {pipeline_mode = #tpu.pipeline_mode<synchronous>, transform_indices = @transform_4, window_bounds = array<i64: 1, 128>}, {pipeline_mode = #tpu.pipeline_mode<synchronous>, transform_indices = @transform_5, window_bounds = array<i64: 128, 128>}, {pipeline_mode = #tpu.pipeline_mode<synchronous>, transform_indices = @transform_6, window_bounds = array<i64: 1, 128>}, {pipeline_mode = #tpu.pipeline_mode<synchronous>, transform_indices = @transform_7, window_bounds = array<i64: 128, 3>}, {pipeline_mode = #tpu.pipeline_mode<synchronous>, transform_indices = @transform_8, window_bounds = array<i64: 1, 3>}, {transform_indices = @transform_9, window_bounds = array<i64: 128, 3>}]} {
    %c0 = arith.constant 0 : index
    %c0_0 = arith.constant 0 : index
    %0 = vector.load %arg1[%c0, %c0_0] : memref<128x2xf32, #tpu.memory_space<vmem>>, vector<128x2xf32>
    %c0_1 = arith.constant 0 : index
    %c0_2 = arith.constant 0 : index
    %1 = vector.load %arg2[%c0_1, %c0_2] : memref<2x128xf32, #tpu.memory_space<vmem>>, vector<2x128xf32>
    %c0_3 = arith.constant 0 : index
    %c0_4 = arith.constant 0 : index
    %2 = vector.load %arg3[%c0_3, %c0_4] : memref<1x128xf32, #tpu.memory_space<vmem>>, vector<1x128xf32>
    %3 = vector.extract_strided_slice %0 {offsets = [0, 0], sizes = [128, 1], strides = [1, 1]} : vector<128x2xf32> to vector<128x1xf32>
    %4 = vector.extract_strided_slice %1 {offsets = [0, 0], sizes = [1, 128], strides = [1, 1]} : vector<2x128xf32> to vector<1x128xf32>
    %5 = vector.broadcast %3 : vector<128x1xf32> to vector<128x128xf32>
    %6 = vector.broadcast %4 : vector<1x128xf32> to vector<128x128xf32>
    %7 = arith.mulf %5, %6 : vector<128x128xf32>
    %8 = vector.broadcast %2 : vector<1x128xf32> to vector<128x128xf32>
    %9 = arith.addf %8, %7 : vector<128x128xf32>
    %10 = vector.extract_strided_slice %0 {offsets = [0, 1], sizes = [128, 1], strides = [1, 1]} : vector<128x2xf32> to vector<128x1xf32>
    %11 = vector.extract_strided_slice %1 {offsets = [1, 0], sizes = [1, 128], strides = [1, 1]} : vector<2x128xf32> to vector<1x128xf32>
    %12 = vector.broadcast %10 : vector<128x1xf32> to vector<128x128xf32>
    %13 = vector.broadcast %11 : vector<1x128xf32> to vector<128x128xf32>
    %14 = arith.mulf %12, %13 : vector<128x128xf32>
    %15 = arith.addf %9, %14 : vector<128x128xf32>
    %16 = math.sin %15 : vector<128x128xf32>
    %c0_5 = arith.constant 0 : index
    %c0_6 = arith.constant 0 : index
    %17 = vector.load %arg4[%c0_5, %c0_6] : memref<128x128xf32, #tpu.memory_space<vmem>>, vector<128x128xf32>
    %c0_7 = arith.constant 0 : index
    %c0_8 = arith.constant 0 : index
    %18 = vector.load %arg5[%c0_7, %c0_8] : memref<1x128xf32, #tpu.memory_space<vmem>>, vector<1x128xf32>
    %cst = arith.constant dense<0.000000e+00> : vector<128x128xf32>
    %19 = tpu.matmul %16, %17, %cst {dimension_numbers = #tpu.dot_dimension_numbers<[1], [0], [0], [1], [0, 0, 1, 1], [], []>} : vector<128x128xf32>, vector<128x128xf32>, vector<128x128xf32> -> vector<128x128xf32>
    %20 = vector.broadcast %18 : vector<1x128xf32> to vector<128x128xf32>
    %21 = arith.addf %19, %20 : vector<128x128xf32>
    %22 = math.sin %21 : vector<128x128xf32>
    %c0_9 = arith.constant 0 : index
    %c0_10 = arith.constant 0 : index
    %23 = vector.load %arg6[%c0_9, %c0_10] : memref<128x128xf32, #tpu.memory_space<vmem>>, vector<128x128xf32>
    %c0_11 = arith.constant 0 : index
    %c0_12 = arith.constant 0 : index
    %24 = vector.load %arg7[%c0_11, %c0_12] : memref<1x128xf32, #tpu.memory_space<vmem>>, vector<1x128xf32>
    %cst_13 = arith.constant dense<0.000000e+00> : vector<128x128xf32>
    %25 = tpu.matmul %22, %23, %cst_13 {dimension_numbers = #tpu.dot_dimension_numbers<[1], [0], [0], [1], [0, 0, 1, 1], [], []>} : vector<128x128xf32>, vector<128x128xf32>, vector<128x128xf32> -> vector<128x128xf32>
    %26 = vector.broadcast %24 : vector<1x128xf32> to vector<128x128xf32>
    %27 = arith.addf %25, %26 : vector<128x128xf32>
    %28 = math.sin %27 : vector<128x128xf32>
    %c0_14 = arith.constant 0 : index
    %c0_15 = arith.constant 0 : index
    %29 = vector.load %arg8[%c0_14, %c0_15] : memref<128x3xf32, #tpu.memory_space<vmem>>, vector<128x3xf32>
    %c0_16 = arith.constant 0 : index
    %c0_17 = arith.constant 0 : index
    %30 = vector.load %arg9[%c0_16, %c0_17] : memref<1x3xf32, #tpu.memory_space<vmem>>, vector<1x3xf32>
    %cst_18 = arith.constant dense<0.000000e+00> : vector<128x3xf32>
    %31 = tpu.matmul %28, %29, %cst_18 {dimension_numbers = #tpu.dot_dimension_numbers<[1], [0], [0], [1], [0, 0, 1, 1], [], []>} : vector<128x128xf32>, vector<128x3xf32>, vector<128x3xf32> -> vector<128x3xf32>
    %32 = vector.broadcast %30 : vector<1x3xf32> to vector<128x3xf32>
    %33 = arith.addf %31, %32 : vector<128x3xf32>
    %c0_19 = arith.constant 0 : index
    %c0_20 = arith.constant 0 : index
    %34 = vector.load %arg10[%c0_19, %c0_20] : memref<128x3xf32, #tpu.memory_space<vmem>>, vector<128x3xf32>
    tpu.vector_store %arg10[%c0_19, %c0_20], %33 {strides = array<i32>} : memref<128x3xf32, #tpu.memory_space<vmem>>, vector<128x3xf32>,
    return
  }
  func.func @transform_0(%arg0: i32) -> (i32, i32) {
    %c0_i32 = arith.constant 0 : i32
    %c0_i32_0 = arith.constant 0 : i32
    return %arg0, %c0_i32 : i32, i32
  }
  func.func @transform_1(%arg0: i32) -> (i32, i32) {
    %c0_i32 = arith.constant 0 : i32
    %c0_i32_0 = arith.constant 0 : i32
    %c0_i32_1 = arith.constant 0 : i32
    return %c0_i32, %c0_i32_0 : i32, i32
  }
  func.func @transform_2(%arg0: i32) -> (i32, i32) {
    %c0_i32 = arith.constant 0 : i32
    %c0_i32_0 = arith.constant 0 : i32
    %c0_i32_1 = arith.constant 0 : i32
    return %c0_i32, %c0_i32_0 : i32, i32
  }
  func.func @transform_3(%arg0: i32) -> (i32, i32) {
    %c0_i32 = arith.constant 0 : i32
    %c0_i32_0 = arith.constant 0 : i32
    %c0_i32_1 = arith.constant 0 : i32
    return %c0_i32, %c0_i32_0 : i32, i32
  }
  func.func @transform_4(%arg0: i32) -> (i32, i32) {
    %c0_i32 = arith.constant 0 : i32
    %c0_i32_0 = arith.constant 0 : i32
    %c0_i32_1 = arith.constant 0 : i32
    return %c0_i32, %c0_i32_0 : i32, i32
  }
  func.func @transform_5(%arg0: i32) -> (i32, i32) {
    %c0_i32 = arith.constant 0 : i32
    %c0_i32_0 = arith.constant 0 : i32
    %c0_i32_1 = arith.constant 0 : i32
    return %c0_i32, %c0_i32_0 : i32, i32
  }
  func.func @transform_6(%arg0: i32) -> (i32, i32) {
    %c0_i32 = arith.constant 0 : i32
    %c0_i32_0 = arith.constant 0 : i32
    %c0_i32_1 = arith.constant 0 : i32
    return %c0_i32, %c0_i32_0 : i32, i32
  }
  func.func @transform_7(%arg0: i32) -> (i32, i32) {
    %c0_i32 = arith.constant 0 : i32
    %c0_i32_0 = arith.constant 0 : i32
    %c0_i32_1 = arith.constant 0 : i32
    return %c0_i32, %c0_i32_0 : i32, i32
  }
  func.func @transform_8(%arg0: i32) -> (i32, i32) {
    %c0_i32 = arith.constant 0 : i32
    %c0_i32_0 = arith.constant 0 : i32
    %c0_i32_1 = arith.constant 0 : i32
    return %c0_i32, %c0_i32_0 : i32, i32
  }
  func.func @transform_9(%arg0: i32) -> (i32, i32) {
    %c0_i32 = arith.constant 0 : i32
    %c0_i32_0 = arith.constant 0 : i32
    return %arg0, %c0_i32 : i32, i32
  }
}

</mosaic_0001>

<bundles_post_ra>
// kernel: tpu_custom_call.1
= control target key start
LH: loop header
LB: loop body
LE: loop exit
PB: predicated region body
PF: predicated region fallthrough
CT: control target
= control target key end

     0   :  { %s7216_s30 = smov 0   ;;  %s12519_s0 = inlined_call_operand.vmem [shape: f32[256,2], index: 0, kind: input, shape index: {}]   ;;  %s12520_s1 = inlined_call_operand.vmem [shape: f32[2,128], index: 1, kind: input, shape index: {}]   ;;  %s12521_s2 = inlined_call_operand.vmem [shape: f32[1,128], index: 2, kind: input, shape index: {}]   ;;  %s12522_s3 = inlined_call_operand.vmem [shape: f32[128,128], index: 3, kind: input, shape index: {}]   ;;  %s12523_s4 = inlined_call_operand.vmem [shape: f32[1,128], index: 4, kind: input, shape index: {}]   ;;  %s12524_s5 = inlined_call_operand.vmem [shape: f32[128,128], index: 5, kind: input, shape index: {}]   ;;  %s12525_s6 = inlined_call_operand.vmem [shape: f32[1,128], index: 6, kind: input, shape index: {}]   ;;  %s12526_s7 = inlined_call_operand.vmem [shape: f32[128,3], index: 7, kind: input, shape index: {}]   ;;  %s12527_s8 = inlined_call_operand.vmem [shape: f32[1,3], index: 8, kind: input, shape index: {}]   ;;  %s12528_s9 = inlined_call_operand.vmem [shape: f32[256,3], index: 9, kind: output, shape index: {}]  }
   0x1 LB: > { %s6145_s10 = sadd.s32 4294967295, %s7156_s30   ;;  %p6149_p0 = scmp.ge.s32.totalorder %s7156_s30, 1  ;;  %s7156_s30 = sphi %s7216_s30, %s19_s30  }
   0x2   : > { %p288_p1 = scmp.lt.s32.totalorder %s7156_s30, 3 }
   0x4   : > { %p289_p2 = pnand %p6149_p0, %p288_p1 }
   0x6   : > { %292 = sbr.rel (%p289_p2) target bundleno = 1783 (0x6f7), region = 56 }
   0xd   : > { %s6150_s11 = sshll.u32 %s6145_s10, 4  ;;  %v7158_v0 = vmov 1   ;;  %v7159_v7 = vmov 0   ;;  %v2240_v17 = vld [vmem:[%s12522_s3] sm:$0xff]  ;;  %v2241_v18 = vld [vmem:[%s12522_s3 + $0x8] sm:$0xff]  ;;  %v2242_v21 = vld [vmem:[%s12522_s3 + $0x10] sm:$0xff]  ;;  %v434_v42 = vlaneseq }
   0xe   : > { %6938 = vset.pattern.permute.xlu0 %v7158_v0  ;;  %6936 = vset.pattern.permute.xlu1 %v7158_v0  ;;  %p325_p3 = scmp.lt.s32.totalorder %s6150_s11, 31  ;;  %v6616_v19 = vpack.c.bf16 %v2241_v18, %v2240_v17  ;;  %v2243_v22 = vld [vmem:[%s12522_s3 + $0x18] sm:$0xff]  ;;  %v2244_v24 = vld [vmem:[%s12522_s3 + $0x20] sm:$0xff]  ;;  %v2245_v25 = vld [vmem:[%s12522_s3 + $0x28] sm:$0xff] }
   0xf   : > { %v6620_v23 = vpack.c.bf16 %v2243_v22, %v2242_v21  ;;  %v6624_v26 = vpack.c.bf16 %v2245_v25, %v2244_v24  ;;  %v2246_v27 = vld [vmem:[%s12522_s3 + $0x30] sm:$0xff]  ;;  %v2247_v28 = vld [vmem:[%s12522_s3 + $0x38] sm:$0xff]  ;;  %v2248_v30 = vld [vmem:[%s12522_s3 + $0x40] sm:$0xff]  ;;  %v435_v45 = vshrl.u32 %v434_v42, 7 }
  0x10   : > { %s13117_s11 = smov (!%p325_p3, %s6150_s11), 31  ;;  %6617 = vmatprep.subr.bf16.mxu0 %v6616_v19  ;;  %v6628_v29 = vpack.c.bf16 %v2247_v28, %v2246_v27  ;;  %v2249_v31 = vld [vmem:[%s12522_s3 + $0x48] sm:$0xff]  ;;  %v2250_v33 = vld [vmem:[%s12522_s3 + $0x50] sm:$0xff]  ;;  %v2251_v34 = vld [vmem:[%s12522_s3 + $0x58] sm:$0xff] }
  0x11   : > { %s6151_s12 = sshll.u32 %s13117_s11, 3  ;;  %6619 = vmatpush3.bf16.msra.mxu0 %v6616_v19  ;;  %v6632_v32 = vpack.c.bf16 %v2249_v31, %v2248_v30  ;;  %v6636_v35 = vpack.c.bf16 %v2251_v34, %v2250_v33  ;;  %v2252_v36 = vld [vmem:[%s12522_s3 + $0x60] sm:$0xff]  ;;  %v2253_v37 = vld [vmem:[%s12522_s3 + $0x68] sm:$0xff]  ;;  %v2254_v39 = vld [vmem:[%s12522_s3 + $0x70] sm:$0xff]  ;;  %v436_v48 = vsub.s32 0, %v435_v45  ;;  %v542_v52 = vsub.s32 1, %v435_v45 }
  0x12   : > { %s7234_s15 = scalar_lea.vmem %s12519_s0, %s6151_s12  ;;  %6621 = vmatprep.subr.bf16.mxu0 %v6620_v23  ;;  %v6640_v38 = vpack.c.bf16 %v2253_v37, %v2252_v36  ;;  %v2255_v40 = vld [vmem:[%s12522_s3 + $0x78] sm:$0xff]  ;;  %v352_v50 = vld [vmem:[%s12520_s1] sm:$0x3]  ;;  %s12482_s24 = scalar_lea.vmem %s12528_s9, %s6151_s12 }
  0x13   : > { %v338_v1 = vld [vmem:[%s7234_s15 + $0x10] sm:$0xff]  ;;  %v336_v2 = vld [vmem:[%s7234_s15] sm:$0xff]  ;;  %v337_v4 = vld [vmem:[%s7234_s15 + $0x8] sm:$0xff]  ;;  %v6644_v41 = vpack.c.bf16 %v2255_v40, %v2254_v39  ;;  %v7315_v53 = vrot.slane %v352_v50, %v436_v48  ;;  %v7317_v55 = vrot.slane %v352_v50, %v542_v52 }
  0x14   : > { %485 = vperm.xlu0 %6938, %v338_v1   ;;  %477 = vperm.xlu1 %6936, %v336_v2   ;;  %v342_v3 = vld [vmem:[%s7234_s15 + $0x30] sm:$0xff]  ;;  %v339_v6 = vld [vmem:[%s7234_s15 + $0x18] sm:$0xff]  ;;  %v340_v8 = vld [vmem:[%s7234_s15 + $0x20] sm:$0xff] }
  0x15   : > { %v346_v5 = vld [vmem:[%s7234_s15 + $0x50] sm:$0xff]  ;;  %v341_v9 = vld [vmem:[%s7234_s15 + $0x28] sm:$0xff]  ;;  %v343_v11 = vld [vmem:[%s7234_s15 + $0x38] sm:$0xff]  ;;  %6623 = vmatpush3.bf16.msra.mxu0 %v6620_v23 }
  0x16   : > { %v345_v10 = vld [vmem:[%s7234_s15 + $0x48] sm:$0xff]  ;;  %v344_v13 = vld [vmem:[%s7234_s15 + $0x40] sm:$0xff]  ;;  %v350_v14 = vld [vmem:[%s7234_s15 + $0x70] sm:$0xff]  ;;  %6625 = vmatprep.subr.bf16.mxu0 %v6624_v26 }
  0x17   : > { %v349_v12 = vld [vmem:[%s7234_s15 + $0x68] sm:$0xff]  ;;  %v347_v15 = vld [vmem:[%s7234_s15 + $0x58] sm:$0xff]  ;;  %v348_v16 = vld [vmem:[%s7234_s15 + $0x60] sm:$0xff] }
  0x18   : > { %501 = vperm.xlu0 %6938, %v342_v3   ;;  %481 = vperm.xlu1 %6936, %v337_v4   ;;  %v351_v20 = vld [vmem:[%s7234_s15 + $0x78] sm:$0xff]  ;;  %v7323_v58 = vld [vmem:[%s12521_s2] ss:$0 sm:$0xff] }
  0x19   : > { %6627 = vmatpush3.bf16.msra.mxu0 %v6624_v26 }
  0x1a   : > { %6629 = vmatprep.subr.bf16.mxu0 %v6628_v29 }
  0x1c   : > { %517 = vperm.xlu0 %6938, %v346_v5   ;;  %6937 = vset.pattern.permute.xlu1 %v7159_v7 }
  0x1d   : > { %371 = vperm.xlu1 %6937, %v339_v6   ;;  %6631 = vmatpush3.bf16.msra.mxu0 %v6628_v29 }
  0x1e   : > { %6633 = vmatprep.subr.bf16.mxu0 %v6632_v32 }
  0x20   : > { %6947 = vset.pattern.permute.xlu0 %v7159_v7 }
  0x21   : > { %356 = vperm.xlu0 %6947, %v336_v2   ;;  %6939 = vset.pattern.permute.xlu1 %v7158_v0 }
  0x22   : > { %489 = vperm.xlu1 %6939, %v339_v6   ;;  %6635 = vmatpush3.bf16.msra.mxu0 %v6632_v32 }
  0x23   : > { %6637 = vmatprep.subr.bf16.mxu0 %v6636_v35 }
  0x25   : > { %361 = vperm.xlu0 %6947, %v337_v4  }
  0x26   : > { %6940 = vset.pattern.permute.xlu1 %v7159_v7  ;;  %6639 = vmatpush3.bf16.msra.mxu0 %v6636_v35 }
  0x27   : > { %376 = vperm.xlu1 %6940, %v340_v8   ;;  %6641 = vmatprep.subr.bf16.mxu0 %v6640_v38 }
  0x29   : > { %366 = vperm.xlu0 %6947, %v338_v1  }
  0x2a   : > { %6643 = vmatpush3.bf16.msra.mxu0 %v6640_v38 }
  0x2b   : > { %6941 = vset.pattern.permute.xlu1 %v7158_v0  ;;  %6645 = vmatprep.subr.bf16.mxu0 %v6644_v41 }
  0x2c   : > { %493 = vperm.xlu1 %6941, %v340_v8  }
  0x2d   : > { %381 = vperm.xlu0 %6947, %v341_v9  }
  0x2e   : > { %6647 = vmatpush3.bf16.msra.mxu0 %v6644_v41 }
  0x30   : > { %497 = vperm.xlu1 %6941, %v341_v9  }
  0x31   : > { %386 = vperm.xlu0 %6947, %v342_v3  }
  0x34   : > { %6942 = vset.pattern.permute.xlu1 %v7159_v7 }
  0x35   : > { %401 = vperm.xlu0 %6947, %v345_v10   ;;  %391 = vperm.xlu1 %6942, %v343_v11  }
  0x39   : > { %406 = vperm.xlu0 %6947, %v346_v5   ;;  %6943 = vset.pattern.permute.xlu1 %v7158_v0 }
  0x3a   : > { %505 = vperm.xlu1 %6943, %v343_v11  }
  0x3d   : > { %421 = vperm.xlu0 %6947, %v349_v12  }
  0x3e   : > { %6944 = vset.pattern.permute.xlu1 %v7159_v7 }
  0x3f   : > { %396 = vperm.xlu1 %6944, %v344_v13  }
  0x41   : > { %426 = vperm.xlu0 %6947, %v350_v14  }
  0x43   : > { %6945 = vset.pattern.permute.xlu1 %v7158_v0 }
  0x44   : > { %509 = vperm.xlu1 %6945, %v344_v13  }
  0x45   : > { %6952 = vset.pattern.permute.xlu0 %v7158_v0 }
  0x46   : > { %533 = vperm.xlu0 %6952, %v350_v14  }
  0x48   : > { %513 = vperm.xlu1 %6945, %v345_v10  }
  0x4c   : > { %6946 = vset.pattern.permute.xlu1 %v7159_v7 }
  0x4d   : > { %411 = vperm.xlu1 %6946, %v347_v15  }
  0x51   : > { %6948 = vset.pattern.permute.xlu1 %v7158_v0 }
  0x52   : > { %521 = vperm.xlu1 %6948, %v347_v15  }
  0x56   : > { %6949 = vset.pattern.permute.xlu1 %v7159_v7 }
  0x57   : > { %416 = vperm.xlu1 %6949, %v348_v16  }
  0x5b   : > { %6950 = vset.pattern.permute.xlu1 %v7158_v0 }
  0x5c   : > { %525 = vperm.xlu1 %6950, %v348_v16  }
  0x60   : > { %529 = vperm.xlu1 %6950, %v349_v12  }
  0x64   : > { %6951 = vset.pattern.permute.xlu1 %v7159_v7 }
  0x65   : > { %431 = vperm.xlu1 %6951, %v351_v20  }
  0x69   : > { %6953 = vset.pattern.permute.xlu1 %v7158_v0 }
  0x6a   : > { %537 = vperm.xlu1 %6953, %v351_v20  }
  0x93   : > { %v478_v43 = vpop.permute.xlu1 %477  ;;  %v486_v44 = vpop.permute.xlu0 %485 }
  0x94   : > { %v544_v3 = vmul.f32 %v7317_v55, %v478_v43  ;;  %v546_v23 = vmul.f32 %v7317_v55, %v486_v44 }
  0x97   : > { %v482_v46 = vpop.permute.xlu1 %481  ;;  %v7308_v47 = vpop.permute.xlu0 %501 }
  0x98   : > { %v545_v17 = vmul.f32 %v7317_v55, %v482_v46 }
  0x9b   : > { %v7310_v49 = vpop.permute.xlu0 %517 }
  0x9c   : > { %v372_v51 = vpop.permute.xlu1 %371 }
  0x9d   : > { %v441_v56 = vmul.f32 %v7315_v53, %v372_v51 }
  0x9f   : > { %v463_v62 = vadd.f32 %v7323_v58, %v441_v56 }
  0xa0   : > { %v357_v54 = vpop.permute.xlu0 %356 }
  0xa1   : > { %v490_v57 = vpop.permute.xlu1 %489  ;;  %v438_v59 = vmul.f32 %v7315_v53, %v357_v54 }
  0xa2   : > { %v547_v60 = vmul.f32 %v7317_v55, %v490_v57 }
  0xa3   : > { %v460_v0 = vadd.f32 %v7323_v58, %v438_v59 }
  0xa4   : > { %v362_v61 = vpop.permute.xlu0 %361  ;;  %v7329_v1 = vadd.f32 %v547_v60, %v463_v62  ;;  %v550_v62 = vmul.f32 %v7317_v55, %v7308_v47 }
  0xa5   : > { %v7332_v4 = vadd.f32 %v544_v3, %v460_v0  ;;  %v439_v6 = vmul.f32 %v7315_v53, %v362_v61 }
  0xa6   : > { %v377_v63 = vpop.permute.xlu1 %376  ;;  %v891_v5 = vand.u32 2139095040, %v7329_v1 }
  0xa7   : > { %v442_v9 = vmul.f32 %v7315_v53, %v377_v63  ;;  %v579_v10 = vand.u32 2139095040, %v7332_v4  ;;  %v461_v12 = vadd.f32 %v7323_v58, %v439_v6  ;;  %v12529_v41 = vand.u32 2147483647, %v7332_v4 }
  0xa8   : > { %v367_v2 = vpop.permute.xlu0 %366  ;;  %v892_v11 = vshrl.u32 %v891_v5, 23 }
  0xa9   : > { %v440_v14 = vmul.f32 %v7315_v53, %v367_v2  ;;  %v464_v19 = vadd.f32 %v7323_v58, %v442_v9  ;;  %v580_v20 = vshrl.u32 %v579_v10, 23  ;;  %v7344_v22 = vadd.f32 %v545_v17, %v461_v12 }
  0xaa   : > { %v6167_v21 = vadd.s32 4294967169, %v892_v11  ;;  %v583_v56 = vand.u32 8388607, %v12529_v41  ;;  %v554_v17 = vmul.f32 %v7317_v55, %v7310_v49 }
  0xab   : > { %v494_v7 = vpop.permute.xlu1 %493  ;;  %v462_v24 = vadd.f32 %v7323_v58, %v440_v14  ;;  %v6155_v30 = vadd.s32 4294967169, %v580_v20  ;;  %v683_v32 = vand.u32 2139095040, %v7344_v22 }
  0xac   : > { %v382_v8 = vpop.permute.xlu0 %381  ;;  %v548_v15 = vmul.f32 %v7317_v55, %v494_v7  ;;  %v898_v31 = vadd.s32 1, %v6167_v21  ;;  %v584_v9 = vor.u32 8388608, %v583_v56 }
  0xad   : > { %v443_v18 = vmul.f32 %v7315_v53, %v382_v8  ;;  %v7355_v33 = vadd.f32 %v546_v23, %v462_v24  ;;  %v586_v39 = vadd.s32 1, %v6155_v30  ;;  %v684_v40 = vshrl.u32 %v683_v32, 23 }
  0xae   : > { %v7348_v25 = vadd.f32 %v548_v15, %v464_v19  ;;  %vm899_vm0 = vcmp.gt.s32.totalorder %v898_v31, 0 }
  0xaf   : > { %v498_v13 = vpop.permute.xlu1 %497  ;;  %v465_v28 = vadd.f32 %v7323_v58, %v443_v18  ;;  %v787_v42 = vand.u32 2139095040, %v7355_v33  ;;  %vm587_vm1 = vcmp.gt.s32.totalorder %v586_v39, 0  ;;  %v900_v54 = vsel %vm899_vm0, %v898_v31, 0 }
  0xb0   : > { %v387_v16 = vpop.permute.xlu0 %386  ;;  %v549_v29 = vmul.f32 %v7317_v55, %v498_v13  ;;  %v995_v34 = vand.u32 2139095040, %v7348_v25  ;;  %v6159_v57 = vadd.s32 4294967169, %v684_v40  ;;  %v588_v6 = vsel %vm587_vm1, %v586_v39, 0 }
  0xb1   : > { %v444_v50 = vmul.f32 %v7315_v53, %v387_v16  ;;  %v788_v59 = vshrl.u32 %v787_v42, 23  ;;  %v7379_v7 = vand.u32 31, %v900_v54  ;;  %v7400_v30 = vshrl.u32 %v900_v54, 5 }
  0xb2   : > { %v7358_v36 = vadd.f32 %v549_v29, %v465_v28  ;;  %v996_v43 = vshrl.u32 %v995_v34, 23  ;;  %v690_v10 = vadd.s32 1, %v6159_v57  ;;  %v7398_v29 = vshrl.u32 %v588_v6, 5 }
  0xb3   : > { %v466_v0 = vadd.f32 %v7323_v58, %v444_v50  ;;  %v6163_v11 = vadd.s32 4294967169, %v788_v59  ;;  %v7391_v21 = vsub.s32 32, %v7379_v7  ;;  %v7408_v42 = vand.u32 31, %v588_v6 }
  0xb4   : > { %v7350_v26 = vpop.permute.xlu0 %401  ;;  %v392_v27 = vpop.permute.xlu1 %391  ;;  %12724 = vst [vmem:[#allocation2_spill] sm:$0xff] %v7358_v36  ;;  %v1099_v48 = vand.u32 2139095040, %v7358_v36  ;;  %v6171_v60 = vadd.s32 4294967169, %v996_v43  ;;  %vm691_vm3 = vcmp.gt.s32.totalorder %v690_v10, 0  ;;  %v12530_v43 = vmov 2102212464  }
  0xb5   : > { %v445_v38 = vmul.f32 %v7315_v53, %v392_v27  ;;  %v7382_v47 = vadd.f32 %v550_v62, %v466_v0  ;;  %v7395_v27 = vshll.u32 %v584_v9, 8  ;;  %v794_v32 = vadd.s32 1, %v6163_v11 }
  0xb6   : > { %v1100_v63 = vshrl.u32 %v1099_v48, 23  ;;  %v1002_v12 = vadd.s32 1, %v6171_v60  ;;  %v692_v56 = vsel %vm691_vm3, %v690_v10, 0  ;;  %vm923_vm6 = vcmp.lt.s32.totalorder %v7400_v30, 4 }
  0xb7   : > { %v467_v44 = vadd.f32 %v7323_v58, %v445_v38  ;;  %12726 = vst [vmem:[#allocation4_spill] sm:$0xff] %v7382_v47  ;;  %vm795_vm4 = vcmp.gt.s32.totalorder %v794_v32, 0  ;;  %v7430_v6 = vand.u32 31, %v692_v56  ;;  %vm608_vm3 = vcmp.lt.s32.totalorder %v7398_v29, 1 }
  0xb8   : > { %v407_v35 = vpop.permute.xlu0 %406  ;;  %v6175_v14 = vadd.s32 4294967169, %v1100_v63  ;;  %vm1003_vm2 = vcmp.gt.s32.totalorder %v1002_v12, 0  ;;  %v447_v63 = vmul.f32 %v7315_v53, %v7350_v26  ;;  %v796_v26 = vsel %vm795_vm4, %v794_v32, 0 }
  0xb9   : > { %v506_v37 = vpop.permute.xlu1 %505  ;;  %v448_v61 = vmul.f32 %v7315_v53, %v407_v35  ;;  %v1203_v35 = vand.u32 2139095040, %v7382_v47  ;;  %v1004_v50 = vsel %vm1003_vm2, %v1002_v12, 0  ;;  %vm611_vm4 = vcmp.lt.s32.totalorder %v7398_v29, 4 }
  0xba   : > { %v551_v45 = vmul.f32 %v7317_v55, %v506_v37  ;;  %v1106_v34 = vadd.s32 1, %v6175_v14  ;;  %v7421_v62 = vand.u32 31, %v1004_v50 }
  0xbb   : > { %v470_v13 = vadd.f32 %v7323_v58, %v448_v61  ;;  %v1204_v61 = vshrl.u32 %v1203_v35, 23  ;;  %v7458_v35 = vand.u32 31, %v796_v26 }
  0xbc   : > { %v7365_v46 = vpop.permute.xlu0 %421  ;;  %v7369_v51 = vadd.f32 %v551_v45, %v467_v44  ;;  %v914_v44 = vshll.u32 %v12530_v43, %v7379_v7  ;;  %v12538_v45 = vmov 920167782   ;;  %vm1107_vm5 = vcmp.gt.s32.totalorder %v1106_v34, 0 }
  0xbd   : > { %v7402_v49 = vadd.f32 %v554_v17, %v470_v13  ;;  %v915_v48 = vshrl.u32 %v12538_v45, %v7391_v21  ;;  %v917_v60 = vshll.u32 %v12538_v45, %v7379_v7  ;;  %v1108_v10 = vsel %vm1107_vm5, %v1106_v34, 0 }
  0xbe   : > { %12725 = vst [vmem:[#allocation3_spill] sm:$0xff] %v7369_v51  ;;  %v397_v52 = vpop.permute.xlu1 %396  ;;  %v1307_v5 = vand.u32 2139095040, %v7369_v51  ;;  %v7434_v13 = vsub.s32 32, %v7408_v42  ;;  %v6179_v14 = vadd.s32 4294967169, %v1204_v61  ;;  %v7441_v17 = vsub.s32 32, %v7421_v62 }
  0xbf   : > { %v446_v2 = vmul.f32 %v7315_v53, %v397_v52  ;;  %12728 = vst [vmem:[#allocation6_spill] sm:$0xff] %v7402_v49  ;;  %v12532_v52 = vmov 1326507024   ;;  %v1619_v57 = vand.u32 2139095040, %v7402_v49  ;;  %v1018_v61 = vshll.u32 %v12530_v43, %v7421_v62 }
  0xc0   : > { %v427_v3 = vpop.permute.xlu0 %426  ;;  %v1308_v18 = vshrl.u32 %v1307_v5, 23  ;;  %v918_v54 = vshrl.u32 %v12532_v52, %v7391_v21  ;;  %v7427_v5 = vor.u32 %v915_v48, %v914_v44  ;;  %vm610_vm5 = vcmp.lt.s32.totalorder %v7398_v29, 3 }
  0xc1   : > { %v468_v15 = vadd.f32 %v7323_v58, %v446_v2  ;;  %v452_v19 = vmul.f32 %v7315_v53, %v427_v3  ;;  %v1620_v11 = vshrl.u32 %v1619_v57, 23  ;;  %v7465_v57 = vshrl.u32 %v1004_v50, 5 }
  0xc2   : > { %v6183_v37 = vadd.s32 4294967169, %v1308_v18  ;;  %v919_v9 = vor.u32 %v918_v54, %v917_v60  ;;  %v469_v18 = vadd.f32 %v7323_v58, %v447_v63  ;;  %v1022_v60 = vshrl.u32 %v12532_v52, %v7441_v17 }
  0xc3   : > { %v510_v8 = vpop.permute.xlu1 %509  ;;  %v474_v38 = vadd.f32 %v7323_v58, %v452_v19  ;;  %v7447_v19 = vsel %vm923_vm6, %v7427_v5, 920167782  ;;  %12732 = vst [vmem:[#allocation10_spill] sm:$0xff] %v7465_v57  ;;  %vm1027_vm10 = vcmp.lt.s32.totalorder %v7465_v57, 4 }
  0xc4   : > { %v552_v16 = vmul.f32 %v7317_v55, %v510_v8  ;;  %v1314_v0 = vadd.s32 1, %v6183_v37  ;;  %v7456_v34 = vsel %vm923_vm6, %v919_v9, 1326507024  ;;  %v6195_v37 = vadd.s32 4294967169, %v1620_v11 }
  0xc5   : > { %v534_v24 = vpop.permute.xlu0 %533  ;;  %v7483_v11 = vsub.s32 32, %v7458_v35 }
  0xc6   : > { %v7393_v23 = vadd.f32 %v552_v16, %v468_v15  ;;  %v558_v40 = vmul.f32 %v7317_v55, %v534_v24  ;;  %v7438_v16 = vshrl.u32 %v692_v56, 5  ;;  %vm1315_vm7 = vcmp.gt.s32.totalorder %v1314_v0, 0 }
  0xc7   : > { %v514_v31 = vpop.permute.xlu1 %513  ;;  %v7450_v24 = vsub.s32 32, %v7430_v6  ;;  %v1316_v44 = vsel %vm1315_vm7, %v1314_v0, 0  ;;  %v7463_v56 = vshrl.u32 %v796_v26, 5  ;;  %v1626_v50 = vadd.s32 1, %v6195_v37 }
  0xc8   : > { %12727 = vst [vmem:[#allocation5_spill] sm:$0xff] %v7393_v23  ;;  %v1411_v39 = vand.u32 2139095040, %v7393_v23  ;;  %v7425_v2 = vadd.f32 %v558_v40, %v474_v38  ;;  %v553_v12 = vmul.f32 %v7317_v55, %v514_v31  ;;  %v7452_v31 = vand.u32 31, %v1108_v10 }
  0xc9   : > { %v1210_v40 = vadd.s32 1, %v6179_v14  ;;  %vm1627_vm11 = vcmp.gt.s32.totalorder %v1626_v50, 0  ;;  %v12752_v23 = vmov 920167782   ;;  %vm609_vm7 = vcmp.lt.s32.totalorder %v7398_v29, 2 }
  0xca   : > { %v1412_v59 = vshrl.u32 %v1411_v39, 23  ;;  %12729 = vst [vmem:[#allocation7_spill] sm:$0xff] %v7425_v2  ;;  %v2035_v15 = vand.u32 2139095040, %v7425_v2  ;;  %12730 = vst [vmem:[#allocation8_spill] sm:$0xff] %v7452_v31  ;;  %v7460_v38 = vadd.f32 %v553_v12, %v469_v18  ;;  %v7474_v63 = vsub.s32 32, %v7452_v31 }
  0xcb   : > { %vm1211_vm9 = vcmp.gt.s32.totalorder %v1210_v40, 0  ;;  %v451_v18 = vmul.f32 %v7315_v53, %v7365_v46  ;;  %v1122_v46 = vshll.u32 %v12530_v43, %v7452_v31 }
  0xcc   : > { %v412_v3 = vpop.permute.xlu1 %411  ;;  %v6187_v8 = vadd.s32 4294967169, %v1412_v59  ;;  %12731 = vst [vmem:[#allocation9_spill] sm:$0xff] %v7460_v38  ;;  %v2036_v48 = vshrl.u32 %v2035_v15, 23  ;;  %v1019_v59 = vshrl.u32 %v12538_v45, %v7441_v17  ;;  %12733 = vst [vmem:[#allocation11_spill] sm:$0xff] %v7474_v63  ;;  %v1515_v9 = vand.u32 2139095040, %v7460_v38 }
  0xcd   : > { %v449_v54 = vmul.f32 %v7315_v53, %v412_v3  ;;  %v1021_v3 = vshll.u32 %v12538_v45, %v7421_v62  ;;  %v1123_v37 = vshrl.u32 %v12538_v45, %v7474_v63  ;;  %v1126_v20 = vshrl.u32 %v12532_v52, %v7474_v63 }
  0xce   : > { %v1418_v32 = vadd.s32 1, %v6187_v8  ;;  %v7479_v8 = vand.u32 31, %v1316_v44  ;;  %v6211_v12 = vadd.s32 4294967169, %v2036_v48  ;;  %v7486_v14 = vor.u32 %v1019_v59, %v1018_v61 }
  0xcf   : > { %v471_v26 = vadd.f32 %v7323_v58, %v449_v54  ;;  %v1023_v15 = vor.u32 %v1022_v60, %v1021_v3  ;;  %v1212_v48 = vsel %vm1211_vm9, %v1210_v40, 0  ;;  %v1516_v59 = vshrl.u32 %v1515_v9, 23 }
  0xd0   : > { %vm1419_vm8 = vcmp.gt.s32.totalorder %v1418_v32, 0  ;;  %12734 = vst [vmem:[#allocation12_spill] sm:$0xff] %v7479_v8  ;;  %12735 = vst [vmem:[#allocation13_spill] sm:$0xff] %v7486_v14  ;;  %v7498_v54 = vsub.s32 32, %v7479_v8  ;;  %v7500_v60 = vshrl.u32 %v1108_v10, 5  ;;  %v2042_v61 = vadd.s32 1, %v6211_v12 }
  0xd1   : > { %v522_v39 = vpop.permute.xlu1 %521  ;;  %v7509_v3 = vsel %vm1027_vm10, %v7486_v14, 920167782  ;;  %v7513_v40 = vsel %vm1027_vm10, %v1023_v15, 1326507024  ;;  %v7518_v10 = vadd.f32 %v7323_v58, %v451_v18  ;;  %v7520_v9 = vor.u32 %v1123_v37, %v1122_v46 }
  0xd2   : > { %v555_v0 = vmul.f32 %v7317_v55, %v522_v39  ;;  %v1420_v39 = vsel %vm1419_vm8, %v1418_v32, 0  ;;  %12737 = vst [vmem:[#allocation15_spill] sm:$0xff] %v7498_v54  ;;  %12738 = vst [vmem:[#allocation16_spill] sm:$0xff] %v7500_v60  ;;  %v1628_v12 = vsel %vm1627_vm11, %v1626_v50, 0  ;;  %v1331_v52 = vshrl.u32 %v12538_v45, %v7498_v54 }
  0xd3   : > { %v7504_v32 = vand.u32 31, %v1420_v39  ;;  %12740 = vst [vmem:[#allocation18_spill] sm:$0xff] %v7509_v3  ;;  %12741 = vst [vmem:[#allocation19_spill] sm:$0xff] %v7513_v40  ;;  %v6191_v2 = vadd.s32 4294967169, %v1516_v59  ;;  %v12540_v15 = vmov 683565275  }
  0xd4   : > { %v7495_v41 = vadd.f32 %v555_v0, %v471_v26  ;;  %v1125_v0 = vshll.u32 %v12538_v45, %v7452_v31  ;;  %12742 = vst [vmem:[#allocation20_spill] sm:$0xff] %v7520_v9  ;;  %v7522_v26 = vand.u32 31, %v1212_v48  ;;  %v7529_v49 = vshrl.u32 %v12540_v15, %v7434_v13 }
  0xd5   : > { %12739 = vst [vmem:[#allocation17_spill] sm:$0xff] %v7504_v32  ;;  %vm1131_vm12 = vcmp.lt.s32.totalorder %v7500_v60, 4  ;;  %v12744_v18 = vmov 1326507024   ;;  %v7535_v46 = vsub.s32 32, %v7504_v32  ;;  %vm2043_vm13 = vcmp.gt.s32.totalorder %v2042_v61, 0 }
  0xd6   : > { %12736 = vst [vmem:[#allocation14_spill] sm:$0xff] %v7495_v41  ;;  %12743 = vst [vmem:[#allocation21_spill] sm:$0xff] %v7522_v26  ;;  %v1723_v28 = vand.u32 2139095040, %v7495_v41  ;;  %v1127_v43 = vor.u32 %v1126_v20, %v1125_v0  ;;  %v1334_v37 = vshrl.u32 %v12744_v18, %v7498_v54  ;;  %v7537_v50 = vshrl.u32 %v1212_v48, 5  ;;  %v417_v15 = vpop.permute.xlu1 %416 }
  0xd7   : > { %12745 = vst [vmem:[#allocation22_spill] sm:$0xff] %v7535_v46  ;;  %v7539_v20 = vand.u32 31, %v1628_v12  ;;  %v7541_v0 = vshrl.u32 %v1316_v44, 5  ;;  %v12749_v59 = vmov 2102212464   ;;  %v7551_v38 = vsub.s32 32, %v7522_v26 }
  0xd8   : > { %12746 = vst [vmem:[#allocation23_spill] sm:$0xff] %v7537_v50  ;;  %v1330_v45 = vshll.u32 %v12749_v59, %v7479_v8  ;;  %v7548_v41 = vsel %vm1131_vm12, %v7520_v9, 920167782  ;;  %v1333_v48 = vshll.u32 %v12752_v23, %v7479_v8  ;;  %v1724_v54 = vshrl.u32 %v1723_v28, 23 }
  0xd9   : > { %12747 = vst [vmem:[#allocation24_spill] sm:$0xff] %v7539_v20  ;;  %12748 = vst [vmem:[#allocation25_spill] sm:$0xff] %v7541_v0  ;;  %v7557_v44 = vsel %vm1131_vm12, %v1127_v43, 1326507024  ;;  %v2044_v50 = vsel %vm2043_vm13, %v2042_v61, 0  ;;  %v1522_v47 = vadd.s32 1, %v6191_v2  ;;  %v603_v9 = vshrl.u32 %v12752_v23, %v7434_v13 }
  0xda   : > { %12750 = vst [vmem:[#allocation26_spill] sm:$0xff] %v7548_v41  ;;  %12751 = vst [vmem:[#allocation27_spill] sm:$0xff] %v7551_v38  ;;  %v7559_v51 = vor.u32 %v1331_v52, %v1330_v45  ;;  %v7561_v63 = vshrl.u32 %v1628_v12, 5  ;;  %v1335_v31 = vor.u32 %v1334_v37, %v1333_v48  ;;  %v1435_v41 = vshrl.u32 %v12752_v23, %v7535_v46 }
  0xdb   : > { %12753 = vst [vmem:[#allocation28_spill] sm:$0xff] %v7557_v44  ;;  %v12562_v26 = vmov 2475754826   ;;  %v7568_v28 = vsub.s32 32, %v7539_v20  ;;  %vm1339_vm14 = vcmp.lt.s32.totalorder %v7541_v0, 4  ;;  %v7571_v43 = vshrl.u32 %v1420_v39, 5 }
  0xdc   : > { %12754 = vst [vmem:[#allocation29_spill] sm:$0xff] %v7559_v51  ;;  %12755 = vst [vmem:[#allocation30_spill] sm:$0xff] %v7561_v63  ;;  %v594_v38 = vshrl.u32 %v12562_v26, %v7434_v13  ;;  %v1438_v45 = vshrl.u32 %v12744_v18, %v7535_v46  ;;  %v1434_v52 = vshll.u32 %v12749_v59, %v7504_v32  ;;  %v7577_v2 = vand.u32 31, %v2044_v50  ;;  %v526_v26 = vpop.permute.xlu1 %525 }
  0xdd   : > { %12756 = vst [vmem:[#allocation31_spill] sm:$0xff] %v7568_v28  ;;  %12757 = vst [vmem:[#allocation32_spill] sm:$0xff] %v7571_v43  ;;  %v6199_v61 = vadd.s32 4294967169, %v1724_v54  ;;  %v12759_v12 = vmov 683565275   ;;  %v1437_v39 = vshll.u32 %v12752_v23, %v7504_v32  ;;  %vm1523_vm15 = vcmp.gt.s32.totalorder %v1522_v47, 0 }
  0xde   : > { %12758 = vst [vmem:[#allocation33_spill] sm:$0xff] %v7577_v2  ;;  %v593_v37 = vshll.u32 %v12759_v12, %v7408_v42  ;;  %v7584_v48 = vsel %vm1339_vm14, %v7559_v51, 920167782  ;;  %v12576_v63 = vmov 2131351028   ;;  %v7594_v28 = vor.u32 %v1435_v41, %v1434_v52 }
  0xdf   : > { %12760 = vst [vmem:[#allocation34_spill] sm:$0xff] %v7584_v48  ;;  %v597_v20 = vshrl.u32 %v12576_v63, %v7434_v13  ;;  %v7592_v54 = vsel %vm1339_vm14, %v1335_v31, 1326507024  ;;  %v450_v46 = vmul.f32 %v7315_v53, %v417_v15  ;;  %v1439_v51 = vor.u32 %v1438_v45, %v1437_v39 }
  0xe0   : > { %12761 = vst [vmem:[#allocation35_spill] sm:$0xff] %v7592_v54  ;;  %12762 = vst [vmem:[#allocation36_spill] sm:$0xff] %v7594_v28  ;;  %v595_v8 = vor.u32 %v594_v38, %v593_v37  ;;  %vm1443_vm0 = vcmp.lt.s32.totalorder %v7571_v43, 4  ;;  %v12763_v32 = vmov 2475754826   ;;  %v7603_v63 = vsub.s32 32, %v7577_v2 }
  0xe1   : > { %v596_v48 = vshll.u32 %v12763_v32, %v7408_v42  ;;  %v1524_v0 = vsel %vm1523_vm15, %v1522_v47, 0  ;;  %v1730_v31 = vadd.s32 1, %v6199_v61  ;;  %v556_v41 = vmul.f32 %v7317_v55, %v526_v26 }
  0xe2   : > { %12764 = vst [vmem:[#allocation37_spill] sm:$0xff] %v7603_v63  ;;  %v7606_v52 = vshrl.u32 %v2044_v50, 5  ;;  %v600_v38 = vshrl.u32 %v12749_v59, %v7434_v13  ;;  %v602_v45 = vshll.u32 %v12749_v59, %v7408_v42  ;;  %v7615_v37 = vsel %vm1443_vm0, %v7594_v28, 920167782 }
  0xe3   : > { %v598_v15 = vor.u32 %v597_v20, %v596_v48  ;;  %12766 = vst [vmem:[#allocation39_spill] sm:$0xff] %v7615_v37  ;;  %v472_v39 = vadd.f32 %v7323_v58, %v450_v46  ;;  %v12767_v47 = vmov 2131351028   ;;  %v606_v26 = vshrl.u32 %v12744_v18, %v7434_v13 }
  0xe4   : > { %12765 = vst [vmem:[#allocation38_spill] sm:$0xff] %v7606_v52  ;;  %v599_v61 = vshll.u32 %v12767_v47, %v7408_v42  ;;  %v7624_v50 = vsel %vm1443_vm0, %v1439_v51, 1326507024  ;;  %v2058_v20 = vshll.u32 %v12749_v59, %v7577_v2  ;;  %v7628_v48 = vand.u32 31, %v1524_v0 }
  0xe5   : > { %12768 = vst [vmem:[#allocation40_spill] sm:$0xff] %v7624_v50  ;;  %v604_v54 = vor.u32 %v603_v9, %v602_v45  ;;  %v2059_v28 = vshrl.u32 %v12752_v23, %v7603_v63  ;;  %vm1731_vm1 = vcmp.gt.s32.totalorder %v1730_v31, 0  ;;  %v7632_v46 = vadd.f32 %v556_v41, %v472_v39  ;;  %v530_v50 = vpop.permute.xlu1 %529 }
  0xe6   : > { %12769 = vst [vmem:[#allocation41_spill] sm:$0xff] %v7628_v48  ;;  %v605_v37 = vshll.u32 %v12752_v23, %v7408_v42  ;;  %v2061_v13 = vshll.u32 %v12752_v23, %v7577_v2  ;;  %vm12612_vm2 = vcmp.lt.s32.totalorder %v7606_v52, 4  ;;  %v7639_v51 = vshrl.u32 %v1524_v0, 5 }
  0xe7   : > { %12770 = vst [vmem:[#allocation42_spill] sm:$0xff] %v7632_v46  ;;  %v601_v43 = vor.u32 %v600_v38, %v599_v61  ;;  %v2062_v9 = vshrl.u32 %v12744_v18, %v7603_v63  ;;  %v7646_v41 = vsub.s32 32, %v7628_v48  ;;  %v1732_v42 = vsel %vm1731_vm1, %v1730_v31, 0 }
  0xe8   : > { %v607_v45 = vor.u32 %v606_v26, %v605_v37  ;;  %v616_v39 = vsel %vm608_vm3, %v595_v8, %v598_v15  ;;  %v617_v0 = vsel %vm611_vm4, %v604_v54, 920167782  ;;  %v7652_v2 = vor.u32 %v2059_v28, %v2058_v20 }
  0xe9   : > { %12771 = vst [vmem:[#allocation43_spill] sm:$0xff] %v7646_v41  ;;  %v1827_v38 = vand.u32 2139095040, %v7632_v46  ;;  %v557_v37 = vmul.f32 %v7317_v55, %v530_v50  ;;  %v613_v61 = vsel %vm611_vm4, %v601_v43, 2102212464  ;;  %v618_v31 = vsel %vm610_vm5, %v601_v43, %v617_v0 }
  0xea   : > { %12772 = vst [vmem:[#allocation44_spill] sm:$0xff] %v7652_v2  ;;  %v620_v26 = vsel %vm608_vm3, %v598_v15, %v601_v43  ;;  %v2063_v63 = vor.u32 %v2062_v9, %v2061_v13  ;;  %v7662_v44 = vand.u32 31, %v1732_v42  ;;  %v619_v28 = vsel %vm609_vm7, %v616_v39, %v618_v31 }
  0xeb   : > { %v621_v50 = vsel %vm611_vm4, %v607_v45, 1326507024  ;;  %v1539_v20 = vshrl.u32 %v12752_v23, %v7646_v41  ;;  %v7671_v60 = vmul.u32.u64.low %v7395_v27, %v619_v28  ;;  %v7672_v36 = vmul.u32.u64.high %v7395_v27, %v619_v28, %v7671_v60 }
  0xec   : > { %12773 = vst [vmem:[#allocation45_spill] sm:$0xff] %v7662_v44  ;;  %v622_v46 = vsel %vm610_vm5, %v604_v54, %v621_v50  ;;  %v7677_v43 = vshrl.u32 %v12744_v18, %v7646_v41  ;;  %v612_v13 = vsel %vm608_vm3, %v7529_v49, %v595_v8  ;;  %v614_v9 = vsel %vm610_vm5, %v598_v15, %v613_v61 }
  0xed   : > { %v623_v45 = vsel %vm609_vm7, %v620_v26, %v622_v46  ;;  %v1828_v39 = vshrl.u32 %v1827_v38, 23  ;;  %v7685_v54 = vadd.f32 %v557_v37, %v7518_v10  ;;  %v7694_v28 = vsel %vm12612_vm2, %v7652_v2, 920167782 }
  0xee   : > { %v7688_v0 = vmul.u32.u64.low %v7395_v27, %v623_v45  ;;  %v7689_v31 = vmul.u32.u64.high %v7395_v27, %v623_v45, %v7688_v0  ;;  %12775 = vst [vmem:[#allocation47_spill] sm:$0xff] %v7694_v28  ;;  %v1538_v49 = vshll.u32 %v12749_v59, %v7628_v48  ;;  %v7700_v8 = vshll.u32 %v12752_v23, %v7628_v48  ;;  %v432_v28 = vpop.permute.xlu1 %431 }
  0xef   : > { %12774 = vst [vmem:[#allocation46_spill] sm:$0xff] %v7685_v54  ;;  %v7703_v15 = vsub.s32 32, %v7662_v44  ;;  %v7707_v10 = vsel %vm12612_vm2, %v2063_v63, 1326507024  ;;  %v7709_v46 = vshrl.u32 %v1732_v42, 5  ;;  %v615_v38 = vsel %vm609_vm7, %v612_v13, %v614_v9 }
  0xf0   : > { %12777 = vst [vmem:[#allocation49_spill] sm:$0xff] %v7707_v10  ;;  %v634_v37 = vadd.s32 1, %v7672_v36  ;;  %v7714_v61 = vor.u32 %v1539_v20, %v1538_v49  ;;  %v1746_v50 = vshll.u32 %v12749_v59, %v7662_v44  ;;  %v7722_v45 = vshll.u32 %v12752_v23, %v7662_v44 }
  0xf1   : > { %12776 = vst [vmem:[#allocation48_spill] sm:$0xff] %v7703_v15  ;;  %v6203_v63 = vadd.s32 4294967169, %v1828_v39  ;;  %v1931_v42 = vand.u32 2139095040, %v7685_v54  ;;  %v698_v29 = vshrl.u32 %v12763_v32, %v7450_v24  ;;  %v701_v20 = vshrl.u32 %v12767_v47, %v7450_v24 }
  0xf2   : > { %12778 = vst [vmem:[#allocation50_spill] sm:$0xff] %v7714_v61  ;;  %v1747_v13 = vshrl.u32 %v12752_v23, %v7703_v15  ;;  %v631_v9 = vmul.u32 %v7395_v27, %v615_v38  ;;  %vm633_vm8 = vc.u32 %v7689_v31, %v7671_v60  ;;  %v12779_v0 = vand.u32 2147483647, %v7344_v22 }
  0xf3   : > { %v635_v39 = vsel %vm633_vm8, %v634_v37, %v7672_v36  ;;  %v697_v26 = vshll.u32 %v12759_v12, %v7430_v6  ;;  %v700_v2 = vshll.u32 %v12763_v32, %v7430_v6  ;;  %v703_v10 = vshll.u32 %v12767_v47, %v7430_v6 }
  0xf4   : > { %v687_v49 = vand.u32 8388607, %v12779_v0  ;;  %v636_v52 = vadd.s32 %v635_v39, %v631_v9  ;;  %v704_v27 = vshrl.u32 %v12749_v59, %v7450_v24  ;;  %v706_v38 = vshll.u32 %v12749_v59, %v7430_v6 }
  0xf5   : > { %v707_v36 = vshrl.u32 %v12752_v23, %v7450_v24  ;;  %v699_v37 = vor.u32 %v698_v29, %v697_v26  ;;  %v702_v0 = vor.u32 %v701_v20, %v700_v2  ;;  %v709_v54 = vshll.u32 %v12752_v23, %v7430_v6 }
  0xf6   : > { %v710_v44 = vshrl.u32 %v12744_v18, %v7450_v24  ;;  %vm1547_vm9 = vcmp.lt.s32.totalorder %v7639_v51, 4  ;;  %v7756_v9 = vshrl.u32 %v12744_v18, %v7703_v15  ;;  %v637_v39 = vadd.s32 536870912, %v636_v52 }
  0xf7   : > { %v705_v41 = vor.u32 %v704_v27, %v703_v10  ;;  %v708_v48 = vor.u32 %v707_v36, %v706_v38  ;;  %v7758_v14 = vadd.s32 1, %v6203_v63  ;;  %v453_v26 = vmul.f32 %v7315_v53, %v432_v28 }
  0xf8   : > { %v688_v2 = vor.u32 8388608, %v687_v49  ;;  %v711_v29 = vor.u32 %v710_v44, %v709_v54  ;;  %v638_v20 = vshrl.u32 %v637_v39, 30  ;;  %v696_v6 = vshrl.u32 %v12759_v12, %v7450_v24 }
  0xf9   : > { %vm712_vm11 = vcmp.lt.s32.totalorder %v7438_v16, 1  ;;  %vm715_vm13 = vcmp.lt.s32.totalorder %v7438_v16, 4  ;;  %vm578_vm15 = vcmp.lt.s32.totalorder %v7332_v4, 0  ;;  %vm714_vm1 = vcmp.lt.s32.totalorder %v7438_v16, 3 }
  0xfa   : > { %v717_v10 = vsel %vm715_vm13, %v705_v41, 2102212464  ;;  %v720_v63 = vsel %vm712_vm11, %v699_v37, %v702_v0  ;;  %v721_v27 = vsel %vm715_vm13, %v708_v48, 920167782  ;;  %v639_v53 = vshll.u32 %v638_v20, 30 }
  0xfb   : > { %vm713_vm3 = vcmp.lt.s32.totalorder %v7438_v16, 2  ;;  %v722_v44 = vsel %vm714_vm1, %v705_v41, %v721_v27  ;;  %v724_v24 = vsel %vm712_vm11, %v702_v0, %v705_v41  ;;  %v1932_v54 = vshrl.u32 %v1931_v42, 23 }
  0xfc   : > { %v723_v28 = vsel %vm713_vm3, %v720_v63, %v722_v44  ;;  %v725_v49 = vsel %vm715_vm13, %v711_v29, 1326507024  ;;  %v728_v38 = vshll.u32 %v688_v2, 8  ;;  %v7774_v36 = vsub.s32 %v636_v52, %v639_v53  ;;  %v538_v52 = vpop.permute.xlu1 %537 }
  0xfd   : > { %v716_v39 = vsel %vm712_vm11, %v696_v6, %v699_v37  ;;  %v718_v15 = vsel %vm714_vm1, %v702_v0, %v717_v10  ;;  %v726_v40 = vsel %vm714_vm1, %v708_v48, %v725_v49  ;;  %v7778_v3 = vor.u32 %v1747_v13, %v1746_v50 }
  0xfe   : > { %v12781_v27 = vand.u32 2147483647, %v7332_v4  ;;  %v727_v41 = vsel %vm713_vm3, %v724_v24, %v726_v40  ;;  %v7788_v42 = vmul.u32.u64.low %v728_v38, %v723_v28  ;;  %v7789_v2 = vmul.u32.u64.high %v728_v38, %v723_v28, %v7788_v42 }
  0xff   : > { %12780 = vst [vmem:[#allocation51_spill] sm:$0xff] %v7778_v3  ;;  %v642_v37 = vsub.s32 0, %v7774_v36  ;;  %v662_v0 = vsub.s32 4, %v638_v20  ;;  %v7793_v48 = vmul.u32.u64.low %v728_v38, %v727_v41  ;;  %v7794_v50 = vmul.u32.u64.high %v728_v38, %v727_v41, %v7793_v48 }
 0x100   : > { %vm7782_vm4 = vcmp.le.f32.partialorder %v12781_v27, 0.7853982  ;;  %v7799_v13 = vsel %vm1547_vm9, %v7714_v61, 920167782  ;;  %vm1755_vm5 = vcmp.lt.s32.totalorder %v7709_v46, 4  ;;  %v719_v40 = vsel %vm713_vm3, %v716_v39, %v718_v15 }
 0x101   : > { %12784 = vst [vmem:[#allocation52_spill] sm:$0xff] %v7799_v13  ;;  %v12609_v29 = vand.u32 2147483647, %v7355_v33  ;;  %v12785_v6 = vor.u32 %v7677_v43, %v7700_v8  ;;  %v7815_v53 = vadd.f32 %v7323_v58, %v453_v26  ;;  %v6156_v44 = vmin.u32 %v642_v37, %v7774_v36 }
 0x102   : > { %v7821_v16 = vsel %vm1755_vm5, %v7778_v3, 920167782  ;;  %v7823_v15 = vadd.s32 4294967169, %v1932_v54  ;;  %v7826_v43 = vmul.f32 %v7317_v55, %v538_v52  ;;  %v738_v8 = vadd.s32 1, %v7789_v2 }
 0x103   : > { %v7810_v10 = vsel %vm1547_vm9, %v12785_v6, 1326507024  ;;  %12787 = vst [vmem:[#allocation54_spill] sm:$0xff] %v7821_v16  ;;  %vm1835_vm7 = vcmp.gt.s32.totalorder %v7758_v14, 0  ;;  %v644_v24 = vclz %v6156_v44  ;;  %v663_v58 = vsel %vm578_vm15, %v662_v0, %v638_v20 }
 0x104   : > { %12786 = vst [vmem:[#allocation53_spill] sm:$0xff] %v7810_v10  ;;  %v735_v26 = vmul.u32 %v728_v38, %v719_v40  ;;  %v801_v28 = vshll.u32 %v12759_v12, %v7458_v35  ;;  %vm737_vm8 = vc.u32 %v7794_v50, %v7788_v42  ;;  %v791_v54 = vand.u32 8388607, %v12609_v29 }
 0x105   : > { %v802_v55 = vshrl.u32 %v12763_v32, %v7483_v11  ;;  %v804_v49 = vshll.u32 %v12763_v32, %v7458_v35  ;;  %v6157_v39 = vadd.s32 4294967294, %v644_v24  ;;  %v739_v27 = vsel %vm737_vm8, %v738_v8, %v7789_v2 }
 0x106   : > { %v805_v20 = vshrl.u32 %v12767_v47, %v7483_v11  ;;  %v807_v38 = vshll.u32 %v12767_v47, %v7458_v35  ;;  %v740_v41 = vadd.s32 %v739_v27, %v735_v26  ;;  %v808_v52 = vshrl.u32 %v12749_v59, %v7483_v11 }
 0x107   : > { %v810_v37 = vshll.u32 %v12749_v59, %v7458_v35  ;;  %v811_v0 = vshrl.u32 %v12752_v23, %v7483_v11  ;;  %v632_v48 = vadd.s32 %v7671_v60, %v7689_v31  ;;  %vm6158_vm11 = vcmp.lt.s32.totalorder %v6157_v39, 0 }
 0x108   : > { %v665_v2 = vsel %vm7782_vm4, 0, %v663_v58  ;;  %v800_v40 = vshrl.u32 %v12759_v12, %v7483_v11  ;;  %v647_v6 = vsel %vm6158_vm11, 0, %v6157_v39  ;;  %v741_v44 = vadd.s32 536870912, %v740_v41 }
 0x109   : > { %v813_v8 = vshll.u32 %v12752_v23, %v7458_v35  ;;  %v814_v24 = vshrl.u32 %v12744_v18, %v7483_v11  ;;  %v648_v26 = vsub.s32 32, %v647_v6  ;;  %v652_v27 = vsub.s32 4294967266, %v647_v6 }
 0x10a   : > { %v809_v29 = vor.u32 %v808_v52, %v807_v38  ;;  %v812_v63 = vor.u32 %v811_v0, %v810_v37  ;;  %v742_v60 = vshrl.u32 %v741_v44, 30  ;;  %v792_v31 = vor.u32 8388608, %v791_v54 }
 0x10b   : > { %v803_v16 = vor.u32 %v802_v55, %v801_v28  ;;  %v806_v3 = vor.u32 %v805_v20, %v804_v49  ;;  %v649_v58 = vshll.u32 %v7774_v36, %v647_v6  ;;  %v650_v61 = vshrl.u32 %v632_v48, %v648_v26 }
 0x10c   : > { %v653_v10 = vadd.s32 127, %v652_v27  ;;  %vm819_vm13 = vcmp.lt.s32.totalorder %v7463_v56, 4  ;;  %v743_v39 = vshll.u32 %v742_v60, 30  ;;  %v815_v13 = vor.u32 %v814_v24, %v813_v8 }
 0x10d   : > { %vm816_vm1 = vcmp.lt.s32.totalorder %v7463_v56, 1  ;;  %vm818_vm3 = vcmp.lt.s32.totalorder %v7463_v56, 3  ;;  %v651_v35 = vor.u32 %v650_v61, %v649_v58  ;;  %vm682_vm8 = vcmp.lt.s32.totalorder %v7344_v22, 0 }
 0x10e   : > { %v654_v11 = vshll.u32 %v653_v10, 23  ;;  %v821_v28 = vsel %vm819_vm13, %v809_v29, 2102212464  ;;  %v825_v36 = vsel %vm819_vm13, %v812_v63, 920167782  ;;  %v7875_v54 = vsel %vm1835_vm7, %v7758_v14, 0 }
 0x10f   : > { %v669_v55 = vadd.s32 3, %v665_v2  ;;  %v7877_v49 = vsub.s32 %v740_v41, %v743_v39  ;;  %vm817_vm11 = vcmp.lt.s32.totalorder %v7463_v56, 2  ;;  %v820_v10 = vsel %vm816_vm1, %v800_v40, %v803_v16 }
 0x110   : > { %v655_v61 = vor.u32 4788187, %v654_v11  ;;  %v824_v20 = vsel %vm816_vm1, %v803_v16, %v806_v3  ;;  %v826_v38 = vsel %vm818_vm3, %v809_v29, %v825_v36  ;;  %v822_v14 = vsel %vm818_vm3, %v806_v3, %v821_v28 }
 0x111   : > { %v746_v52 = vsub.s32 0, %v7877_v49  ;;  %v828_v41 = vsel %vm816_vm1, %v806_v3, %v809_v29  ;;  %v829_v37 = vsel %vm819_vm13, %v815_v13, 1326507024  ;;  %v658_v48 = vcvt.s32.f32 %v651_v35 }
 0x112   : > { %v656_v0 = vand.u32 2147483647, %v655_v61  ;;  %v830_v2 = vsel %vm818_vm3, %v812_v63, %v829_v37  ;;  %v832_v16 = vshll.u32 %v792_v31, 8  ;;  %v766_v6 = vsub.s32 4, %v742_v60 }
 0x113   : > { %v6160_v40 = vmin.u32 %v746_v52, %v7877_v49  ;;  %v827_v44 = vsel %vm817_vm11, %v824_v20, %v826_v38  ;;  %v831_v8 = vsel %vm817_vm11, %v828_v41, %v830_v2  ;;  %v12788_v3 = vor.u32 %v7756_v9, %v7722_v45 }
 0x114   : > { %v659_v29 = vmul.f32 %v658_v48, %v656_v0  ;;  %v7907_v24 = vmul.u32.u64.low %v832_v16, %v831_v8  ;;  %v7908_v63 = vmul.u32.u64.high %v832_v16, %v831_v8, %v7907_v24  ;;  %v7911_v26 = vand.u32 31, %v7875_v54 }
 0x115   : > { %v7905_v13 = vsel %vm1755_vm5, %v12788_v3, 1326507024  ;;  %v7913_v27 = vand.u32 3, %v669_v55  ;;  %v748_v31 = vclz %v6160_v40  ;;  %v823_v58 = vsel %vm817_vm11, %v820_v10, %v822_v14 }
 0x116   : > { %v660_v39 = vxor.u32 2147483648, %v659_v29  ;;  %v736_v45 = vadd.s32 %v7788_v42, %v7794_v50  ;;  %v7919_v9 = vmul.u32.u64.low %v832_v16, %v827_v44  ;;  %v7920_v35 = vmul.u32.u64.high %v832_v16, %v827_v44, %v7919_v9 }
 0x117   : > { %v6161_v11 = vadd.s32 4294967294, %v748_v31  ;;  %v767_v28 = vsel %vm682_vm8, %v766_v6, %v742_v60  ;;  %v12789_v36 = vand.u32 2147483647, %v7329_v1  ;;  %v906_v61 = vshrl.u32 %v12763_v32, %v7391_v21 }
 0x118   : > { %v661_v56 = vsel %vm578_vm15, %v660_v39, %v659_v29  ;;  %v12790_v10 = vand.u32 2147483647, %v7344_v22  ;;  %v839_v50 = vmul.u32 %v832_v16, %v823_v58  ;;  %vm841_vm13 = vc.u32 %v7908_v63, %v7919_v9 }
 0x119   : > { %v895_v55 = vand.u32 8388607, %v12789_v36  ;;  %v905_v60 = vshll.u32 %v12759_v12, %v7379_v7  ;;  %v664_v20 = vsel %vm7782_vm4, %v7332_v4, %v661_v56  ;;  %vm6162_vm1 = vcmp.lt.s32.totalorder %v6161_v11, 0 }
 0x11a   : > { %vm7933_vm7 = vcmp.le.f32.partialorder %v12790_v10, 0.7853982  ;;  %v908_v38 = vshll.u32 %v12763_v32, %v7379_v7  ;;  %v909_v52 = vshrl.u32 %v12767_v47, %v7391_v21  ;;  %6954 = vcosq.f32 %v664_v20 }
 0x11b   : > { %v751_v14 = vsel %vm6162_vm1, 0, %v6161_v11  ;;  %v842_v41 = vadd.s32 1, %v7920_v35  ;;  %v907_v37 = vor.u32 %v906_v61, %v905_v60  ;;  %6956 = vsinq.f32 %v664_v20 }
 0x11c   : > { %v752_v0 = vsub.s32 32, %v751_v14  ;;  %v756_v48 = vsub.s32 4294967266, %v751_v14  ;;  %v911_v2 = vshll.u32 %v12767_v47, %v7379_v7  ;;  %v753_v57 = vshll.u32 %v7877_v49, %v751_v14 }
 0x11d   : > { %v843_v16 = vsel %vm841_vm13, %v842_v41, %v7920_v35  ;;  %v910_v40 = vor.u32 %v909_v52, %v908_v38  ;;  %v912_v6 = vshrl.u32 %v12749_v59, %v7391_v21  ;;  %vm920_vm15 = vcmp.lt.s32.totalorder %v7400_v30, 1 }
 0x11e   : > { %v754_v44 = vshrl.u32 %v736_v45, %v752_v0  ;;  %v757_v8 = vadd.s32 127, %v756_v48  ;;  %v844_v3 = vadd.s32 %v843_v16, %v839_v50  ;;  %v896_v29 = vor.u32 8388608, %v895_v55 }
 0x11f   : > { %v913_v24 = vor.u32 %v912_v6, %v911_v2  ;;  %vm922_vm4 = vcmp.lt.s32.totalorder %v7400_v30, 3  ;;  %v928_v7 = vsel %vm920_vm15, %v907_v37, %v910_v40  ;;  %v904_v45 = vshrl.u32 %v12759_v12, %v7391_v21 }
 0x120   : > { %v755_v31 = vor.u32 %v754_v44, %v753_v57  ;;  %v758_v49 = vshll.u32 %v757_v8, 23  ;;  %v845_v58 = vadd.s32 536870912, %v844_v3  ;;  %v934_v39 = vsel %vm922_vm4, %v7427_v5, %v7456_v34 }
 0x121   : > { %v925_v35 = vsel %vm923_vm6, %v913_v24, 2102212464  ;;  %v930_v11 = vsel %vm922_vm4, %v913_v24, %v7447_v19  ;;  %v932_v36 = vsel %vm920_vm15, %v910_v40, %v913_v24  ;;  %vm668_vm3 = vweird.f32 %v7332_v4 }
 0x122   : > { %v759_v55 = vor.u32 4788187, %v758_v49  ;;  %v769_v61 = vsel %vm7933_vm7, 0, %v767_v28  ;;  %v846_v5 = vshrl.u32 %v845_v58, 30  ;;  %vm921_vm11 = vcmp.lt.s32.totalorder %v7400_v30, 2 }
 0x123   : > { %vm786_vm13 = vcmp.lt.s32.totalorder %v7355_v33, 0  ;;  %v924_v21 = vsel %vm920_vm15, %v904_v45, %v907_v37  ;;  %v931_v19 = vsel %vm921_vm11, %v928_v7, %v930_v11  ;;  %v935_v34 = vsel %vm921_vm11, %v932_v36, %v934_v39 }
 0x124   : > { %v936_v56 = vshll.u32 %v896_v29, 8  ;;  %v760_v10 = vand.u32 2147483647, %v759_v55  ;;  %v762_v50 = vcvt.s32.f32 %v755_v31  ;;  %v847_v60 = vshll.u32 %v846_v5, 30  ;;  %v6955_v20 = vpop.eup %6954 }
 0x125   : > { %v926_v28 = vsel %vm922_vm4, %v910_v40, %v925_v35  ;;  %v6957_v37 = vpop.eup %6956  ;;  %v676_v0 = vxor.u32 2147483648, %v6955_v20  ;;  %v773_v2 = vadd.s32 3, %v769_v61  ;;  %vm672_vm6 = vcmp.eq.s32.totalorder %v7913_v27, 0 }
 0x126   : > { %v7985_v38 = vmul.u32.u64.low %v936_v56, %v935_v34  ;;  %v7986_v52 = vmul.u32.u64.high %v936_v56, %v935_v34, %v7985_v38  ;;  %v7988_v14 = vmul.u32.u64.low %v936_v56, %v931_v19  ;;  %v7989_v41 = vmul.u32.u64.high %v936_v56, %v931_v19, %v7988_v14 }
 0x127   : > { %v763_v48 = vmul.f32 %v762_v50, %v760_v10  ;;  %v7992_v57 = vsub.s32 %v844_v3, %v847_v60  ;;  %v673_v16 = vxor.u32 2147483648, %v6957_v37  ;;  %vm675_vm1 = vcmp.eq.s32.totalorder %v7913_v27, 2 }
 0x128   : > { %v927_v40 = vsel %vm921_vm11, %v924_v21, %v926_v28  ;;  %v677_v6 = vsel %vm675_vm1, %v676_v0, %v6957_v37  ;;  %v870_v29 = vsub.s32 4, %v846_v5  ;;  %vm671_vm15 = vcmp.lt.s32.totalorder %v7913_v27, 2 }
 0x129   : > { %v764_v44 = vxor.u32 2147483648, %v763_v48  ;;  %v850_v8 = vsub.s32 0, %v7992_v57  ;;  %v674_v24 = vsel %vm672_vm6, %v6955_v20, %v673_v16  ;;  %vm945_vm4 = vc.u32 %v7986_v52, %v7988_v14 }
 0x12a   : > { %v946_v3 = vadd.s32 1, %v7989_v41  ;;  %v678_v7 = vsel %vm671_vm15, %v674_v24, %v677_v6  ;;  %v8005_v49 = vand.u32 3, %v773_v2  ;;  %v943_v39 = vmul.u32 %v936_v56, %v927_v40 }
 0x12b   : > { %v765_v31 = vsel %vm682_vm8, %v764_v44, %v763_v48  ;;  %v6164_v30 = vmin.u32 %v850_v8, %v7992_v57  ;;  %v679_v58 = vsel %vm668_vm3, nan, %v678_v7  ;;  %v871_v11 = vsel %vm786_vm13, %v870_v29, %v846_v5 }
 0x12c   : > { %v768_v27 = vsel %vm7933_vm7, %v7344_v22, %v765_v31  ;;  %v947_v45 = vsel %vm945_vm4, %v946_v3, %v7989_v41  ;;  %6480 = vmatprep.mubr.f32.mxu0 %v679_v58  ;;  %v992_v36 = vand.u32 2147483647, %v7348_v25  ;;  %v8018_v55 = vshrl.u32 %v7875_v54, 5 }
 0x12d   : > { %6958 = vcosq.f32 %v768_v27  ;;  %v852_v35 = vclz %v6164_v30  ;;  %v8021_v4 = vadd.s32 1, %v7823_v15  ;;  %v948_v42 = vadd.s32 %v947_v45, %v943_v39 }
 0x12e   : > { %6960 = vsinq.f32 %v768_v27  ;;  %v8024_v61 = vsub.s32 32, %v7911_v26  ;;  %v8028_v21 = vadd.f32 %v7826_v43, %v7815_v53  ;;  %v12793_v19 = vand.u32 2147483647, %v7355_v33 }
 0x12f   : > { %v6165_v54 = vadd.s32 4294967294, %v852_v35  ;;  %v949_v34 = vadd.s32 536870912, %v948_v42  ;;  %v1010_v56 = vshrl.u32 %v12763_v32, %v7441_v17  ;;  %v1013_v10 = vshrl.u32 %v12767_v47, %v7441_v17 }
 0x130   : > { %vm8032_vm8 = vcmp.le.f32.partialorder %v12793_v19, 0.7853982  ;;  %vm779_vm7 = vcmp.eq.s32.totalorder %v8005_v49, 2  ;;  %v999_v53 = vand.u32 8388607, %v992_v36  ;;  %v1015_v43 = vshll.u32 %v12767_v47, %v7421_v62 }
 0x131   : > { %v873_v15 = vsel %vm8032_vm8, 0, %v871_v11  ;;  %vm6166_vm3 = vcmp.lt.s32.totalorder %v6165_v54, 0  ;;  %v1016_v50 = vshrl.u32 %v12749_v59, %v7441_v17  ;;  %vm776_vm11 = vcmp.eq.s32.totalorder %v8005_v49, 0  ;;  %v12797_v11 = vld [vmem:[#allocation18_spill] sm:$0xff] }
 0x132   : > { %v855_v60 = vsel %vm6166_vm3, 0, %v6165_v54  ;;  %v8050_v28 = vshrl.u32 %v949_v34, 30  ;;  %v1009_v20 = vshll.u32 %v12759_v12, %v7421_v62  ;;  %v1012_v38 = vshll.u32 %v12763_v32, %v7421_v62 }
 0x133   : > { %vm775_vm6 = vcmp.lt.s32.totalorder %v8005_v49, 2  ;;  %v840_v41 = vadd.s32 %v7919_v9, %v7908_v63  ;;  %v856_v37 = vsub.s32 32, %v855_v60  ;;  %v860_v0 = vsub.s32 4294967266, %v855_v60  ;;  %v12796_v9 = vld [vmem:[#allocation10_spill] sm:$0xff] }
 0x134   : > { %v1017_v48 = vor.u32 %v1016_v50, %v1015_v43  ;;  %vm772_vm1 = vweird.f32 %v7344_v22  ;;  %v877_v2 = vadd.s32 3, %v873_v15  ;;  %v951_v16 = vshll.u32 %v8050_v28, 30 }
 0x135   : > { %v1011_v40 = vor.u32 %v1010_v56, %v1009_v20  ;;  %v1014_v6 = vor.u32 %v1013_v10, %v1012_v38  ;;  %v857_v44 = vshll.u32 %v7992_v57, %v855_v60  ;;  %v858_v8 = vshrl.u32 %v840_v41, %v856_v37  ;;  %v12798_v56 = vld [vmem:[#allocation19_spill] sm:$0xff]  ;;  %v12799_v10 = vld [vmem:[#allocation13_spill] sm:$0xff] }
 0x136   : > { %v861_v29 = vadd.s32 127, %v860_v0  ;;  %v1000_v62 = vor.u32 8388608, %v999_v53  ;;  %v8062_v24 = vsub.s32 %v948_v42, %v951_v16  ;;  %v1008_v63 = vshrl.u32 %v12759_v12, %v7441_v17 }
 0x137   : > { %vm1024_vm15 = vcmp.lt.s32.totalorder %v12796_v9, 1  ;;  %vm1025_vm4 = vcmp.lt.s32.totalorder %v12796_v9, 2  ;;  %v6959_v3 = vpop.eup %6958  ;;  %v859_v7 = vor.u32 %v858_v8, %v857_v44  ;;  %vm1026_vm3 = vcmp.lt.s32.totalorder %v12796_v9, 3 }
 0x138   : > { %v862_v31 = vshll.u32 %v861_v29, 23  ;;  %v1029_v57 = vsel %vm1027_vm10, %v1017_v48, 2102212464  ;;  %v6961_v30 = vpop.eup %6960  ;;  %v780_v58 = vxor.u32 2147483648, %v6959_v3  ;;  %vm890_vm2 = vcmp.lt.s32.totalorder %v7329_v1, 0 }
 0x139   : > { %v954_v27 = vsub.s32 0, %v8062_v24  ;;  %v1028_v17 = vsel %vm1024_vm15, %v1008_v63, %v1011_v40  ;;  %v1032_v39 = vsel %vm1024_vm15, %v1011_v40, %v1014_v6  ;;  %v777_v45 = vxor.u32 2147483648, %v6961_v30 }
 0x13a   : > { %v863_v35 = vor.u32 4788187, %v862_v31  ;;  %v1034_v42 = vsel %vm1026_vm3, %v1017_v48, %v12797_v11  ;;  %v1036_v19 = vsel %vm1024_vm15, %v1014_v6, %v1017_v48  ;;  %v781_v54 = vsel %vm779_vm7, %v780_v58, %v6961_v30  ;;  %v12803_v31 = vld [vmem:[#allocation2_spill] sm:$0xff] }
 0x13b   : > { %v6168_v15 = vmin.u32 %v954_v27, %v8062_v24  ;;  %v1030_v34 = vsel %vm1026_vm3, %v1014_v6, %v1029_v57  ;;  %v1038_v53 = vsel %vm1026_vm3, %v12799_v10, %v12798_v56  ;;  %v778_v43 = vsel %vm776_vm11, %v6959_v3, %v777_v45 }
 0x13c   : > { %v864_v50 = vand.u32 2147483647, %v863_v35  ;;  %v866_v60 = vcvt.s32.f32 %v859_v7  ;;  %v1039_v20 = vsel %vm1025_vm4, %v1036_v19, %v1038_v53  ;;  %v782_v38 = vsel %vm775_vm6, %v778_v43, %v781_v54 }
 0x13d   : > { %v956_v41 = vclz %v6168_v15  ;;  %v1035_v37 = vsel %vm1025_vm4, %v1032_v39, %v1034_v42  ;;  %v1040_v0 = vshll.u32 %v1000_v62, 8  ;;  %v8095_v48 = vshll.u32 %v12749_v59, %v7911_v26  ;;  %v12804_v42 = vld [vmem:[#allocation8_spill] sm:$0xff] }
 0x13e   : > { %v783_v16 = vsel %vm772_vm1, nan, %v782_v38  ;;  %v867_v40 = vmul.f32 %v866_v60, %v864_v50  ;;  %v974_v6 = vsub.s32 4, %v8050_v28  ;;  %v1031_v49 = vsel %vm1025_vm4, %v1028_v17, %v1030_v34  ;;  %v12805_v34 = vld [vmem:[#allocation11_spill] sm:$0xff] }
 0x13f   : > { %6481 = vmatmul.mubr.f32.vlgmr.msra.gmra.mrb[0].mxu0 %v783_v16  ;;  %v6169_v44 = vadd.s32 4294967294, %v956_v41  ;;  %v8102_v8 = vmul.u32.u64.low %v1040_v0, %v1039_v20  ;;  %v8103_v29 = vmul.u32.u64.high %v1040_v0, %v1039_v20, %v8102_v8  ;;  %v12800_v62 = vand.u32 2147483647, %v7329_v1 }
 0x140   : > { %v868_v63 = vxor.u32 2147483648, %v867_v40  ;;  %v8111_v22 = vmul.u32.u64.low %v1040_v0, %v1035_v37  ;;  %v8112_v7 = vmul.u32.u64.high %v1040_v0, %v1035_v37, %v8111_v22  ;;  %v1096_v57 = vand.u32 2147483647, %v12803_v31 }
 0x141   : > { %vm8107_vm10 = vcmp.le.f32.partialorder %v12800_v62, 0.7853982  ;;  %v8118_v9 = vshll.u32 %v12752_v23, %v7911_v26  ;;  %v8120_v30 = vand.u32 3, %v877_v2  ;;  %v944_v58 = vadd.s32 %v7988_v14, %v7986_v52 }
 0x142   : > { %vm6170_vm7 = vcmp.lt.s32.totalorder %v6169_v44, 0  ;;  %v869_v27 = vsel %vm786_vm13, %v868_v63, %v867_v40  ;;  %v975_v39 = vsel %vm890_vm2, %v974_v6, %v8050_v28  ;;  %v1047_v45 = vmul.u32 %v1040_v0, %v1031_v49  ;;  %v12806_v49 = vld [vmem:[#allocation16_spill] sm:$0xff] }
 0x143   : > { %v959_v17 = vsel %vm6170_vm7, 0, %v6169_v44  ;;  %v872_v35 = vsel %vm8032_vm8, %v7355_v33, %v869_v27  ;;  %v1113_v19 = vshll.u32 %v12759_v12, %v12804_v42  ;;  %vm1049_vm11 = vc.u32 %v8103_v29, %v8111_v22 }
 0x144   : > { %v960_v11 = vsub.s32 32, %v959_v17  ;;  %v964_v2 = vsub.s32 4294967266, %v959_v17  ;;  %6962 = vcosq.f32 %v872_v35  ;;  %v1050_v52 = vadd.s32 1, %v8112_v7 }
 0x145   : > { %v1103_v14 = vand.u32 8388607, %v1096_v57  ;;  %6964 = vsinq.f32 %v872_v35  ;;  %v961_v28 = vshll.u32 %v8062_v24, %v959_v17  ;;  %v1114_v56 = vshrl.u32 %v12763_v32, %v12805_v34 }
 0x146   : > { %v962_v54 = vshrl.u32 %v944_v58, %v960_v11  ;;  %v965_v5 = vadd.s32 127, %v964_v2  ;;  %v1051_v15 = vsel %vm1049_vm11, %v1050_v52, %v8112_v7  ;;  %v1116_v10 = vshll.u32 %v12763_v32, %v12804_v42  ;;  %v12807_v7 = vld [vmem:[#allocation28_spill] sm:$0xff] }
 0x147   : > { %v1117_v53 = vshrl.u32 %v12767_v47, %v12805_v34  ;;  %v2139_v43 = vand.u32 2139095040, %v8028_v21  ;;  %v1052_v20 = vadd.s32 %v1051_v15, %v1047_v45  ;;  %v1115_v38 = vor.u32 %v1114_v56, %v1113_v19  ;;  %v12808_v58 = vld [vmem:[#allocation20_spill] sm:$0xff]  ;;  %v12809_v45 = vld [vmem:[#allocation26_spill] sm:$0xff] }
 0x148   : > { %v963_v50 = vor.u32 %v962_v54, %v961_v28  ;;  %v966_v60 = vshll.u32 %v965_v5, 23  ;;  %v1119_v41 = vshll.u32 %v12767_v47, %v12804_v42  ;;  %v1120_v37 = vshrl.u32 %v12749_v59, %v12805_v34 }
 0x149   : > { %v1118_v24 = vor.u32 %v1117_v53, %v1116_v10  ;;  %vm880_vm13 = vcmp.eq.s32.totalorder %v8120_v30, 0  ;;  %vm883_vm8 = vcmp.eq.s32.totalorder %v8120_v30, 2  ;;  %v977_v16 = vsel %vm8107_vm10, 0, %v975_v39 }
 0x14a   : > { %v967_v0 = vor.u32 4788187, %v966_v60  ;;  %v1053_v40 = vadd.s32 536870912, %v1052_v20  ;;  %vm879_vm6 = vcmp.lt.s32.totalorder %v8120_v30, 2  ;;  %v1104_v6 = vor.u32 8388608, %v1103_v14  ;;  %v12810_v30 = vld [vmem:[#allocation4_spill] sm:$0xff] }
 0x14b   : > { %v1121_v44 = vor.u32 %v1120_v37, %v1119_v41  ;;  %vm1128_vm1 = vcmp.lt.s32.totalorder %v12806_v49, 1  ;;  %vm1130_vm15 = vcmp.lt.s32.totalorder %v12806_v49, 3  ;;  %v970_v63 = vcvt.s32.f32 %v963_v50 }
 0x14c   : > { %v968_v8 = vand.u32 2147483647, %v967_v0  ;;  %v1054_v62 = vshrl.u32 %v1053_v40, 30  ;;  %v1142_v27 = vsel %vm1130_vm15, %v12808_v58, %v12807_v7  ;;  %vm1939_vm4 = vcmp.gt.s32.totalorder %v8021_v4, 0 }
 0x14d   : > { %v1112_v17 = vshrl.u32 %v12759_v12, %v12805_v34  ;;  %v1136_v39 = vsel %vm1128_vm1, %v1115_v38, %v1118_v24  ;;  %v1138_v35 = vsel %vm1130_vm15, %v1121_v44, %v12809_v45  ;;  %v1140_v11 = vsel %vm1128_vm1, %v1118_v24, %v1121_v44 }
 0x14e   : > { %v971_v2 = vmul.f32 %v970_v63, %v968_v8  ;;  %v981_v42 = vadd.s32 3, %v977_v16  ;;  %v1055_v19 = vshll.u32 %v1054_v62, 30  ;;  %vm1129_vm3 = vcmp.lt.s32.totalorder %v12806_v49, 2  ;;  %v6963_v52 = vpop.eup %6962 }
 0x14f   : > { %v1132_v14 = vsel %vm1128_vm1, %v1112_v17, %v1115_v38  ;;  %v1133_v28 = vsel %vm1131_vm12, %v1121_v44, 2102212464  ;;  %v1143_v54 = vsel %vm1129_vm3, %v1140_v11, %v1142_v27  ;;  %v1144_v5 = vshll.u32 %v1104_v6, 8  ;;  %v6965_v15 = vpop.eup %6964 }
 0x150   : > { %v884_v34 = vxor.u32 2147483648, %v6963_v52  ;;  %v972_v56 = vxor.u32 2147483648, %v971_v2  ;;  %v8180_v10 = vsub.s32 %v1052_v20, %v1055_v19  ;;  %v1139_v53 = vsel %vm1129_vm3, %v1136_v39, %v1138_v35 }
 0x151   : > { %v881_v50 = vxor.u32 2147483648, %v6965_v15  ;;  %v1078_v60 = vsub.s32 4, %v1054_v62  ;;  %v8184_v41 = vmul.u32.u64.low %v1144_v5, %v1143_v54  ;;  %v8185_v37 = vmul.u32.u64.high %v1144_v5, %v1143_v54, %v8184_v41 }
 0x152   : > { %v885_v38 = vsel %vm883_vm8, %v884_v34, %v6965_v15  ;;  %v973_v0 = vsel %vm890_vm2, %v972_v56, %v971_v2  ;;  %v1058_v16 = vsub.s32 0, %v8180_v10  ;;  %v1134_v20 = vsel %vm1130_vm15, %v1118_v24, %v1133_v28  ;;  %v12813_v28 = vld [vmem:[#allocation21_spill] sm:$0xff] }
 0x153   : > { %v882_v40 = vsel %vm880_vm13, %v6963_v52, %v881_v50  ;;  %v976_v6 = vsel %vm8107_vm10, %v7329_v1, %v973_v0  ;;  %v8199_v44 = vmul.u32.u64.low %v1144_v5, %v1139_v53  ;;  %v8200_v8 = vmul.u32.u64.high %v1144_v5, %v1139_v53, %v8199_v44 }
 0x154   : > { %vm876_vm12 = vweird.f32 %v7355_v33  ;;  %v886_v63 = vsel %vm879_vm6, %v882_v40, %v885_v38  ;;  %6966 = vcosq.f32 %v976_v6  ;;  %v6172_v7 = vmin.u32 %v1058_v16, %v8180_v10 }
 0x155   : > { %v887_v24 = vsel %vm876_vm12, nan, %v886_v63  ;;  %6968 = vsinq.f32 %v976_v6  ;;  %v8207_v58 = vand.u32 3, %v981_v42  ;;  %v1135_v3 = vsel %vm1129_vm3, %v1132_v14, %v1134_v20 }
 0x156   : > { %v8213_v27 = vshrl.u32 %v12752_v23, %v8024_v61  ;;  %6483 = vmatprep.mubr.f32.mxu0 %v887_v24  ;;  %vm994_vm2 = vcmp.lt.s32.totalorder %v7348_v25, 0  ;;  %v1060_v33 = vclz %v6172_v7  ;;  %v1200_v17 = vand.u32 2147483647, %v12810_v30 }
 0x157   : > { %v8219_v39 = vshrl.u32 %v12744_v18, %v8024_v61  ;;  %v8223_v45 = vsel %vm994_vm2, %v1078_v60, %v1054_v62  ;;  %vm1153_vm10 = vc.u32 %v8185_v37, %v8199_v44  ;;  %v1154_v49 = vadd.s32 1, %v8200_v8 }
 0x158   : > { %v8231_v35 = vsel %vm1939_vm4, %v8021_v4, 0  ;;  %vm8235_vm7 = vcmp.le.f32.partialorder %v992_v36, 0.7853982  ;;  %v6173_v2 = vadd.s32 4294967294, %v1060_v33  ;;  %v1151_v42 = vmul.u32 %v1144_v5, %v1135_v3 }
 0x159   : > { %vm984_vm11 = vcmp.eq.s32.totalorder %v8207_v58, 0  ;;  %vm987_vm13 = vcmp.eq.s32.totalorder %v8207_v58, 2  ;;  %v1048_v62 = vadd.s32 %v8111_v22, %v8103_v29  ;;  %v1155_v19 = vsel %vm1153_vm10, %v1154_v49, %v8200_v8  ;;  %v12814_v22 = vld [vmem:[#allocation27_spill] sm:$0xff] }
 0x15a   : > { %vm983_vm8 = vcmp.lt.s32.totalorder %v8207_v58, 2  ;;  %vm6174_vm6 = vcmp.lt.s32.totalorder %v6173_v2, 0  ;;  %v1081_v36 = vsel %vm8235_vm7, 0, %v8223_v45  ;;  %v1156_v4 = vadd.s32 %v1155_v19, %v1151_v42 }
 0x15b   : > { %v8250_v52 = vand.u32 8388607, %v1200_v17  ;;  %vm980_vm1 = vweird.f32 %v7329_v1  ;;  %v1063_v14 = vsel %vm6174_vm6, 0, %v6173_v2  ;;  %v1217_v29 = vshll.u32 %v12759_v12, %v12813_v28 }
 0x15c   : > { %v1218_v54 = vshrl.u32 %v12763_v32, %v12814_v22  ;;  %v1220_v5 = vshll.u32 %v12763_v32, %v12813_v28  ;;  %v1064_v15 = vsub.s32 32, %v1063_v14  ;;  %v1068_v34 = vsub.s32 4294967266, %v1063_v14 }
 0x15d   : > { %v1157_v56 = vadd.s32 536870912, %v1156_v4  ;;  %v1221_v53 = vshrl.u32 %v12767_v47, %v12814_v22  ;;  %v1223_v50 = vshll.u32 %v12767_v47, %v12813_v28  ;;  %v1224_v60 = vshrl.u32 %v12749_v59, %v12814_v22 }
 0x15e   : > { %v1226_v41 = vshll.u32 %v12749_v59, %v12813_v28  ;;  %v1227_v38 = vshrl.u32 %v12752_v23, %v12814_v22  ;;  %v6967_v0 = vpop.eup %6966  ;;  %v1065_v16 = vshll.u32 %v8180_v10, %v1063_v14  ;;  %v1066_v20 = vshrl.u32 %v1048_v62, %v1064_v15 }
 0x15f   : > { %v1069_v40 = vadd.s32 127, %v1068_v34  ;;  %v1158_v6 = vshrl.u32 %v1157_v56, 30  ;;  %v6969_v8 = vpop.eup %6968  ;;  %v988_v63 = vxor.u32 2147483648, %v6967_v0  ;;  %v1216_v7 = vshrl.u32 %v12759_v12, %v12814_v22 }
 0x160   : > { %v1229_v24 = vshll.u32 %v12752_v23, %v12813_v28  ;;  %v1230_v3 = vshrl.u32 %v12744_v18, %v12814_v22  ;;  %v985_v33 = vxor.u32 2147483648, %v6969_v8  ;;  %v1067_v45 = vor.u32 %v1066_v20, %v1065_v16 }
 0x161   : > { %v1070_v49 = vshll.u32 %v1069_v40, 23  ;;  %vm1098_vm15 = vcmp.lt.s32.totalorder %v12803_v31, 0  ;;  %v1159_v10 = vshll.u32 %v1158_v6, 30  ;;  %v989_v2 = vsel %vm987_vm13, %v988_v63, %v6969_v8 }
 0x162   : > { %v1219_v42 = vor.u32 %v1218_v54, %v1217_v29  ;;  %v1222_v62 = vor.u32 %v1221_v53, %v1220_v5  ;;  %v1228_v19 = vor.u32 %v1227_v38, %v1226_v41  ;;  %v986_v14 = vsel %vm984_vm11, %v6967_v0, %v985_v33  ;;  %v12815_v5 = vld [vmem:[#allocation23_spill] sm:$0xff] }
 0x163   : > { %v1071_v15 = vor.u32 4788187, %v1070_v49  ;;  %v8281_v28 = vsub.s32 %v1156_v4, %v1159_v10  ;;  %v1225_v34 = vor.u32 %v1224_v60, %v1223_v50  ;;  %v990_v22 = vsel %vm983_vm8, %v986_v14, %v989_v2 }
 0x164   : > { %v1074_v56 = vcvt.s32.f32 %v1067_v45  ;;  %v1208_v16 = vor.u32 8388608, %v8250_v52  ;;  %v1231_v20 = vor.u32 %v1230_v3, %v1229_v24  ;;  %v991_v40 = vsel %vm980_vm1, nan, %v990_v22 }
 0x165   : > { %v1072_v29 = vand.u32 2147483647, %v1071_v15  ;;  %v1162_v54 = vsub.s32 0, %v8281_v28  ;;  %vm1235_vm4 = vcmp.lt.s32.totalorder %v12815_v5, 4  ;;  %6484 = vmatmul.mubr.f32.gmra.mrb[2].mxu0 %v991_v40  ;;  %v1182_v53 = vsub.s32 4, %v1158_v6 }
 0x166   : > { %vm1232_vm3 = vcmp.lt.s32.totalorder %v12815_v5, 1  ;;  %vm1234_vm12 = vcmp.lt.s32.totalorder %v12815_v5, 3  ;;  %v1241_v58 = vsel %vm1235_vm4, %v1228_v19, 920167782  ;;  %v1085_v60 = vadd.s32 3, %v1081_v36 }
 0x167   : > { %v1075_v4 = vmul.f32 %v1074_v56, %v1072_v29  ;;  %v6176_v52 = vmin.u32 %v1162_v54, %v8281_v28  ;;  %v1240_v1 = vsel %vm1232_vm3, %v1219_v42, %v1222_v62  ;;  %v1242_v50 = vsel %vm1234_vm12, %v1225_v34, %v1241_v58  ;;  %v12818_v56 = vld [vmem:[#allocation3_spill] sm:$0xff] }
 0x168   : > { %vm8301_vm10 = vcmp.le.f32.partialorder %v1096_v57, 0.7853982  ;;  %vm1233_vm11 = vcmp.lt.s32.totalorder %v12815_v5, 2  ;;  %v1244_v38 = vsel %vm1232_vm3, %v1222_v62, %v1225_v34  ;;  %v1237_v63 = vsel %vm1235_vm4, %v1225_v34, 2102212464 }
 0x169   : > { %v1076_v0 = vxor.u32 2147483648, %v1075_v4  ;;  %v1164_v8 = vclz %v6176_v52  ;;  %v1245_v24 = vsel %vm1235_vm4, %v1231_v20, 1326507024  ;;  %v1183_v36 = vsel %vm1098_vm15, %v1182_v53, %v1158_v6 }
 0x16a   : > { %v1243_v57 = vsel %vm1233_vm11, %v1240_v1, %v1242_v50  ;;  %v1246_v3 = vsel %vm1234_vm12, %v1228_v19, %v1245_v24  ;;  %v1248_v33 = vshll.u32 %v1208_v16, 8  ;;  %v1236_v10 = vsel %vm1232_vm3, %v1216_v7, %v1219_v42  ;;  %v12819_v1 = vld [vmem:[#allocation15_spill] sm:$0xff] }
 0x16b   : > { %v1077_v45 = vsel %vm994_vm2, %v1076_v0, %v1075_v4  ;;  %v6177_v49 = vadd.s32 4294967294, %v1164_v8  ;;  %v1247_v2 = vsel %vm1233_vm11, %v1244_v38, %v1246_v3  ;;  %v1238_v14 = vsel %vm1234_vm12, %v1222_v62, %v1237_v63  ;;  %v12820_v0 = vld [vmem:[#allocation12_spill] sm:$0xff] }
 0x16c   : > { %v1080_v6 = vsel %vm8235_vm7, %v7348_v25, %v1077_v45  ;;  %v8329_v15 = vmul.u32.u64.low %v1248_v33, %v1247_v2  ;;  %v8330_v19 = vmul.u32.u64.high %v1248_v33, %v1247_v2, %v8329_v15  ;;  %v8336_v7 = vand.u32 3, %v1085_v60 }
 0x16d   : > { %6970 = vcosq.f32 %v1080_v6  ;;  %vm6178_vm13 = vcmp.lt.s32.totalorder %v6177_v49, 0  ;;  %v8332_v34 = vmul.u32.u64.low %v1248_v33, %v1243_v57  ;;  %v8333_v22 = vmul.u32.u64.high %v1248_v33, %v1243_v57, %v8332_v34 }
 0x16e   : > { %6972 = vsinq.f32 %v1080_v6  ;;  %v1167_v42 = vsel %vm6178_vm13, 0, %v6177_v49  ;;  %v1304_v16 = vand.u32 2147483647, %v12818_v56  ;;  %v1152_v11 = vadd.s32 %v8199_v44, %v8185_v37 }
 0x16f   : > { %v1168_v20 = vsub.s32 32, %v1167_v42  ;;  %v1172_v62 = vsub.s32 4294967266, %v1167_v42  ;;  %v1239_v40 = vsel %vm1233_vm11, %v1236_v10, %v1238_v14  ;;  %v8344_v29 = vshrl.u32 %v8231_v35, 5 }
 0x170   : > { %v8348_v54 = vshrl.u32 %v2139_v43, 23  ;;  %v1185_v53 = vsel %vm8301_vm10, 0, %v1183_v36  ;;  %vm1257_vm2 = vc.u32 %v8330_v19, %v8332_v34  ;;  %v1169_v37 = vshll.u32 %v8281_v28, %v1167_v42 }
 0x171   : > { %v1170_v44 = vshrl.u32 %v1152_v11, %v1168_v20  ;;  %v1173_v58 = vadd.s32 127, %v1172_v62  ;;  %v1258_v5 = vadd.s32 1, %v8333_v22  ;;  %v1255_v4 = vmul.u32 %v1248_v33, %v1239_v40  ;;  %v12821_v40 = vld [vmem:[#allocation25_spill] sm:$0xff] }
 0x172   : > { %v1311_v52 = vand.u32 8388607, %v1304_v16  ;;  %v1322_v43 = vshrl.u32 %v12763_v32, %v12819_v1  ;;  %v1325_v50 = vshrl.u32 %v12767_v47, %v12819_v1  ;;  %vm1087_vm7 = vcmp.lt.s32.totalorder %v8336_v7, 2 }
 0x173   : > { %v1171_v60 = vor.u32 %v1170_v44, %v1169_v37  ;;  %v1174_v38 = vshll.u32 %v1173_v58, 23  ;;  %v1259_v28 = vsel %vm1257_vm2, %v1258_v5, %v8333_v22  ;;  %v1321_v8 = vshll.u32 %v12759_v12, %v12820_v0  ;;  %v12822_v44 = vld [vmem:[#allocation35_spill] sm:$0xff]  ;;  %v12823_v58 = vld [vmem:[#allocation29_spill] sm:$0xff] }
 0x174   : > { %vm1084_vm8 = vweird.f32 %v7348_v25  ;;  %v1260_v63 = vadd.s32 %v1259_v28, %v1255_v4  ;;  %v1324_v24 = vshll.u32 %v12763_v32, %v12820_v0  ;;  %v1327_v36 = vshll.u32 %v12767_v47, %v12820_v0 }
 0x175   : > { %v1328_v57 = vshrl.u32 %v12749_v59, %v12819_v1  ;;  %vm1088_vm6 = vcmp.eq.s32.totalorder %v8336_v7, 0  ;;  %vm1091_vm1 = vcmp.eq.s32.totalorder %v8336_v7, 2  ;;  %v1175_v3 = vor.u32 4788187, %v1174_v38  ;;  %v12824_v38 = vld [vmem:[#allocation34_spill] sm:$0xff] }
 0x176   : > { %v1189_v33 = vadd.s32 3, %v1185_v53  ;;  %v1261_v45 = vadd.s32 536870912, %v1260_v63  ;;  %v1323_v49 = vor.u32 %v1322_v43, %v1321_v8  ;;  %v1326_v10 = vor.u32 %v1325_v50, %v1324_v24 }
 0x177   : > { %v1329_v2 = vor.u32 %v1328_v57, %v1327_v36  ;;  %v6971_v6 = vpop.eup %6970  ;;  %v1176_v14 = vand.u32 2147483647, %v1175_v3  ;;  %v1178_v15 = vcvt.s32.f32 %v1171_v60  ;;  %v1312_v22 = vor.u32 8388608, %v1311_v52 }
 0x178   : > { %v1320_v42 = vshrl.u32 %v12759_v12, %v12819_v1  ;;  %v6973_v11 = vpop.eup %6972  ;;  %v1092_v20 = vxor.u32 2147483648, %v6971_v6  ;;  %v1262_v62 = vshrl.u32 %v1261_v45, 30  ;;  %vm1336_vm4 = vcmp.lt.s32.totalorder %v12821_v40, 1 }
 0x179   : > { %vm1338_vm3 = vcmp.lt.s32.totalorder %v12821_v40, 3  ;;  %v1089_v37 = vxor.u32 2147483648, %v6973_v11  ;;  %v1179_v53 = vmul.f32 %v1178_v15, %v1176_v14  ;;  %vm1337_vm12 = vcmp.lt.s32.totalorder %v12821_v40, 2 }
 0x17a   : > { %v1350_v5 = vsel %vm1338_vm3, %v12823_v58, %v12822_v44  ;;  %v1093_v4 = vsel %vm1091_vm1, %v1092_v20, %v6973_v11  ;;  %v1263_v52 = vshll.u32 %v1262_v62, 30  ;;  %v1341_v1 = vsel %vm1339_vm14, %v1329_v2, 2102212464  ;;  %v12828_v44 = vld [vmem:[#allocation17_spill] sm:$0xff] }
 0x17b   : > { %v1344_v43 = vsel %vm1336_vm4, %v1323_v49, %v1326_v10  ;;  %v1090_v50 = vsel %vm1088_vm6, %v6971_v6, %v1089_v37  ;;  %v1180_v60 = vxor.u32 2147483648, %v1179_v53  ;;  %v1346_v28 = vsel %vm1338_vm3, %v1329_v2, %v12824_v38 }
 0x17c   : > { %v1348_v0 = vsel %vm1336_vm4, %v1326_v10, %v1329_v2  ;;  %v1094_v8 = vsel %vm1087_vm7, %v1090_v50, %v1093_v4  ;;  %v8399_v24 = vsub.s32 %v1260_v63, %v1263_v52  ;;  %v1340_v36 = vsel %vm1336_vm4, %v1320_v42, %v1323_v49 }
 0x17d   : > { %v1351_v57 = vsel %vm1337_vm12, %v1348_v0, %v1350_v5  ;;  %v1095_v3 = vsel %vm1084_vm8, nan, %v1094_v8  ;;  %v1181_v45 = vsel %vm1098_vm15, %v1180_v60, %v1179_v53  ;;  %v1342_v2 = vsel %vm1338_vm3, %v1326_v10, %v1341_v1  ;;  %v12829_v5 = vld [vmem:[#allocation22_spill] sm:$0xff] }
 0x17e   : > { %v1352_v6 = vshll.u32 %v1312_v22, 8  ;;  %v8412_v7 = vand.u32 31, %v8231_v35  ;;  %6486 = vmatprep.mubr.f32.mxu0 %v1095_v3  ;;  %v1184_v63 = vsel %vm8301_vm10, %v12803_v31, %v1181_v45  ;;  %v1266_v49 = vsub.s32 0, %v8399_v24 }
 0x17f   : > { %v1347_v25 = vsel %vm1337_vm12, %v1344_v43, %v1346_v28  ;;  %6974 = vcosq.f32 %v1184_v63  ;;  %v8420_v14 = vand.u32 3, %v1189_v33  ;;  %v8427_v35 = vor.u32 %v8213_v27, %v8095_v48  ;;  %v12825_v33 = vld [vmem:[#allocation5_spill] sm:$0xff] }
 0x180   : > { %v8422_v15 = vmul.u32.u64.low %v1352_v6, %v1351_v57  ;;  %v8423_v42 = vmul.u32.u64.high %v1352_v6, %v1351_v57, %v8422_v15  ;;  %6976 = vsinq.f32 %v1184_v63  ;;  %v6180_v10 = vmin.u32 %v1266_v49, %v8399_v24  ;;  %v12830_v57 = vld [vmem:[#allocation32_spill] sm:$0xff] }
 0x181   : > { %v1343_v41 = vsel %vm1337_vm12, %v1340_v36, %v1342_v2  ;;  %v8433_v22 = vadd.s32 4294967169, %v8348_v54  ;;  %v8435_v11 = vmul.u32.u64.low %v1352_v6, %v1347_v25  ;;  %v8436_v20 = vmul.u32.u64.high %v1352_v6, %v1347_v25, %v8435_v11  ;;  %v12831_v25 = vld [vmem:[#allocation39_spill] sm:$0xff] }
 0x182   : > { %v1408_v37 = vand.u32 2147483647, %v12825_v33  ;;  %vm8442_vm14 = vcmp.le.f32.partialorder %v1200_v17, 0.7853982  ;;  %vm1202_vm15 = vcmp.lt.s32.totalorder %v12810_v30, 0  ;;  %v1268_v27 = vclz %v6180_v10 }
 0x183   : > { %v1286_v40 = vsub.s32 4, %v1262_v62  ;;  %vm1195_vm10 = vcmp.eq.s32.totalorder %v8420_v14, 2  ;;  %v1256_v54 = vadd.s32 %v8332_v34, %v8330_v19  ;;  %v1359_v53 = vmul.u32 %v1352_v6, %v1343_v41 }
 0x184   : > { %vm1361_vm11 = vc.u32 %v8423_v42, %v8435_v11  ;;  %v1425_v58 = vshll.u32 %v12759_v12, %v12828_v44  ;;  %vm1192_vm13 = vcmp.eq.s32.totalorder %v8420_v14, 0  ;;  %v6181_v17 = vadd.s32 4294967294, %v1268_v27 }
 0x185   : > { %v1426_v4 = vshrl.u32 %v12763_v32, %v12829_v5  ;;  %v1428_v52 = vshll.u32 %v12763_v32, %v12828_v44  ;;  %v1429_v1 = vshrl.u32 %v12767_v47, %v12829_v5  ;;  %vm1191_vm2 = vcmp.lt.s32.totalorder %v8420_v14, 2 }
 0x186   : > { %v1362_v19 = vadd.s32 1, %v8436_v20  ;;  %v1415_v34 = vand.u32 8388607, %v1408_v37  ;;  %v1431_v43 = vshll.u32 %v12767_v47, %v12828_v44  ;;  %v1432_v50 = vshrl.u32 %v12749_v59, %v12829_v5 }
 0x187   : > { %vm1188_vm7 = vweird.f32 %v12803_v31  ;;  %vm6182_vm8 = vcmp.lt.s32.totalorder %v6181_v17, 0  ;;  %v1287_v60 = vsel %vm1202_vm15, %v1286_v40, %v1262_v62  ;;  %v1427_v38 = vor.u32 %v1426_v4, %v1425_v58 }
 0x188   : > { %v1430_v28 = vor.u32 %v1429_v1, %v1428_v52  ;;  %v1271_v0 = vsel %vm6182_vm8, 0, %v6181_v17  ;;  %v1363_v8 = vsel %vm1361_vm11, %v1362_v19, %v8436_v20  ;;  %v1433_v36 = vor.u32 %v1432_v50, %v1431_v43  ;;  %v12833_v43 = vld [vmem:[#allocation36_spill] sm:$0xff] }
 0x189   : > { %vm1440_vm6 = vcmp.lt.s32.totalorder %v12830_v57, 1  ;;  %v1272_v3 = vsub.s32 32, %v1271_v0  ;;  %v1276_v45 = vsub.s32 4294967266, %v1271_v0  ;;  %v1364_v2 = vadd.s32 %v1363_v8, %v1359_v53  ;;  %v6975_v6 = vpop.eup %6974 }
 0x18a   : > { %vm1442_vm1 = vcmp.lt.s32.totalorder %v12830_v57, 3  ;;  %v1273_v63 = vshll.u32 %v8399_v24, %v1271_v0  ;;  %v1416_v62 = vor.u32 8388608, %v1415_v34  ;;  %v1448_v49 = vsel %vm1440_vm6, %v1427_v38, %v1430_v28  ;;  %v6977_v10 = vpop.eup %6976  ;;  %v12832_v34 = vld [vmem:[#allocation40_spill] sm:$0xff] }
 0x18b   : > { %v1450_v15 = vsel %vm1442_vm1, %v1433_v36, %v12831_v25  ;;  %v1196_v41 = vxor.u32 2147483648, %v6975_v6  ;;  %v1274_v20 = vshrl.u32 %v1256_v54, %v1272_v3  ;;  %v1277_v27 = vadd.s32 127, %v1276_v45 }
 0x18c   : > { %v1365_v40 = vadd.s32 536870912, %v1364_v2  ;;  %v1193_v44 = vxor.u32 2147483648, %v6977_v10  ;;  %v1289_v53 = vsel %vm8442_vm14, 0, %v1287_v60  ;;  %vm1441_vm4 = vcmp.lt.s32.totalorder %v12830_v57, 2 }
 0x18d   : > { %v1452_v24 = vsel %vm1440_vm6, %v1430_v28, %v1433_v36  ;;  %v1197_v58 = vsel %vm1195_vm10, %v1196_v41, %v6977_v10  ;;  %v1275_v17 = vor.u32 %v1274_v20, %v1273_v63  ;;  %v1278_v4 = vshll.u32 %v1277_v27, 23 }
 0x18e   : > { %v1366_v52 = vshrl.u32 %v1365_v40, 30  ;;  %v1194_v54 = vsel %vm1192_vm13, %v6975_v6, %v1193_v44  ;;  %v1445_v1 = vsel %vm1443_vm0, %v1433_v36, 2102212464  ;;  %v1451_v19 = vsel %vm1441_vm4, %v1448_v49, %v1450_v15 }
 0x18f   : > { %v1454_v50 = vsel %vm1442_vm1, %v12833_v43, %v12832_v34  ;;  %v1198_v60 = vsel %vm1191_vm2, %v1194_v54, %v1197_v58  ;;  %v1279_v0 = vor.u32 4788187, %v1278_v4  ;;  %v1456_v3 = vshll.u32 %v1416_v62, 8 }
 0x190   : > { %v1367_v8 = vshll.u32 %v1366_v52, 30  ;;  %v1199_v45 = vsel %vm1188_vm7, nan, %v1198_v60  ;;  %v1282_v6 = vcvt.s32.f32 %v1275_v17  ;;  %v1424_v36 = vshrl.u32 %v12759_v12, %v12829_v5  ;;  %v12834_v17 = vld [vmem:[#allocation9_spill] sm:$0xff] }
 0x191   : > { %v1455_v63 = vsel %vm1441_vm4, %v1452_v24, %v1454_v50  ;;  %6487 = vmatmul.mubr.f32.gmra.mrb[4].mxu0 %v1199_v45  ;;  %v1280_v49 = vand.u32 2147483647, %v1279_v0  ;;  %v1446_v31 = vsel %vm1442_vm1, %v1430_v28, %v1445_v1  ;;  %v1855_v5 = vor.u32 %v8219_v39, %v8118_v9  ;;  %v12837_v50 = vld [vmem:[#allocation41_spill] sm:$0xff]  ;;  %v12838_v0 = vld [vmem:[#allocation43_spill] sm:$0xff] }
 0x192   : > { %v8509_v25 = vsub.s32 %v1364_v2, %v1367_v8  ;;  %v8511_v15 = vmul.u32.u64.low %v1456_v3, %v1455_v63  ;;  %v8512_v14 = vmul.u32.u64.high %v1456_v3, %v1455_v63, %v8511_v15  ;;  %v1444_v62 = vsel %vm1440_vm6, %v1424_v36, %v1427_v38 }
 0x193   : > { %v8518_v10 = vmul.u32.u64.low %v1456_v3, %v1451_v19  ;;  %v8519_v41 = vmul.u32.u64.high %v1456_v3, %v1451_v19, %v8518_v10  ;;  %v1283_v20 = vmul.f32 %v1282_v6, %v1280_v49  ;;  %v1293_v27 = vadd.s32 3, %v1289_v53 }
 0x194   : > { %v1370_v2 = vsub.s32 0, %v8509_v25  ;;  %v8526_v40 = vsub.s32 32, %v8412_v7  ;;  %v8530_v38 = vshll.u32 %v12749_v59, %v8412_v7  ;;  %v8534_v28 = vshll.u32 %v12752_v23, %v8412_v7 }
 0x195   : > { %v8537_v44 = vadd.s32 1, %v8433_v22  ;;  %v1284_v24 = vxor.u32 2147483648, %v1283_v20  ;;  %v1447_v53 = vsel %vm1441_vm4, %v1444_v62, %v1446_v31  ;;  %v1512_v4 = vand.u32 2147483647, %v12834_v17 }
 0x196   : > { %v6184_v58 = vmin.u32 %v1370_v2, %v8509_v25  ;;  %vm8545_vm0 = vcmp.le.f32.partialorder %v1304_v16, 0.7853982  ;;  %vm1306_vm3 = vcmp.lt.s32.totalorder %v12818_v56, 0  ;;  %vm1465_vm12 = vc.u32 %v8512_v14, %v8518_v10 }
 0x197   : > { %v1466_v22 = vadd.s32 1, %v8519_v41  ;;  %v1285_v1 = vsel %vm1202_vm15, %v1284_v24, %v1283_v20  ;;  %v8555_v57 = vand.u32 3, %v1293_v27  ;;  %v1390_v34 = vsub.s32 4, %v1366_v52 }
 0x198   : > { %v1372_v19 = vclz %v6184_v58  ;;  %v1288_v16 = vsel %vm8442_vm14, %v12810_v30, %v1285_v1  ;;  %v1463_v43 = vmul.u32 %v1456_v3, %v1447_v53  ;;  %v1529_v60 = vshll.u32 %v12759_v12, %v12837_v50 }
 0x199   : > { %v1530_v8 = vshrl.u32 %v12763_v32, %v12838_v0  ;;  %6978 = vcosq.f32 %v1288_v16  ;;  %v1467_v6 = vsel %vm1465_vm12, %v1466_v22, %v8519_v41  ;;  %v1519_v36 = vand.u32 8388607, %v1512_v4 }
 0x19a   : > { %v6185_v45 = vadd.s32 4294967294, %v1372_v19  ;;  %6980 = vsinq.f32 %v1288_v16  ;;  %v1468_v63 = vadd.s32 %v1467_v6, %v1463_v43  ;;  %v1532_v48 = vshll.u32 %v12763_v32, %v12837_v50 }
 0x19b   : > { %v1533_v3 = vshrl.u32 %v12767_v47, %v12838_v0  ;;  %v1391_v49 = vsel %vm1306_vm3, %v1390_v34, %v1366_v52  ;;  %vm1410_vm15 = vcmp.lt.s32.totalorder %v12825_v33, 0  ;;  %v1535_v15 = vshll.u32 %v12767_v47, %v12837_v50 }
 0x19c   : > { %vm6186_vm14 = vcmp.lt.s32.totalorder %v6185_v45, 0  ;;  %v1536_v62 = vshrl.u32 %v12749_v59, %v12838_v0  ;;  %v1469_v41 = vadd.s32 536870912, %v1468_v63  ;;  %v1531_v20 = vor.u32 %v1530_v8, %v1529_v60 }
 0x19d   : > { %v1375_v31 = vsel %vm6186_vm14, 0, %v6185_v45  ;;  %v1534_v27 = vor.u32 %v1533_v3, %v1532_v48  ;;  %vm1299_vm10 = vcmp.eq.s32.totalorder %v8555_v57, 2  ;;  %v1360_v2 = vadd.s32 %v8435_v11, %v8423_v42  ;;  %v12842_v3 = vld [vmem:[#allocation53_spill] sm:$0xff] }
 0x19e   : > { %v1376_v24 = vsub.s32 32, %v1375_v31  ;;  %v1380_v58 = vsub.s32 4294967266, %v1375_v31  ;;  %v1537_v52 = vor.u32 %v1536_v62, %v1535_v15  ;;  %vm1296_vm11 = vcmp.eq.s32.totalorder %v8555_v57, 0 }
 0x19f   : > { %v1393_v53 = vsel %vm8545_vm0, 0, %v1391_v49  ;;  %v1470_v22 = vshrl.u32 %v1469_v41, 30  ;;  %v1520_v1 = vor.u32 8388608, %v1519_v36  ;;  %vm1544_vm13 = vcmp.lt.s32.totalorder %v7639_v51, 1  ;;  %v12843_v49 = vld [vmem:[#allocation50_spill] sm:$0xff] }
 0x1a0   : > { %vm1295_vm2 = vcmp.lt.s32.totalorder %v8555_v57, 2  ;;  %v1377_v19 = vshll.u32 %v8509_v25, %v1375_v31  ;;  %v1378_v34 = vshrl.u32 %v1360_v2, %v1376_v24  ;;  %v1381_v16 = vadd.s32 127, %v1380_v58  ;;  %v12841_v25 = vld [vmem:[#allocation52_spill] sm:$0xff] }
 0x1a1   : > { %vm8589_vm7 = vcmp.le.f32.partialorder %v1408_v37, 0.7853982  ;;  %vm1546_vm8 = vcmp.lt.s32.totalorder %v7639_v51, 3  ;;  %vm1859_vm6 = vcmp.lt.s32.totalorder %v8018_v55, 4  ;;  %vm1292_vm1 = vweird.f32 %v12810_v30 }
 0x1a2   : > { %v1471_v11 = vshll.u32 %v1470_v22, 30  ;;  %v1494_v43 = vsub.s32 4, %v1470_v22  ;;  %v1552_v50 = vsel %vm1544_vm13, %v1531_v20, %v1534_v27  ;;  %v1554_v60 = vsel %vm1546_vm8, %v1537_v52, %v12841_v25 }
 0x1a3   : > { %v1379_v8 = vor.u32 %v1378_v34, %v1377_v19  ;;  %v1382_v37 = vshll.u32 %v1381_v16, 23  ;;  %v1528_v45 = vshrl.u32 %v12759_v12, %v12838_v0  ;;  %v1556_v6 = vsel %vm1544_vm13, %v1534_v27, %v1537_v52  ;;  %v6979_v62 = vpop.eup %6978 }
 0x1a4   : > { %v8605_v36 = vsub.s32 %v1468_v63, %v1471_v11  ;;  %vm1545_vm4 = vcmp.lt.s32.totalorder %v7639_v51, 2  ;;  %v1549_v48 = vsel %vm1547_vm9, %v1537_v52, 2102212464  ;;  %v1558_v15 = vsel %vm1546_vm8, %v12843_v49, %v12842_v3  ;;  %v6981_v2 = vpop.eup %6980 }
 0x1a5   : > { %v1383_v31 = vor.u32 4788187, %v1382_v37  ;;  %v1555_v0 = vsel %vm1545_vm4, %v1552_v50, %v1554_v60  ;;  %v1559_v41 = vsel %vm1545_vm4, %v1556_v6, %v1558_v15  ;;  %v1560_v63 = vshll.u32 %v1520_v1, 8 }
 0x1a6   : > { %v1300_v24 = vxor.u32 2147483648, %v6979_v62  ;;  %v1386_v58 = vcvt.s32.f32 %v1379_v8  ;;  %v1474_v19 = vsub.s32 0, %v8605_v36  ;;  %v1495_v52 = vsel %vm1410_vm15, %v1494_v43, %v1470_v22 }
 0x1a7   : > { %v1297_v34 = vxor.u32 2147483648, %v6981_v2  ;;  %v1384_v16 = vand.u32 2147483647, %v1383_v31  ;;  %v8621_v11 = vmul.u32.u64.low %v1560_v63, %v1559_v41  ;;  %v8622_v25 = vmul.u32.u64.high %v1560_v63, %v1559_v41, %v8621_v11 }
 0x1a8   : > { %v1301_v50 = vsel %vm1299_vm10, %v1300_v24, %v6981_v2  ;;  %v6188_v60 = vmin.u32 %v1474_v19, %v8605_v36  ;;  %v1548_v1 = vsel %vm1544_vm13, %v1528_v45, %v1531_v20  ;;  %v1550_v8 = vsel %vm1546_vm8, %v1534_v27, %v1549_v48  ;;  %v12844_v11 = vld [vmem:[#allocation6_spill] sm:$0xff] }
 0x1a9   : > { %v1298_v37 = vsel %vm1296_vm11, %v6979_v62, %v1297_v34  ;;  %v1387_v22 = vmul.f32 %v1386_v58, %v1384_v16  ;;  %v8633_v43 = vmul.u32.u64.low %v1560_v63, %v1555_v0  ;;  %v8634_v6 = vmul.u32.u64.high %v1560_v63, %v1555_v0, %v8633_v43 }
 0x1aa   : > { %v1302_v3 = vsel %vm1295_vm2, %v1298_v37, %v1301_v50  ;;  %v1397_v49 = vadd.s32 3, %v1393_v53  ;;  %v1476_v15 = vclz %v6188_v60  ;;  %v1497_v31 = vsel %vm8589_vm7, 0, %v1495_v52 }
 0x1ab   : > { %v8644_v20 = vsel %vm1859_vm6, %v8427_v35, 920167782  ;;  %v8651_v27 = vsel %vm1859_vm6, %v1855_v5, 1326507024  ;;  %v1303_v57 = vsel %vm1292_vm1, nan, %v1302_v3  ;;  %v1388_v53 = vxor.u32 2147483648, %v1387_v22 }
 0x1ac   : > { %v8657_v45 = vshrl.u32 %v12752_v23, %v8526_v40  ;;  %6489 = vmatprep.mubr.f32.mxu0 %v1303_v57  ;;  %v6189_v48 = vadd.s32 4294967294, %v1476_v15  ;;  %v1551_v62 = vsel %vm1545_vm4, %v1548_v1, %v1550_v8  ;;  %vm1569_vm9 = vc.u32 %v8622_v25, %v8633_v43  ;;  %v12845_v8 = vld [vmem:[#allocation31_spill] sm:$0xff] }
 0x1ad   : > { %v8665_v9 = vshrl.u32 %v12744_v18, %v8526_v40  ;;  %v1389_v30 = vsel %vm1306_vm3, %v1388_v53, %v1387_v22  ;;  %v1501_v39 = vadd.s32 3, %v1497_v31  ;;  %v1570_v5 = vadd.s32 1, %v8634_v6 }
 0x1ae   : > { %vm2147_vm12 = vcmp.gt.s32.totalorder %v8537_v44, 0  ;;  %v1392_v51 = vsel %vm8545_vm0, %v12818_v56, %v1389_v30  ;;  %v8674_v0 = vand.u32 3, %v1397_v49  ;;  %vm6190_vm14 = vcmp.lt.s32.totalorder %v6189_v48, 0 }
 0x1af   : > { %6982 = vcosq.f32 %v1392_v51  ;;  %v1479_v41 = vsel %vm6190_vm14, 0, %v6189_v48  ;;  %v1567_v2 = vmul.u32 %v1560_v63, %v1551_v62  ;;  %v1571_v24 = vsel %vm1569_vm9, %v1570_v5, %v8634_v6 }
 0x1b0   : > { %6984 = vsinq.f32 %v1392_v51  ;;  %v1464_v58 = vadd.s32 %v8518_v10, %v8512_v14  ;;  %v1480_v19 = vsub.s32 32, %v1479_v41  ;;  %v1484_v52 = vsub.s32 4294967266, %v1479_v41 }
 0x1b1   : > { %v8680_v34 = vsel %vm2147_vm12, %v8537_v44, 0  ;;  %v8682_v16 = vand.u32 3, %v1501_v39  ;;  %v1572_v54 = vadd.s32 %v1571_v24, %v1567_v2  ;;  %v1616_v50 = vand.u32 2147483647, %v12844_v11  ;;  %v12846_v44 = vld [vmem:[#allocation24_spill] sm:$0xff] }
 0x1b2   : > { %v1481_v60 = vshll.u32 %v8605_v36, %v1479_v41  ;;  %v1482_v1 = vshrl.u32 %v1464_v58, %v1480_v19  ;;  %v1485_v63 = vadd.s32 127, %v1484_v52  ;;  %v1634_v37 = vshrl.u32 %v12763_v32, %v12845_v8 }
 0x1b3   : > { %vm1403_vm0 = vcmp.eq.s32.totalorder %v8674_v0, 2  ;;  %v1573_v14 = vadd.s32 536870912, %v1572_v54  ;;  %v1637_v10 = vshrl.u32 %v12767_v47, %v12845_v8  ;;  %v1642_v22 = vshll.u32 %v12749_v59, %v12846_v44 }
 0x1b4   : > { %v1643_v6 = vshrl.u32 %v12752_v23, %v12845_v8  ;;  %vm1400_vm3 = vcmp.eq.s32.totalorder %v8674_v0, 0  ;;  %v1483_v36 = vor.u32 %v1482_v1, %v1481_v60  ;;  %v1486_v3 = vshll.u32 %v1485_v63, 23  ;;  %v12847_v60 = vld [vmem:[#allocation30_spill] sm:$0xff] }
 0x1b5   : > { %v1633_v49 = vshll.u32 %v12759_v12, %v12846_v44  ;;  %v1640_v15 = vshrl.u32 %v12749_v59, %v12845_v8  ;;  %vm1399_vm10 = vcmp.lt.s32.totalorder %v8674_v0, 2  ;;  %v1574_v31 = vshrl.u32 %v1573_v14, 30 }
 0x1b6   : > { %v1623_v57 = vand.u32 8388607, %v1616_v50  ;;  %v1636_v53 = vshll.u32 %v12763_v32, %v12846_v44  ;;  %v1644_v48 = vor.u32 %v1643_v6, %v1642_v22  ;;  %vm1396_vm11 = vweird.f32 %v12818_v56 }
 0x1b7   : > { %v1487_v62 = vor.u32 4788187, %v1486_v3  ;;  %v1632_v30 = vshrl.u32 %v12759_v12, %v12845_v8  ;;  %v1639_v39 = vshll.u32 %v12767_v47, %v12846_v44  ;;  %v1646_v5 = vshrl.u32 %v12744_v18, %v12845_v8 }
 0x1b8   : > { %v1575_v51 = vshll.u32 %v1574_v31, 30  ;;  %v1635_v41 = vor.u32 %v1634_v37, %v1633_v49  ;;  %v1638_v2 = vor.u32 %v1637_v10, %v1636_v53  ;;  %v1645_v24 = vshll.u32 %v12752_v23, %v12846_v44 }
 0x1b9   : > { %v1488_v58 = vand.u32 2147483647, %v1487_v62  ;;  %v1490_v19 = vcvt.s32.f32 %v1483_v36  ;;  %vm1514_vm13 = vcmp.lt.s32.totalorder %v12834_v17, 0  ;;  %v1641_v52 = vor.u32 %v1640_v15, %v1639_v39  ;;  %v6983_v1 = vpop.eup %6982 }
 0x1ba   : > { %vm1651_vm2 = vcmp.lt.s32.totalorder %v12847_v60, 4  ;;  %v8716_v63 = vsub.s32 %v1572_v54, %v1575_v51  ;;  %v1624_v14 = vor.u32 8388608, %v1623_v57  ;;  %vm1648_vm8 = vcmp.lt.s32.totalorder %v12847_v60, 1  ;;  %v6985_v37 = vpop.eup %6984 }
 0x1bb   : > { %v1657_v8 = vsel %vm1651_vm2, %v1644_v48, 920167782  ;;  %v1404_v10 = vxor.u32 2147483648, %v6983_v1  ;;  %v1491_v22 = vmul.f32 %v1490_v19, %v1488_v58  ;;  %v1647_v44 = vor.u32 %v1646_v5, %v1645_v24 }
 0x1bc   : > { %vm1649_vm1 = vcmp.lt.s32.totalorder %v12847_v60, 2  ;;  %v1401_v6 = vxor.u32 2147483648, %v6985_v37  ;;  %v1578_v36 = vsub.s32 0, %v8716_v63  ;;  %v1598_v3 = vsub.s32 4, %v1574_v31 }
 0x1bd   : > { %vm1650_vm4 = vcmp.lt.s32.totalorder %v12847_v60, 3  ;;  %v1405_v54 = vsel %vm1403_vm0, %v1404_v10, %v6985_v37  ;;  %v1492_v49 = vxor.u32 2147483648, %v1491_v22  ;;  %v1656_v15 = vsel %vm1648_vm8, %v1635_v41, %v1638_v2 }
 0x1be   : > { %v1658_v57 = vsel %vm1650_vm4, %v1641_v52, %v1657_v8  ;;  %v1402_v53 = vsel %vm1400_vm3, %v6983_v1, %v1401_v6  ;;  %v6192_v62 = vmin.u32 %v1578_v36, %v8716_v63  ;;  %v1652_v39 = vsel %vm1648_vm8, %v1632_v30, %v1635_v41 }
 0x1bf   : > { %v1653_v5 = vsel %vm1651_vm2, %v1641_v52, 2102212464  ;;  %v1406_v51 = vsel %vm1399_vm10, %v1402_v53, %v1405_v54  ;;  %v1493_v24 = vsel %vm1410_vm15, %v1492_v49, %v1491_v22  ;;  %v1660_v58 = vsel %vm1648_vm8, %v1638_v2, %v1641_v52 }
 0x1c0   : > { %v1661_v19 = vsel %vm1651_vm2, %v1647_v44, 1326507024  ;;  %v1407_v1 = vsel %vm1396_vm11, nan, %v1406_v51  ;;  %v1496_v30 = vsel %vm8589_vm7, %v12825_v33, %v1493_v24  ;;  %v1580_v41 = vclz %v6192_v62  ;;  %v12852_v24 = vld [vmem:[#allocation45_spill] sm:$0xff] }
 0x1c1   : > { %v1659_v0 = vsel %vm1649_vm1, %v1656_v15, %v1658_v57  ;;  %6490 = vmatmul.mubr.f32.gmra.mrb[6].mxu0 %v1407_v1  ;;  %6986 = vcosq.f32 %v1496_v30  ;;  %v1654_v8 = vsel %vm1650_vm4, %v1638_v2, %v1653_v5  ;;  %v1662_v52 = vsel %vm1650_vm4, %v1644_v48, %v1661_v19  ;;  %v12850_v57 = vld [vmem:[#allocation14_spill] sm:$0xff] }
 0x1c2   : > { %v1664_v37 = vshll.u32 %v1624_v14, 8  ;;  %6988 = vsinq.f32 %v1496_v30  ;;  %v6193_v56 = vadd.s32 4294967294, %v1580_v41  ;;  %v1599_v10 = vsel %vm1514_vm13, %v1598_v3, %v1574_v31 }
 0x1c3   : > { %v1663_v42 = vsel %vm1649_vm1, %v1660_v58, %v1662_v52  ;;  %v8769_v2 = vor.u32 %v8657_v45, %v8530_v38  ;;  %v1959_v48 = vor.u32 %v8665_v9, %v8534_v28  ;;  %v1655_v31 = vsel %vm1649_vm1, %v1652_v39, %v1654_v8 }
 0x1c4   : > { %v8760_v22 = vmul.u32.u64.low %v1664_v37, %v1663_v42  ;;  %v8761_v44 = vmul.u32.u64.high %v1664_v37, %v1663_v42, %v8760_v22  ;;  %v8763_v6 = vmul.u32.u64.low %v1664_v37, %v1659_v0  ;;  %v8764_v36 = vmul.u32.u64.high %v1664_v37, %v1659_v0, %v8763_v6 }
 0x1c5   : > { %vm6194_vm15 = vcmp.lt.s32.totalorder %v6193_v56, 0  ;;  %v8776_v14 = vand.u32 31, %v8680_v34  ;;  %vm1507_vm7 = vcmp.eq.s32.totalorder %v8682_v16, 2  ;;  %vm8781_vm9 = vcmp.le.f32.partialorder %v1512_v4, 0.7853982 }
 0x1c6   : > { %v1583_v38 = vsel %vm6194_vm15, 0, %v6193_v56  ;;  %vm1504_vm12 = vcmp.eq.s32.totalorder %v8682_v16, 0  ;;  %v1568_v45 = vadd.s32 %v8633_v43, %v8622_v25  ;;  %v1601_v49 = vsel %vm8781_vm9, 0, %v1599_v10  ;;  %v12851_v25 = vld [vmem:[#allocation48_spill] sm:$0xff] }
 0x1c7   : > { %v1584_v54 = vsub.s32 32, %v1583_v38  ;;  %v1588_v60 = vsub.s32 4294967266, %v1583_v38  ;;  %vm1503_vm14 = vcmp.lt.s32.totalorder %v8682_v16, 2  ;;  %v1671_v15 = vmul.u32 %v1664_v37, %v1655_v31 }
 0x1c8   : > { %vm1673_vm0 = vc.u32 %v8761_v44, %v8763_v6  ;;  %v1674_v4 = vadd.s32 1, %v8764_v36  ;;  %v1720_v53 = vand.u32 2147483647, %v12850_v57  ;;  %v1585_v62 = vshll.u32 %v8716_v63, %v1583_v38 }
 0x1c9   : > { %v1586_v39 = vshrl.u32 %v1568_v45, %v1584_v54  ;;  %v1589_v5 = vadd.s32 127, %v1588_v60  ;;  %v1738_v43 = vshrl.u32 %v12763_v32, %v12851_v25  ;;  %vm1963_vm3 = vcmp.lt.s32.totalorder %v8344_v29, 4 }
 0x1ca   : > { %v1675_v51 = vsel %vm1673_vm0, %v1674_v4, %v8764_v36  ;;  %v1737_v58 = vshll.u32 %v12759_v12, %v12852_v24  ;;  %v1740_v19 = vshll.u32 %v12763_v32, %v12852_v24  ;;  %v1741_v1 = vshrl.u32 %v12767_v47, %v12851_v25 }
 0x1cb   : > { %v1587_v30 = vor.u32 %v1586_v39, %v1585_v62  ;;  %v1590_v63 = vshll.u32 %v1589_v5, 23  ;;  %v1676_v41 = vadd.s32 %v1675_v51, %v1671_v15  ;;  %v1744_v0 = vshrl.u32 %v12749_v59, %v12851_v25  ;;  %v6987_v8 = vpop.eup %6986 }
 0x1cc   : > { %v1605_v52 = vadd.s32 3, %v1601_v49  ;;  %v1727_v37 = vand.u32 8388607, %v1720_v53  ;;  %v1742_v56 = vor.u32 %v1741_v1, %v1740_v19  ;;  %v1743_v10 = vshll.u32 %v12767_v47, %v12852_v24  ;;  %v6989_v42 = vpop.eup %6988 }
 0x1cd   : > { %v1508_v22 = vxor.u32 2147483648, %v6987_v8  ;;  %v1591_v36 = vor.u32 4788187, %v1590_v63  ;;  %v1677_v31 = vadd.s32 536870912, %v1676_v41  ;;  %v1739_v38 = vor.u32 %v1738_v43, %v1737_v58  ;;  %v12853_v43 = vld [vmem:[#allocation51_spill] sm:$0xff]  ;;  %v12854_v63 = vld [vmem:[#allocation54_spill] sm:$0xff] }
 0x1ce   : > { %v1505_v45 = vxor.u32 2147483648, %v6989_v42  ;;  %v1745_v54 = vor.u32 %v1744_v0, %v1743_v10  ;;  %vm1752_vm10 = vcmp.lt.s32.totalorder %v7709_v46, 1  ;;  %vm1754_vm11 = vcmp.lt.s32.totalorder %v7709_v46, 3 }
 0x1cf   : > { %v1509_v60 = vsel %vm1507_vm7, %v1508_v22, %v6989_v42  ;;  %v1592_v49 = vand.u32 2147483647, %v1591_v36  ;;  %v1594_v15 = vcvt.s32.f32 %v1587_v30  ;;  %v1678_v4 = vshrl.u32 %v1677_v31, 30 }
 0x1d0   : > { %v1506_v62 = vsel %vm1504_vm12, %v6987_v8, %v1505_v45  ;;  %v1728_v39 = vor.u32 8388608, %v1727_v37  ;;  %v1764_v5 = vsel %vm1752_vm10, %v1742_v56, %v1745_v54  ;;  %v1766_v51 = vsel %vm1754_vm11, %v12853_v43, %v7905_v13 }
 0x1d1   : > { %vm1500_vm2 = vweird.f32 %v12825_v33  ;;  %v1510_v24 = vsel %vm1503_vm14, %v1506_v62, %v1509_v60  ;;  %v1595_v58 = vmul.f32 %v1594_v15, %v1592_v49  ;;  %v1679_v19 = vshll.u32 %v1678_v4, 30 }
 0x1d2   : > { %v1511_v1 = vsel %vm1500_vm2, nan, %v1510_v24  ;;  %vm1753_vm8 = vcmp.lt.s32.totalorder %v7709_v46, 2  ;;  %v1760_v30 = vsel %vm1752_vm10, %v1739_v38, %v1742_v56  ;;  %v1762_v0 = vsel %vm1754_vm11, %v1745_v54, %v12854_v63 }
 0x1d3   : > { %v8836_v13 = vsel %vm1963_vm3, %v8769_v2, 920167782  ;;  %6492 = vmatprep.mubr.f32.mxu0 %v1511_v1  ;;  %v1596_v33 = vxor.u32 2147483648, %v1595_v58  ;;  %v8838_v16 = vsub.s32 %v1676_v41, %v1679_v19  ;;  %v1767_v8 = vsel %vm1753_vm8, %v1764_v5, %v1766_v51 }
 0x1d4   : > { %v8843_v37 = vsub.s32 32, %v8776_v14  ;;  %v8845_v10 = vand.u32 3, %v1605_v52  ;;  %v1757_v42 = vsel %vm1755_vm5, %v1745_v54, 2102212464  ;;  %v1768_v22 = vshll.u32 %v1728_v39, 8  ;;  %v12855_v54 = vld [vmem:[#allocation42_spill] sm:$0xff] }
 0x1d5   : > { %v1597_v36 = vsel %vm1514_vm13, %v1596_v33, %v1595_v58  ;;  %v1682_v31 = vsub.s32 0, %v8838_v16  ;;  %v1736_v41 = vshrl.u32 %v12759_v12, %v12851_v25  ;;  %v1763_v45 = vsel %vm1753_vm8, %v1760_v30, %v1762_v0 }
 0x1d6   : > { %v1600_v52 = vsel %vm8781_vm9, %v12834_v17, %v1597_v36  ;;  %v8859_v60 = vmul.u32.u64.low %v1768_v22, %v1767_v8  ;;  %v8860_v49 = vmul.u32.u64.high %v1768_v22, %v1767_v8, %v8859_v60  ;;  %v1824_v15 = vand.u32 2147483647, %v12855_v54 }
 0x1d7   : > { %6990 = vcosq.f32 %v1600_v52  ;;  %v6196_v62 = vmin.u32 %v1682_v31, %v8838_v16  ;;  %v1756_v39 = vsel %vm1752_vm10, %v1736_v41, %v1739_v38  ;;  %v1758_v25 = vsel %vm1754_vm11, %v1742_v56, %v1757_v42 }
 0x1d8   : > { %v8873_v3 = vsel %vm1963_vm3, %v1959_v48, 1326507024  ;;  %6992 = vsinq.f32 %v1600_v52  ;;  %v8875_v5 = vmul.u32.u64.low %v1768_v22, %v1763_v45  ;;  %v8876_v43 = vmul.u32.u64.high %v1768_v22, %v1763_v45, %v8875_v5 }
 0x1d9   : > { %v8881_v51 = vshrl.u32 %v12752_v23, %v8843_v37  ;;  %vm1618_vm5 = vcmp.lt.s32.totalorder %v12844_v11, 0  ;;  %v1684_v38 = vclz %v6196_v62  ;;  %v1702_v56 = vsub.s32 4, %v1678_v4 }
 0x1da   : > { %vm8886_vm13 = vcmp.le.f32.partialorder %v1616_v50, 0.7853982  ;;  %v1759_v9 = vsel %vm1753_vm8, %v1756_v39, %v1758_v25  ;;  %vm1777_vm1 = vc.u32 %v8860_v49, %v8875_v5  ;;  %v1831_v48 = vand.u32 8388607, %v1824_v15 }
 0x1db   : > { %vm1611_vm4 = vcmp.eq.s32.totalorder %v8845_v10, 2  ;;  %v6197_v24 = vadd.s32 4294967294, %v1684_v38  ;;  %v1841_v58 = vshll.u32 %v12759_v12, %v7911_v26  ;;  %v1842_v50 = vshrl.u32 %v12763_v32, %v8024_v61 }
 0x1dc   : > { %v1844_v19 = vshll.u32 %v12763_v32, %v7911_v26  ;;  %vm1608_vm15 = vcmp.eq.s32.totalorder %v8845_v10, 0  ;;  %v1778_v46 = vadd.s32 1, %v8876_v43  ;;  %v1845_v1 = vshrl.u32 %v12767_v47, %v8024_v61 }
 0x1dd   : > { %v1847_v30 = vshll.u32 %v12767_v47, %v7911_v26  ;;  %v1848_v63 = vshrl.u32 %v12749_v59, %v8024_v61  ;;  %vm1607_vm7 = vcmp.lt.s32.totalorder %v8845_v10, 2  ;;  %vm6198_vm9 = vcmp.lt.s32.totalorder %v6197_v24, 0 }
 0x1de   : > { %v1703_v0 = vsel %vm1618_vm5, %v1702_v56, %v1678_v4  ;;  %v1775_v33 = vmul.u32 %v1768_v22, %v1759_v9  ;;  %v1843_v8 = vor.u32 %v1842_v50, %v1841_v58  ;;  %vm1604_vm12 = vweird.f32 %v12834_v17 }
 0x1df   : > { %v1687_v42 = vsel %vm6198_vm9, 0, %v6197_v24  ;;  %v1779_v36 = vsel %vm1777_vm1, %v1778_v46, %v8876_v43  ;;  %v1846_v26 = vor.u32 %v1845_v1, %v1844_v19  ;;  %v1849_v31 = vor.u32 %v1848_v63, %v1847_v30 }
 0x1e0   : > { %v1672_v41 = vadd.s32 %v8763_v6, %v8761_v44  ;;  %v1688_v45 = vsub.s32 32, %v1687_v42  ;;  %v1692_v52 = vsub.s32 4294967266, %v1687_v42  ;;  %v1780_v60 = vadd.s32 %v1779_v36, %v1775_v33 }
 0x1e1   : > { %v1689_v4 = vshll.u32 %v8838_v16, %v1687_v42  ;;  %v1705_v22 = vsel %vm8886_vm13, 0, %v1703_v0  ;;  %v1832_v62 = vor.u32 8388608, %v1831_v48  ;;  %vm1856_vm14 = vcmp.lt.s32.totalorder %v8018_v55, 1  ;;  %v6991_v39 = vpop.eup %6990 }
 0x1e2   : > { %v1690_v25 = vshrl.u32 %v1672_v41, %v1688_v45  ;;  %v1693_v38 = vadd.s32 127, %v1692_v52  ;;  %v1781_v43 = vadd.s32 536870912, %v1780_v60  ;;  %vm1858_vm0 = vcmp.lt.s32.totalorder %v8018_v55, 3  ;;  %v6993_v56 = vpop.eup %6992 }
 0x1e3   : > { %v1612_v9 = vxor.u32 2147483648, %v6991_v39  ;;  %v1864_v44 = vsel %vm1856_vm14, %v1843_v8, %v1846_v26  ;;  %v1866_v6 = vsel %vm1858_vm0, %v1849_v31, %v8644_v20  ;;  %v1868_v16 = vsel %vm1856_vm14, %v1846_v26, %v1849_v31 }
 0x1e4   : > { %v1609_v48 = vxor.u32 2147483648, %v6993_v56  ;;  %v1691_v24 = vor.u32 %v1690_v25, %v1689_v4  ;;  %v1694_v58 = vshll.u32 %v1693_v38, 23  ;;  %v1782_v50 = vshrl.u32 %v1781_v43, 30 }
 0x1e5   : > { %v1613_v19 = vsel %vm1611_vm4, %v1612_v9, %v6993_v56  ;;  %v1840_v46 = vshrl.u32 %v12759_v12, %v8024_v61  ;;  %vm1857_vm10 = vcmp.lt.s32.totalorder %v8018_v55, 2  ;;  %v1870_v20 = vsel %vm1858_vm0, %v8427_v35, %v8651_v27 }
 0x1e6   : > { %v1610_v1 = vsel %vm1608_vm15, %v6991_v39, %v1609_v48  ;;  %v1695_v30 = vor.u32 4788187, %v1694_v58  ;;  %v1783_v63 = vshll.u32 %v1782_v50, 30  ;;  %v1861_v0 = vsel %vm1859_vm6, %v1849_v31, 2102212464 }
 0x1e7   : > { %v1614_v33 = vsel %vm1607_vm7, %v1610_v1, %v1613_v19  ;;  %v1867_v61 = vsel %vm1857_vm10, %v1864_v44, %v1866_v6  ;;  %v1871_v42 = vsel %vm1857_vm10, %v1868_v16, %v1870_v20  ;;  %v1872_v36 = vshll.u32 %v1832_v62, 8 }
 0x1e8   : > { %v1615_v35 = vsel %vm1604_vm12, nan, %v1614_v33  ;;  %v1696_v27 = vand.u32 2147483647, %v1695_v30  ;;  %v1698_v41 = vcvt.s32.f32 %v1691_v24  ;;  %v8954_v45 = vsub.s32 %v1780_v60, %v1783_v63 }
 0x1e9   : > { %6493 = vmatmul.mubr.f32.gmra.mrb[8].mxu0 %v1615_v35  ;;  %v1860_v31 = vsel %vm1856_vm14, %v1840_v46, %v1843_v8  ;;  %v1862_v10 = vsel %vm1858_vm0, %v1846_v26, %v1861_v0  ;;  %v8960_v52 = vmul.u32.u64.low %v1872_v36, %v1871_v42  ;;  %v8961_v4 = vmul.u32.u64.high %v1872_v36, %v1871_v42, %v8960_v52 }
 0x1ea   : > { %v8964_v39 = vshrl.u32 %v8680_v34, 5  ;;  %v1699_v62 = vmul.f32 %v1698_v41, %v1696_v27  ;;  %v1709_v17 = vadd.s32 3, %v1705_v22  ;;  %v1786_v25 = vsub.s32 0, %v8954_v45  ;;  %v12858_v34 = vld [vmem:[#allocation46_spill] sm:$0xff] }
 0x1eb   : > { %v2162_v60 = vshll.u32 %v12749_v59, %v8776_v14  ;;  %v1806_v38 = vsub.s32 4, %v1782_v50  ;;  %v8969_v43 = vmul.u32.u64.low %v1872_v36, %v1867_v61  ;;  %v8970_v56 = vmul.u32.u64.high %v1872_v36, %v1867_v61, %v8969_v43 }
 0x1ec   : > { %v1700_v8 = vxor.u32 2147483648, %v1699_v62  ;;  %v6200_v26 = vmin.u32 %v1786_v25, %v8954_v45  ;;  %v1863_v9 = vsel %vm1857_vm10, %v1860_v31, %v1862_v10  ;;  %v1928_v44 = vand.u32 2147483647, %v12858_v34 }
 0x1ed   : > { %v8978_v22 = vor.u32 %v8881_v51, %v2162_v60  ;;  %v8982_v6 = vshll.u32 %v12752_v23, %v8776_v14  ;;  %v8986_v16 = vshrl.u32 %v12744_v18, %v8843_v37  ;;  %vm1722_vm6 = vcmp.lt.s32.totalorder %v12850_v57, 0 }
 0x1ee   : > { %v1701_v48 = vsel %vm1618_vm5, %v1700_v8, %v1699_v62  ;;  %v8991_v55 = vand.u32 3, %v1709_v17  ;;  %vm8995_vm11 = vcmp.le.f32.partialorder %v1720_v53, 0.7853982  ;;  %v1788_v24 = vclz %v6200_v26 }
 0x1ef   : > { %v1704_v58 = vsel %vm8886_vm13, %v12844_v11, %v1701_v48  ;;  %v1807_v19 = vsel %vm1722_vm6, %v1806_v38, %v1782_v50  ;;  %v1879_v46 = vmul.u32 %v1872_v36, %v1863_v9  ;;  %vm1881_vm2 = vc.u32 %v8961_v4, %v8969_v43 }
 0x1f0   : > { %6994 = vcosq.f32 %v1704_v58  ;;  %v6201_v20 = vadd.s32 4294967294, %v1788_v24  ;;  %v1882_v1 = vadd.s32 1, %v8970_v56  ;;  %v1935_v53 = vand.u32 8388607, %v1928_v44 }
 0x1f1   : > { %6996 = vsinq.f32 %v1704_v58  ;;  %v1946_v30 = vshrl.u32 %v12763_v32, %v8526_v40  ;;  %v1948_v28 = vshll.u32 %v12763_v32, %v8412_v7  ;;  %v1949_v50 = vshrl.u32 %v12767_v47, %v8526_v40 }
 0x1f2   : > { %vm6202_vm8 = vcmp.lt.s32.totalorder %v6201_v20, 0  ;;  %v1883_v63 = vsel %vm1881_vm2, %v1882_v1, %v8970_v56  ;;  %v1951_v0 = vshll.u32 %v12767_v47, %v8412_v7  ;;  %v1952_v33 = vshrl.u32 %v12749_v59, %v8526_v40 }
 0x1f3   : > { %v1776_v61 = vadd.s32 %v8875_v5, %v8860_v49  ;;  %v1791_v42 = vsel %vm6202_vm8, 0, %v6201_v20  ;;  %v1884_v36 = vadd.s32 %v1883_v63, %v1879_v46  ;;  %v1945_v35 = vshll.u32 %v12759_v12, %v8412_v7 }
 0x1f4   : > { %v1792_v27 = vsub.s32 32, %v1791_v42  ;;  %v1796_v41 = vsub.s32 4294967266, %v1791_v42  ;;  %v1950_v31 = vor.u32 %v1949_v50, %v1948_v28  ;;  %v1953_v10 = vor.u32 %v1952_v33, %v1951_v0 }
 0x1f5   : > { %vm1712_vm5 = vcmp.eq.s32.totalorder %v8991_v55, 0  ;;  %v1809_v52 = vsel %vm8995_vm11, 0, %v1807_v19  ;;  %v1885_v62 = vadd.s32 536870912, %v1884_v36  ;;  %v1936_v17 = vor.u32 8388608, %v1935_v53 }
 0x1f6   : > { %v1944_v25 = vshrl.u32 %v12759_v12, %v8526_v40  ;;  %vm1711_vm13 = vcmp.lt.s32.totalorder %v8991_v55, 2  ;;  %v1793_v49 = vshll.u32 %v8954_v45, %v1791_v42  ;;  %v1794_v5 = vshrl.u32 %v1776_v61, %v1792_v27  ;;  %v12861_v42 = vld [vmem:[#allocation7_spill] sm:$0xff] }
 0x1f7   : > { %v1797_v7 = vadd.s32 127, %v1796_v41  ;;  %v1947_v60 = vor.u32 %v1946_v30, %v1945_v35  ;;  %v9031_v38 = vshrl.u32 %v1885_v62, 30  ;;  %vm1960_vm1 = vcmp.lt.s32.totalorder %v8344_v29, 1 }
 0x1f8   : > { %vm1962_vm4 = vcmp.lt.s32.totalorder %v8344_v29, 3  ;;  %v1965_v56 = vsel %vm1963_vm3, %v1953_v10, 2102212464  ;;  %v1795_v8 = vor.u32 %v1794_v5, %v1793_v49  ;;  %v1972_v9 = vsel %vm1960_vm1, %v1950_v31, %v1953_v10 }
 0x1f9   : > { %v1798_v26 = vshll.u32 %v1797_v7, 23  ;;  %v1974_v40 = vsel %vm1962_vm4, %v8769_v2, %v8873_v3  ;;  %vm1715_vm15 = vcmp.eq.s32.totalorder %v8991_v55, 2  ;;  %v1813_v45 = vadd.s32 3, %v1809_v52 }
 0x1fa   : > { %v1887_v48 = vshll.u32 %v9031_v38, 30  ;;  %vm1961_vm7 = vcmp.lt.s32.totalorder %v8344_v29, 2  ;;  %v6995_v24 = vpop.eup %6994  ;;  %v1964_v19 = vsel %vm1960_vm1, %v1944_v25, %v1947_v60  ;;  %v1968_v46 = vsel %vm1960_vm1, %v1947_v60, %v1950_v31 }
 0x1fb   : > { %v1799_v58 = vor.u32 4788187, %v1798_v26  ;;  %v1970_v20 = vsel %vm1962_vm4, %v1953_v10, %v8836_v13  ;;  %v6997_v1 = vpop.eup %6996  ;;  %v1716_v53 = vxor.u32 2147483648, %v6995_v24  ;;  %v1966_v2 = vsel %vm1962_vm4, %v1950_v31, %v1965_v56 }
 0x1fc   : > { %v9047_v30 = vsub.s32 %v1884_v36, %v1887_v48  ;;  %v1975_v3 = vsel %vm1961_vm7, %v1972_v9, %v1974_v40  ;;  %v1713_v28 = vxor.u32 2147483648, %v6997_v1  ;;  %v1802_v63 = vcvt.s32.f32 %v1795_v8 }
 0x1fd   : > { %v1800_v50 = vand.u32 2147483647, %v1799_v58  ;;  %v1976_v0 = vshll.u32 %v1936_v17, 8  ;;  %v1717_v33 = vsel %vm1715_vm15, %v1716_v53, %v6997_v1  ;;  %v1971_v13 = vsel %vm1961_vm7, %v1968_v46, %v1970_v20  ;;  %v12865_v58 = vld [vmem:[#allocation37_spill] sm:$0xff] }
 0x1fe   : > { %v1890_v61 = vsub.s32 0, %v9047_v30  ;;  %v2032_v36 = vand.u32 2147483647, %v12861_v42  ;;  %v1714_v35 = vsel %vm1712_vm5, %v6995_v24, %v1713_v28  ;;  %vm1708_vm3 = vweird.f32 %v12844_v11 }
 0x1ff   : > { %v1803_v27 = vmul.f32 %v1802_v63, %v1800_v50  ;;  %v9061_v41 = vmul.u32.u64.low %v1976_v0, %v1975_v3  ;;  %v9062_v31 = vmul.u32.u64.high %v1976_v0, %v1975_v3, %v9061_v41  ;;  %v1718_v10 = vsel %vm1711_vm13, %v1714_v35, %v1717_v33 }
 0x200   : > { %v6204_v52 = vmin.u32 %v1890_v61, %v9047_v30  ;;  %v1967_v62 = vsel %vm1961_vm7, %v1964_v19, %v1966_v2  ;;  %v1719_v17 = vsel %vm1708_vm3, nan, %v1718_v10  ;;  %v2167_v7 = vor.u32 %v8986_v16, %v8982_v6  ;;  %v12866_v10 = vld [vmem:[#allocation38_spill] sm:$0xff] }
 0x201   : > { %v1804_v25 = vxor.u32 2147483648, %v1803_v27  ;;  %v9070_v49 = vmul.u32.u64.low %v1976_v0, %v1971_v13  ;;  %v9071_v5 = vmul.u32.u64.high %v1976_v0, %v1971_v13, %v9070_v49  ;;  %6495 = vmatprep.mubr.f32.mxu0 %v1719_v17  ;;  %v9076_v60 = vand.u32 3, %v1813_v45  ;;  %v12864_v45 = vld [vmem:[#allocation33_spill] sm:$0xff] }
 0x202   : > { %vm1826_vm9 = vcmp.lt.s32.totalorder %v12855_v54, 0  ;;  %v1892_v11 = vclz %v6204_v52  ;;  %v1910_v29 = vsub.s32 4, %v9031_v38  ;;  %v1983_v56 = vmul.u32 %v1976_v0, %v1967_v62 }
 0x203   : > { %v1805_v55 = vsel %vm1722_vm6, %v1804_v25, %v1803_v27  ;;  %v2039_v8 = vand.u32 8388607, %v2032_v36  ;;  %vm9089_vm12 = vcmp.le.f32.partialorder %v1824_v15, 0.7853982  ;;  %vm1985_vm14 = vc.u32 %v9062_v31, %v9070_v49 }
 0x204   : > { %v1808_v26 = vsel %vm8995_vm11, %v12850_v57, %v1805_v55  ;;  %v6205_v40 = vadd.s32 4294967294, %v1892_v11  ;;  %v2049_v48 = vshll.u32 %v12759_v12, %v12864_v45  ;;  %v1986_v24 = vadd.s32 1, %v9071_v5  ;;  %v12868_v11 = vld [vmem:[#allocation49_spill] sm:$0xff]  ;;  %v12869_v55 = vld [vmem:[#allocation44_spill] sm:$0xff] }
 0x205   : > { %6998 = vcosq.f32 %v1808_v26  ;;  %v2050_v51 = vshrl.u32 %v12763_v32, %v12865_v58  ;;  %v2052_v19 = vshll.u32 %v12763_v32, %v12864_v45  ;;  %v2053_v15 = vshrl.u32 %v12767_v47, %v12865_v58 }
 0x206   : > { %7000 = vsinq.f32 %v1808_v26  ;;  %vm6206_vm0 = vcmp.lt.s32.totalorder %v6205_v40, 0  ;;  %v2055_v46 = vshll.u32 %v12767_v47, %v12864_v45  ;;  %v1987_v1 = vsel %vm1985_vm14, %v1986_v24, %v9071_v5 }
 0x207   : > { %v1895_v20 = vsel %vm6206_vm0, 0, %v6205_v40  ;;  %v2051_v53 = vor.u32 %v2050_v51, %v2049_v48  ;;  %v2056_v2 = vshrl.u32 %v12749_v59, %v12865_v58  ;;  %v1880_v3 = vadd.s32 %v8969_v43, %v8961_v4 }
 0x208   : > { %v1896_v28 = vsub.s32 32, %v1895_v20  ;;  %v1900_v50 = vsub.s32 4294967266, %v1895_v20  ;;  %v1988_v63 = vadd.s32 %v1987_v1, %v1983_v56  ;;  %v1897_v0 = vshll.u32 %v9047_v30, %v1895_v20 }
 0x209   : > { %v1911_v33 = vsel %vm1826_vm9, %v1910_v29, %v9031_v38  ;;  %v2054_v61 = vor.u32 %v2053_v15, %v2052_v19  ;;  %v2057_v13 = vor.u32 %v2056_v2, %v2055_v46  ;;  %vm2064_vm10 = vcmp.lt.s32.totalorder %v12866_v10, 1  ;;  %v12867_v38 = vld [vmem:[#allocation47_spill] sm:$0xff] }
 0x20a   : > { %v1898_v35 = vshrl.u32 %v1880_v3, %v1896_v28  ;;  %v1901_v27 = vadd.s32 127, %v1900_v50  ;;  %v1989_v41 = vadd.s32 536870912, %v1988_v63  ;;  %vm1816_vm6 = vcmp.eq.s32.totalorder %v9076_v60, 0 }
 0x20b   : > { %v2040_v52 = vor.u32 8388608, %v2039_v8  ;;  %vm2066_vm11 = vcmp.lt.s32.totalorder %v12866_v10, 3  ;;  %v2072_v4 = vsel %vm2064_vm10, %v2051_v53, %v2054_v61  ;;  %vm1819_vm2 = vcmp.eq.s32.totalorder %v9076_v60, 2 }
 0x20c   : > { %v1899_v43 = vor.u32 %v1898_v35, %v1897_v0  ;;  %v1902_v30 = vshll.u32 %v1901_v27, 23  ;;  %v9120_v62 = vshrl.u32 %v1989_v41, 30  ;;  %v2074_v17 = vsel %vm2066_vm11, %v2057_v13, %v12867_v38 }
 0x20d   : > { %v1913_v25 = vsel %vm9089_vm12, 0, %v1911_v33  ;;  %v2076_v5 = vsel %vm2064_vm10, %v2054_v61, %v2057_v13  ;;  %v2078_v29 = vsel %vm2066_vm11, %v12869_v55, %v12868_v11  ;;  %v2048_v26 = vshrl.u32 %v12759_v12, %v12865_v58 }
 0x20e   : > { %v1903_v56 = vor.u32 4788187, %v1902_v30  ;;  %v1991_v8 = vshll.u32 %v9120_v62, 30  ;;  %vm2065_vm8 = vcmp.lt.s32.totalorder %v12866_v10, 2  ;;  %vm12870_vm5 = vcmp.lt.s32.totalorder %v12866_v10, 4 }
 0x20f   : > { %v6999_v40 = vpop.eup %6998  ;;  %v2069_v45 = vsel %vm12870_vm5, %v2057_v13, 2102212464  ;;  %v2075_v48 = vsel %vm2065_vm8, %v2072_v4, %v2074_v17  ;;  %v2079_v24 = vsel %vm2065_vm8, %v2076_v5, %v2078_v29  ;;  %v2080_v51 = vshll.u32 %v2040_v52, 8 }
 0x210   : > { %v7001_v19 = vpop.eup %7000  ;;  %v1820_v15 = vxor.u32 2147483648, %v6999_v40  ;;  %v1904_v46 = vand.u32 2147483647, %v1903_v56  ;;  %v1906_v20 = vcvt.s32.f32 %v1899_v43  ;;  %v9144_v1 = vsub.s32 %v1988_v63, %v1991_v8 }
 0x211   : > { %v1817_v58 = vxor.u32 2147483648, %v7001_v19  ;;  %v2068_v2 = vsel %vm2064_vm10, %v2048_v26, %v2051_v53  ;;  %v9148_v3 = vmul.u32.u64.low %v2080_v51, %v2079_v24  ;;  %v9149_v28 = vmul.u32.u64.high %v2080_v51, %v2079_v24, %v9148_v3 }
 0x212   : > { %v1821_v50 = vsel %vm1819_vm2, %v1820_v15, %v7001_v19  ;;  %v1907_v0 = vmul.f32 %v1906_v20, %v1904_v46  ;;  %v1994_v33 = vsub.s32 0, %v9144_v1  ;;  %v2070_v13 = vsel %vm2066_vm11, %v2054_v61, %v2069_v45 }
 0x213   : > { %vm1815_vm13 = vcmp.lt.s32.totalorder %v9076_v60, 2  ;;  %v1818_v63 = vsel %vm1816_vm6, %v6999_v40, %v1817_v58  ;;  %v9159_v35 = vmul.u32.u64.low %v2080_v51, %v2075_v48  ;;  %v9160_v27 = vmul.u32.u64.high %v2080_v51, %v2075_v48, %v9159_v35  ;;  %v9198_v40 = vpop.f32.mrb[0].mxu0 }
 0x214   : > { %vm1812_vm1 = vweird.f32 %v12850_v57  ;;  %v1822_v53 = vsel %vm1815_vm13, %v1818_v63, %v1821_v50  ;;  %v1908_v41 = vxor.u32 2147483648, %v1907_v0  ;;  %v6208_v52 = vmin.u32 %v1994_v33, %v9144_v1 }
 0x215   : > { %v1823_v4 = vsel %vm1812_vm1, nan, %v1822_v53  ;;  %v1917_v43 = vadd.s32 3, %v1913_v25  ;;  %v2071_v61 = vsel %vm2065_vm8, %v2068_v2, %v2070_v13  ;;  %vm2171_vm4 = vcmp.lt.s32.totalorder %v8964_v39, 4 }
 0x216   : > { %6496 = vmatmul.mubr.f32.gmra.mrb[10].mxu0 %v1823_v4  ;;  %v1909_v60 = vsel %vm1826_vm9, %v1908_v41, %v1907_v0  ;;  %v1996_v30 = vclz %v6208_v52  ;;  %vm2089_vm15 = vc.u32 %v9149_v28, %v9159_v35  ;;  %v2177_v57 = vsel %vm2171_vm4, %v8978_v22, 920167782 }
 0x217   : > { %v1912_v38 = vsel %vm9089_vm12, %v12855_v54, %v1909_v60  ;;  %v2090_v10 = vadd.s32 1, %v9160_v27  ;;  %v2136_v17 = vand.u32 2147483647, %v8028_v21  ;;  %v2181_v25 = vsel %vm2171_vm4, %v2167_v7, 1326507024 }
 0x218   : > { %7002 = vcosq.f32 %v1912_v38  ;;  %v6209_v5 = vadd.s32 4294967294, %v1996_v30  ;;  %v2087_v11 = vmul.u32 %v2080_v51, %v2071_v61  ;;  %v9185_v55 = vand.u32 3, %v1917_v43 }
 0x219   : > { %7004 = vsinq.f32 %v1912_v38  ;;  %vm1930_vm7 = vcmp.lt.s32.totalorder %v12858_v34, 0  ;;  %v2091_v9 = vsel %vm2089_vm15, %v2090_v10, %v9160_v27  ;;  %v1984_v29 = vadd.s32 %v9070_v49, %v9062_v31  ;;  %v9202_v49 = vpop.f32.mrb[1].mxu0 }
 0x21a   : > { %vm6210_vm3 = vcmp.lt.s32.totalorder %v6209_v5, 0  ;;  %v2014_v56 = vsub.s32 4, %v9120_v62  ;;  %v2092_v6 = vadd.s32 %v2091_v9, %v2087_v11  ;;  %v2143_v7 = vand.u32 8388607, %v2136_v17 }
 0x21b   : > { %v1999_v16 = vsel %vm6210_vm3, 0, %v6209_v5  ;;  %v2154_v8 = vshrl.u32 %v12763_v32, %v8843_v37  ;;  %v2157_v26 = vshrl.u32 %v12767_v47, %v8843_v37  ;;  %v2156_v31 = vshll.u32 %v12763_v32, %v8776_v14 }
 0x21c   : > { %v2000_v45 = vsub.s32 32, %v1999_v16  ;;  %v2004_v48 = vsub.s32 4294967266, %v1999_v16  ;;  %v2093_v24 = vadd.s32 536870912, %v2092_v6  ;;  %v2001_v51 = vshll.u32 %v9144_v1, %v1999_v16 }
 0x21d   : > { %v2153_v19 = vshll.u32 %v12759_v12, %v8776_v14  ;;  %v2159_v15 = vshll.u32 %v12767_v47, %v8776_v14  ;;  %v2160_v46 = vshrl.u32 %v12749_v59, %v8843_v37  ;;  %vm1919_vm9 = vcmp.lt.s32.totalorder %v9185_v55, 2 }
 0x21e   : > { %v2002_v20 = vshrl.u32 %v1984_v29, %v2000_v45  ;;  %v2005_v58 = vadd.s32 127, %v2004_v48  ;;  %v9212_v2 = vshrl.u32 %v2093_v24, 30  ;;  %v2158_v3 = vor.u32 %v2157_v26, %v2156_v31  ;;  %v9255_v45 = vld [vmem:[%s12523_s4] ss:$0 sm:$0xff] }
 0x21f   : > { %vm1916_vm12 = vweird.f32 %v12855_v54  ;;  %vm1920_vm14 = vcmp.eq.s32.totalorder %v9185_v55, 0  ;;  %vm1923_vm0 = vcmp.eq.s32.totalorder %v9185_v55, 2  ;;  %v2155_v1 = vor.u32 %v2154_v8, %v2153_v19 }
 0x220   : > { %v2161_v50 = vor.u32 %v2160_v46, %v2159_v15  ;;  %v2003_v0 = vor.u32 %v2002_v20, %v2001_v51  ;;  %v2006_v14 = vshll.u32 %v2005_v58, 23  ;;  %v2015_v33 = vsel %vm1930_vm7, %v2014_v56, %v9120_v62 }
 0x221   : > { %v2095_v13 = vshll.u32 %v9212_v2, 30  ;;  %v2144_v63 = vor.u32 8388608, %v2143_v7  ;;  %v2152_v27 = vshrl.u32 %v12759_v12, %v8843_v37  ;;  %vm2168_vm10 = vcmp.lt.s32.totalorder %v8964_v39, 1 }
 0x222   : > { %vm2170_vm6 = vcmp.lt.s32.totalorder %v8964_v39, 3  ;;  %v7003_v53 = vpop.eup %7002  ;;  %v2007_v41 = vor.u32 4788187, %v2006_v14  ;;  %v2180_v4 = vsel %vm2168_vm10, %v2158_v3, %v2161_v50  ;;  %vm2169_vm11 = vcmp.lt.s32.totalorder %v8964_v39, 2 }
 0x223   : > { %v2096_v52 = vsub.s32 %v2092_v6, %v2095_v13  ;;  %v2182_v62 = vsel %vm2170_vm6, %v8978_v22, %v2181_v25  ;;  %v7005_v43 = vpop.eup %7004  ;;  %v1924_v61 = vxor.u32 2147483648, %v7003_v53  ;;  %v2176_v37 = vsel %vm2168_vm10, %v2155_v1, %v2158_v3 }
 0x224   : > { %v2178_v60 = vsel %vm2170_vm6, %v2161_v50, %v2177_v57  ;;  %v1921_v30 = vxor.u32 2147483648, %v7005_v43  ;;  %v2008_v38 = vand.u32 2147483647, %v2007_v41  ;;  %v2010_v10 = vcvt.s32.f32 %v2003_v0 }
 0x225   : > { %v2098_v5 = vsub.s32 0, %v2096_v52  ;;  %v1925_v11 = vsel %vm1923_vm0, %v1924_v61, %v7005_v43  ;;  %v2173_v22 = vsel %vm2171_vm4, %v2161_v50, 2102212464  ;;  %v2183_v25 = vsel %vm2169_vm11, %v2180_v4, %v2182_v62 }
 0x226   : > { %v2184_v9 = vshll.u32 %v2144_v63, 8  ;;  %v1922_v29 = vsel %vm1920_vm14, %v7003_v53, %v1921_v30  ;;  %v2011_v56 = vmul.f32 %v2010_v10, %v2008_v38  ;;  %v2179_v57 = vsel %vm2169_vm11, %v2176_v37, %v2178_v60 }
 0x227   : > { %v6212_v6 = vmin.u32 %v2098_v5, %v2096_v52  ;;  %v1926_v16 = vsel %vm1919_vm9, %v1922_v29, %v1925_v11  ;;  %v2172_v7 = vsel %vm2168_vm10, %v2152_v27, %v2155_v1  ;;  %v2174_v55 = vsel %vm2170_vm6, %v2158_v3, %v2173_v22 }
 0x228   : > { %v9249_v8 = vmul.u32.u64.low %v2184_v9, %v2183_v25  ;;  %v9250_v26 = vmul.u32.u64.high %v2184_v9, %v2183_v25, %v9249_v8  ;;  %v1927_v48 = vsel %vm1916_vm12, nan, %v1926_v16  ;;  %v2012_v24 = vxor.u32 2147483648, %v2011_v56 }
 0x229   : > { %v2100_v31 = vclz %v6212_v6  ;;  %6498 = vmatprep.mubr.f32.mxu0 %v1927_v48  ;;  %v9261_v51 = vmul.u32.u64.low %v2184_v9, %v2179_v57  ;;  %v9262_v19 = vmul.u32.u64.high %v2184_v9, %v2179_v57, %v9261_v51  ;;  %vm9267_vm2 = vcmp.le.f32.partialorder %v1928_v44, 0.7853982 }
 0x22a   : > { %v2013_v54 = vsel %vm1930_vm7, %v2012_v24, %v2011_v56  ;;  %v9275_v20 = vadd.f32 %v9198_v40, %v9255_v45  ;;  %v2017_v3 = vsel %vm9267_vm2, 0, %v2015_v33  ;;  %v2175_v44 = vsel %vm2169_vm11, %v2172_v7, %v2174_v55 }
 0x22b   : > { %v6213_v46 = vadd.s32 4294967294, %v2100_v31  ;;  %v2016_v58 = vsel %vm9267_vm2, %v12858_v34, %v2013_v54  ;;  %v2088_v1 = vadd.s32 %v9159_v35, %v9149_v28  ;;  %vm2193_vm5 = vc.u32 %v9250_v26, %v9261_v51 }
 0x22c   : > { %7006 = vcosq.f32 %v2016_v58  ;;  %v2194_v50 = vadd.s32 1, %v9262_v19  ;;  %v2515_v0 = vand.u32 2139095040, %v9275_v20  ;;  %v2118_v33 = vsub.s32 4, %v9212_v2 }
 0x22d   : > { %vm6214_vm8 = vcmp.lt.s32.totalorder %v6213_v46, 0  ;;  %7008 = vsinq.f32 %v2016_v58  ;;  %v2191_v39 = vmul.u32 %v2184_v9, %v2175_v44  ;;  %v2021_v63 = vadd.s32 3, %v2017_v3 }
 0x22e   : > { %v2103_v40 = vsel %vm6214_vm8, 0, %v6213_v46  ;;  %v2195_v27 = vsel %vm2193_vm5, %v2194_v50, %v9262_v19  ;;  %v2516_v53 = vshrl.u32 %v2515_v0, 23  ;;  %vm2034_vm13 = vcmp.lt.s32.totalorder %v12861_v42, 0 }
 0x22f   : > { %v2104_v14 = vsub.s32 32, %v2103_v40  ;;  %v2108_v13 = vsub.s32 4294967266, %v2103_v40  ;;  %v2105_v28 = vshll.u32 %v2096_v52, %v2103_v40  ;;  %v2196_v4 = vadd.s32 %v2195_v27, %v2191_v39 }
 0x230   : > { %v6224_v62 = vadd.s32 4294967169, %v2516_v53  ;;  %v2119_v37 = vsel %vm2034_vm13, %v2118_v33, %v9212_v2  ;;  %v2022_v30 = vand.u32 3, %v2021_v63  ;;  %vm9298_vm1 = vcmp.le.f32.partialorder %v2032_v36, 0.7853982 }
 0x231   : > { %v2106_v35 = vshrl.u32 %v2088_v1, %v2104_v14  ;;  %v2109_v41 = vadd.s32 127, %v2108_v13  ;;  %v2197_v60 = vadd.s32 536870912, %v2196_v4  ;;  %v2121_v11 = vsel %vm9298_vm1, 0, %v2119_v37 }
 0x232   : > { %v2522_v38 = vadd.s32 1, %v6224_v62  ;;  %v12617_v22 = vand.u32 2147483647, %v9275_v20  ;;  %vm2024_vm15 = vcmp.eq.s32.totalorder %v2022_v30, 0  ;;  %vm2027_vm7 = vcmp.eq.s32.totalorder %v2022_v30, 2 }
 0x233   : > { %v2107_v43 = vor.u32 %v2106_v35, %v2105_v28  ;;  %v2110_v61 = vshll.u32 %v2109_v41, 23  ;;  %v9302_v5 = vshrl.u32 %v2197_v60, 30  ;;  %v2125_v24 = vadd.s32 3, %v2121_v11 }
 0x234   : > { %vm2523_vm4 = vcmp.gt.s32.totalorder %v2522_v38, 0  ;;  %v2519_v31 = vand.u32 8388607, %v12617_v22  ;;  %vm2023_vm3 = vcmp.lt.s32.totalorder %v2022_v30, 2  ;;  %vm2020_vm9 = vweird.f32 %v12858_v34 }
 0x235   : > { %v2111_v52 = vor.u32 4788187, %v2110_v61  ;;  %v2114_v9 = vcvt.s32.f32 %v2107_v43  ;;  %v2199_v29 = vshll.u32 %v9302_v5, 30  ;;  %v2524_v56 = vsel %vm2523_vm4, %v2522_v38, 0 }
 0x236   : > { %v7007_v25 = vpop.eup %7006  ;;  %v2526_v57 = vand.u32 31, %v2524_v56  ;;  %v9321_v50 = vand.u32 3, %v2125_v24  ;;  %v2520_v0 = vor.u32 8388608, %v2519_v31  ;;  %v9324_v13 = vshrl.u32 %v2524_v56, 5 }
 0x237   : > { %v2112_v2 = vand.u32 2147483647, %v2111_v52  ;;  %v7009_v6 = vpop.eup %7008  ;;  %v2028_v36 = vxor.u32 2147483648, %v7007_v25  ;;  %v9308_v8 = vsub.s32 %v2196_v4, %v2199_v29  ;;  %v2192_v30 = vadd.s32 %v9261_v51, %v9250_v26 }
 0x238   : > { %v2025_v16 = vxor.u32 2147483648, %v7009_v6  ;;  %v2527_v55 = vsub.s32 32, %v2526_v57  ;;  %v2529_v33 = vshll.u32 %v12759_v12, %v2526_v57  ;;  %v2532_v39 = vshll.u32 %v12763_v32, %v2526_v57  ;;  %v6485_v4 = vpop.f32.mrb[2].mxu0 }
 0x239   : > { %v2115_v7 = vmul.f32 %v2114_v9, %v2112_v2  ;;  %v2029_v48 = vsel %vm2027_vm7, %v2028_v36, %v7009_v6  ;;  %v2202_v54 = vsub.s32 0, %v9308_v8  ;;  %v2535_v63 = vshll.u32 %v12767_v47, %v2526_v57  ;;  %v2339_v60 = vpop.f32.mrb[3].mxu0 }
 0x23a   : > { %v2026_v19 = vsel %vm2024_vm15, %v7007_v25, %v2025_v16  ;;  %v2530_v1 = vshrl.u32 %v12763_v32, %v2527_v55  ;;  %v2533_v14 = vshrl.u32 %v12767_v47, %v2527_v55  ;;  %v2536_v27 = vshrl.u32 %v12749_v59, %v2527_v55 }
 0x23b   : > { %v2116_v15 = vxor.u32 2147483648, %v2115_v7  ;;  %v2030_v46 = vsel %vm2023_vm3, %v2026_v19, %v2029_v48  ;;  %v6216_v44 = vmin.u32 %v2202_v54, %v9308_v8  ;;  %v2538_v35 = vshll.u32 %v12749_v59, %v2526_v57 }
 0x23c   : > { %v2031_v58 = vsel %vm2020_vm9, nan, %v2030_v46  ;;  %v2531_v28 = vor.u32 %v2530_v1, %v2529_v33  ;;  %v2539_v41 = vshrl.u32 %v12752_v23, %v2527_v55  ;;  %v2534_v62 = vor.u32 %v2533_v14, %v2532_v39 }
 0x23d   : > { %v2117_v3 = vsel %vm2034_vm13, %v2116_v15, %v2115_v7  ;;  %6499 = vmatmul.mubr.f32.gmra.mrb[12].mxu0 %v2031_v58  ;;  %v2204_v34 = vclz %v6216_v44  ;;  %v2537_v43 = vor.u32 %v2536_v27, %v2535_v63  ;;  %v2541_v61 = vshll.u32 %v12752_v23, %v2526_v57 }
 0x23e   : > { %v2120_v40 = vsel %vm9298_vm1, %v12861_v42, %v2117_v3  ;;  %v2542_v37 = vshrl.u32 %v12744_v18, %v2527_v55  ;;  %vm2131_vm12 = vcmp.eq.s32.totalorder %v9321_v50, 2  ;;  %v2540_v38 = vor.u32 %v2539_v41, %v2538_v35 }
 0x23f   : > { %7010 = vcosq.f32 %v2120_v40  ;;  %v6217_v53 = vadd.s32 4294967294, %v2204_v34  ;;  %vm2544_vm0 = vcmp.lt.s32.totalorder %v9324_v13, 1  ;;  %v2560_v11 = vshll.u32 %v2520_v0, 8 }
 0x240   : > { %7012 = vsinq.f32 %v2120_v40  ;;  %v2543_v52 = vor.u32 %v2542_v37, %v2541_v61  ;;  %vm2138_vm10 = vcmp.lt.s32.totalorder %v8028_v21, 0  ;;  %vm2546_vm6 = vcmp.lt.s32.totalorder %v9324_v13, 3 }
 0x241   : > { %vm6218_vm14 = vcmp.lt.s32.totalorder %v6217_v53, 0  ;;  %vm2547_vm11 = vcmp.lt.s32.totalorder %v9324_v13, 4  ;;  %v2552_v26 = vsel %vm2544_vm0, %v2531_v28, %v2534_v62  ;;  %v2556_v29 = vsel %vm2544_vm0, %v2534_v62, %v2537_v43 }
 0x242   : > { %v2207_v10 = vsel %vm6218_vm14, 0, %v6217_v53  ;;  %v2553_v51 = vsel %vm2547_vm11, %v2540_v38, 920167782  ;;  %v2557_v57 = vsel %vm2547_vm11, %v2543_v52, 1326507024  ;;  %v2528_v16 = vshrl.u32 %v12759_v12, %v2527_v55 }
 0x243   : > { %v2208_v25 = vsub.s32 32, %v2207_v10  ;;  %v2212_v2 = vsub.s32 4294967266, %v2207_v10  ;;  %v2209_v9 = vshll.u32 %v9308_v8, %v2207_v10  ;;  %v2554_v36 = vsel %vm2546_vm6, %v2537_v43, %v2553_v51 }
 0x244   : > { %vm2545_vm2 = vcmp.lt.s32.totalorder %v9324_v13, 2  ;;  %v2549_v7 = vsel %vm2547_vm11, %v2537_v43, 2102212464  ;;  %v2558_v8 = vsel %vm2546_vm6, %v2540_v38, %v2557_v57  ;;  %v2222_v58 = vsub.s32 4, %v9302_v5 }
 0x245   : > { %v2210_v56 = vshrl.u32 %v2192_v30, %v2208_v25  ;;  %v2213_v6 = vadd.s32 127, %v2212_v2  ;;  %v2555_v19 = vsel %vm2545_vm2, %v2552_v26, %v2554_v36  ;;  %v2559_v15 = vsel %vm2545_vm2, %v2556_v29, %v2558_v8 }
 0x246   : > { %v9357_v55 = vmul.u32.u64.low %v2560_v11, %v2559_v15  ;;  %v9358_v3 = vmul.u32.u64.high %v2560_v11, %v2559_v15, %v9357_v55  ;;  %v2548_v40 = vsel %vm2544_vm0, %v2528_v16, %v2531_v28  ;;  %v2550_v0 = vsel %vm2546_vm6, %v2534_v62, %v2549_v7 }
 0x247   : > { %v2211_v24 = vor.u32 %v2210_v56, %v2209_v9  ;;  %v2214_v31 = vshll.u32 %v2213_v6, 23  ;;  %vm2128_vm8 = vcmp.eq.s32.totalorder %v9321_v50, 0  ;;  %vm2127_vm5 = vcmp.lt.s32.totalorder %v9321_v50, 2 }
 0x248   : > { %v9367_v34 = vmul.u32.u64.low %v2560_v11, %v2555_v19  ;;  %v9368_v33 = vmul.u32.u64.high %v2560_v11, %v2555_v19, %v9367_v34  ;;  %vm2124_vm13 = vweird.f32 %v12861_v42  ;;  %v2223_v28 = vsel %vm2138_vm10, %v2222_v58, %v9302_v5 }
 0x249   : > { %v7011_v48 = vpop.eup %7010  ;;  %v2215_v1 = vor.u32 4788187, %v2214_v31  ;;  %v2218_v27 = vcvt.s32.f32 %v2211_v24  ;;  %v2551_v35 = vsel %vm2545_vm2, %v2548_v40, %v2550_v0  ;;  %v9381_v50 = vadd.f32 %v6485_v4, %v9255_v45 }
 0x24a   : > { %v7013_v54 = vpop.eup %7012  ;;  %v2132_v46 = vxor.u32 2147483648, %v7011_v48  ;;  %vm2569_vm1 = vc.u32 %v9358_v3, %v9367_v34  ;;  %v2570_v43 = vadd.s32 1, %v9368_v33  ;;  %v9386_v42 = vadd.f32 %v9255_v45, %v9202_v49 }
 0x24b   : > { %v2129_v44 = vxor.u32 2147483648, %v7013_v54  ;;  %v2216_v63 = vand.u32 2147483647, %v2215_v1  ;;  %12875 = vst [vmem:[#allocation10_spill] sm:$0xff] %v9381_v50  ;;  %v9389_v5 = vadd.f32 %v9255_v45, %v2339_v60  ;;  %vm2137_vm4 = vcmp.le.f32.partialorder %v2136_v17, 0.7853982 }
 0x24c   : > { %v2133_v14 = vsel %vm2131_vm12, %v2132_v46, %v7013_v54  ;;  %v2567_v61 = vmul.u32 %v2560_v11, %v2551_v35  ;;  %v2225_v37 = vsel %vm2137_vm4, 0, %v2223_v28  ;;  %v2571_v30 = vsel %vm2569_vm1, %v2570_v43, %v9368_v33 }
 0x24d   : > { %v2130_v39 = vsel %vm2128_vm8, %v7011_v48, %v2129_v44  ;;  %v2219_v62 = vmul.f32 %v2218_v27, %v2216_v63  ;;  %v2723_v4 = vand.u32 2139095040, %v9381_v50  ;;  %v2411_v52 = vand.u32 2139095040, %v9386_v42 }
 0x24e   : > { %v2134_v53 = vsel %vm2127_vm5, %v2130_v39, %v2133_v14  ;;  %v2572_v10 = vadd.s32 %v2571_v30, %v2567_v61  ;;  %v2619_v25 = vand.u32 2139095040, %v9389_v5  ;;  %v2229_v17 = vadd.s32 3, %v2225_v37 }
 0x24f   : > { %v2135_v41 = vsel %vm2124_vm13, nan, %v2134_v53  ;;  %v2220_v13 = vxor.u32 2147483648, %v2219_v62  ;;  %v2724_v60 = vshrl.u32 %v2723_v4, 23  ;;  %v12615_v11 = vand.u32 2147483647, %v9381_v50 }
 0x250   : > { %6501 = vmatprep.mubr.f32.mxu0 %v2135_v41  ;;  %v2573_v2 = vadd.s32 536870912, %v2572_v10  ;;  %v2620_v26 = vshrl.u32 %v2619_v25, 23  ;;  %v2412_v29 = vshrl.u32 %v2411_v52, 23  ;;  %v2230_v6 = vand.u32 3, %v2229_v17 }
 0x251   : > { %v2221_v38 = vsel %vm2138_vm10, %v2220_v13, %v2219_v62  ;;  %v6232_v9 = vadd.s32 4294967169, %v2724_v60  ;;  %v2727_v57 = vand.u32 8388607, %v12615_v11  ;;  %vm2228_vm7 = vweird.f32 %v8028_v21 }
 0x252   : > { %v2224_v49 = vsel %vm2137_vm4, %v8028_v21, %v2221_v38  ;;  %v9401_v51 = vshrl.u32 %v2573_v2, 30  ;;  %v6228_v16 = vadd.s32 4294967169, %v2620_v26  ;;  %v6220_v8 = vadd.s32 4294967169, %v2412_v29 }
 0x253   : > { %7014 = vcosq.f32 %v2224_v49  ;;  %v2730_v56 = vadd.s32 1, %v6232_v9  ;;  %vm2231_vm3 = vcmp.lt.s32.totalorder %v2230_v6, 2  ;;  %vm2232_vm9 = vcmp.eq.s32.totalorder %v2230_v6, 0 }
 0x254   : > { %7016 = vsinq.f32 %v2224_v49  ;;  %12876 = vst [vmem:[#allocation18_spill] sm:$0xff] %v9401_v51  ;;  %v2575_v36 = vshll.u32 %v9401_v51, 30  ;;  %vm2235_vm12 = vcmp.eq.s32.totalorder %v2230_v6, 2  ;;  %v12616_v24 = vand.u32 2147483647, %v9389_v5 }
 0x255   : > { %vm2731_vm15 = vcmp.gt.s32.totalorder %v2730_v56, 0  ;;  %v2728_v19 = vor.u32 8388608, %v2727_v57  ;;  %v2626_v54 = vadd.s32 1, %v6228_v16  ;;  %v2418_v38 = vadd.s32 1, %v6220_v8 }
 0x256   : > { %v2732_v7 = vsel %vm2731_vm15, %v2730_v56, 0  ;;  %v9408_v31 = vsub.s32 %v2572_v10, %v2575_v36  ;;  %v2623_v52 = vand.u32 8388607, %v12616_v24 }
 0x257   : > { %v2734_v48 = vand.u32 31, %v2732_v7  ;;  %v2733_v58 = vshrl.u32 %v2732_v7, 5  ;;  %vm2627_vm14 = vcmp.gt.s32.totalorder %v2626_v54, 0  ;;  %v2768_v2 = vshll.u32 %v2728_v19, 8 }
 0x258   : > { %v2578_v61 = vsub.s32 0, %v9408_v31  ;;  %v2628_v29 = vsel %vm2627_vm14, %v2626_v54, 0  ;;  %v2624_v19 = vor.u32 8388608, %v2623_v52  ;;  %vm2419_vm2 = vcmp.gt.s32.totalorder %v2418_v38, 0 }
 0x259   : > { %v2735_v15 = vsub.s32 32, %v2734_v48  ;;  %v2737_v55 = vshll.u32 %v12759_v12, %v2734_v48  ;;  %v2740_v44 = vshll.u32 %v12763_v32, %v2734_v48  ;;  %v2743_v1 = vshll.u32 %v12767_v47, %v2734_v48 }
 0x25a   : > { %v2746_v39 = vshll.u32 %v12749_v59, %v2734_v48  ;;  %v2749_v28 = vshll.u32 %v12752_v23, %v2734_v48  ;;  %vm2752_vm0 = vcmp.lt.s32.totalorder %v2733_v58, 1  ;;  %vm2755_vm10 = vcmp.lt.s32.totalorder %v2733_v58, 4 }
 0x25b   : > { %v2738_v14 = vshrl.u32 %v12763_v32, %v2735_v15  ;;  %v2741_v33 = vshrl.u32 %v12767_v47, %v2735_v15  ;;  %v2744_v27 = vshrl.u32 %v12749_v59, %v2735_v15  ;;  %v2747_v53 = vshrl.u32 %v12752_v23, %v2735_v15 }
 0x25c   : > { %v2750_v43 = vshrl.u32 %v12744_v18, %v2735_v15  ;;  %v6225_v9 = vmin.u32 %v2578_v61, %v9408_v31  ;;  %v2736_v26 = vshrl.u32 %v12759_v12, %v2735_v15  ;;  %vm2754_vm6 = vcmp.lt.s32.totalorder %v2733_v58, 3 }
 0x25d   : > { %v7015_v46 = vpop.eup %7014  ;;  %v2739_v41 = vor.u32 %v2738_v14, %v2737_v55  ;;  %v2742_v62 = vor.u32 %v2741_v33, %v2740_v44  ;;  %v2745_v37 = vor.u32 %v2744_v27, %v2743_v1  ;;  %v2748_v30 = vor.u32 %v2747_v53, %v2746_v39 }
 0x25e   : > { %v7017_v40 = vpop.eup %7016  ;;  %v2236_v0 = vxor.u32 2147483648, %v7015_v46  ;;  %v2751_v10 = vor.u32 %v2750_v43, %v2749_v28  ;;  %vm2753_vm11 = vcmp.lt.s32.totalorder %v2733_v58, 2  ;;  %v2580_v55 = vclz %v6225_v9 }
 0x25f   : > { %v2233_v63 = vxor.u32 2147483648, %v7017_v40  ;;  %v2757_v60 = vsel %vm2755_vm10, %v2745_v37, 2102212464  ;;  %v2760_v25 = vsel %vm2752_vm0, %v2739_v41, %v2742_v62  ;;  %v2761_v17 = vsel %vm2755_vm10, %v2748_v30, 920167782 }
 0x260   : > { %v2237_v35 = vsel %vm2235_vm12, %v2236_v0, %v7017_v40  ;;  %v2762_v21 = vsel %vm2754_vm6, %v2745_v37, %v2761_v17  ;;  %v2764_v56 = vsel %vm2752_vm0, %v2742_v62, %v2745_v37  ;;  %v2765_v6 = vsel %vm2755_vm10, %v2751_v10, 1326507024 }
 0x261   : > { %v2234_v13 = vsel %vm2232_vm9, %v7015_v46, %v2233_v63  ;;  %v2756_v36 = vsel %vm2752_vm0, %v2736_v26, %v2739_v41  ;;  %v2758_v57 = vsel %vm2754_vm6, %v2742_v62, %v2757_v60  ;;  %v2763_v16 = vsel %vm2753_vm11, %v2760_v25, %v2762_v21 }
 0x262   : > { %v2238_v4 = vsel %vm2231_vm3, %v2234_v13, %v2237_v35  ;;  %v2766_v7 = vsel %vm2754_vm6, %v2748_v30, %v2765_v6  ;;  %v9433_v48 = vmul.u32.u64.low %v2768_v2, %v2763_v16  ;;  %v9434_v46 = vmul.u32.u64.high %v2768_v2, %v2763_v16, %v9433_v48 }
 0x263   : > { %v2239_v49 = vsel %vm2228_vm7, nan, %v2238_v4  ;;  %v2767_v8 = vsel %vm2753_vm11, %v2764_v56, %v2766_v7  ;;  %v2759_v1 = vsel %vm2753_vm11, %v2756_v36, %v2758_v57  ;;  %v2630_v40 = vand.u32 31, %v2628_v29 }
 0x264   : > { %6502 = vmatmul.mubr.f32.gmra.mrb[14].mxu0 %v2239_v49  ;;  %v9437_v15 = vmul.u32.u64.low %v2768_v2, %v2767_v8  ;;  %v9438_v54 = vmul.u32.u64.high %v2768_v2, %v2767_v8, %v9437_v15  ;;  %v6488_v44 = vpop.f32.mrb[4].mxu0  ;;  %v9440_v58 = vsel %vm2419_vm2, %v2418_v38, 0  ;;  %v2778_v14 = vadd.s32 1, %v9434_v46 }
 0x265   : > { %v2349_v0 = vpop.f32.mrb[5].mxu0  ;;  %v2631_v33 = vsub.s32 32, %v2630_v40  ;;  %v9443_v39 = vshll.u32 %v2624_v19, 8  ;;  %v6226_v63 = vadd.s32 4294967294, %v2580_v55  ;;  %v2775_v27 = vmul.u32 %v2768_v2, %v2759_v1 }
 0x266   : > { %vm2777_vm8 = vc.u32 %v9438_v54, %v9433_v48  ;;  %v2633_v53 = vshll.u32 %v12759_v12, %v2630_v40  ;;  %v2636_v41 = vshll.u32 %v12763_v32, %v2630_v40  ;;  %v2629_v13 = vshrl.u32 %v2628_v29, 5 }
 0x267   : > { %v2779_v28 = vsel %vm2777_vm8, %v2778_v14, %v9434_v46  ;;  %v2634_v35 = vshrl.u32 %v12763_v32, %v2631_v33  ;;  %v2637_v62 = vshrl.u32 %v12767_v47, %v2631_v33  ;;  %v2639_v61 = vshll.u32 %v12767_v47, %v2630_v40 }
 0x268   : > { %v2780_v43 = vadd.s32 %v2779_v28, %v2775_v27  ;;  %v2640_v37 = vshrl.u32 %v12749_v59, %v2631_v33  ;;  %v2642_v38 = vshll.u32 %v12749_v59, %v2630_v40  ;;  %v2643_v10 = vshrl.u32 %v12752_v23, %v2631_v33 }
 0x269   : > { %v2635_v30 = vor.u32 %v2634_v35, %v2633_v53  ;;  %v2638_v4 = vor.u32 %v2637_v62, %v2636_v41  ;;  %v2645_v60 = vshll.u32 %v12752_v23, %v2630_v40  ;;  %v2646_v25 = vshrl.u32 %v12744_v18, %v2631_v33 }
 0x26a   : > { %v2781_v49 = vadd.s32 536870912, %v2780_v43  ;;  %v2641_v52 = vor.u32 %v2640_v37, %v2639_v61  ;;  %vm6227_vm5 = vcmp.lt.s32.totalorder %v6226_v63, 0  ;;  %v2632_v17 = vshrl.u32 %v12759_v12, %v2631_v33 }
 0x26b   : > { %v2644_v2 = vor.u32 %v2643_v10, %v2642_v38  ;;  %v9460_v9 = vadd.f32 %v6488_v44, %v9255_v45  ;;  %v2647_v29 = vor.u32 %v2646_v25, %v2645_v60  ;;  %vm2648_vm13 = vcmp.lt.s32.totalorder %v2629_v13, 1 }
 0x26c   : > { %v9462_v26 = vshrl.u32 %v2781_v49, 30  ;;  %vm2651_vm1 = vcmp.lt.s32.totalorder %v2629_v13, 4  ;;  %vm2650_vm4 = vcmp.lt.s32.totalorder %v2629_v13, 3  ;;  %v2656_v56 = vsel %vm2648_vm13, %v2635_v30, %v2638_v4 }
 0x26d   : > { %12877 = vst [vmem:[#allocation19_spill] sm:$0xff] %v9460_v9  ;;  %v2653_v21 = vsel %vm2651_vm1, %v2641_v52, 2102212464  ;;  %v2657_v6 = vsel %vm2651_vm1, %v2644_v2, 920167782  ;;  %vm2649_vm15 = vcmp.lt.s32.totalorder %v2629_v13, 2  ;;  %v2660_v16 = vsel %vm2648_vm13, %v2638_v4, %v2641_v52 }
 0x26e   : > { %12878 = vst [vmem:[#allocation13_spill] sm:$0xff] %v9462_v26  ;;  %v2783_v36 = vshll.u32 %v9462_v26, 30  ;;  %v2658_v57 = vsel %vm2650_vm4, %v2641_v52, %v2657_v6  ;;  %v2652_v7 = vsel %vm2648_vm13, %v2632_v17, %v2635_v30  ;;  %v2661_v46 = vsel %vm2651_vm1, %v2647_v29, 1326507024 }
 0x26f   : > { %v2659_v8 = vsel %vm2649_vm15, %v2656_v56, %v2658_v57  ;;  %v9467_v19 = vadd.f32 %v9255_v45, %v2349_v0  ;;  %v2654_v55 = vsel %vm2650_vm4, %v2638_v4, %v2653_v21  ;;  %v2662_v15 = vsel %vm2650_vm4, %v2644_v2, %v2661_v46 }
 0x270   : > { %v9470_v44 = vmul.u32.u64.low %v9443_v39, %v2659_v8  ;;  %v9471_v1 = vmul.u32.u64.high %v9443_v39, %v2659_v8, %v9470_v44  ;;  %v2583_v40 = vsel %vm6227_vm5, 0, %v6226_v63  ;;  %v9475_v14 = vsub.s32 %v2780_v43, %v2783_v36 }
 0x271   : > { %12879 = vst [vmem:[#allocation2_spill] sm:$0xff] %v9467_v19  ;;  %v2663_v33 = vsel %vm2649_vm15, %v2660_v16, %v2662_v15  ;;  %v2931_v27 = vand.u32 2139095040, %v9460_v9  ;;  %v2655_v0 = vsel %vm2649_vm15, %v2652_v7, %v2654_v55  ;;  %v2827_v41 = vand.u32 2139095040, %v9467_v19 }
 0x272   : > { %v9480_v53 = vmul.u32.u64.low %v9443_v39, %v2663_v33  ;;  %v9481_v28 = vmul.u32.u64.high %v9443_v39, %v2663_v33, %v9480_v53  ;;  %v2584_v62 = vsub.s32 32, %v2583_v40  ;;  %v9486_v61 = vand.u32 31, %v9440_v58 }
 0x273   : > { %v2932_v35 = vshrl.u32 %v2931_v27, 23  ;;  %v2674_v63 = vadd.s32 1, %v9471_v1  ;;  %v2588_v43 = vsub.s32 4294967266, %v2583_v40  ;;  %v2786_v37 = vsub.s32 0, %v9475_v14 }
 0x274   : > { %v2568_v4 = vadd.s32 %v9367_v34, %v9358_v3  ;;  %v2671_v38 = vmul.u32 %v9443_v39, %v2655_v0  ;;  %vm2673_vm7 = vc.u32 %v9481_v28, %v9470_v44  ;;  %v2828_v13 = vshrl.u32 %v2827_v41, 23 }
 0x275   : > { %v6240_v30 = vadd.s32 4294967169, %v2932_v35  ;;  %v2675_v10 = vsel %vm2673_vm7, %v2674_v63, %v9471_v1  ;;  %v9497_v60 = vsub.s32 32, %v9486_v61  ;;  %v2589_v17 = vadd.s32 127, %v2588_v43 }
 0x276   : > { %v2586_v52 = vshrl.u32 %v2568_v4, %v2584_v62  ;;  %v2676_v25 = vadd.s32 %v2675_v10, %v2671_v38  ;;  %v6233_v2 = vmin.u32 %v2786_v37, %v9475_v14  ;;  %v12613_v29 = vand.u32 2147483647, %v9460_v9 }
 0x277   : > { %v2938_v49 = vadd.s32 1, %v6240_v30  ;;  %v2585_v3 = vshll.u32 %v9408_v31, %v2583_v40  ;;  %v6236_v21 = vadd.s32 4294967169, %v2828_v13  ;;  %v9504_v56 = vshll.u32 %v12749_v59, %v9486_v61 }
 0x278   : > { %v2677_v34 = vadd.s32 536870912, %v2676_v25  ;;  %v9508_v6 = vshll.u32 %v12752_v23, %v9486_v61  ;;  %v2435_v16 = vshrl.u32 %v12752_v23, %v9497_v60  ;;  %v9516_v31 = vshrl.u32 %v12744_v18, %v9497_v60 }
 0x279   : > { %vm2939_vm3 = vcmp.gt.s32.totalorder %v2938_v49, 0  ;;  %v9510_v57 = vor.u32 %v2586_v52, %v2585_v3  ;;  %v2590_v8 = vshll.u32 %v2589_v17, 23  ;;  %v2788_v46 = vclz %v6233_v2 }
 0x27a   : > { %v2940_v39 = vsel %vm2939_vm3, %v2938_v49, 0  ;;  %v9518_v7 = vshrl.u32 %v2677_v34, 30  ;;  %v2935_v55 = vand.u32 8388607, %v12613_v29  ;;  %v2834_v27 = vadd.s32 1, %v6236_v21 }
 0x27b   : > { %v2942_v36 = vand.u32 31, %v2940_v39  ;;  %v2941_v63 = vshrl.u32 %v2940_v39, 5  ;;  %v9533_v30 = vor.u32 4788187, %v2590_v8  ;;  %v12614_v17 = vand.u32 2147483647, %v9467_v19 }
 0x27c   : > { %12880 = vst [vmem:[#allocation8_spill] sm:$0xff] %v9518_v7  ;;  %v2679_v1 = vshll.u32 %v9518_v7, 30  ;;  %v2936_v49 = vor.u32 8388608, %v2935_v55  ;;  %v6234_v2 = vadd.s32 4294967294, %v2788_v46  ;;  %vm2835_vm9 = vcmp.gt.s32.totalorder %v2834_v27, 0 }
 0x27d   : > { %v2943_v15 = vsub.s32 32, %v2942_v36  ;;  %v2945_v40 = vshll.u32 %v12759_v12, %v2942_v36  ;;  %v2948_v33 = vshll.u32 %v12763_v32, %v2942_v36  ;;  %v2951_v35 = vshll.u32 %v12767_v47, %v2942_v36 }
 0x27e   : > { %v9529_v62 = vsub.s32 %v2676_v25, %v2679_v1  ;;  %v2954_v43 = vshll.u32 %v12749_v59, %v2942_v36  ;;  %v2957_v25 = vshll.u32 %v12752_v23, %v2942_v36  ;;  %vm2960_vm12 = vcmp.lt.s32.totalorder %v2941_v63, 1 }
 0x27f   : > { %v2946_v53 = vshrl.u32 %v12763_v32, %v2943_v15  ;;  %v2949_v0 = vshrl.u32 %v12767_v47, %v2943_v15  ;;  %v2952_v41 = vshrl.u32 %v12749_v59, %v2943_v15  ;;  %v2955_v37 = vshrl.u32 %v12752_v23, %v2943_v15 }
 0x280   : > { %v2682_v10 = vsub.s32 0, %v9529_v62  ;;  %v2958_v3 = vshrl.u32 %v12744_v18, %v2943_v15  ;;  %vm2962_vm14 = vcmp.lt.s32.totalorder %v2941_v63, 3  ;;  %vm2963_vm0 = vcmp.lt.s32.totalorder %v2941_v63, 4 }
 0x281   : > { %v2947_v4 = vor.u32 %v2946_v53, %v2945_v40  ;;  %v2950_v38 = vor.u32 %v2949_v0, %v2948_v33  ;;  %v2953_v13 = vor.u32 %v2952_v41, %v2951_v35  ;;  %v2956_v52 = vor.u32 %v2955_v37, %v2954_v43 }
 0x282   : > { %v6229_v34 = vmin.u32 %v2682_v10, %v9529_v62  ;;  %v2959_v39 = vor.u32 %v2958_v3, %v2957_v25  ;;  %v2944_v40 = vshrl.u32 %v12759_v12, %v2943_v15  ;;  %vm2961_vm10 = vcmp.lt.s32.totalorder %v2941_v63, 2 }
 0x283   : > { %v2965_v21 = vsel %vm2963_vm0, %v2953_v13, 2102212464  ;;  %v2968_v8 = vsel %vm2960_vm12, %v2947_v4, %v2950_v38  ;;  %v2969_v1 = vsel %vm2963_vm0, %v2956_v52, 920167782  ;;  %v2972_v33 = vsel %vm2960_vm12, %v2950_v38, %v2953_v13 }
 0x284   : > { %v2684_v55 = vclz %v6229_v34  ;;  %v2970_v46 = vsel %vm2962_vm14, %v2953_v13, %v2969_v1  ;;  %v2973_v53 = vsel %vm2963_vm0, %v2959_v39, 1326507024  ;;  %v2976_v0 = vshll.u32 %v2936_v49, 8 }
 0x285   : > { %v2971_v36 = vsel %vm2961_vm10, %v2968_v8, %v2970_v46  ;;  %v2964_v41 = vsel %vm2960_vm12, %v2944_v40, %v2947_v4  ;;  %v2966_v43 = vsel %vm2962_vm14, %v2950_v38, %v2965_v21  ;;  %v2974_v37 = vsel %vm2962_vm14, %v2956_v52, %v2973_v53 }
 0x286   : > { %v6230_v35 = vadd.s32 4294967294, %v2684_v55  ;;  %v2975_v10 = vsel %vm2961_vm10, %v2972_v33, %v2974_v37  ;;  %v9549_v25 = vmul.u32.u64.low %v2976_v0, %v2971_v36  ;;  %v9550_v15 = vmul.u32.u64.high %v2976_v0, %v2971_v36, %v9549_v25 }
 0x287   : > { %v2836_v3 = vsel %vm2835_vm9, %v2834_v27, 0  ;;  %vm6235_vm6 = vcmp.lt.s32.totalorder %v6234_v2, 0  ;;  %v9554_v34 = vmul.u32.u64.low %v2976_v0, %v2975_v10  ;;  %v9555_v13 = vmul.u32.u64.high %v2976_v0, %v2975_v10, %v9554_v34 }
 0x288   : > { %v2831_v49 = vand.u32 8388607, %v12614_v17  ;;  %v2967_v4 = vsel %vm2961_vm10, %v2964_v41, %v2966_v43  ;;  %v2838_v38 = vand.u32 31, %v2836_v3  ;;  %v9562_v39 = vshrl.u32 %v9440_v58, 5 }
 0x289   : > { %v9565_v21 = vor.u32 %v2435_v16, %v9504_v56  ;;  %v9569_v8 = vsel %vm6235_vm6, 0, %v6234_v2  ;;  %vm6231_vm11 = vcmp.lt.s32.totalorder %v6230_v35, 0  ;;  %v2986_v1 = vadd.s32 1, %v9550_v15 }
 0x28a   : > { %v2839_v55 = vsub.s32 32, %v2838_v38  ;;  %v2592_v63 = vand.u32 2147483647, %v9533_v30  ;;  %v2983_v40 = vmul.u32 %v2976_v0, %v2967_v4  ;;  %vm2985_vm2 = vc.u32 %v9555_v13, %v9549_v25 }
 0x28b   : > { %12881 = vst [vmem:[#allocation11_spill] sm:$0xff] %v9565_v21  ;;  %v2832_v58 = vor.u32 8388608, %v2831_v49  ;;  %v2987_v46 = vsel %vm2985_vm2, %v2986_v1, %v9550_v15  ;;  %v2841_v56 = vshll.u32 %v12759_v12, %v2838_v38  ;;  %v2796_v33 = vsub.s32 4294967266, %v9569_v8 }
 0x28c   : > { %v2842_v16 = vshrl.u32 %v12763_v32, %v2839_v55  ;;  %v2845_v2 = vshrl.u32 %v12767_v47, %v2839_v55  ;;  %v9580_v53 = vsel %vm6231_vm11, 0, %v6230_v35  ;;  %v2988_v41 = vadd.s32 %v2987_v46, %v2983_v40 }
 0x28d   : > { %v2844_v0 = vshll.u32 %v12763_v32, %v2838_v38  ;;  %v2837_v37 = vshrl.u32 %v2836_v3, 5  ;;  %v2847_v34 = vshll.u32 %v12767_v47, %v2838_v38  ;;  %v2848_v15 = vshrl.u32 %v12749_v59, %v2839_v55 }
 0x28e   : > { %v2843_v10 = vor.u32 %v2842_v16, %v2841_v56  ;;  %v2989_v49 = vadd.s32 536870912, %v2988_v41  ;;  %v2850_v1 = vshll.u32 %v12749_v59, %v2838_v38  ;;  %v2851_v29 = vshrl.u32 %v12752_v23, %v2839_v55 }
 0x28f   : > { %v2846_v4 = vor.u32 %v2845_v2, %v2844_v0  ;;  %v2849_v17 = vor.u32 %v2848_v15, %v2847_v34  ;;  %v2853_v35 = vshll.u32 %v12752_v23, %v2838_v38  ;;  %v2854_v40 = vshrl.u32 %v12744_v18, %v2839_v55 }
 0x290   : > { %v2872_v46 = vshll.u32 %v2832_v58, 8  ;;  %v2792_v11 = vsub.s32 32, %v9569_v8  ;;  %v2797_v3 = vadd.s32 127, %v2796_v33  ;;  %v9590_v56 = vshrl.u32 %v2989_v49, 30 }
 0x291   : > { %v2852_v16 = vor.u32 %v2851_v29, %v2850_v1  ;;  %v2688_v24 = vsub.s32 32, %v9580_v53  ;;  %v2840_v2 = vshrl.u32 %v12759_v12, %v2839_v55  ;;  %v2855_v0 = vor.u32 %v2854_v40, %v2853_v35 }
 0x292   : > { %12882 = vst [vmem:[#allocation16_spill] sm:$0xff] %v9590_v56  ;;  %vm2856_vm8 = vcmp.lt.s32.totalorder %v2837_v37, 1  ;;  %v2991_v22 = vshll.u32 %v9590_v56, 30  ;;  %vm2858_vm5 = vcmp.lt.s32.totalorder %v2837_v37, 3  ;;  %vm2859_vm13 = vcmp.lt.s32.totalorder %v2837_v37, 4 }
 0x293   : > { %v2864_v38 = vsel %vm2856_vm8, %v2843_v10, %v2846_v4  ;;  %v2861_v34 = vsel %vm2859_vm13, %v2849_v17, 2102212464  ;;  %v2865_v15 = vsel %vm2859_vm13, %v2852_v16, 920167782  ;;  %v2868_v58 = vsel %vm2856_vm8, %v2846_v4, %v2849_v17 }
 0x294   : > { %v6491_v36 = vpop.f32.mrb[6].mxu0  ;;  %v2869_v27 = vsel %vm2859_vm13, %v2855_v0, 1326507024  ;;  %v2692_v33 = vsub.s32 4294967266, %v9580_v53  ;;  %v9596_v49 = vsub.s32 %v2988_v41, %v2991_v22  ;;  %vm2857_vm1 = vcmp.lt.s32.totalorder %v2837_v37, 2 }
 0x295   : > { %v2359_v43 = vpop.f32.mrb[7].mxu0  ;;  %v2866_v29 = vsel %vm2858_vm5, %v2849_v17, %v2865_v15  ;;  %v2860_v1 = vsel %vm2856_vm8, %v2840_v2, %v2843_v10  ;;  %v2870_v35 = vsel %vm2858_vm5, %v2852_v16, %v2869_v27  ;;  %v9602_v40 = vadd.f32 %v6491_v36, %v9255_v45 }
 0x296   : > { %v2867_v55 = vsel %vm2857_vm1, %v2864_v38, %v2866_v29  ;;  %vm2443_vm4 = vcmp.lt.s32.totalorder %v9562_v39, 4  ;;  %v2994_v52 = vsub.s32 0, %v9596_v49  ;;  %v2862_v0 = vsel %vm2858_vm5, %v2846_v4, %v2861_v34 }
 0x297   : > { %v2871_v22 = vsel %vm2857_vm1, %v2868_v58, %v2870_v35  ;;  %v9609_v41 = vadd.f32 %v9255_v45, %v2359_v43  ;;  %v9614_v2 = vmul.u32.u64.low %v2872_v46, %v2867_v55  ;;  %v9615_v38 = vmul.u32.u64.high %v2872_v46, %v2867_v55, %v9614_v2 }
 0x298   : > { %v9611_v17 = vmul.u32.u64.low %v2872_v46, %v2871_v22  ;;  %v9612_v10 = vmul.u32.u64.high %v2872_v46, %v2871_v22, %v9611_v17  ;;  %v2776_v27 = vadd.s32 %v9433_v48, %v9438_v54  ;;  %v2693_v36 = vadd.s32 127, %v2692_v33 }
 0x299   : > { %v6241_v16 = vmin.u32 %v2994_v52, %v9596_v49  ;;  %v3139_v4 = vand.u32 2139095040, %v9602_v40  ;;  %v2672_v34 = vadd.s32 %v9470_v44, %v9481_v28  ;;  %v2863_v45 = vsel %vm2857_vm1, %v2860_v1, %v2862_v0 }
 0x29a   : > { %v12618_v43 = vand.u32 2147483647, %v9602_v40  ;;  %v3035_v15 = vand.u32 2139095040, %v9609_v41  ;;  %v2794_v58 = vshrl.u32 %v2776_v27, %v2792_v11  ;;  %v2798_v29 = vshll.u32 %v2797_v3, 23 }
 0x29b   : > { %v2996_v55 = vclz %v6241_v16  ;;  %v3140_v35 = vshrl.u32 %v3139_v4, 23  ;;  %v2690_v22 = vshrl.u32 %v2672_v34, %v2688_v24  ;;  %vm2881_vm15 = vc.u32 %v9612_v10, %v9614_v2 }
 0x29c   : > { %v2882_v48 = vadd.s32 1, %v9615_v38  ;;  %v3036_v54 = vshrl.u32 %v3035_v15, 23  ;;  %v2694_v52 = vshll.u32 %v2693_v36, 23  ;;  %v2879_v44 = vmul.u32 %v2872_v46, %v2863_v45 }
 0x29d   : > { %v6242_v33 = vadd.s32 4294967294, %v2996_v55  ;;  %v6248_v28 = vadd.s32 4294967169, %v3140_v35  ;;  %v2793_v37 = vshll.u32 %v9475_v14, %v9569_v8  ;;  %v3143_v11 = vand.u32 8388607, %v12618_v43 }
 0x29e   : > { %v2883_v1 = vsel %vm2881_vm15, %v2882_v48, %v9615_v38  ;;  %v6244_v3 = vadd.s32 4294967169, %v3036_v54  ;;  %v12883_v24 = vcvt.s32.f32 %v9510_v57  ;;  %v2689_v17 = vshll.u32 %v9529_v62, %v9580_v53 }
 0x29f   : > { %v2884_v46 = vadd.s32 %v2883_v1, %v2879_v44  ;;  %v3146_v27 = vadd.s32 1, %v6248_v28  ;;  %v9646_v14 = vsel %vm2443_vm4, %v9565_v21, 920167782  ;;  %v9648_v8 = vor.u32 %v2794_v58, %v2793_v37 }
 0x2a0   : > { %v9639_v0 = vmul.f32 %v12883_v24, %v2592_v63  ;;  %v9650_v38 = vor.u32 4788187, %v2798_v29  ;;  %vm6243_vm7 = vcmp.lt.s32.totalorder %v6242_v33, 0  ;;  %v9652_v30 = vor.u32 %v2690_v22, %v2689_v17 }
 0x2a1   : > { %v9654_v57 = vor.u32 4788187, %v2694_v52  ;;  %v2885_v63 = vadd.s32 536870912, %v2884_v46  ;;  %v12619_v36 = vand.u32 2147483647, %v9609_v41  ;;  %v12884_v62 = vor.u32 %v9516_v31, %v9508_v6 }
 0x2a2   : > { %v3144_v16 = vor.u32 8388608, %v3143_v11  ;;  %vm3147_vm3 = vcmp.gt.s32.totalorder %v3146_v27, 0  ;;  %v3042_v4 = vadd.s32 1, %v6244_v3  ;;  %v9665_v45 = vsel %vm6243_vm7, 0, %v6242_v33 }
 0x2a3   : > { %v9662_v53 = vsel %vm2443_vm4, %v12884_v62, 1326507024  ;;  %v9667_v15 = vshrl.u32 %v2885_v63, 30  ;;  %v3148_v58 = vsel %vm3147_vm3, %v3146_v27, 0  ;;  %v2984_v6 = vadd.s32 %v9549_v25, %v9555_v13 }
 0x2a4   : > { %12885 = vst [vmem:[#allocation28_spill] sm:$0xff] %v9662_v53  ;;  %v3150_v31 = vand.u32 31, %v3148_v58  ;;  %v3039_v54 = vand.u32 8388607, %v12619_v36  ;;  %v3004_v52 = vsub.s32 4294967266, %v9665_v45  ;;  %v9679_v44 = vshll.u32 %v3144_v16, 8 }
 0x2a5   : > { %12886 = vst [vmem:[#allocation20_spill] sm:$0xff] %v9667_v15  ;;  %v2887_v48 = vshll.u32 %v9667_v15, 30  ;;  %vm3043_vm9 = vcmp.gt.s32.totalorder %v3042_v4, 0  ;;  %v3149_v37 = vshrl.u32 %v3148_v58, 5  ;;  %v3000_v43 = vsub.s32 32, %v9665_v45 }
 0x2a6   : > { %v3151_v33 = vsub.s32 32, %v3150_v31  ;;  %v3153_v25 = vshll.u32 %v12759_v12, %v3150_v31  ;;  %v3156_v13 = vshll.u32 %v12763_v32, %v3150_v31  ;;  %v3159_v3 = vshll.u32 %v12767_v47, %v3150_v31 }
 0x2a7   : > { %v9681_v28 = vsub.s32 %v2884_v46, %v2887_v48  ;;  %v3162_v27 = vshll.u32 %v12749_v59, %v3150_v31  ;;  %v3165_v63 = vshll.u32 %v12752_v23, %v3150_v31  ;;  %v3040_v22 = vor.u32 8388608, %v3039_v54 }
 0x2a8   : > { %v3154_v1 = vshrl.u32 %v12763_v32, %v3151_v33  ;;  %v3157_v11 = vshrl.u32 %v12767_v47, %v3151_v33  ;;  %v3160_v24 = vshrl.u32 %v12749_v59, %v3151_v33  ;;  %v3163_v46 = vshrl.u32 %v12752_v23, %v3151_v33 }
 0x2a9   : > { %v2890_v17 = vsub.s32 0, %v9681_v28  ;;  %v3166_v48 = vshrl.u32 %v12744_v18, %v3151_v33  ;;  %v3005_v35 = vadd.s32 127, %v3004_v52  ;;  %vm3171_vm12 = vcmp.lt.s32.totalorder %v3149_v37, 4 }
 0x2aa   : > { %v3155_v62 = vor.u32 %v3154_v1, %v3153_v25  ;;  %v3158_v16 = vor.u32 %v3157_v11, %v3156_v13  ;;  %v3161_v58 = vor.u32 %v3160_v24, %v3159_v3  ;;  %v3164_v34 = vor.u32 %v3163_v46, %v3162_v27 }
 0x2ab   : > { %v6237_v36 = vmin.u32 %v2890_v17, %v9681_v28  ;;  %v3167_v55 = vor.u32 %v3166_v48, %v3165_v63  ;;  %v3044_v29 = vsel %vm3043_vm9, %v3042_v4, 0  ;;  %v3152_v15 = vshrl.u32 %v12759_v12, %v3151_v33 }
 0x2ac   : > { %vm3168_vm14 = vcmp.lt.s32.totalorder %v3149_v37, 1  ;;  %v3173_v31 = vsel %vm3171_vm12, %v3161_v58, 2102212464  ;;  %vm3169_vm0 = vcmp.lt.s32.totalorder %v3149_v37, 2  ;;  %vm3170_vm10 = vcmp.lt.s32.totalorder %v3149_v37, 3 }
 0x2ad   : > { %v2892_v56 = vclz %v6237_v36  ;;  %v3176_v25 = vsel %vm3168_vm14, %v3155_v62, %v3158_v16  ;;  %v3177_v13 = vsel %vm3171_vm12, %v3164_v34, 920167782  ;;  %v3172_v11 = vsel %vm3168_vm14, %v3152_v15, %v3155_v62 }
 0x2ae   : > { %v3178_v3 = vsel %vm3170_vm10, %v3161_v58, %v3177_v13  ;;  %v3180_v54 = vsel %vm3168_vm14, %v3158_v16, %v3161_v58  ;;  %v3174_v52 = vsel %vm3170_vm10, %v3158_v16, %v3173_v31  ;;  %v3181_v4 = vsel %vm3171_vm12, %v3167_v55, 1326507024 }
 0x2af   : > { %v6238_v1 = vadd.s32 4294967294, %v2892_v56  ;;  %v3179_v24 = vsel %vm3169_vm0, %v3176_v25, %v3178_v3  ;;  %v3046_v36 = vand.u32 31, %v3044_v29  ;;  %v3182_v33 = vsel %vm3170_vm10, %v3164_v34, %v3181_v4 }
 0x2b0   : > { %v9703_v17 = vmul.u32.u64.low %v9679_v44, %v3179_v24  ;;  %v9704_v27 = vmul.u32.u64.high %v9679_v44, %v3179_v24, %v9703_v17  ;;  %v2880_v46 = vadd.s32 %v9614_v2, %v9612_v10  ;;  %v3183_v15 = vsel %vm3169_vm0, %v3180_v54, %v3182_v33 }
 0x2b1   : > { %vm6239_vm6 = vcmp.lt.s32.totalorder %v6238_v1, 0  ;;  %v3047_v63 = vsub.s32 32, %v3046_v36  ;;  %v9716_v16 = vshrl.u32 %v2984_v6, %v3000_v43  ;;  %v3006_v34 = vshll.u32 %v3005_v35, 23 }
 0x2b2   : > { %v9709_v56 = vsel %vm6239_vm6, 0, %v6238_v1  ;;  %v9718_v58 = vshll.u32 %v3040_v22, 8  ;;  %v3175_v31 = vsel %vm3169_vm0, %v3172_v11, %v3174_v52  ;;  %v3194_v1 = vadd.s32 1, %v9704_v27 }
 0x2b3   : > { %v9724_v10 = vmul.u32.u64.low %v9679_v44, %v3183_v15  ;;  %v9725_v2 = vmul.u32.u64.high %v9679_v44, %v3183_v15, %v9724_v10  ;;  %v3050_v25 = vshrl.u32 %v12763_v32, %v3047_v63  ;;  %v2900_v13 = vsub.s32 4294967266, %v9709_v56 }
 0x2b4   : > { %v3045_v3 = vshrl.u32 %v3044_v29, 5  ;;  %v3053_v43 = vshrl.u32 %v12767_v47, %v3047_v63  ;;  %v3049_v6 = vshll.u32 %v12759_v12, %v3046_v36  ;;  %v3052_v35 = vshll.u32 %v12763_v32, %v3046_v36 }
 0x2b5   : > { %v3055_v22 = vshll.u32 %v12767_v47, %v3046_v36  ;;  %v3056_v37 = vshrl.u32 %v12749_v59, %v3047_v63  ;;  %v2896_v11 = vsub.s32 32, %v9709_v56  ;;  %v3191_v54 = vmul.u32 %v9679_v44, %v3175_v31 }
 0x2b6   : > { %v3058_v52 = vshll.u32 %v12749_v59, %v3046_v36  ;;  %v3059_v24 = vshrl.u32 %v12752_v23, %v3047_v63  ;;  %vm3193_vm11 = vc.u32 %v9725_v2, %v9703_v17  ;;  %v3051_v29 = vor.u32 %v3050_v25, %v3049_v6 }
 0x2b7   : > { %v3054_v4 = vor.u32 %v3053_v43, %v3052_v35  ;;  %v3057_v33 = vor.u32 %v3056_v37, %v3055_v22  ;;  %v9741_v15 = vor.u32 4788187, %v3006_v34  ;;  %v2901_v10 = vadd.s32 127, %v2900_v13  ;;  %v4073_v22 = vld [vmem:[%s12524_s5 + $0x8] sm:$0xff]  ;;  %v4074_v37 = vld [vmem:[%s12524_s5 + $0x10] sm:$0xff] }
 0x2b8   : > { %v3195_v55 = vsel %vm3193_vm11, %v3194_v1, %v9704_v27  ;;  %v3060_v26 = vor.u32 %v3059_v24, %v3058_v52  ;;  %v2897_v7 = vshll.u32 %v9681_v28, %v9709_v56  ;;  %v3061_v31 = vshll.u32 %v12752_v23, %v3046_v36 }
 0x2b9   : > { %v3196_v44 = vadd.s32 %v3195_v55, %v3191_v54  ;;  %v3062_v51 = vshrl.u32 %v12744_v18, %v3047_v63  ;;  %v2898_v21 = vshrl.u32 %v2880_v46, %v2896_v11  ;;  %v3048_v53 = vshrl.u32 %v12759_v12, %v3047_v63  ;;  %v4072_v63 = vld [vmem:[%s12524_s5] sm:$0xff]  ;;  %v4075_v11 = vld [vmem:[%s12524_s5 + $0x18] sm:$0xff] }
 0x2ba   : > { %vm3064_vm2 = vcmp.lt.s32.totalorder %v3045_v3, 1  ;;  %vm3067_vm8 = vcmp.lt.s32.totalorder %v3045_v3, 4  ;;  %v2902_v27 = vshll.u32 %v2901_v10, 23  ;;  %vm3066_vm5 = vcmp.lt.s32.totalorder %v3045_v3, 3 }
 0x2bb   : > { %v3197_v25 = vadd.s32 536870912, %v3196_v44  ;;  %v3063_v34 = vor.u32 %v3062_v51, %v3061_v31  ;;  %v3069_v43 = vsel %vm3067_vm8, %v3057_v33, 2102212464  ;;  %v3072_v13 = vsel %vm3064_vm2, %v3051_v29, %v3054_v4 }
 0x2bc   : > { %v9712_v62 = vpop.f32.mrb[8].mxu0  ;;  %v3073_v1 = vsel %vm3067_vm8, %v3060_v26, 920167782  ;;  %v3076_v28 = vsel %vm3064_vm2, %v3054_v4, %v3057_v33  ;;  %vm2514_vm13 = vcmp.lt.s32.totalorder %v9275_v20, 0  ;;  %vm3065_vm1 = vcmp.lt.s32.totalorder %v3045_v3, 2 }
 0x2bd   : > { %v9720_v48 = vpop.f32.mrb[9].mxu0  ;;  %v9752_v36 = vshrl.u32 %v3197_v25, 30  ;;  %v3074_v46 = vsel %vm3066_vm5, %v3057_v33, %v3073_v1  ;;  %v3077_v56 = vsel %vm3067_vm8, %v3063_v34, 1326507024  ;;  %v3068_v51 = vsel %vm3064_vm2, %v3048_v53, %v3051_v29  ;;  %v9782_v33 = vld [vmem:[%s12523_s4] ss:$0 sm:$0xff] }
 0x2be   : > { %v3070_v55 = vsel %vm3066_vm5, %v3054_v4, %v3069_v43  ;;  %v3075_v6 = vsel %vm3065_vm1, %v3072_v13, %v3074_v46  ;;  %v3078_v35 = vsel %vm3066_vm5, %v3060_v26, %v3077_v56  ;;  %v2903_v26 = vor.u32 4788187, %v2902_v27 }
 0x2bf   : > { %12887 = vst [vmem:[#allocation26_spill] sm:$0xff] %v9752_v36  ;;  %v3199_v54 = vshll.u32 %v9752_v36, 30  ;;  %v3079_v53 = vsel %vm3065_vm1, %v3076_v28, %v3078_v35  ;;  %v9771_v52 = vmul.u32.u64.low %v9718_v58, %v3075_v6  ;;  %v9772_v24 = vmul.u32.u64.high %v9718_v58, %v3075_v6, %v9771_v52 }
 0x2c0   : > { %v9776_v29 = vmul.u32.u64.low %v9718_v58, %v3079_v53  ;;  %v9777_v4 = vmul.u32.u64.high %v9718_v58, %v3079_v53, %v9776_v29  ;;  %v9786_v10 = vadd.f32 %v9782_v33, %v9712_v62  ;;  %v3071_v25 = vsel %vm3065_vm1, %v3068_v51, %v3070_v55 }
 0x2c1   : > { %v9788_v31 = vsub.s32 %v3196_v44, %v3199_v54  ;;  %v6648_v34 = vpack.c.bf16 %v4073_v22, %v4072_v63  ;;  %v6652_v43 = vpack.c.bf16 %v4075_v11, %v4074_v37  ;;  %v12889_v13 = vand.u32 2147483647, %v9650_v38  ;;  %v4076_v63 = vld [vmem:[%s12524_s5 + $0x20] sm:$0xff]  ;;  %v4079_v37 = vld [vmem:[%s12524_s5 + $0x38] sm:$0xff] }
 0x2c2   : > { %12888 = vst [vmem:[#allocation4_spill] sm:$0xff] %v9786_v10  ;;  %v12890_v27 = vcvt.s32.f32 %v9648_v8  ;;  %v12891_v28 = vand.u32 2147483647, %v9654_v57  ;;  %v12892_v46 = vcvt.s32.f32 %v9652_v30  ;;  %v12893_v62 = vshll.u32 %v9596_v49, %v9665_v45  ;;  %v4077_v8 = vld [vmem:[%s12524_s5 + $0x28] sm:$0xff] }
 0x2c3   : > { %v3347_v3 = vand.u32 2139095040, %v9786_v10  ;;  %vm2722_vm15 = vcmp.lt.s32.totalorder %v9381_v50, 0  ;;  %v2899_v38 = vor.u32 %v2898_v21, %v2897_v7  ;;  %v3202_v30 = vsub.s32 0, %v9788_v31  ;;  %6649 = vmatprep.subr.bf16.mxu1 %v6648_v34 }
 0x2c4   : > { %v2803_v1 = vmul.f32 %v12890_v27, %v12889_v13  ;;  %v2699_v56 = vmul.f32 %v12892_v46, %v12891_v28  ;;  %v3003_v44 = vor.u32 %v9716_v16, %v12893_v62  ;;  %v3090_v57 = vadd.s32 1, %v9772_v24  ;;  %6651 = vmatpush3.bf16.msra.mxu1 %v6648_v34 }
 0x2c5   : > { %v9815_v49 = vadd.f32 %v9782_v33, %v9720_v48  ;;  %v3087_v45 = vmul.u32 %v9718_v58, %v3071_v25  ;;  %vm3089_vm7 = vc.u32 %v9777_v4, %v9771_v52  ;;  %v3348_v16 = vshrl.u32 %v3347_v3, 23  ;;  %6653 = vmatprep.subr.bf16.mxu1 %v6652_v43 }
 0x2c6   : > { %v12632_v51 = vand.u32 2147483647, %v9386_v42  ;;  %v3008_v7 = vand.u32 2147483647, %v9741_v15  ;;  %v2904_v21 = vand.u32 2147483647, %v2903_v26  ;;  %v3091_v55 = vsel %vm3089_vm7, %v3090_v57, %v9772_v24 }
 0x2c7   : > { %12894 = vst [vmem:[#allocation21_spill] sm:$0xff] %v9815_v49  ;;  %v6656_v6 = vpack.c.bf16 %v4077_v8, %v4076_v63  ;;  %v12895_v48 = vxor.u32 2147483648, %v9639_v0  ;;  %vm2618_vm3 = vcmp.lt.s32.totalorder %v9389_v5, 0  ;;  %v3092_v35 = vadd.s32 %v3091_v55, %v3087_v45  ;;  %v4078_v15 = vld [vmem:[%s12524_s5 + $0x30] sm:$0xff] }
 0x2c8   : > { %v6256_v22 = vadd.s32 4294967169, %v3348_v16  ;;  %v3010_v11 = vcvt.s32.f32 %v3003_v44  ;;  %v2906_v54 = vcvt.s32.f32 %v2899_v38  ;;  %v6249_v53 = vmin.u32 %v3202_v30, %v9788_v31  ;;  %6655 = vmatpush3.bf16.msra.mxu1 %v6652_v43 }
 0x2c9   : > { %v9828_v58 = vsel %vm2514_vm13, %v12895_v48, %v9639_v0  ;;  %v3243_v24 = vand.u32 2139095040, %v9815_v49  ;;  %v2804_v0 = vxor.u32 2147483648, %v2803_v1  ;;  %v2700_v26 = vxor.u32 2147483648, %v2699_v56  ;;  %6657 = vmatprep.subr.bf16.mxu1 %v6656_v6 }
 0x2ca   : > { %v3093_v29 = vadd.s32 536870912, %v3092_v35  ;;  %v3354_v25 = vadd.s32 1, %v6256_v22  ;;  %v3011_v34 = vmul.f32 %v3010_v11, %v3008_v7  ;;  %v2907_v13 = vmul.f32 %v2906_v54, %v2904_v21 }
 0x2cb   : > { %v6660_v27 = vpack.c.bf16 %v4079_v37, %v4078_v15  ;;  %v9841_v28 = vand.u32 8388607, %v12632_v51  ;;  %vm2930_vm9 = vcmp.lt.s32.totalorder %v9460_v9, 0  ;;  %v12631_v62 = vand.u32 2147483647, %v9786_v10 }
 0x2cc   : > { %v9844_v46 = vshrl.u32 %v3093_v29, 30  ;;  %vm3355_vm12 = vcmp.gt.s32.totalorder %v3354_v25, 0  ;;  %vm2826_vm14 = vcmp.lt.s32.totalorder %v9467_v19, 0  ;;  %v3204_v44 = vclz %v6249_v53  ;;  %6659 = vmatpush3.bf16.msra.mxu1 %v6656_v6 }
 0x2cd   : > { %v3356_v3 = vsel %vm3355_vm12, %v3354_v25, 0  ;;  %v3244_v43 = vshrl.u32 %v3243_v24, 23  ;;  %v9850_v63 = vsel %vm2722_vm15, %v2804_v0, %v2803_v1  ;;  %v9854_v8 = vsel %vm2618_vm3, %v2700_v26, %v2699_v56  ;;  %6661 = vmatprep.subr.bf16.mxu1 %v6660_v27 }
 0x2ce   : > { %12896 = vst [vmem:[#allocation27_spill] sm:$0xff] %v9844_v46  ;;  %12897 = vst [vmem:[#allocation23_spill] sm:$0xff] %v9850_v63  ;;  %v3095_v38 = vshll.u32 %v9844_v46, 30  ;;  %v3358_v30 = vand.u32 31, %v3356_v3  ;;  %v3012_v57 = vxor.u32 2147483648, %v3011_v34  ;;  %v2908_v45 = vxor.u32 2147483648, %v2907_v13 }
 0x2cf   : > { %12898 = vst [vmem:[#allocation3_spill] sm:$0xff] %v9854_v8  ;;  %v9860_v7 = vshll.u32 %v12759_v12, %v9486_v61  ;;  %v3351_v1 = vand.u32 8388607, %v12631_v62  ;;  %v6250_v48 = vadd.s32 4294967294, %v3204_v44  ;;  %v9867_v22 = vshrl.u32 %v3356_v3, 5 }
 0x2d0   : > { %v9862_v21 = vsub.s32 %v3092_v35, %v3095_v38  ;;  %v3359_v56 = vsub.s32 32, %v3358_v30  ;;  %v3361_v6 = vshll.u32 %v12759_v12, %v3358_v30  ;;  %v6252_v15 = vadd.s32 4294967169, %v3244_v43  ;;  %6663 = vmatpush3.bf16.msra.mxu1 %v6660_v27 }
 0x2d1   : > { %v3364_v54 = vshll.u32 %v12763_v32, %v3358_v30  ;;  %v3367_v53 = vshll.u32 %v12767_v47, %v3358_v30  ;;  %v3370_v0 = vshll.u32 %v12749_v59, %v3358_v30  ;;  %v9880_v29 = vsel %vm2930_vm9, %v3012_v57, %v3011_v34 }
 0x2d2   : > { %v3098_v37 = vsub.s32 0, %v9862_v21  ;;  %v3362_v11 = vshrl.u32 %v12763_v32, %v3359_v56  ;;  %v3365_v35 = vshrl.u32 %v12767_v47, %v3359_v56  ;;  %v3368_v24 = vshrl.u32 %v12749_v59, %v3359_v56  ;;  %12899 = vst [vmem:[#allocation15_spill] sm:$0xff] %v9880_v29 }
 0x2d3   : > { %v3371_v26 = vshrl.u32 %v12752_v23, %v3359_v56  ;;  %v9885_v43 = vadd.s32 %v9703_v17, %v9725_v2  ;;  %v3352_v27 = vor.u32 8388608, %v3351_v1  ;;  %v9889_v51 = vsel %vm2826_vm14, %v2908_v45, %v2907_v13 }
 0x2d4   : > { %v6245_v25 = vmin.u32 %v3098_v37, %v9862_v21  ;;  %v3363_v44 = vor.u32 %v3362_v11, %v3361_v6  ;;  %v3366_v3 = vor.u32 %v3365_v35, %v3364_v54  ;;  %v3369_v38 = vor.u32 %v3368_v24, %v3367_v53  ;;  %12900 = vst [vmem:[#allocation12_spill] sm:$0xff] %v9889_v51  ;;  %v4080_v24 = vld [vmem:[%s12524_s5 + $0x40] sm:$0xff] }
 0x2d5   : > { %v3372_v62 = vor.u32 %v3371_v26, %v3370_v0  ;;  %v3373_v55 = vshll.u32 %v12752_v23, %v3358_v30  ;;  %v3374_v34 = vshrl.u32 %v12744_v18, %v3359_v56  ;;  %vm6251_vm0 = vcmp.lt.s32.totalorder %v6250_v48, 0 }
 0x2d6   : > { %v3100_v16 = vclz %v6245_v25  ;;  %vm3376_vm10 = vcmp.lt.s32.totalorder %v9867_v22, 1  ;;  %v12901_v57 = vand.u32 2147483647, %v9815_v49  ;;  %v3250_v17 = vadd.s32 1, %v6252_v15 }
 0x2d7   : > { %v3375_v1 = vor.u32 %v3374_v34, %v3373_v55  ;;  %vm3379_vm6 = vcmp.lt.s32.totalorder %v9867_v22, 4  ;;  %v3384_v13 = vsel %vm3376_vm10, %v3363_v44, %v3366_v3  ;;  %vm3378_vm11 = vcmp.lt.s32.totalorder %v9867_v22, 3 }
 0x2d8   : > { %v3247_v6 = vand.u32 8388607, %v12901_v57  ;;  %v6246_v2 = vadd.s32 4294967294, %v3100_v16  ;;  %v3385_v45 = vsel %vm3379_vm6, %v3372_v62, 920167782  ;;  %v3388_v30 = vsel %vm3376_vm10, %v3366_v3, %v3369_v38 }
 0x2d9   : > { %v3392_v37 = vshll.u32 %v3352_v27, 8  ;;  %vm3377_vm2 = vcmp.lt.s32.totalorder %v9867_v22, 2  ;;  %v3381_v11 = vsel %vm3379_vm6, %v3369_v38, 2102212464  ;;  %v3386_v15 = vsel %vm3378_vm11, %v3369_v38, %v3385_v45 }
 0x2da   : > { %v3389_v16 = vsel %vm3379_vm6, %v3375_v1, 1326507024  ;;  %v9906_v55 = vsel %vm6251_vm0, 0, %v6250_v48  ;;  %v3360_v54 = vshrl.u32 %v12759_v12, %v3359_v56  ;;  %v3387_v35 = vsel %vm3377_vm2, %v3384_v13, %v3386_v15  ;;  %v4081_v56 = vld [vmem:[%s12524_s5 + $0x48] sm:$0xff]  ;;  %v4082_v48 = vld [vmem:[%s12524_s5 + $0x50] sm:$0xff] }
 0x2db   : > { %v3390_v53 = vsel %vm3378_vm11, %v3372_v62, %v3389_v16  ;;  %vm6247_vm8 = vcmp.lt.s32.totalorder %v6246_v2, 0  ;;  %v3248_v26 = vor.u32 8388608, %v3247_v6  ;;  %vm3251_vm5 = vcmp.gt.s32.totalorder %v3250_v17, 0  ;;  %v4083_v62 = vld [vmem:[%s12524_s5 + $0x58] sm:$0xff] }
 0x2dc   : > { %v3391_v0 = vsel %vm3377_vm2, %v3388_v30, %v3390_v53  ;;  %v3380_v25 = vsel %vm3376_vm10, %v3360_v54, %v3363_v44  ;;  %v3382_v27 = vsel %vm3378_vm11, %v3366_v3, %v3381_v11  ;;  %v3212_v57 = vsub.s32 4294967266, %v9906_v55 }
 0x2dd   : > { %v9931_v38 = vmul.u32.u64.low %v3392_v37, %v3391_v0  ;;  %v9932_v34 = vmul.u32.u64.high %v3392_v37, %v3391_v0, %v9931_v38  ;;  %v9937_v6 = vadd.s32 %v9771_v52, %v9777_v4  ;;  %v9943_v45 = vsel %vm6247_vm8, 0, %v6246_v2 }
 0x2de   : > { %v9939_v1 = vmul.u32.u64.low %v3392_v37, %v3387_v35  ;;  %v9940_v13 = vmul.u32.u64.high %v3392_v37, %v3387_v35, %v9939_v1  ;;  %v3252_v30 = vsel %vm3251_vm5, %v3250_v17, 0  ;;  %v6664_v15 = vpack.c.bf16 %v4081_v56, %v4080_v24 }
 0x2df   : > { %v6668_v16 = vpack.c.bf16 %v4083_v62, %v4082_v48  ;;  %v3383_v3 = vsel %vm3377_vm2, %v3380_v25, %v3382_v27  ;;  %v3254_v11 = vand.u32 31, %v3252_v30  ;;  %v9949_v53 = vshrl.u32 %v12759_v12, %v9497_v60 }
 0x2e0   : > { %v9953_v52 = vshrl.u32 %v12763_v32, %v9497_v60  ;;  %v3208_v4 = vsub.s32 32, %v9906_v55  ;;  %vm3401_vm1 = vc.u32 %v9932_v34, %v9939_v1  ;;  %v9960_v22 = vshll.u32 %v3248_v26, 8  ;;  %6665 = vmatprep.subr.bf16.mxu1 %v6664_v15 }
 0x2e1   : > { %v9962_v2 = vadd.s32 127, %v3212_v57  ;;  %v3108_v35 = vsub.s32 4294967266, %v9943_v45  ;;  %v3402_v24 = vadd.s32 1, %v9940_v13  ;;  %v3255_v0 = vsub.s32 32, %v3254_v11  ;;  %6667 = vmatpush3.bf16.msra.mxu1 %v6664_v15 }
 0x2e2   : > { %v3399_v56 = vmul.u32 %v3392_v37, %v3383_v3  ;;  %v3253_v48 = vshrl.u32 %v3252_v30, 5  ;;  %v3257_v62 = vshll.u32 %v12759_v12, %v3254_v11  ;;  %v3260_v25 = vshll.u32 %v12763_v32, %v3254_v11  ;;  %6669 = vmatprep.subr.bf16.mxu1 %v6668_v16 }
 0x2e3   : > { %v3403_v27 = vsel %vm3401_vm1, %v3402_v24, %v9940_v13  ;;  %v3258_v26 = vshrl.u32 %v12763_v32, %v3255_v0  ;;  %v3263_v38 = vshll.u32 %v12767_v47, %v3254_v11  ;;  %v3266_v57 = vshll.u32 %v12749_v59, %v3254_v11 }
 0x2e4   : > { %v3404_v17 = vadd.s32 %v3403_v27, %v3399_v56  ;;  %v3261_v36 = vshrl.u32 %v12767_v47, %v3255_v0  ;;  %v3264_v15 = vshrl.u32 %v12749_v59, %v3255_v0  ;;  %v3267_v37 = vshrl.u32 %v12752_v23, %v3255_v0 }
 0x2e5   : > { %v3104_v30 = vsub.s32 32, %v9943_v45  ;;  %v3259_v3 = vor.u32 %v3258_v26, %v3257_v62  ;;  %v3269_v46 = vshll.u32 %v12752_v23, %v3254_v11  ;;  %v3270_v13 = vshrl.u32 %v12744_v18, %v3255_v0  ;;  %6671 = vmatpush3.bf16.msra.mxu1 %v6668_v16 }
 0x2e6   : > { %v3405_v24 = vadd.s32 536870912, %v3404_v17  ;;  %v3262_v29 = vor.u32 %v3261_v36, %v3260_v25  ;;  %v3265_v9 = vor.u32 %v3264_v15, %v3263_v38  ;;  %v3268_v51 = vor.u32 %v3267_v37, %v3266_v57 }
 0x2e7   : > { %v3109_v19 = vadd.s32 127, %v3108_v35  ;;  %v3271_v56 = vor.u32 %v3270_v13, %v3269_v46  ;;  %v3256_v62 = vshrl.u32 %v12759_v12, %v3255_v0  ;;  %vm3272_vm7 = vcmp.lt.s32.totalorder %v3253_v48, 1 }
 0x2e8   : > { %v9984_v50 = vshrl.u32 %v3405_v24, 30  ;;  %vm3275_vm12 = vcmp.lt.s32.totalorder %v3253_v48, 4  ;;  %vm3274_vm0 = vcmp.lt.s32.totalorder %v3253_v48, 3  ;;  %v3280_v11 = vsel %vm3272_vm7, %v3259_v3, %v3262_v29 }
 0x2e9   : > { %v6497_v44 = vpop.f32.mrb[10].mxu0  ;;  %v3277_v16 = vsel %vm3275_vm12, %v3265_v9, 2102212464  ;;  %v3281_v36 = vsel %vm3275_vm12, %v3268_v51, 920167782  ;;  %vm3273_vm10 = vcmp.lt.s32.totalorder %v3253_v48, 2  ;;  %v3284_v35 = vsel %vm3272_vm7, %v3262_v29, %v3265_v9 }
 0x2ea   : > { %v2379_v54 = vpop.f32.mrb[11].mxu0  ;;  %v9979_v27 = vadd.f32 %v9782_v33, %v6497_v44  ;;  %12902 = vst [vmem:[#allocation25_spill] sm:$0xff] %v9984_v50  ;;  %v3407_v25 = vshll.u32 %v9984_v50, 30  ;;  %v3282_v46 = vsel %vm3274_vm0, %v3265_v9, %v3281_v36  ;;  %v3276_v44 = vsel %vm3272_vm7, %v3256_v62, %v3259_v3  ;;  %v4087_v62 = vld [vmem:[%s12524_s5 + $0x78] sm:$0xff] }
 0x2eb   : > { %v9982_v63 = vadd.f32 %v9782_v33, %v2379_v54  ;;  %v3278_v26 = vsel %vm3274_vm0, %v3262_v29, %v3277_v16  ;;  %v3283_v54 = vsel %vm3273_vm10, %v3280_v11, %v3282_v46  ;;  %v3285_v38 = vsel %vm3275_vm12, %v3271_v56, 1326507024  ;;  %v4084_v29 = vld [vmem:[%s12524_s5 + $0x60] sm:$0xff]  ;;  %v4086_v56 = vld [vmem:[%s12524_s5 + $0x70] sm:$0xff] }
 0x2ec   : > { %v9989_v57 = vsub.s32 %v3404_v17, %v3407_v25  ;;  %v3286_v15 = vsel %vm3274_vm0, %v3268_v51, %v3285_v38  ;;  %v9992_v0 = vmul.u32.u64.low %v9960_v22, %v3283_v54  ;;  %v9993_v37 = vmul.u32.u64.high %v9960_v22, %v3283_v54, %v9992_v0  ;;  %v4085_v51 = vld [vmem:[%s12524_s5 + $0x68] sm:$0xff] }
 0x2ed   : > { %v3210_v13 = vshrl.u32 %v9885_v43, %v3208_v4  ;;  %v3287_v24 = vsel %vm3273_vm10, %v3284_v35, %v3286_v15  ;;  %v12645_v36 = vand.u32 2147483647, %v9979_v27  ;;  %v3555_v9 = vand.u32 2139095040, %v9979_v27 }
 0x2ee   : > { %v3214_v17 = vshll.u32 %v9962_v2, 23  ;;  %v3410_v3 = vsub.s32 0, %v9989_v57  ;;  %v10009_v43 = vmul.u32.u64.low %v9960_v22, %v3287_v24  ;;  %v10010_v4 = vmul.u32.u64.high %v9960_v22, %v3287_v24, %v10009_v43 }
 0x2ef   : > { %v3106_v16 = vshrl.u32 %v9937_v6, %v3104_v30  ;;  %v3279_v11 = vsel %vm3273_vm10, %v3276_v44, %v3278_v26  ;;  %v3556_v25 = vshrl.u32 %v3555_v9, 23  ;;  %v3451_v2 = vand.u32 2139095040, %v9982_v63 }
 0x2f0   : > { %v3110_v46 = vshll.u32 %v3109_v19, 23  ;;  %v6257_v35 = vmin.u32 %v3410_v3, %v9989_v57  ;;  %v3298_v54 = vadd.s32 1, %v9993_v37  ;;  %v6672_v38 = vpack.c.bf16 %v4085_v51, %v4084_v29 }
 0x2f1   : > { %v6264_v15 = vadd.s32 4294967169, %v3556_v25  ;;  %v3559_v24 = vand.u32 8388607, %v12645_v36  ;;  %v3452_v43 = vshrl.u32 %v3451_v2, 23  ;;  %v6676_v50 = vpack.c.bf16 %v4087_v62, %v4086_v56 }
 0x2f2   : > { %v3105_v6 = vshll.u32 %v9862_v21, %v9943_v45  ;;  %v3412_v48 = vclz %v6257_v35  ;;  %v3295_v30 = vmul.u32 %v9960_v22, %v3279_v11  ;;  %vm3297_vm6 = vc.u32 %v10010_v4, %v9992_v0  ;;  %6673 = vmatprep.subr.bf16.mxu1 %v6672_v38 }
 0x2f3   : > { %v12903_v19 = vshll.u32 %v9788_v31, %v9906_v55  ;;  %v10035_v26 = vor.u32 4788187, %v3214_v17  ;;  %v3299_v9 = vsel %vm3297_vm6, %v3298_v54, %v9993_v37  ;;  %v3562_v29 = vadd.s32 1, %v6264_v15  ;;  %6675 = vmatpush3.bf16.msra.mxu1 %v6672_v38 }
 0x2f4   : > { %v10038_v51 = vor.u32 %v3106_v16, %v3105_v6  ;;  %v10040_v21 = vor.u32 4788187, %v3110_v46  ;;  %v6258_v45 = vadd.s32 4294967294, %v3412_v48  ;;  %v3300_v22 = vadd.s32 %v3299_v9, %v3295_v30  ;;  %6677 = vmatprep.subr.bf16.mxu1 %v6676_v50 }
 0x2f5   : > { %v10033_v44 = vor.u32 %v3210_v13, %v12903_v19  ;;  %v3560_v3 = vor.u32 8388608, %v3559_v24  ;;  %vm3563_vm11 = vcmp.gt.s32.totalorder %v3562_v29, 0  ;;  %v12646_v56 = vand.u32 2147483647, %v9982_v63 }
 0x2f6   : > { %v6260_v31 = vadd.s32 4294967169, %v3452_v43  ;;  %vm6259_vm2 = vcmp.lt.s32.totalorder %v6258_v45, 0  ;;  %v3301_v55 = vadd.s32 536870912, %v3300_v22  ;;  %v3564_v13 = vsel %vm3563_vm11, %v3562_v29, 0 }
 0x2f7   : > { %v10045_v37 = vshll.u32 %v12763_v32, %v9486_v61  ;;  %v10049_v16 = vsel %vm6259_vm2, 0, %v6258_v45  ;;  %v3566_v11 = vand.u32 31, %v3564_v13  ;;  %6679 = vmatpush3.bf16.msra.mxu1 %v6676_v50  ;;  %v3400_v46 = vadd.s32 %v9939_v1, %v9932_v34 }
 0x2f8   : > { %v10055_v35 = vshrl.u32 %v3301_v55, 30  ;;  %v10057_v38 = vshll.u32 %v3560_v3, 8  ;;  %v10061_v15 = vand.u32 8388607, %v12646_v56  ;;  %v3458_v24 = vadd.s32 1, %v6260_v31 }
 0x2f9   : > { %v3567_v54 = vsub.s32 32, %v3566_v11  ;;  %v3420_v43 = vsub.s32 4294967266, %v10049_v16  ;;  %v3569_v6 = vshll.u32 %v12759_v12, %v3566_v11  ;;  %v3572_v48 = vshll.u32 %v12763_v32, %v3566_v11 }
 0x2fa   : > { %12904 = vst [vmem:[#allocation35_spill] sm:$0xff] %v10055_v35  ;;  %v3303_v50 = vshll.u32 %v10055_v35, 30  ;;  %v3575_v30 = vshll.u32 %v12767_v47, %v3566_v11  ;;  %v3565_v29 = vshrl.u32 %v3564_v13, 5  ;;  %v3578_v45 = vshll.u32 %v12749_v59, %v3566_v11 }
 0x2fb   : > { %v3570_v34 = vshrl.u32 %v12763_v32, %v3567_v54  ;;  %v3573_v1 = vshrl.u32 %v12767_v47, %v3567_v54  ;;  %v3576_v19 = vshrl.u32 %v12749_v59, %v3567_v54  ;;  %v3579_v3 = vshrl.u32 %v12752_v23, %v3567_v54 }
 0x2fc   : > { %v10071_v9 = vsub.s32 %v3300_v22, %v3303_v50  ;;  %v3456_v56 = vor.u32 8388608, %v10061_v15  ;;  %v3421_v2 = vadd.s32 127, %v3420_v43  ;;  %vm3459_vm8 = vcmp.gt.s32.totalorder %v3458_v24, 0 }
 0x2fd   : > { %v3571_v31 = vor.u32 %v3570_v34, %v3569_v6  ;;  %v3574_v55 = vor.u32 %v3573_v1, %v3572_v48  ;;  %v3577_v36 = vor.u32 %v3576_v19, %v3575_v30  ;;  %v3580_v62 = vor.u32 %v3579_v3, %v3578_v45 }
 0x2fe   : > { %v3306_v25 = vsub.s32 0, %v10071_v9  ;;  %v3416_v17 = vsub.s32 32, %v10049_v16  ;;  %v3568_v22 = vshrl.u32 %v12759_v12, %v3567_v54  ;;  %v3581_v13 = vshll.u32 %v12752_v23, %v3566_v11 }
 0x2ff   : > { %v3582_v50 = vshrl.u32 %v12744_v18, %v3567_v54  ;;  %vm3584_vm5 = vcmp.lt.s32.totalorder %v3565_v29, 1  ;;  %vm3586_vm1 = vcmp.lt.s32.totalorder %v3565_v29, 3  ;;  %vm3587_vm7 = vcmp.lt.s32.totalorder %v3565_v29, 4 }
 0x300   : > { %v6253_v35 = vmin.u32 %v3306_v25, %v10071_v9  ;;  %v3589_v15 = vsel %vm3587_vm7, %v3577_v36, 2102212464  ;;  %v3592_v43 = vsel %vm3584_vm5, %v3571_v31, %v3574_v55  ;;  %v3593_v48 = vsel %vm3587_vm7, %v3580_v62, 920167782 }
 0x301   : > { %v3583_v6 = vor.u32 %v3582_v50, %v3581_v13  ;;  %v3422_v34 = vshll.u32 %v3421_v2, 23  ;;  %vm3585_vm12 = vcmp.lt.s32.totalorder %v3565_v29, 2  ;;  %v3594_v30 = vsel %vm3586_vm1, %v3577_v36, %v3593_v48 }
 0x302   : > { %v3308_v1 = vclz %v6253_v35  ;;  %v3418_v19 = vshrl.u32 %v3400_v46, %v3416_v17  ;;  %v3595_v11 = vsel %vm3585_vm12, %v3592_v43, %v3594_v30  ;;  %v3596_v54 = vsel %vm3584_vm5, %v3574_v55, %v3577_v36 }
 0x303   : > { %v3597_v45 = vsel %vm3587_vm7, %v3583_v6, 1326507024  ;;  %v3588_v3 = vsel %vm3584_vm5, %v3568_v22, %v3571_v31  ;;  %v3590_v13 = vsel %vm3586_vm1, %v3574_v55, %v3589_v15  ;;  %v3460_v17 = vsel %vm3459_vm8, %v3458_v24, 0 }
 0x304   : > { %v6254_v25 = vadd.s32 4294967294, %v3308_v1  ;;  %v3598_v50 = vsel %vm3586_vm1, %v3580_v62, %v3597_v45  ;;  %v10091_v2 = vmul.u32.u64.low %v10057_v38, %v3595_v11  ;;  %v10092_v35 = vmul.u32.u64.high %v10057_v38, %v3595_v11, %v10091_v2 }
 0x305   : > { %v3599_v8 = vsel %vm3585_vm12, %v3596_v54, %v3598_v50  ;;  %v10096_v43 = vor.u32 4788187, %v3422_v34  ;;  %v3417_v62 = vshll.u32 %v9989_v57, %v10049_v16  ;;  %v3591_v6 = vsel %vm3585_vm12, %v3588_v3, %v3590_v13 }
 0x306   : > { %vm6255_vm0 = vcmp.lt.s32.totalorder %v6254_v25, 0  ;;  %v10099_v36 = vmul.u32.u64.low %v10057_v38, %v3599_v8  ;;  %v10100_v31 = vmul.u32.u64.high %v10057_v38, %v3599_v8, %v10099_v36  ;;  %v3462_v15 = vand.u32 31, %v3460_v17 }
 0x307   : > { %v3311_v22 = vsel %vm6255_vm0, 0, %v6254_v25  ;;  %v12905_v48 = vand.u32 2147483647, %v10035_v26  ;;  %v12906_v24 = vcvt.s32.f32 %v10033_v44  ;;  %v12907_v34 = vand.u32 2147483647, %v10040_v21 }
 0x308   : > { %v12908_v30 = vcvt.s32.f32 %v10038_v51  ;;  %v3296_v11 = vadd.s32 %v9992_v0, %v10010_v4  ;;  %v3316_v57 = vsub.s32 4294967266, %v3311_v22  ;;  %v10119_v16 = vor.u32 %v3418_v19, %v3417_v62 }
 0x309   : > { %v10109_v1 = vmul.f32 %v12906_v24, %v12905_v48  ;;  %v3610_v29 = vadd.s32 1, %v10092_v35  ;;  %v3463_v54 = vsub.s32 32, %v3462_v15  ;;  %v10122_v26 = vshll.u32 %v3456_v56, 8 }
 0x30a   : > { %v10115_v8 = vmul.f32 %v12908_v30, %v12907_v34  ;;  %v3424_v44 = vand.u32 2147483647, %v10096_v43  ;;  %v3317_v45 = vadd.s32 127, %v3316_v57  ;;  %v3607_v21 = vmul.u32 %v10057_v38, %v3591_v6 }
 0x30b   : > { %vm3609_vm10 = vc.u32 %v10100_v31, %v10091_v2  ;;  %v3465_v0 = vshll.u32 %v12759_v12, %v3462_v15  ;;  %v3466_v4 = vshrl.u32 %v12763_v32, %v3463_v54  ;;  %v3469_v19 = vshrl.u32 %v12767_v47, %v3463_v54 }
 0x30c   : > { %v3611_v51 = vsel %vm3609_vm10, %v3610_v29, %v10092_v35  ;;  %v3312_v25 = vsub.s32 32, %v3311_v22  ;;  %v3461_v56 = vshrl.u32 %v3460_v17, 5  ;;  %v3468_v13 = vshll.u32 %v12763_v32, %v3462_v15 }
 0x30d   : > { %v3612_v3 = vadd.s32 %v3611_v51, %v3607_v21  ;;  %v3318_v50 = vshll.u32 %v3317_v45, 23  ;;  %v3467_v36 = vor.u32 %v3466_v4, %v3465_v0  ;;  %v3471_v38 = vshll.u32 %v12767_v47, %v3462_v15 }
 0x30e   : > { %v3472_v62 = vshrl.u32 %v12749_v59, %v3463_v54  ;;  %v3470_v48 = vor.u32 %v3469_v19, %v3468_v13  ;;  %v3474_v35 = vshll.u32 %v12749_v59, %v3462_v15  ;;  %v3475_v24 = vshrl.u32 %v12752_v23, %v3463_v54 }
 0x30f   : > { %v3613_v6 = vadd.s32 536870912, %v3612_v3  ;;  %v3477_v30 = vshll.u32 %v12752_v23, %v3462_v15  ;;  %v3478_v57 = vshrl.u32 %v12744_v18, %v3463_v54  ;;  %v3313_v29 = vshll.u32 %v10071_v9, %v3311_v22 }
 0x310   : > { %v6500_v46 = vpop.f32.mrb[12].mxu0  ;;  %v3473_v34 = vor.u32 %v3472_v62, %v3471_v38  ;;  %v3476_v21 = vor.u32 %v3475_v24, %v3474_v35  ;;  %v3314_v0 = vshrl.u32 %v3296_v11, %v3312_v25  ;;  %v3319_v4 = vor.u32 4788187, %v3318_v50 }
 0x311   : > { %v2389_v55 = vpop.f32.mrb[13].mxu0  ;;  %v10140_v17 = vadd.f32 %v9782_v33, %v6500_v46  ;;  %v10143_v45 = vshrl.u32 %v3613_v6, 30  ;;  %v3479_v19 = vor.u32 %v3478_v57, %v3477_v30  ;;  %vm3480_vm6 = vcmp.lt.s32.totalorder %v3461_v56, 1 }
 0x312   : > { %v10146_v51 = vadd.f32 %v9782_v33, %v2389_v55  ;;  %vm3482_vm11 = vcmp.lt.s32.totalorder %v3461_v56, 3  ;;  %vm3483_vm2 = vcmp.lt.s32.totalorder %v3461_v56, 4  ;;  %v3488_v15 = vsel %vm3480_vm6, %v3467_v36, %v3470_v48 }
 0x313   : > { %12909 = vst [vmem:[#allocation29_spill] sm:$0xff] %v10143_v45  ;;  %v3615_v13 = vshll.u32 %v10143_v45, 30  ;;  %v3485_v46 = vsel %vm3483_vm2, %v3473_v34, 2102212464  ;;  %v3489_v38 = vsel %vm3483_vm2, %v3476_v21, 920167782  ;;  %v3492_v9 = vsel %vm3480_vm6, %v3470_v48, %v3473_v34 }
 0x314   : > { %v3493_v22 = vsel %vm3483_vm2, %v3479_v19, 1326507024  ;;  %v3464_v33 = vshrl.u32 %v12759_v12, %v3463_v54  ;;  %vm3481_vm8 = vcmp.lt.s32.totalorder %v3461_v56, 2  ;;  %v3490_v55 = vsel %vm3482_vm11, %v3473_v34, %v3489_v38 }
 0x315   : > { %v10151_v62 = vsub.s32 %v3612_v3, %v3615_v13  ;;  %v3315_v11 = vor.u32 %v3314_v0, %v3313_v29  ;;  %v3320_v25 = vand.u32 2147483647, %v3319_v4  ;;  %v3491_v50 = vsel %vm3481_vm8, %v3488_v15, %v3490_v55 }
 0x316   : > { %v3494_v6 = vsel %vm3482_vm11, %v3476_v21, %v3493_v22  ;;  %vm3138_vm5 = vcmp.lt.s32.totalorder %v9602_v40, 0  ;;  %v3484_v24 = vsel %vm3480_vm6, %v3464_v33, %v3467_v36  ;;  %v3486_v3 = vsel %vm3482_vm11, %v3470_v48, %v3485_v46 }
 0x317   : > { %v3618_v35 = vsub.s32 0, %v10151_v62  ;;  %v3495_v30 = vsel %vm3481_vm8, %v3492_v9, %v3494_v6  ;;  %vm3034_vm1 = vcmp.lt.s32.totalorder %v9609_v41, 0  ;;  %v3426_v21 = vcvt.s32.f32 %v10119_v16 }
 0x318   : > { %v10164_v54 = vmul.u32.u64.low %v10122_v26, %v3495_v30  ;;  %v10165_v34 = vmul.u32.u64.high %v10122_v26, %v3495_v30, %v10164_v54  ;;  %v10168_v57 = vmul.u32.u64.low %v10122_v26, %v3491_v50  ;;  %v10169_v29 = vmul.u32.u64.high %v10122_v26, %v3491_v50, %v10168_v57 }
 0x319   : > { %v6265_v0 = vmin.u32 %v3618_v35, %v10151_v62  ;;  %v12649_v36 = vand.u32 2147483647, %v10140_v17  ;;  %v3763_v48 = vand.u32 2139095040, %v10140_v17  ;;  %v3322_v4 = vcvt.s32.f32 %v3315_v11 }
 0x31a   : > { %v3487_v19 = vsel %vm3481_vm8, %v3484_v24, %v3486_v3  ;;  %v3659_v13 = vand.u32 2139095040, %v10146_v51  ;;  %v2429_v15 = vshrl.u32 %v12767_v47, %v9497_v60  ;;  %v3220_v46 = vxor.u32 2147483648, %v10109_v1 }
 0x31b   : > { %vm3346_vm7 = vcmp.lt.s32.totalorder %v9786_v10, 0  ;;  %v3427_v16 = vmul.f32 %v3426_v21, %v3424_v44  ;;  %vm3242_vm12 = vcmp.lt.s32.totalorder %v9815_v49, 0  ;;  %v3620_v38 = vclz %v6265_v0 }
 0x31c   : > { %v3764_v9 = vshrl.u32 %v3763_v48, 23  ;;  %v3323_v22 = vmul.f32 %v3322_v4, %v3320_v25  ;;  %vm3505_vm0 = vc.u32 %v10165_v34, %v10168_v57  ;;  %v3506_v56 = vadd.s32 1, %v10169_v29 }
 0x31d   : > { %v3660_v33 = vshrl.u32 %v3659_v13, 23  ;;  %v3116_v55 = vxor.u32 2147483648, %v10115_v8  ;;  %v3503_v11 = vmul.u32 %v10122_v26, %v3487_v19  ;;  %v3767_v6 = vand.u32 8388607, %v12649_v36 }
 0x31e   : > { %v6272_v50 = vadd.s32 4294967169, %v3764_v9  ;;  %v3507_v43 = vsel %vm3505_vm0, %v3506_v56, %v10169_v29  ;;  %v12650_v44 = vand.u32 2147483647, %v10146_v51  ;;  %v2427_v25 = vor.u32 %v9953_v52, %v9860_v7 }
 0x31f   : > { %v6268_v35 = vadd.s32 4294967169, %v3660_v33  ;;  %v6266_v24 = vadd.s32 4294967294, %v3620_v38  ;;  %v3508_v3 = vadd.s32 %v3507_v43, %v3503_v11  ;;  %v2432_v54 = vshrl.u32 %v12749_v59, %v9497_v60 }
 0x320   : > { %v3770_v30 = vadd.s32 1, %v6272_v50  ;;  %v10199_v26 = vsel %vm3138_vm5, %v3220_v46, %v10109_v1  ;;  %v3428_v21 = vxor.u32 2147483648, %v3427_v16  ;;  %v3324_v0 = vxor.u32 2147483648, %v3323_v22 }
 0x321   : > { %v2431_v29 = vshll.u32 %v12767_v47, %v9486_v61  ;;  %v10206_v7 = vsel %vm3034_vm1, %v3116_v55, %v10115_v8  ;;  %v3509_v52 = vadd.s32 536870912, %v3508_v3  ;;  %v3768_v48 = vor.u32 8388608, %v3767_v6 }
 0x322   : > { %v10209_v4 = vor.u32 %v2429_v15, %v10045_v37  ;;  %vm3771_vm10 = vcmp.gt.s32.totalorder %v3770_v30, 0  ;;  %v10213_v60 = vand.u32 8388607, %v12650_v44  ;;  %v3666_v1 = vadd.s32 1, %v6268_v35 }
 0x323   : > { %vm2440_vm6 = vcmp.lt.s32.totalorder %v9562_v39, 1  ;;  %vm6267_vm11 = vcmp.lt.s32.totalorder %v6266_v24, 0  ;;  %v10216_v61 = vshrl.u32 %v3509_v52, 30  ;;  %v3772_v19 = vsel %vm3771_vm10, %v3770_v30, 0 }
 0x324   : > { %v10218_v13 = vor.u32 %v2432_v54, %v2431_v29  ;;  %v10222_v8 = vsel %vm3346_vm7, %v3428_v21, %v3427_v16  ;;  %v10226_v37 = vsel %vm3242_vm12, %v3324_v0, %v3323_v22  ;;  %v3608_v15 = vadd.s32 %v10091_v2, %v10100_v31 }
 0x325   : > { %12910 = vst [vmem:[#allocation34_spill] sm:$0xff] %v10216_v61  ;;  %12911 = vst [vmem:[#allocation5_spill] sm:$0xff] %v10222_v8  ;;  %v3774_v46 = vand.u32 31, %v3772_v19  ;;  %v10231_v38 = vadd.s32 %v10168_v57, %v10165_v34  ;;  %v3511_v9 = vshll.u32 %v10216_v61, 30  ;;  %v10234_v56 = vshll.u32 %v3768_v48, 8 }
 0x326   : > { %12912 = vst [vmem:[#allocation17_spill] sm:$0xff] %v10226_v37  ;;  %v10239_v16 = vsel %vm2440_vm6, %v9949_v53, %v2427_v25  ;;  %v10241_v33 = vsel %vm6267_vm11, 0, %v6266_v24  ;;  %v3664_v55 = vor.u32 8388608, %v10213_v60  ;;  %vm3667_vm2 = vcmp.gt.s32.totalorder %v3666_v1, 0 }
 0x327   : > { %v3775_v22 = vsub.s32 32, %v3774_v46  ;;  %v10244_v2 = vsub.s32 %v3508_v3, %v3511_v9  ;;  %v3773_v31 = vshrl.u32 %v3772_v19, 5  ;;  %v3777_v34 = vshll.u32 %v12759_v12, %v3774_v46 }
 0x328   : > { %v3780_v57 = vshll.u32 %v12763_v32, %v3774_v46  ;;  %v3783_v53 = vshll.u32 %v12767_v47, %v3774_v46  ;;  %v3786_v35 = vshll.u32 %v12749_v59, %v3774_v46  ;;  %v3789_v3 = vshll.u32 %v12752_v23, %v3774_v46 }
 0x329   : > { %v3778_v11 = vshrl.u32 %v12763_v32, %v3775_v22  ;;  %v3781_v50 = vshrl.u32 %v12767_v47, %v3775_v22  ;;  %v3784_v6 = vshrl.u32 %v12749_v59, %v3775_v22  ;;  %v3514_v43 = vsub.s32 0, %v10244_v2 }
 0x32a   : > { %v3787_v24 = vshrl.u32 %v12752_v23, %v3775_v22  ;;  %v3790_v0 = vshrl.u32 %v12744_v18, %v3775_v22  ;;  %vm2442_vm8 = vcmp.lt.s32.totalorder %v9562_v39, 3  ;;  %v2445_v48 = vsel %vm2443_vm4, %v10218_v13, 2102212464 }
 0x32b   : > { %v3779_v30 = vor.u32 %v3778_v11, %v3777_v34  ;;  %v3782_v54 = vor.u32 %v3781_v50, %v3780_v57  ;;  %v3785_v21 = vor.u32 %v3784_v6, %v3783_v53  ;;  %v6261_v29 = vmin.u32 %v3514_v43, %v10244_v2 }
 0x32c   : > { %v3788_v52 = vor.u32 %v3787_v24, %v3786_v35  ;;  %v10265_v60 = vsel %vm2440_vm6, %v2427_v25, %v10209_v4  ;;  %v3624_v19 = vsub.s32 32, %v10241_v33  ;;  %v3628_v46 = vsub.s32 4294967266, %v10241_v33 }
 0x32d   : > { %v3791_v9 = vor.u32 %v3790_v0, %v3789_v3  ;;  %v3668_v34 = vsel %vm3667_vm2, %v3666_v1, 0  ;;  %v3516_v57 = vclz %v6261_v29  ;;  %v3776_v11 = vshrl.u32 %v12759_v12, %v3775_v22 }
 0x32e   : > { %vm3792_vm0 = vcmp.lt.s32.totalorder %v3773_v31, 1  ;;  %vm3795_vm10 = vcmp.lt.s32.totalorder %v3773_v31, 4  ;;  %vm3794_vm11 = vcmp.lt.s32.totalorder %v3773_v31, 3  ;;  %vm3793_vm4 = vcmp.lt.s32.totalorder %v3773_v31, 2 }
 0x32f   : > { %v3797_v50 = vsel %vm3795_vm10, %v3785_v21, 2102212464  ;;  %v3800_v53 = vsel %vm3792_vm0, %v3779_v30, %v3782_v54  ;;  %v3801_v6 = vsel %vm3795_vm10, %v3788_v52, 920167782  ;;  %v6262_v25 = vadd.s32 4294967294, %v3516_v57 }
 0x330   : > { %v3802_v35 = vsel %vm3794_vm11, %v3785_v21, %v3801_v6  ;;  %v3804_v24 = vsel %vm3792_vm0, %v3782_v54, %v3785_v21  ;;  %v3796_v3 = vsel %vm3792_vm0, %v3776_v11, %v3779_v30  ;;  %v3805_v0 = vsel %vm3795_vm10, %v3791_v9, 1326507024 }
 0x331   : > { %v3803_v1 = vsel %vm3793_vm4, %v3800_v53, %v3802_v35  ;;  %v3670_v29 = vand.u32 31, %v3668_v34  ;;  %v3798_v22 = vsel %vm3794_vm11, %v3782_v54, %v3797_v50  ;;  %v3806_v44 = vsel %vm3794_vm11, %v3788_v52, %v3805_v0 }
 0x332   : > { %v10277_v45 = vmul.u32.u64.low %v10234_v56, %v3803_v1  ;;  %v10278_v61 = vmul.u32.u64.high %v10234_v56, %v3803_v1, %v10277_v45  ;;  %vm6263_vm2 = vcmp.lt.s32.totalorder %v6262_v25, 0  ;;  %v3807_v57 = vsel %vm3793_vm4, %v3804_v24, %v3806_v44 }
 0x333   : > { %v3671_v8 = vsub.s32 32, %v3670_v29  ;;  %v10282_v6 = vshll.u32 %v3664_v55, 8  ;;  %v3625_v30 = vshll.u32 %v10151_v62, %v10241_v33  ;;  %v3626_v21 = vshrl.u32 %v3608_v15, %v3624_v19 }
 0x334   : > { %v10289_v54 = vsel %vm2442_vm8, %v10209_v4, %v2445_v48  ;;  %v10295_v52 = vsel %vm2442_vm8, %v10218_v13, %v9646_v14  ;;  %v3799_v44 = vsel %vm3793_vm4, %v3796_v3, %v3798_v22  ;;  %v3629_v15 = vadd.s32 127, %v3628_v46 }
 0x335   : > { %v10299_v55 = vmul.u32.u64.low %v10234_v56, %v3807_v57  ;;  %v10300_v9 = vmul.u32.u64.high %v10234_v56, %v3807_v57, %v10299_v55  ;;  %v3674_v62 = vshrl.u32 %v12763_v32, %v3671_v8  ;;  %v10303_v33 = vsel %vm6263_vm2, 0, %v6262_v25 }
 0x336   : > { %v3818_v48 = vadd.s32 1, %v10278_v61  ;;  %v3677_v19 = vshrl.u32 %v12767_v47, %v3671_v8  ;;  %v3673_v11 = vshll.u32 %v12759_v12, %v3670_v29  ;;  %v3676_v14 = vshll.u32 %v12763_v32, %v3670_v29 }
 0x337   : > { %v10271_v43 = vpop.f32.mrb[14].mxu0  ;;  %v3679_v31 = vshll.u32 %v12767_v47, %v3670_v29  ;;  %v3680_v50 = vshrl.u32 %v12749_v59, %v3671_v8  ;;  %v3815_v53 = vmul.u32 %v10234_v56, %v3799_v44  ;;  %v3669_v35 = vshrl.u32 %v3668_v34, 5 }
 0x338   : > { %v10273_v36 = vpop.f32.mrb[15].mxu0  ;;  %v3682_v24 = vshll.u32 %v12749_v59, %v3670_v29  ;;  %v3683_v46 = vshrl.u32 %v12752_v23, %v3671_v8  ;;  %vm3817_vm0 = vc.u32 %v10300_v9, %v10277_v45  ;;  %v3675_v25 = vor.u32 %v3674_v62, %v3673_v11 }
 0x339   : > { %v3678_v3 = vor.u32 %v3677_v19, %v3676_v14  ;;  %v3681_v1 = vor.u32 %v3680_v50, %v3679_v31  ;;  %v10316_v0 = vor.u32 %v3626_v21, %v3625_v30  ;;  %v3524_v22 = vsub.s32 4294967266, %v10303_v33 }
 0x33a   : > { %v3819_v57 = vsel %vm3817_vm0, %v3818_v48, %v10278_v61  ;;  %v3684_v55 = vor.u32 %v3683_v46, %v3682_v24  ;;  %v3630_v10 = vshll.u32 %v3629_v15, 23  ;;  %v3685_v34 = vshll.u32 %v12752_v23, %v3670_v29 }
 0x33b   : > { %v3820_v56 = vadd.s32 %v3819_v57, %v3815_v53  ;;  %v3686_v44 = vshrl.u32 %v12744_v18, %v3671_v8  ;;  %vm2441_vm10 = vcmp.lt.s32.totalorder %v9562_v39, 2  ;;  %v3520_v37 = vsub.s32 32, %v10303_v33 }
 0x33c   : > { %v3672_v62 = vshrl.u32 %v12759_v12, %v3671_v8  ;;  %vm3688_vm11 = vcmp.lt.s32.totalorder %v3669_v35, 1  ;;  %vm3691_vm4 = vcmp.lt.s32.totalorder %v3669_v35, 4  ;;  %v3525_v61 = vadd.s32 127, %v3524_v22 }
 0x33d   : > { %v3821_v30 = vadd.s32 536870912, %v3820_v56  ;;  %v3687_v21 = vor.u32 %v3686_v44, %v3685_v34  ;;  %v3693_v19 = vsel %vm3691_vm4, %v3681_v1, 2102212464  ;;  %v3696_v11 = vsel %vm3688_vm11, %v3675_v25, %v3678_v3 }
 0x33e   : > { %vm3690_vm2 = vcmp.lt.s32.totalorder %v3669_v35, 3  ;;  %v3697_v15 = vsel %vm3691_vm4, %v3684_v55, 920167782  ;;  %v3700_v48 = vsel %vm3688_vm11, %v3678_v3, %v3681_v1  ;;  %vm3689_vm0 = vcmp.lt.s32.totalorder %v3669_v35, 2 }
 0x33f   : > { %v10325_v14 = vshrl.u32 %v3821_v30, 30  ;;  %v3698_v29 = vsel %vm3690_vm2, %v3681_v1, %v3697_v15  ;;  %v3701_v31 = vsel %vm3691_vm4, %v3687_v21, 1326507024  ;;  %v3692_v50 = vsel %vm3688_vm11, %v3672_v62, %v3675_v25  ;;  %v7147_v25 = vld [vmem:[%s12523_s4] ss:$0 sm:$0xff] }
 0x340   : > { %v3694_v53 = vsel %vm3690_vm2, %v3678_v3, %v3693_v19  ;;  %v3699_v24 = vsel %vm3689_vm0, %v3696_v11, %v3698_v29  ;;  %v3702_v8 = vsel %vm3690_vm2, %v3684_v55, %v3701_v31  ;;  %v3631_v44 = vor.u32 4788187, %v3630_v10 }
 0x341   : > { %12913 = vst [vmem:[#allocation22_spill] sm:$0xff] %v10325_v14  ;;  %v3823_v46 = vshll.u32 %v10325_v14, 30  ;;  %v3703_v57 = vsel %vm3689_vm0, %v3700_v48, %v3702_v8  ;;  %v10331_v34 = vmul.u32.u64.low %v10282_v6, %v3699_v24  ;;  %v10332_v22 = vmul.u32.u64.high %v10282_v6, %v3699_v24, %v10331_v34 }
 0x342   : > { %v10335_v30 = vmul.u32.u64.low %v10282_v6, %v3703_v57  ;;  %v10336_v49 = vmul.u32.u64.high %v10282_v6, %v3703_v57, %v10335_v30  ;;  %v10342_v3 = vadd.f32 %v7147_v25, %v10271_v43  ;;  %v3522_v1 = vshrl.u32 %v10231_v38, %v3520_v37 }
 0x343   : > { %v10345_v55 = vsub.s32 %v3820_v56, %v3823_v46  ;;  %v3695_v62 = vsel %vm3689_vm0, %v3692_v50, %v3694_v53  ;;  %v10349_v21 = vadd.f32 %v7147_v25, %v10273_v36  ;;  %v3634_v10 = vcvt.s32.f32 %v10316_v0 }
 0x344   : > { %v12659_v19 = vand.u32 2147483647, %v10342_v3  ;;  %v3971_v11 = vand.u32 2139095040, %v10342_v3  ;;  %v10358_v43 = vsel %vm2441_vm10, %v10239_v16, %v10289_v54  ;;  %v3521_v37 = vshll.u32 %v10244_v2, %v10303_v33 }
 0x345   : > { %v3526_v38 = vshll.u32 %v3525_v61, 23  ;;  %v3826_v35 = vsub.s32 0, %v10345_v55  ;;  %v3714_v36 = vadd.s32 1, %v10332_v22  ;;  %v3632_v56 = vand.u32 2147483647, %v3631_v44 }
 0x346   : > { %v3711_v0 = vmul.u32 %v10282_v6, %v3695_v62  ;;  %vm3713_vm11 = vc.u32 %v10336_v49, %v10331_v34  ;;  %v3972_v15 = vshrl.u32 %v3971_v11, 23  ;;  %v10366_v48 = vor.u32 %v3522_v1, %v3521_v37 }
 0x347   : > { %v6273_v29 = vmin.u32 %v3826_v35, %v10345_v55  ;;  %v3715_v16 = vsel %vm3713_vm11, %v3714_v36, %v10332_v22  ;;  %v12660_v54 = vand.u32 2147483647, %v10349_v21  ;;  %v3975_v61 = vand.u32 8388607, %v12659_v19 }
 0x348   : > { %v3716_v2 = vadd.s32 %v3715_v16, %v3711_v0  ;;  %v6280_v33 = vadd.s32 4294967169, %v3972_v15  ;;  %v3867_v31 = vand.u32 2139095040, %v10349_v21  ;;  %v10374_v50 = vor.u32 4788187, %v3526_v38 }
 0x349   : > { %v3828_v6 = vclz %v6273_v29  ;;  %v10380_v53 = vsel %vm2441_vm10, %v10265_v60, %v10295_v52  ;;  %v2452_v24 = vsel %vm2440_vm6, %v10209_v4, %v10218_v13  ;;  %v10386_v8 = vmul.f32 %v3634_v10, %v3632_v56  ;;  %v12914_v60 = vld [vmem:[#allocation28_spill] sm:$0xff]  ;;  %v12915_v52 = vld [vmem:[#allocation11_spill] sm:$0xff] }
 0x34a   : > { %v3816_v46 = vadd.s32 %v10277_v45, %v10300_v9  ;;  %v3717_v57 = vadd.s32 536870912, %v3716_v2  ;;  %v3978_v22 = vadd.s32 1, %v6280_v33  ;;  %v10393_v25 = vand.u32 8388607, %v12660_v54 }
 0x34b   : > { %v6274_v30 = vadd.s32 4294967294, %v3828_v6  ;;  %v2454_v1 = vsel %vm2442_vm8, %v12915_v52, %v12914_v60  ;;  %v3976_v13 = vor.u32 8388608, %v3975_v61  ;;  %v3868_v62 = vshrl.u32 %v3867_v31, 23 }
 0x34c   : > { %v10399_v4 = vshrl.u32 %v3717_v57, 30  ;;  %vm3979_vm6 = vcmp.gt.s32.totalorder %v3978_v22, 0  ;;  %v12917_v10 = vor.u32 8388608, %v9841_v28  ;;  %v10409_v36 = vsel %vm2441_vm10, %v2452_v24, %v2454_v1 }
 0x34d   : > { %vm6275_vm4 = vcmp.lt.s32.totalorder %v6274_v30, 0  ;;  %v3980_v9 = vsel %vm3979_vm6, %v3978_v22, 0  ;;  %v10412_v0 = vadd.s32 %v10331_v34, %v10336_v49  ;;  %v3872_v15 = vor.u32 8388608, %v10393_v25 }
 0x34e   : > { %12916 = vst [vmem:[#allocation32_spill] sm:$0xff] %v10399_v4  ;;  %v10404_v11 = vshll.u32 %v12917_v10, 8  ;;  %v3831_v37 = vsel %vm6275_vm4, 0, %v6274_v30  ;;  %v3719_v38 = vshll.u32 %v10399_v4, 30  ;;  %v3982_v35 = vand.u32 31, %v3980_v9 }
 0x34f   : > { %v3836_v56 = vsub.s32 4294967266, %v3831_v37  ;;  %v10419_v33 = vshll.u32 %v3976_v13, 8  ;;  %v6276_v61 = vadd.s32 4294967169, %v3868_v62  ;;  %v3832_v31 = vsub.s32 32, %v3831_v37  ;;  %v12918_v62 = vld [vmem:[#allocation18_spill] sm:$0xff] }
 0x350   : > { %v10417_v28 = vsub.s32 %v3716_v2, %v3719_v38  ;;  %v3983_v16 = vsub.s32 32, %v3982_v35  ;;  %v3981_v6 = vshrl.u32 %v3980_v9, 5  ;;  %v3985_v39 = vshll.u32 %v12759_v12, %v3982_v35 }
 0x351   : > { %v3988_v24 = vshll.u32 %v12763_v32, %v3982_v35  ;;  %v3837_v57 = vadd.s32 127, %v3836_v56  ;;  %v3991_v2 = vshll.u32 %v12767_v47, %v3982_v35  ;;  %v3994_v25 = vshll.u32 %v12749_v59, %v3982_v35 }
 0x352   : > { %v3722_v49 = vsub.s32 0, %v10417_v28  ;;  %v3986_v34 = vshrl.u32 %v12763_v32, %v3983_v16  ;;  %v3989_v22 = vshrl.u32 %v12767_v47, %v3983_v16  ;;  %v3992_v30 = vshrl.u32 %v12749_v59, %v3983_v16 }
 0x353   : > { %v3995_v60 = vshrl.u32 %v12752_v23, %v3983_v16  ;;  %v2598_v9 = vsub.s32 4, %v12918_v62  ;;  %v3833_v10 = vshll.u32 %v10345_v55, %v3831_v37  ;;  %v3874_v19 = vadd.s32 1, %v6276_v61 }
 0x354   : > { %v6269_v52 = vmin.u32 %v3722_v49, %v10417_v28  ;;  %v3987_v1 = vor.u32 %v3986_v34, %v3985_v39  ;;  %v3990_v13 = vor.u32 %v3989_v22, %v3988_v24  ;;  %v3993_v38 = vor.u32 %v3992_v30, %v3991_v2 }
 0x355   : > { %v3996_v56 = vor.u32 %v3995_v60, %v3994_v25  ;;  %v3834_v54 = vshrl.u32 %v3816_v46, %v3832_v31  ;;  %v3997_v45 = vshll.u32 %v12752_v23, %v3982_v35  ;;  %v3998_v29 = vshrl.u32 %v12744_v18, %v3983_v16 }
 0x356   : > { %v3724_v44 = vclz %v6269_v52  ;;  %v3838_v14 = vshll.u32 %v3837_v57, 23  ;;  %v3984_v4 = vshrl.u32 %v12759_v12, %v3983_v16  ;;  %vm4000_vm8 = vcmp.lt.s32.totalorder %v3981_v6, 1 }
 0x357   : > { %vm4003_vm10 = vcmp.lt.s32.totalorder %v3981_v6, 4  ;;  %v3999_v24 = vor.u32 %v3998_v29, %v3997_v45  ;;  %v4008_v34 = vsel %vm4000_vm8, %v3987_v1, %v3990_v13  ;;  %vm4001_vm2 = vcmp.lt.s32.totalorder %v3981_v6, 2 }
 0x358   : > { %v6270_v39 = vadd.s32 4294967294, %v3724_v44  ;;  %v4005_v49 = vsel %vm4003_vm10, %v3993_v38, 2102212464  ;;  %vm4002_vm0 = vcmp.lt.s32.totalorder %v3981_v6, 3  ;;  %v4009_v55 = vsel %vm4003_vm10, %v3996_v56, 920167782 }
 0x359   : > { %v4012_v37 = vsel %vm4000_vm8, %v3990_v13, %v3993_v38  ;;  %v4004_v46 = vsel %vm4000_vm8, %v3984_v4, %v3987_v1  ;;  %v4010_v61 = vsel %vm4002_vm0, %v3993_v38, %v4009_v55  ;;  %v4013_v31 = vsel %vm4003_vm10, %v3999_v24, 1326507024 }
 0x35a   : > { %vm6271_vm11 = vcmp.lt.s32.totalorder %v6270_v39, 0  ;;  %v12919_v35 = vand.u32 2147483647, %v9275_v20  ;;  %v4006_v44 = vsel %vm4002_vm0, %v3990_v13, %v4005_v49  ;;  %v4011_v45 = vsel %vm4001_vm2, %v4008_v34, %v4010_v61 }
 0x35b   : > { %v10442_v16 = vsel %vm6271_vm11, 0, %v6270_v39  ;;  %v4014_v29 = vsel %vm4002_vm0, %v3996_v56, %v4013_v31  ;;  %v10445_v22 = vor.u32 %v3834_v54, %v3833_v10  ;;  %v10447_v2 = vor.u32 4788187, %v3838_v14 }
 0x35c   : > { %vm10438_vm6 = vcmp.le.f32.partialorder %v12919_v35, 0.7853982  ;;  %v4015_v4 = vsel %vm4001_vm2, %v4012_v37, %v4014_v29  ;;  %vm3875_vm4 = vcmp.gt.s32.totalorder %v3874_v19, 0  ;;  %v3728_v30 = vsub.s32 32, %v10442_v16 }
 0x35d   : > { %v3732_v25 = vsub.s32 4294967266, %v10442_v16  ;;  %v10453_v60 = vmul.u32.u64.low %v10419_v33, %v4015_v4  ;;  %v10454_v52 = vmul.u32.u64.high %v10419_v33, %v4015_v4, %v10453_v60  ;;  %v4007_v1 = vsel %vm4001_vm2, %v4004_v46, %v4006_v44 }
 0x35e   : > { %v10458_v13 = vmul.u32.u64.low %v10419_v33, %v4011_v45  ;;  %v10459_v38 = vmul.u32.u64.high %v10419_v33, %v4011_v45, %v10458_v13  ;;  %v10462_v14 = vshll.u32 %v3872_v15, 8  ;;  %v3876_v54 = vsel %vm3875_vm4, %v3874_v19, 0 }
 0x35f   : > { %v10466_v10 = vmul.u32.u64.low %v10404_v11, %v10409_v36  ;;  %v10467_v56 = vmul.u32.u64.high %v10404_v11, %v10409_v36, %v10466_v10  ;;  %v10472_v39 = vsel %vm2514_vm13, %v2598_v9, %v12918_v62  ;;  %v3840_v6 = vand.u32 2147483647, %v10447_v2 }
 0x360   : > { %v3842_v24 = vcvt.s32.f32 %v10445_v22  ;;  %v3729_v49 = vshll.u32 %v10417_v28, %v10442_v16  ;;  %v3878_v15 = vand.u32 31, %v3876_v54  ;;  %v3730_v19 = vshrl.u32 %v10412_v0, %v3728_v30 }
 0x361   : > { %v3733_v34 = vadd.s32 127, %v3732_v25  ;;  %v4023_v55 = vmul.u32 %v10419_v33, %v4007_v1  ;;  %vm4025_vm8 = vc.u32 %v10454_v52, %v10458_v13  ;;  %v4026_v36 = vadd.s32 1, %v10459_v38 }
 0x362   : > { %v3879_v62 = vsub.s32 32, %v3878_v15  ;;  %v10485_v9 = vmul.u32.u64.low %v10404_v11, %v10380_v53  ;;  %v10486_v37 = vmul.u32.u64.high %v10404_v11, %v10380_v53, %v10485_v9  ;;  %v3877_v46 = vshrl.u32 %v3876_v54, 5 }
 0x363   : > { %v3881_v28 = vshll.u32 %v12759_v12, %v3878_v15  ;;  %v3884_v0 = vshll.u32 %v12763_v32, %v3878_v15  ;;  %v2600_v33 = vsel %vm10438_vm6, %v9275_v20, %v9828_v58  ;;  %v4027_v61 = vsel %vm4025_vm8, %v4026_v36, %v10459_v38 }
 0x364   : > { %v3882_v31 = vshrl.u32 %v12763_v32, %v3879_v62  ;;  %v3887_v35 = vshll.u32 %v12767_v47, %v3878_v15  ;;  %v3890_v53 = vshll.u32 %v12749_v59, %v3878_v15  ;;  %v4028_v16 = vadd.s32 %v4027_v61, %v4023_v55 }
 0x365   : > { %v3885_v44 = vshrl.u32 %v12767_v47, %v3879_v62  ;;  %v3888_v45 = vshrl.u32 %v12749_v59, %v3879_v62  ;;  %v3891_v29 = vshrl.u32 %v12752_v23, %v3879_v62  ;;  %v3734_v4 = vshll.u32 %v3733_v34, 23 }
 0x366   : > { %v3883_v30 = vor.u32 %v3882_v31, %v3881_v28  ;;  %v3893_v25 = vshll.u32 %v12752_v23, %v3878_v15  ;;  %v3894_v58 = vshrl.u32 %v12744_v18, %v3879_v62  ;;  %v4029_v60 = vadd.s32 536870912, %v4028_v16 }
 0x367   : > { %v3886_v1 = vor.u32 %v3885_v44, %v3884_v0  ;;  %v3889_v38 = vor.u32 %v3888_v45, %v3887_v35  ;;  %v3892_v54 = vor.u32 %v3891_v29, %v3890_v53  ;;  %v3880_v10 = vshrl.u32 %v12759_v12, %v3879_v62 }
 0x368   : > { %v3895_v36 = vor.u32 %v3894_v58, %v3893_v25  ;;  %vm3896_vm13 = vcmp.lt.s32.totalorder %v3877_v46, 1  ;;  %vm2465_vm10 = vc.u32 %v10467_v56, %v10485_v9  ;;  %v10507_v55 = vshrl.u32 %v4029_v60, 30 }
 0x369   : > { %vm3897_vm2 = vcmp.lt.s32.totalorder %v3877_v46, 2  ;;  %vm3898_vm0 = vcmp.lt.s32.totalorder %v3877_v46, 3  ;;  %vm3899_vm11 = vcmp.lt.s32.totalorder %v3877_v46, 4  ;;  %v3900_v34 = vsel %vm3896_vm13, %v3880_v10, %v3883_v30 }
 0x36a   : > { %v3901_v15 = vsel %vm3899_vm11, %v3889_v38, 2102212464  ;;  %v3904_v28 = vsel %vm3896_vm13, %v3883_v30, %v3886_v1  ;;  %v3905_v61 = vsel %vm3899_vm11, %v3892_v54, 920167782  ;;  %v4031_v0 = vshll.u32 %v10507_v55, 30 }
 0x36b   : > { %v3902_v31 = vsel %vm3898_vm0, %v3886_v1, %v3901_v15  ;;  %v3906_v62 = vsel %vm3898_vm0, %v3889_v38, %v3905_v61  ;;  %v3908_v35 = vsel %vm3896_vm13, %v3886_v1, %v3889_v38  ;;  %v3735_v53 = vor.u32 4788187, %v3734_v4 }
 0x36c   : > { %v3907_v44 = vsel %vm3897_vm2, %v3904_v28, %v3906_v62  ;;  %v3909_v45 = vsel %vm3899_vm11, %v3895_v36, 1326507024  ;;  %v2466_v29 = vadd.s32 1, %v10486_v37  ;;  %vm12667_vm4 = vcmp.lt.s32.totalorder %v9979_v27, 0 }
 0x36d   : > { %v10515_v25 = vsub.s32 %v4028_v16, %v4031_v0  ;;  %v3910_v30 = vsel %vm3898_vm0, %v3892_v54, %v3909_v45  ;;  %v10519_v58 = vmul.u32.u64.low %v10462_v14, %v3907_v44  ;;  %v10520_v60 = vmul.u32.u64.high %v10462_v14, %v3907_v44, %v10519_v58 }
 0x36e   : > { %v3731_v10 = vor.u32 %v3730_v19, %v3729_v49  ;;  %v3903_v1 = vsel %vm3897_vm2, %v3900_v34, %v3902_v31  ;;  %v3911_v4 = vsel %vm3897_vm2, %v3908_v35, %v3910_v30  ;;  %v2467_v38 = vsel %vm2465_vm10, %v2466_v29, %v10486_v37 }
 0x36f   : > { %vm3450_vm8 = vcmp.lt.s32.totalorder %v9982_v63, 0  ;;  %vm12665_vm13 = vcmp.lt.s32.totalorder %v10140_v17, 0  ;;  %v4034_v16 = vsub.s32 0, %v10515_v25  ;;  %v12922_v49 = vmul.u32 %v10404_v11, %v10358_v43 }
 0x370   : > { %v10533_v54 = vmul.u32.u64.low %v10462_v14, %v3911_v4  ;;  %v10534_v36 = vmul.u32.u64.high %v10462_v14, %v3911_v4, %v10533_v54  ;;  %v12923_v46 = vand.u32 2147483647, %v10374_v50  ;;  %v12924_v34 = vcvt.s32.f32 %v10366_v48  ;;  %v12932_v4 = vld [vmem:[#allocation3_spill] sm:$0xff] }
 0x371   : > { %v2468_v19 = vadd.s32 %v2467_v38, %v12922_v49  ;;  %v3843_v37 = vmul.f32 %v3842_v24, %v3840_v6  ;;  %v3736_v28 = vand.u32 2147483647, %v3735_v53  ;;  %7018 = vcosq.f32 %v2600_v33  ;;  %v12925_v24 = vld [vmem:[#allocation8_spill] sm:$0xff] }
 0x372   : > { %v3531_v15 = vmul.f32 %v12924_v34, %v12923_v46  ;;  %v6281_v61 = vmin.u32 %v4034_v16, %v10515_v25  ;;  %v3922_v0 = vadd.s32 1, %v10520_v60  ;;  %vm2410_vm10 = vcmp.lt.s32.totalorder %v9386_v42, 0 }
 0x373   : > { %v2469_v43 = vadd.s32 536870912, %v2468_v19  ;;  %7020 = vsinq.f32 %v2600_v33  ;;  %v3636_v50 = vxor.u32 2147483648, %v10386_v8  ;;  %v3738_v11 = vcvt.s32.f32 %v3731_v10 }
 0x374   : > { %v3919_v48 = vmul.u32 %v10462_v14, %v3903_v1  ;;  %v2601_v22 = vsel %vm10438_vm6, 0, %v10472_v39  ;;  %vm12666_vm2 = vcmp.lt.s32.totalorder %v10146_v51, 0  ;;  %v4036_v2 = vclz %v6281_v61 }
 0x375   : > { %vm3921_vm0 = vc.u32 %v10534_v36, %v10519_v58  ;;  %v2470_v6 = vshrl.u32 %v2469_v43, 30  ;;  %v2702_v31 = vsub.s32 4, %v12925_v24  ;;  %v3532_v62 = vxor.u32 2147483648, %v3531_v15 }
 0x376   : > { %v3844_v33 = vxor.u32 2147483648, %v3843_v37  ;;  %v3739_v35 = vmul.f32 %v3738_v11, %v3736_v28  ;;  %v3923_v53 = vsel %vm3921_vm0, %v3922_v0, %v10520_v60  ;;  %v12926_v14 = vand.u32 2147483647, %v9386_v42 }
 0x377   : > { %v6282_v57 = vadd.s32 4294967294, %v4036_v2  ;;  %v3924_v39 = vadd.s32 %v3923_v53, %v3919_v48  ;;  %v2471_v45 = vshll.u32 %v2470_v6, 30  ;;  %v12929_v29 = vand.u32 2147483647, %v9389_v5 }
 0x378   : > { %vm10562_vm11 = vcmp.le.f32.partialorder %v12926_v14, 0.7853982  ;;  %v10575_v10 = vsel %vm12667_vm4, %v3636_v50, %v10386_v8  ;;  %v2494_v60 = vsub.s32 4, %v2470_v6  ;;  %v2605_v1 = vadd.s32 3, %v2601_v22 }
 0x379   : > { %vm10568_vm6 = vcmp.le.f32.partialorder %v12929_v29, 0.7853982  ;;  %vm6283_vm0 = vcmp.lt.s32.totalorder %v6282_v57, 0  ;;  %v3925_v16 = vadd.s32 536870912, %v3924_v39  ;;  %v10581_v54 = vsub.s32 %v2468_v19, %v2471_v45 }
 0x37a   : > { %v2704_v38 = vsel %vm10568_vm6, %v9389_v5, %v12932_v4  ;;  %v2703_v49 = vsel %vm2618_vm3, %v2702_v31, %v12925_v24  ;;  %v10588_v46 = vsel %vm3450_vm8, %v3532_v62, %v3531_v15  ;;  %v10592_v8 = vsel %vm12665_vm13, %v3844_v33, %v3843_v37 }
 0x37b   : > { %v3740_v34 = vxor.u32 2147483648, %v3739_v35  ;;  %v4039_v28 = vsel %vm6283_vm0, 0, %v6282_v57  ;;  %v4024_v61 = vadd.s32 %v10458_v13, %v10454_v52  ;;  %v10596_v43 = vshrl.u32 %v3925_v16, 30  ;;  %v7019_v50 = vpop.eup %7018 }
 0x37c   : > { %v4040_v0 = vsub.s32 32, %v4039_v28  ;;  %v4044_v19 = vsub.s32 4294967266, %v4039_v28  ;;  %v2474_v11 = vsub.s32 0, %v10581_v54  ;;  %v2495_v15 = vsel %vm2410_vm10, %v2494_v60, %v2470_v6 }
 0x37d   : > { %v2705_v48 = vsel %vm10568_vm6, 0, %v2703_v49  ;;  %7022 = vcosq.f32 %v2704_v38  ;;  %v7021_v37 = vpop.eup %7020  ;;  %v3927_v2 = vshll.u32 %v10596_v43, 30  ;;  %v2606_v24 = vand.u32 3, %v2605_v1 }
 0x37e   : > { %v4045_v22 = vadd.s32 127, %v4044_v19  ;;  %7024 = vsinq.f32 %v2704_v38  ;;  %v10606_v52 = vsel %vm12666_vm2, %v3740_v34, %v3739_v35  ;;  %v4042_v13 = vshrl.u32 %v4024_v61, %v4040_v0 }
 0x37f   : > { %v2464_v31 = vadd.s32 %v10485_v9, %v10467_v56  ;;  %v6221_v6 = vmin.u32 %v2474_v11, %v10581_v54  ;;  %v10613_v62 = vadd.s32 %v10519_v58, %v10534_v36  ;;  %v10615_v33 = vsub.s32 %v3924_v39, %v3927_v2  ;;  %v12933_v9 = vld [vmem:[#allocation13_spill] sm:$0xff] }
 0x380   : > { %v2497_v53 = vsel %vm10562_vm11, 0, %v2495_v15  ;;  %v2709_v14 = vadd.s32 3, %v2705_v48  ;;  %v4041_v57 = vshll.u32 %v10515_v25, %v4039_v28  ;;  %v2609_v45 = vxor.u32 2147483648, %v7021_v37  ;;  %v12934_v25 = vld [vmem:[#allocation10_spill] sm:$0xff]  ;;  %v12938_v28 = vld [vmem:[#allocation23_spill] sm:$0xff] }
 0x381   : > { %v2476_v35 = vclz %v6221_v6  ;;  %v2612_v29 = vxor.u32 2147483648, %v7019_v50  ;;  %v4046_v30 = vshll.u32 %v4045_v22, 23  ;;  %v3930_v56 = vsub.s32 0, %v10615_v33 }
 0x382   : > { %vm2607_vm3 = vcmp.lt.s32.totalorder %v2606_v24, 2  ;;  %v2806_v60 = vsub.s32 4, %v12933_v9  ;;  %v4043_v1 = vor.u32 %v4042_v13, %v4041_v57  ;;  %v2501_v36 = vadd.s32 3, %v2497_v53 }
 0x383   : > { %v6222_v58 = vadd.s32 4294967294, %v2476_v35  ;;  %vm2604_vm6 = vweird.f32 %v9275_v20  ;;  %vm2608_vm0 = vcmp.eq.s32.totalorder %v2606_v24, 0  ;;  %v6277_v39 = vmin.u32 %v3930_v56, %v10615_v33  ;;  %v12944_v20 = vld [vmem:[#allocation12_spill] sm:$0xff] }
 0x384   : > { %vm2611_vm13 = vcmp.eq.s32.totalorder %v2606_v24, 2  ;;  %v10624_v4 = vand.u32 3, %v2709_v14  ;;  %v12935_v38 = vand.u32 2147483647, %v12934_v25  ;;  %v2610_v49 = vsel %vm2608_vm0, %v7019_v50, %v2609_v45 }
 0x385   : > { %vm6223_vm4 = vcmp.lt.s32.totalorder %v6222_v58, 0  ;;  %v2613_v34 = vsel %vm2611_vm13, %v2612_v29, %v7021_v37  ;;  %v4047_v0 = vor.u32 4788187, %v4046_v30  ;;  %v3932_v19 = vclz %v6277_v39  ;;  %v12939_v39 = vld [vmem:[#allocation2_spill] sm:$0xff] }
 0x386   : > { %vm10628_vm2 = vcmp.le.f32.partialorder %v12935_v38, 0.7853982  ;;  %v2479_v11 = vsel %vm6223_vm4, 0, %v6222_v58  ;;  %v2807_v15 = vsel %vm2722_vm15, %v2806_v60, %v12933_v9  ;;  %v4050_v22 = vcvt.s32.f32 %v4043_v1 }
 0x387   : > { %v2808_v61 = vsel %vm10628_vm2, %v12934_v25, %v12938_v28  ;;  %v7023_v48 = vpop.eup %7022  ;;  %v2480_v2 = vsub.s32 32, %v2479_v11  ;;  %v2484_v13 = vsub.s32 4294967266, %v2479_v11  ;;  %v10639_v6 = vand.u32 3, %v2501_v36 }
 0x388   : > { %v7025_v50 = vpop.eup %7024  ;;  %v6278_v37 = vadd.s32 4294967294, %v3932_v19  ;;  %v2614_v53 = vsel %vm2607_vm3, %v2610_v49, %v2613_v34  ;;  %vm2712_vm13 = vcmp.eq.s32.totalorder %v10624_v4, 0  ;;  %7026 = vcosq.f32 %v2808_v61  ;;  %v12943_v49 = vld [vmem:[#allocation20_spill] sm:$0xff] }
 0x389   : > { %v2481_v14 = vshll.u32 %v10581_v54, %v2479_v11  ;;  %v2482_v57 = vshrl.u32 %v2464_v31, %v2480_v2  ;;  %v2485_v35 = vadd.s32 127, %v2484_v13  ;;  %7028 = vsinq.f32 %v2808_v61 }
 0x38a   : > { %v4048_v45 = vand.u32 2147483647, %v4047_v0  ;;  %vm6279_vm15 = vcmp.lt.s32.totalorder %v6278_v37, 0  ;;  %v2716_v29 = vxor.u32 2147483648, %v7023_v48  ;;  %v2809_v30 = vsel %vm10628_vm2, 0, %v2807_v15 }
 0x38b   : > { %v3935_v56 = vsel %vm6279_vm15, 0, %v6278_v37  ;;  %v2483_v9 = vor.u32 %v2482_v57, %v2481_v14  ;;  %v2486_v60 = vshll.u32 %v2485_v35, 23  ;;  %vm2711_vm4 = vcmp.lt.s32.totalorder %v10624_v4, 2 }
 0x38c   : > { %v2713_v24 = vxor.u32 2147483648, %v7025_v50  ;;  %v3936_v1 = vsub.s32 32, %v3935_v56  ;;  %v3940_v58 = vsub.s32 4294967266, %v3935_v56  ;;  %v10649_v54 = vsel %vm2604_vm6, nan, %v2614_v53 }
 0x38d   : > { %vm2715_vm3 = vcmp.eq.s32.totalorder %v10624_v4, 2  ;;  %v2487_v31 = vor.u32 4788187, %v2486_v60  ;;  %v2813_v36 = vadd.s32 3, %v2809_v30  ;;  %v12940_v38 = vand.u32 2147483647, %v12939_v39 }
 0x38e   : > { %v2910_v34 = vsub.s32 4, %v12943_v49  ;;  %vm3970_vm2 = vcmp.lt.s32.totalorder %v10342_v3, 0  ;;  %v4051_v28 = vmul.f32 %v4050_v22, %v4048_v45  ;;  %v3941_v61 = vadd.s32 127, %v3940_v58  ;;  %v12950_v58 = vld [vmem:[#allocation15_spill] sm:$0xff] }
 0x38f   : > { %vm10654_vm0 = vcmp.le.f32.partialorder %v12940_v38, 0.7853982  ;;  %v2717_v0 = vsel %vm2715_vm3, %v2716_v29, %v7025_v50  ;;  %v3937_v11 = vshll.u32 %v10615_v33, %v3935_v56  ;;  %v2488_v15 = vand.u32 2147483647, %v2487_v31  ;;  %v12945_v29 = vld [vmem:[#allocation19_spill] sm:$0xff] }
 0x390   : > { %v2912_v19 = vsel %vm10654_vm0, %v12939_v39, %v12944_v20  ;;  %v2490_v2 = vcvt.s32.f32 %v2483_v9  ;;  %vm2708_vm6 = vweird.f32 %v9389_v5  ;;  %v2714_v13 = vsel %vm2712_vm13, %v7023_v48, %v2713_v24 }
 0x391   : > { %v3938_v37 = vshrl.u32 %v10613_v62, %v3936_v1  ;;  %v3942_v53 = vshll.u32 %v3941_v61, 23  ;;  %v2911_v22 = vsel %vm2826_vm14, %v2910_v34, %v12943_v49  ;;  %7030 = vcosq.f32 %v2912_v19  ;;  %v12949_v62 = vld [vmem:[#allocation16_spill] sm:$0xff] }
 0x392   : > { %v2491_v50 = vmul.f32 %v2490_v2, %v2488_v15  ;;  %v2814_v14 = vand.u32 3, %v2813_v36  ;;  %v2913_v33 = vsel %vm10654_vm0, 0, %v2911_v22  ;;  %7032 = vsinq.f32 %v2912_v19  ;;  %v7027_v57 = vpop.eup %7026 }
 0x393   : > { %v3943_v35 = vor.u32 4788187, %v3942_v53  ;;  %v2917_v45 = vadd.s32 3, %v2913_v33  ;;  %v12946_v30 = vand.u32 2147483647, %v12945_v29  ;;  %v3014_v56 = vsub.s32 4, %v12949_v62  ;;  %v7029_v9 = vpop.eup %7028 }
 0x394   : > { %v4052_v60 = vxor.u32 2147483648, %v4051_v28  ;;  %v2492_v24 = vxor.u32 2147483648, %v2491_v50  ;;  %v2820_v1 = vxor.u32 2147483648, %v7027_v57  ;;  %v3939_v36 = vor.u32 %v3938_v37, %v3937_v11 }
 0x395   : > { %vm10676_vm13 = vcmp.le.f32.partialorder %v12946_v30, 0.7853982  ;;  %v2718_v38 = vsel %vm2711_vm4, %v2714_v13, %v2717_v0  ;;  %v2817_v16 = vxor.u32 2147483648, %v7029_v9  ;;  %v3015_v49 = vsel %vm2930_vm9, %v3014_v56, %v12949_v62  ;;  %v12955_v30 = vld [vmem:[#allocation26_spill] sm:$0xff] }
 0x396   : > { %v3016_v31 = vsel %vm10676_vm13, %v12945_v29, %v12950_v58  ;;  %v2493_v34 = vsel %vm2410_vm10, %v2492_v24, %v2491_v50  ;;  %vm2816_vm14 = vcmp.eq.s32.totalorder %v2814_v14, 0  ;;  %v3017_v61 = vsel %vm10676_vm13, 0, %v3015_v49 }
 0x397   : > { %7034 = vcosq.f32 %v3016_v31  ;;  %v3944_v20 = vand.u32 2147483647, %v3943_v35  ;;  %v2496_v19 = vsel %vm10562_vm11, %v9386_v42, %v2493_v34  ;;  %vm2819_vm15 = vcmp.eq.s32.totalorder %v2814_v14, 2 }
 0x398   : > { %v2918_v4 = vand.u32 3, %v2917_v45  ;;  %v10699_v0 = vsel %vm3970_vm2, %v4052_v60, %v4051_v28  ;;  %7036 = vcosq.f32 %v2496_v19  ;;  %v2818_v11 = vsel %vm2816_vm14, %v7027_v57, %v2817_v16  ;;  %v12954_v28 = vld [vmem:[#allocation27_spill] sm:$0xff] }
 0x399   : > { %v2821_v15 = vsel %vm2819_vm15, %v2820_v1, %v7029_v9  ;;  %v3946_v2 = vcvt.s32.f32 %v3939_v36  ;;  %7038 = vsinq.f32 %v2496_v19  ;;  %v10703_v13 = vsel %vm2708_vm6, nan, %v2718_v38 }
 0x39a   : > { %v3021_v37 = vadd.s32 3, %v3017_v61  ;;  %vm2815_vm9 = vcmp.lt.s32.totalorder %v2814_v14, 2  ;;  %7040 = vsinq.f32 %v3016_v31  ;;  %v12951_v44 = vand.u32 2147483647, %v9609_v41 }
 0x39b   : > { %v3118_v22 = vsub.s32 4, %v12954_v28  ;;  %v7031_v50 = vpop.eup %7030  ;;  %v10712_v33 = vmul.f32 %v3946_v2, %v3944_v20  ;;  %v2822_v57 = vsel %vm2815_vm9, %v2818_v11, %v2821_v15  ;;  %vm2920_vm11 = vcmp.eq.s32.totalorder %v2918_v4, 0  ;;  %v12957_v15 = vld [vmem:[#allocation35_spill] sm:$0xff] }
 0x39c   : > { %vm10707_vm10 = vcmp.le.f32.partialorder %v12951_v44, 0.7853982  ;;  %v7033_v14 = vpop.eup %7032  ;;  %vm2507_vm4 = vcmp.eq.s32.totalorder %v10639_v6, 2  ;;  %v2924_v35 = vxor.u32 2147483648, %v7031_v50  ;;  %v3222_v48 = vsub.s32 4, %v12955_v30 }
 0x39d   : > { %v3120_v5 = vsel %vm10707_vm10, %v9609_v41, %v10206_v7  ;;  %v3119_v45 = vsel %vm3034_vm1, %v3118_v22, %v12954_v28  ;;  %vm2504_vm3 = vcmp.eq.s32.totalorder %v10639_v6, 0  ;;  %v2921_v62 = vxor.u32 2147483648, %v7033_v14  ;;  %v12958_v28 = vld [vmem:[#allocation21_spill] sm:$0xff] }
 0x39e   : > { %7042 = vcosq.f32 %v3120_v5  ;;  %vm2923_vm0 = vcmp.eq.s32.totalorder %v2918_v4, 2  ;;  %v10724_v56 = vand.u32 3, %v3021_v37  ;;  %v12956_v9 = vand.u32 2147483647, %v9602_v40 }
 0x39f   : > { %vm2503_vm13 = vcmp.lt.s32.totalorder %v10639_v6, 2  ;;  %v2925_v7 = vsel %vm2923_vm0, %v2924_v35, %v7033_v14  ;;  %v3121_v60 = vsel %vm10707_vm10, 0, %v3119_v45  ;;  %7044 = vsinq.f32 %v3120_v5 }
 0x3a0   : > { %vm3137_vm6 = vcmp.le.f32.partialorder %v12956_v9, 0.7853982  ;;  %v3223_v24 = vsel %vm3138_vm5, %v3222_v48, %v12955_v30  ;;  %vm2500_vm1 = vweird.f32 %v9386_v42  ;;  %v2922_v1 = vsel %vm2920_vm11, %v7031_v50, %v2921_v62  ;;  %v12962_v30 = vld [vmem:[#allocation17_spill] sm:$0xff] }
 0x3a1   : > { %v3125_v58 = vadd.s32 3, %v3121_v60  ;;  %v3224_v31 = vsel %vm3137_vm6, %v9602_v40, %v10199_v26  ;;  %v3225_v36 = vsel %vm3137_vm6, 0, %v3223_v24  ;;  %v7035_v38 = vpop.eup %7034  ;;  %vm2812_vm14 = vweird.f32 %v12934_v25 }
 0x3a2   : > { %vm2919_vm15 = vcmp.lt.s32.totalorder %v2918_v4, 2  ;;  %7046 = vcosq.f32 %v3224_v31  ;;  %v3229_v16 = vadd.s32 3, %v3225_v36  ;;  %vm2916_vm9 = vweird.f32 %v12939_v39  ;;  %v7037_v61 = vpop.eup %7036 }
 0x3a3   : > { %v2926_v49 = vsel %vm2919_vm15, %v2922_v1, %v2925_v7  ;;  %v3126_v34 = vand.u32 3, %v3125_v58  ;;  %7048 = vsinq.f32 %v3224_v31  ;;  %v3948_v20 = vxor.u32 2147483648, %v10712_v33  ;;  %v7039_v26 = vpop.eup %7038 }
 0x3a4   : > { %v2823_v19 = vsel %vm2812_vm14, nan, %v2822_v57  ;;  %v3028_v11 = vxor.u32 2147483648, %v7035_v38  ;;  %v3326_v2 = vsub.s32 4, %v12957_v15  ;;  %v2508_v37 = vxor.u32 2147483648, %v7037_v61  ;;  %v7041_v25 = vpop.eup %7040 }
 0x3a5   : > { %vm3023_vm5 = vcmp.lt.s32.totalorder %v10724_v56, 2  ;;  %vm3024_vm10 = vcmp.eq.s32.totalorder %v10724_v56, 0  ;;  %vm3027_vm11 = vcmp.eq.s32.totalorder %v10724_v56, 2  ;;  %v2505_v4 = vxor.u32 2147483648, %v7039_v26 }
 0x3a6   : > { %v2927_v44 = vsel %vm2916_vm9, nan, %v2926_v49  ;;  %vm3020_vm0 = vweird.f32 %v12945_v29  ;;  %v3230_v53 = vand.u32 3, %v3229_v16  ;;  %v12959_v22 = vand.u32 2147483647, %v12958_v28  ;;  %v12963_v16 = vld [vmem:[#allocation4_spill] sm:$0xff]  ;;  %v12972_v29 = vld [vmem:[#allocation34_spill] sm:$0xff] }
 0x3a7   : > { %v2509_v57 = vsel %vm2507_vm4, %v2508_v37, %v7039_v26  ;;  %v3025_v5 = vxor.u32 2147483648, %v7041_v25  ;;  %vm3127_vm14 = vcmp.lt.s32.totalorder %v3126_v34, 2  ;;  %v3327_v14 = vsel %vm3242_vm12, %v3326_v2, %v12957_v15  ;;  %v12968_v2 = vld [vmem:[#allocation5_spill] sm:$0xff] }
 0x3a8   : > { %vm10750_vm6 = vcmp.le.f32.partialorder %v12959_v22, 0.7853982  ;;  %v7043_v39 = vpop.eup %7042  ;;  %v2506_v35 = vsel %vm2504_vm3, %v7037_v61, %v2505_v4  ;;  %v3029_v45 = vsel %vm3027_vm11, %v3028_v11, %v7041_v25  ;;  %vm3124_vm15 = vweird.f32 %v9609_v41 }
 0x3a9   : > { %v3328_v48 = vsel %vm10750_vm6, %v12958_v28, %v12962_v30  ;;  %v3329_v62 = vsel %vm10750_vm6, 0, %v3327_v14  ;;  %v2510_v9 = vsel %vm2503_vm13, %v2506_v35, %v2509_v57  ;;  %v3026_v7 = vsel %vm3024_vm10, %v7035_v38, %v3025_v5  ;;  %v7045_v24 = vpop.eup %7044  ;;  %v12967_v38 = vld [vmem:[#allocation25_spill] sm:$0xff] }
 0x3aa   : > { %v3132_v60 = vxor.u32 2147483648, %v7043_v39  ;;  %7050 = vcosq.f32 %v3328_v48  ;;  %v2511_v1 = vsel %vm2500_vm1, nan, %v2510_v9  ;;  %vm3131_vm12 = vcmp.eq.s32.totalorder %v3126_v34, 2  ;;  %v12976_v9 = vld [vmem:[#allocation29_spill] sm:$0xff] }
 0x3ab   : > { %7052 = vsinq.f32 %v3328_v48  ;;  %v3333_v58 = vadd.s32 3, %v3329_v62  ;;  %6536 = vmatprep.mubr.f32.mxu1 %v2511_v1  ;;  %v3129_v31 = vxor.u32 2147483648, %v7045_v24  ;;  %vm3228_vm4 = vweird.f32 %v9602_v40 }
 0x3ac   : > { %v3133_v36 = vsel %vm3131_vm12, %v3132_v60, %v7045_v24  ;;  %v12964_v6 = vand.u32 2147483647, %v12963_v16  ;;  %v3430_v61 = vsub.s32 4, %v12967_v38  ;;  %v7047_v11 = vpop.eup %7046  ;;  %6537 = vmatmul.mubr.f32.vlgmr.msra.gmra.mrb[0].mxu1 %v10649_v54  ;;  %v3030_v42 = vsel %vm3023_vm5, %v3026_v7, %v3029_v45 }
 0x3ad   : > { %vm3128_vm13 = vcmp.eq.s32.totalorder %v3126_v34, 0  ;;  %v3334_v15 = vand.u32 3, %v3333_v58  ;;  %v7049_v37 = vpop.eup %7048  ;;  %6539 = vmatprep.mubr.f32.mxu1 %v10703_v13  ;;  %v3236_v4 = vxor.u32 2147483648, %v7047_v11  ;;  %vm3231_vm1 = vcmp.lt.s32.totalorder %v3230_v53, 2 }
 0x3ae   : > { %vm10777_vm3 = vcmp.le.f32.partialorder %v12964_v6, 0.7853982  ;;  %v3130_v25 = vsel %vm3128_vm13, %v7043_v39, %v3129_v31  ;;  %v3431_v22 = vsel %vm3346_vm7, %v3430_v61, %v12967_v38  ;;  %v3233_v56 = vxor.u32 2147483648, %v7049_v37 }
 0x3af   : > { %v3432_v26 = vsel %vm10777_vm3, %v12963_v16, %v12968_v2  ;;  %v3134_v54 = vsel %vm3127_vm14, %v3130_v25, %v3133_v36  ;;  %vm3235_vm9 = vcmp.eq.s32.totalorder %v3230_v53, 2  ;;  %v3031_v50 = vsel %vm3020_vm0, nan, %v3030_v42  ;;  %v12981_v25 = vld [vmem:[#allocation32_spill] sm:$0xff] }
 0x3b0   : > { %7054 = vcosq.f32 %v3432_v26  ;;  %vm3232_vm5 = vcmp.eq.s32.totalorder %v3230_v53, 0  ;;  %v3237_v57 = vsel %vm3235_vm9, %v3236_v4, %v7049_v37  ;;  %v3433_v13 = vsel %vm10777_vm3, 0, %v3431_v22  ;;  %6540 = vmatmul.mubr.f32.gmra.mrb[2].mxu1 %v2823_v19 }
 0x3b1   : > { %vm3866_vm10 = vcmp.lt.s32.totalorder %v10349_v21, 0  ;;  %v3234_v5 = vsel %vm3232_vm5, %v7047_v11, %v3233_v56  ;;  %vm3332_vm7 = vweird.f32 %v12958_v28  ;;  %7056 = vsinq.f32 %v3432_v26  ;;  %6542 = vmatprep.mubr.f32.mxu1 %v2927_v44 }
 0x3b2   : > { %v12969_v34 = vand.u32 2147483647, %v9982_v63  ;;  %v3534_v39 = vsub.s32 4, %v12972_v29  ;;  %v3135_v35 = vsel %vm3124_vm15, nan, %v3134_v54  ;;  %v3238_v45 = vsel %vm3231_vm1, %v3234_v5, %v3237_v57 }
 0x3b3   : > { %vm3335_vm0 = vcmp.lt.s32.totalorder %v3334_v15, 2  ;;  %v3437_v30 = vadd.s32 3, %v3433_v13  ;;  %v12973_v62 = vand.u32 2147483647, %v9979_v27  ;;  %v3638_v7 = vsub.s32 4, %v12976_v9 }
 0x3b4   : > { %vm10802_vm11 = vcmp.le.f32.partialorder %v12969_v34, 0.7853982  ;;  %v3535_v48 = vsel %vm3450_vm8, %v3534_v39, %v12972_v29  ;;  %v7051_v41 = vpop.eup %7050  ;;  %6543 = vmatmul.mubr.f32.gmra.mrb[4].mxu1 %v3031_v50  ;;  %v3239_v24 = vsel %vm3228_vm4, nan, %v3238_v45  ;;  %vm3336_vm8 = vcmp.eq.s32.totalorder %v3334_v15, 0 }
 0x3b5   : > { %v3536_v19 = vsel %vm10802_vm11, %v9982_v63, %v10588_v46  ;;  %vm10819_vm6 = vcmp.le.f32.partialorder %v12973_v62, 0.7853982  ;;  %v3537_v53 = vsel %vm10802_vm11, 0, %v3535_v48  ;;  %v7053_v60 = vpop.eup %7052  ;;  %vm3339_vm14 = vcmp.eq.s32.totalorder %v3334_v15, 2  ;;  %6545 = vmatprep.mubr.f32.mxu1 %v3135_v35  ;;  %v12986_v35 = vld [vmem:[#allocation22_spill] sm:$0xff] }
 0x3b6   : > { %7058 = vcosq.f32 %v3536_v19  ;;  %v3640_v46 = vsel %vm10819_vm6, %v9979_v27, %v10575_v10  ;;  %v3340_v1 = vxor.u32 2147483648, %v7051_v41  ;;  %v3337_v58 = vxor.u32 2147483648, %v7053_v60 }
 0x3b7   : > { %7060 = vsinq.f32 %v3536_v19  ;;  %v3541_v31 = vadd.s32 3, %v3537_v53  ;;  %vm12977_vm15 = vcmp.lt.s32.totalorder %v9979_v27, 0  ;;  %v3438_v49 = vand.u32 3, %v3437_v30 }
 0x3b8   : > { %v3639_v36 = vsel %vm12977_vm15, %v3638_v7, %v12976_v9  ;;  %7062 = vcosq.f32 %v3640_v46  ;;  %v3341_v6 = vsel %vm3339_vm14, %v3340_v1, %v7053_v60  ;;  %v3338_v40 = vsel %vm3336_vm8, %v7051_v41, %v3337_v58  ;;  %6546 = vmatmul.mubr.f32.gmra.mrb[6].mxu1 %v3239_v24 }
 0x3b9   : > { %v3641_v10 = vsel %vm10819_vm6, 0, %v3639_v36  ;;  %7064 = vsinq.f32 %v3640_v46  ;;  %v3542_v61 = vand.u32 3, %v3541_v31  ;;  %v12978_v42 = vand.u32 2147483647, %v10146_v51 }
 0x3ba   : > { %v7055_v38 = vpop.eup %7054  ;;  %v3645_v11 = vadd.s32 3, %v3641_v10  ;;  %v3342_v26 = vsel %vm3335_vm0, %v3338_v40, %v3341_v6  ;;  %v3742_v4 = vsub.s32 4, %v12981_v25  ;;  %v3949_v54 = vsel %vm3866_vm10, %v3948_v20, %v10712_v33 }
 0x3bb   : > { %vm10839_vm12 = vcmp.le.f32.partialorder %v12978_v42, 0.7853982  ;;  %v3444_v37 = vxor.u32 2147483648, %v7055_v38  ;;  %v3343_v56 = vsel %vm3332_vm7, nan, %v3342_v26  ;;  %vm3436_vm4 = vweird.f32 %v12963_v16  ;;  %v7057_v15 = vpop.eup %7056 }
 0x3bc   : > { %v3744_v22 = vsel %vm10839_vm12, %v10146_v51, %v10606_v52  ;;  %vm3540_vm3 = vweird.f32 %v9982_v63  ;;  %6548 = vmatprep.mubr.f32.mxu1 %v3343_v56  ;;  %vm3439_vm13 = vcmp.lt.s32.totalorder %v3438_v49, 2  ;;  %vm3443_vm1 = vcmp.eq.s32.totalorder %v3438_v49, 2 }
 0x3bd   : > { %vm12982_vm9 = vcmp.lt.s32.totalorder %v10146_v51, 0  ;;  %7066 = vcosq.f32 %v3744_v22  ;;  %v3441_v50 = vxor.u32 2147483648, %v7057_v15  ;;  %v3445_v57 = vsel %vm3443_vm1, %v3444_v37, %v7057_v15 }
 0x3be   : > { %v3743_v52 = vsel %vm12982_vm9, %v3742_v4, %v12981_v25  ;;  %7068 = vsinq.f32 %v3744_v22  ;;  %vm3440_vm5 = vcmp.eq.s32.totalorder %v3438_v49, 0  ;;  %vm3544_vm7 = vcmp.eq.s32.totalorder %v3542_v61, 0 }
 0x3bf   : > { %v3745_v33 = vsel %vm10839_vm12, 0, %v3743_v52  ;;  %v3646_v28 = vand.u32 3, %v3645_v11  ;;  %v3442_v34 = vsel %vm3440_vm5, %v7055_v38, %v3441_v50  ;;  %v12983_v29 = vand.u32 2147483647, %v10140_v17 }
 0x3c0   : > { %v7059_v20 = vpop.eup %7058  ;;  %v3749_v13 = vadd.s32 3, %v3745_v33  ;;  %v3846_v45 = vsub.s32 4, %v12986_v35  ;;  %v3446_v19 = vsel %vm3439_vm13, %v3442_v34, %v3445_v57  ;;  %vm3547_vm0 = vcmp.eq.s32.totalorder %v3542_v61, 2 }
 0x3c1   : > { %v7061_v5 = vpop.eup %7060  ;;  %v3548_v14 = vxor.u32 2147483648, %v7059_v20  ;;  %vm10865_vm11 = vcmp.le.f32.partialorder %v12983_v29, 0.7853982  ;;  %v3447_v44 = vsel %vm3436_vm4, nan, %v3446_v19  ;;  %vm12987_vm6 = vcmp.lt.s32.totalorder %v10140_v17, 0 }
 0x3c2   : > { %v3545_v30 = vxor.u32 2147483648, %v7061_v5  ;;  %v3848_v48 = vsel %vm10865_vm11, %v10140_v17, %v10592_v8  ;;  %v7063_v62 = vpop.eup %7062  ;;  %v3847_v53 = vsel %vm12987_vm6, %v3846_v45, %v12986_v35  ;;  %6549 = vmatmul.mubr.f32.gmra.mrb[8].mxu1 %v3447_v44  ;;  %vm3543_vm8 = vcmp.lt.s32.totalorder %v3542_v61, 2 }
 0x3c3   : > { %v3549_v41 = vsel %vm3547_vm0, %v3548_v14, %v7061_v5  ;;  %7070 = vcosq.f32 %v3848_v48  ;;  %v7065_v9 = vpop.eup %7064  ;;  %vm3651_vm14 = vcmp.eq.s32.totalorder %v3646_v28, 2  ;;  %v3652_v46 = vxor.u32 2147483648, %v7063_v62 }
 0x3c4   : > { %v3546_v7 = vsel %vm3544_vm7, %v7059_v20, %v3545_v30  ;;  %v3649_v24 = vxor.u32 2147483648, %v7065_v9  ;;  %v3750_v8 = vand.u32 3, %v3749_v13  ;;  %v3849_v16 = vsel %vm10865_vm11, 0, %v3847_v53 }
 0x3c5   : > { %v3550_v60 = vsel %vm3543_vm8, %v3546_v7, %v3549_v41  ;;  %vm3648_vm15 = vcmp.eq.s32.totalorder %v3646_v28, 0  ;;  %v3653_v58 = vsel %vm3651_vm14, %v3652_v46, %v7065_v9  ;;  %7072 = vsinq.f32 %v3848_v48 }
 0x3c6   : > { %v3551_v1 = vsel %vm3540_vm3, nan, %v3550_v60  ;;  %vm3647_vm12 = vcmp.lt.s32.totalorder %v3646_v28, 2  ;;  %v3650_v31 = vsel %vm3648_vm15, %v7063_v62, %v3649_v24  ;;  %v12988_v36 = vand.u32 2147483647, %v10349_v21 }
 0x3c7   : > { %6551 = vmatprep.mubr.f32.mxu1 %v3551_v1  ;;  %v3950_v49 = vsub.s32 4, %v10596_v43  ;;  %v7067_v10 = vpop.eup %7066  ;;  %vm3644_vm13 = vweird.f32 %v9979_v27  ;;  %v3654_v38 = vsel %vm3647_vm12, %v3650_v31, %v3653_v58  ;;  %v3853_v63 = vadd.s32 3, %v3849_v16  ;;  %v10925_v16 = vld [vmem:[%s12525_s6] ss:$0 sm:$0xff] }
 0x3c8   : > { %vm10887_vm4 = vcmp.le.f32.partialorder %v12988_v36, 0.7853982  ;;  %v7069_v61 = vpop.eup %7068  ;;  %v3655_v11 = vsel %vm3644_vm13, nan, %v3654_v38  ;;  %vm3751_vm3 = vcmp.lt.s32.totalorder %v3750_v8, 2  ;;  %v3756_v42 = vxor.u32 2147483648, %v7067_v10 }
 0x3c9   : > { %v3952_v40 = vsel %vm10887_vm4, %v10349_v21, %v3949_v54  ;;  %v3951_v2 = vsel %vm3866_vm10, %v3950_v49, %v10596_v43  ;;  %6552 = vmatmul.mubr.f32.gmra.mrb[10].mxu1 %v3655_v11  ;;  %v3753_v26 = vxor.u32 2147483648, %v7069_v61  ;;  %vm3755_vm1 = vcmp.eq.s32.totalorder %v3750_v8, 2 }
 0x3ca   : > { %7074 = vcosq.f32 %v3952_v40  ;;  %v4054_v27 = vsub.s32 4, %v10507_v55  ;;  %vm3752_vm9 = vcmp.eq.s32.totalorder %v3750_v8, 0  ;;  %v3757_v37 = vsel %vm3755_vm1, %v3756_v42, %v7069_v61 }
 0x3cb   : > { %v3953_v25 = vsel %vm10887_vm4, 0, %v3951_v2  ;;  %v12991_v4 = vand.u32 2147483647, %v10342_v3  ;;  %v3754_v54 = vsel %vm3752_vm9, %v7067_v10, %v3753_v26  ;;  %v3854_v56 = vand.u32 3, %v3853_v63 }
 0x3cc   : > { %7076 = vsinq.f32 %v3952_v40  ;;  %v4055_v43 = vsel %vm3970_vm2, %v4054_v27, %v10507_v55  ;;  %vm3748_vm10 = vweird.f32 %v10146_v51  ;;  %v3758_v52 = vsel %vm3751_vm3, %v3754_v54, %v3757_v37 }
 0x3cd   : > { %vm10904_vm5 = vcmp.le.f32.partialorder %v12991_v4, 0.7853982  ;;  %v7071_v15 = vpop.eup %7070  ;;  %v3759_v57 = vsel %vm3748_vm10, nan, %v3758_v52  ;;  %v3957_v20 = vadd.s32 3, %v3953_v25  ;;  %vm3859_vm2 = vcmp.eq.s32.totalorder %v3854_v56, 2 }
 0x3ce   : > { %v4056_v50 = vsel %vm10904_vm5, %v10342_v3, %v10699_v0  ;;  %v3860_v33 = vxor.u32 2147483648, %v7071_v15  ;;  %6554 = vmatprep.mubr.f32.mxu1 %v3759_v57  ;;  %v4057_v28 = vsel %vm10904_vm5, 0, %v4055_v43  ;;  %vm3856_vm7 = vcmp.eq.s32.totalorder %v3854_v56, 0 }
 0x3cf   : > { %7078 = vcosq.f32 %v4056_v50  ;;  %v7073_v55 = vpop.eup %7072  ;;  %v3958_v5 = vand.u32 3, %v3957_v20  ;;  %v4061_v34 = vadd.s32 3, %v4057_v28  ;;  %vm3855_vm11 = vcmp.lt.s32.totalorder %v3854_v56, 2 }
 0x3d0   : > { %7080 = vsinq.f32 %v4056_v50  ;;  %v3857_v13 = vxor.u32 2147483648, %v7073_v55  ;;  %v3861_v51 = vsel %vm3859_vm2, %v3860_v33, %v7073_v55  ;;  %vm3852_vm0 = vweird.f32 %v10140_v17 }
 0x3d1   : > { %vm3963_vm6 = vcmp.eq.s32.totalorder %v3958_v5, 2  ;;  %v4062_v19 = vand.u32 3, %v4061_v34  ;;  %vm3960_vm8 = vcmp.eq.s32.totalorder %v3958_v5, 0  ;;  %vm3959_vm14 = vcmp.lt.s32.totalorder %v3958_v5, 2 }
 0x3d2   : > { %v3858_v14 = vsel %vm3856_vm7, %v7071_v15, %v3857_v13  ;;  %vm3956_vm15 = vweird.f32 %v10349_v21  ;;  %vm4060_vm3 = vweird.f32 %v10342_v3 }
 0x3d3   : > { %v3862_v0 = vsel %vm3855_vm11, %v3858_v14, %v3861_v51  ;;  %vm4067_vm12 = vcmp.eq.s32.totalorder %v4062_v19, 2  ;;  %vm4064_vm4 = vcmp.eq.s32.totalorder %v4062_v19, 0  ;;  %vm4063_vm13 = vcmp.lt.s32.totalorder %v4062_v19, 2 }
 0x3d4   : > { %v7075_v29 = vpop.eup %7074  ;;  %v3863_v39 = vsel %vm3852_vm0, nan, %v3862_v0 }
 0x3d5   : > { %v3964_v35 = vxor.u32 2147483648, %v7075_v29  ;;  %6555 = vmatmul.mubr.f32.gmra.mrb[12].mxu1 %v3863_v39 }
 0x3d6   : > { %v7077_v45 = vpop.eup %7076 }
 0x3d7   : > { %v3961_v30 = vxor.u32 2147483648, %v7077_v45  ;;  %v3965_v48 = vsel %vm3963_vm6, %v3964_v35, %v7077_v45 }
 0x3d9   : > { %v7079_v62 = vpop.eup %7078  ;;  %v3962_v41 = vsel %vm3960_vm8, %v7075_v29, %v3961_v30 }
 0x3da   : > { %v7081_v44 = vpop.eup %7080  ;;  %v4068_v53 = vxor.u32 2147483648, %v7079_v62  ;;  %v3966_v9 = vsel %vm3959_vm14, %v3962_v41, %v3965_v48 }
 0x3db   : > { %v4065_v7 = vxor.u32 2147483648, %v7081_v44  ;;  %v3967_v17 = vsel %vm3956_vm15, nan, %v3966_v9 }
 0x3dc   : > { %v4069_v46 = vsel %vm4067_vm12, %v4068_v53, %v7081_v44  ;;  %6557 = vmatprep.mubr.f32.mxu1 %v3967_v17 }
 0x3dd   : > { %v4066_v60 = vsel %vm4064_vm4, %v7079_v62, %v4065_v7 }
 0x3de   : > { %v4070_v24 = vsel %vm4063_vm13, %v4066_v60, %v4069_v46 }
 0x3df   : > { %v4071_v8 = vsel %vm4060_vm3, nan, %v4070_v24 }
 0x3e0   : > { %6558 = vmatmul.mubr.f32.gmra.mrb[14].mxu1 %v4071_v8 }
 0x47f   : > { %v6538_v21 = vpop.f32.mrb[0].mxu1 }
 0x480   : > { %v10928_v1 = vadd.f32 %v6538_v21, %v10925_v16  ;;  %v4161_v58 = vpop.f32.mrb[1].mxu1 }
 0x481   : > { %v10931_v31 = vadd.f32 %v10925_v16, %v4161_v58 }
 0x482   : > { %12994 = vst [vmem:[#allocation39_spill] sm:$0xff] %v10928_v1  ;;  %v4344_v36 = vand.u32 2147483647, %v10928_v1  ;;  %v4347_v3 = vand.u32 2139095040, %v10928_v1 }
 0x483   : > { %v12673_v6 = vand.u32 2147483647, %v10931_v31  ;;  %v4243_v49 = vand.u32 2139095040, %v10931_v31  ;;  %v6541_v10 = vpop.f32.mrb[2].mxu1 }
 0x484   : > { %v4348_v38 = vshrl.u32 %v4347_v3, 23  ;;  %v4351_v63 = vand.u32 8388607, %v4344_v36  ;;  %v10940_v40 = vadd.f32 %v6541_v10, %v10925_v16  ;;  %v4171_v61 = vpop.f32.mrb[3].mxu1 }
 0x485   : > { %v4244_v11 = vshrl.u32 %v4243_v49, 23  ;;  %v4247_v42 = vand.u32 8388607, %v12673_v6  ;;  %v10955_v50 = vadd.f32 %v10925_v16, %v4171_v61 }
 0x486   : > { %v6289_v2 = vadd.s32 4294967169, %v4348_v38  ;;  %v12668_v26 = vand.u32 2147483647, %v10940_v40  ;;  %v4352_v27 = vor.u32 8388608, %v4351_v63  ;;  %v4555_v25 = vand.u32 2139095040, %v10940_v40 }
 0x487   : > { %v6285_v37 = vadd.s32 4294967169, %v4244_v11  ;;  %v10946_v4 = vpop.f32.mrb[4].mxu1  ;;  %v4248_v54 = vor.u32 8388608, %v4247_v42  ;;  %v4451_v39 = vand.u32 2139095040, %v10955_v50 }
 0x488   : > { %v4354_v22 = vadd.s32 1, %v6289_v2  ;;  %v10948_v56 = vpop.f32.mrb[5].mxu1  ;;  %v4556_v15 = vshrl.u32 %v4555_v25, 23  ;;  %v10952_v52 = vand.u32 8388607, %v12668_v26  ;;  %v10957_v33 = vshll.u32 %v4352_v27, 8 }
 0x489   : > { %v4250_v43 = vadd.s32 1, %v6285_v37  ;;  %v10961_v5 = vshll.u32 %v4248_v54, 8 }
 0x48a   : > { %vm4355_vm1 = vcmp.gt.s32.totalorder %v4354_v22, 0  ;;  %v6297_v20 = vadd.s32 4294967169, %v4556_v15  ;;  %v4560_v0 = vor.u32 8388608, %v10952_v52 }
 0x48b   : > { %v4356_v57 = vsel %vm4355_vm1, %v4354_v22, 0  ;;  %vm4251_vm9 = vcmp.gt.s32.totalorder %v4250_v43, 0  ;;  %v10959_v28 = vpop.f32.mrb[6].mxu1 }
 0x48c   : > { %v4357_v55 = vshrl.u32 %v4356_v57, 5  ;;  %v4358_v13 = vand.u32 31, %v4356_v57  ;;  %v4252_v51 = vsel %vm4251_vm9, %v4250_v43, 0  ;;  %v10963_v34 = vpop.f32.mrb[7].mxu1  ;;  %v10971_v30 = vadd.s32 1, %v6297_v20 }
 0x48d   : > { %v10965_v14 = vshrl.u32 %v4252_v51, 5  ;;  %v4254_v29 = vand.u32 31, %v4252_v51 }
 0x48e   : > { %v4359_v35 = vsub.s32 32, %v4358_v13  ;;  %v4361_v45 = vshll.u32 %v12759_v12, %v4358_v13  ;;  %v4364_v19 = vshll.u32 %v12763_v32, %v4358_v13  ;;  %v4367_v48 = vshll.u32 %v12767_v47, %v4358_v13 }
 0x48f   : > { %v4370_v62 = vshll.u32 %v12749_v59, %v4358_v13  ;;  %v4373_v44 = vshll.u32 %v12752_v23, %v4358_v13  ;;  %vm4376_vm5 = vcmp.lt.s32.totalorder %v4357_v55, 1  ;;  %vm4377_vm10 = vcmp.lt.s32.totalorder %v4357_v55, 2 }
 0x490   : > { %v4362_v41 = vshrl.u32 %v12763_v32, %v4359_v35  ;;  %v4365_v53 = vshrl.u32 %v12767_v47, %v4359_v35  ;;  %v4368_v9 = vshrl.u32 %v12749_v59, %v4359_v35  ;;  %v4360_v7 = vshrl.u32 %v12759_v12, %v4359_v35 }
 0x491   : > { %v4371_v17 = vshrl.u32 %v12752_v23, %v4359_v35  ;;  %v4374_v46 = vshrl.u32 %v12744_v18, %v4359_v35  ;;  %vm4378_vm2 = vcmp.lt.s32.totalorder %v4357_v55, 3  ;;  %v4255_v21 = vsub.s32 32, %v4254_v29 }
 0x492   : > { %v4363_v60 = vor.u32 %v4362_v41, %v4361_v45  ;;  %v4366_v24 = vor.u32 %v4365_v53, %v4364_v19  ;;  %v4369_v8 = vor.u32 %v4368_v9, %v4367_v48  ;;  %vm4379_vm7 = vcmp.lt.s32.totalorder %v4357_v55, 4 }
 0x493   : > { %v4372_v58 = vor.u32 %v4371_v17, %v4370_v62  ;;  %v4375_v3 = vor.u32 %v4374_v46, %v4373_v44  ;;  %v4257_v49 = vshll.u32 %v12759_v12, %v4254_v29  ;;  %v4260_v37 = vshll.u32 %v12763_v32, %v4254_v29 }
 0x494   : > { %v4380_v38 = vsel %vm4376_vm5, %v4360_v7, %v4363_v60  ;;  %v4381_v63 = vsel %vm4379_vm7, %v4369_v8, 2102212464  ;;  %v4384_v61 = vsel %vm4376_vm5, %v4363_v60, %v4366_v24  ;;  %v4388_v11 = vsel %vm4376_vm5, %v4366_v24, %v4369_v8 }
 0x495   : > { %v10983_v10 = vpop.f32.mrb[8].mxu1  ;;  %v4382_v42 = vsel %vm4378_vm2, %v4366_v24, %v4381_v63  ;;  %v4385_v2 = vsel %vm4379_vm7, %v4372_v58, 920167782  ;;  %v4389_v27 = vsel %vm4379_vm7, %v4375_v3, 1326507024  ;;  %v4256_v54 = vshrl.u32 %v12759_v12, %v4255_v21 }
 0x496   : > { %v4386_v25 = vsel %vm4378_vm2, %v4369_v8, %v4385_v2  ;;  %v4390_v22 = vsel %vm4378_vm2, %v4372_v58, %v4389_v27  ;;  %v4258_v43 = vshrl.u32 %v12763_v32, %v4255_v21  ;;  %v4383_v15 = vsel %vm4377_vm10, %v4380_v38, %v4382_v42  ;;  %v11013_v17 = vpop.f32.mrb[9].mxu1 }
 0x497   : > { %v4387_v57 = vsel %vm4377_vm10, %v4384_v61, %v4386_v25  ;;  %v4391_v20 = vsel %vm4377_vm10, %v4388_v11, %v4390_v22  ;;  %v4261_v13 = vshrl.u32 %v12767_v47, %v4255_v21  ;;  %v4263_v44 = vshll.u32 %v12767_v47, %v4254_v29 }
 0x498   : > { %v10999_v51 = vmul.u32.u64.low %v10957_v33, %v4391_v20  ;;  %v11000_v35 = vmul.u32.u64.high %v10957_v33, %v4391_v20, %v10999_v51  ;;  %v11003_v45 = vmul.u32.u64.low %v10957_v33, %v4387_v57  ;;  %v11004_v19 = vmul.u32.u64.high %v10957_v33, %v4387_v57, %v11003_v45 }
 0x499   : > { %v4259_v48 = vor.u32 %v4258_v43, %v4257_v49  ;;  %v4262_v62 = vor.u32 %v4261_v13, %v4260_v37  ;;  %v4264_v41 = vshrl.u32 %v12749_v59, %v4255_v21  ;;  %v4399_v55 = vmul.u32 %v10957_v33, %v4383_v15 }
 0x49a   : > { %v4266_v53 = vshll.u32 %v12749_v59, %v4254_v29  ;;  %v4267_v9 = vshrl.u32 %v12752_v23, %v4255_v21  ;;  %v4270_v7 = vshrl.u32 %v12744_v18, %v4255_v21  ;;  %v4269_v60 = vshll.u32 %v12752_v23, %v4254_v29 }
 0x49b   : > { %v4265_v46 = vor.u32 %v4264_v41, %v4263_v44  ;;  %vm4272_vm11 = vcmp.lt.s32.totalorder %v10965_v14, 1  ;;  %vm4273_vm0 = vcmp.lt.s32.totalorder %v10965_v14, 2  ;;  %vm4401_vm6 = vc.u32 %v11000_v35, %v11003_v45 }
 0x49c   : > { %v4402_v33 = vadd.s32 1, %v11004_v19  ;;  %v4268_v24 = vor.u32 %v4267_v9, %v4266_v53  ;;  %vm4274_vm8 = vcmp.lt.s32.totalorder %v10965_v14, 3  ;;  %v4271_v8 = vor.u32 %v4270_v7, %v4269_v60 }
 0x49d   : > { %vm4275_vm14 = vcmp.lt.s32.totalorder %v10965_v14, 4  ;;  %v4276_v21 = vsel %vm4272_vm11, %v4256_v54, %v4259_v48  ;;  %v4280_v58 = vsel %vm4272_vm11, %v4259_v48, %v4262_v62  ;;  %v4284_v38 = vsel %vm4272_vm11, %v4262_v62, %v4265_v46 }
 0x49e   : > { %v4403_v3 = vsel %vm4401_vm6, %v4402_v33, %v11004_v19  ;;  %v4277_v29 = vsel %vm4275_vm14, %v4265_v46, 2102212464  ;;  %v4281_v49 = vsel %vm4275_vm14, %v4268_v24, 920167782  ;;  %v4285_v42 = vsel %vm4275_vm14, %v4271_v8, 1326507024 }
 0x49f   : > { %v4404_v63 = vadd.s32 %v4403_v3, %v4399_v55  ;;  %v4278_v61 = vsel %vm4274_vm8, %v4262_v62, %v4277_v29  ;;  %v4282_v11 = vsel %vm4274_vm8, %v4265_v46, %v4281_v49  ;;  %v4286_v27 = vsel %vm4274_vm8, %v4268_v24, %v4285_v42 }
 0x4a0   : > { %v4283_v2 = vsel %vm4273_vm0, %v4280_v58, %v4282_v11  ;;  %vm4563_vm15 = vcmp.gt.s32.totalorder %v10971_v30, 0  ;;  %v4452_v37 = vshrl.u32 %v4451_v39, 23  ;;  %v4287_v22 = vsel %vm4273_vm0, %v4284_v38, %v4286_v27 }
 0x4a1   : > { %v4405_v25 = vadd.s32 536870912, %v4404_v63  ;;  %v11032_v54 = vmul.u32.u64.low %v10961_v5, %v4283_v2  ;;  %v11033_v43 = vmul.u32.u64.high %v10961_v5, %v4283_v2, %v11032_v54  ;;  %v4279_v15 = vsel %vm4273_vm0, %v4276_v21, %v4278_v61 }
 0x4a2   : > { %v11039_v57 = vmul.u32.u64.low %v10961_v5, %v4287_v22  ;;  %v11040_v20 = vmul.u32.u64.high %v10961_v5, %v4287_v22, %v11039_v57  ;;  %v4564_v13 = vsel %vm4563_vm15, %v10971_v30, 0  ;;  %v11047_v19 = vshll.u32 %v4560_v0, 8 }
 0x4a3   : > { %v11043_v51 = vshrl.u32 %v4405_v25, 30  ;;  %v4566_v39 = vand.u32 31, %v4564_v13  ;;  %v12670_v48 = vand.u32 2147483647, %v10955_v50  ;;  %v6293_v62 = vadd.s32 4294967169, %v4452_v37 }
 0x4a4   : > { %v4295_v14 = vmul.u32 %v10961_v5, %v4279_v15  ;;  %v4298_v41 = vadd.s32 1, %v11033_v43  ;;  %vm4297_vm12 = vc.u32 %v11040_v20, %v11032_v54  ;;  %v4565_v30 = vshrl.u32 %v4564_v13, 5 }
 0x4a5   : > { %12995 = vst [vmem:[#allocation40_spill] sm:$0xff] %v11043_v51  ;;  %v4407_v44 = vshll.u32 %v11043_v51, 30  ;;  %v4567_v55 = vsub.s32 32, %v4566_v39  ;;  %v4569_v53 = vshll.u32 %v12759_v12, %v4566_v39  ;;  %v4572_v52 = vshll.u32 %v12763_v32, %v4566_v39 }
 0x4a6   : > { %v4299_v9 = vsel %vm4297_vm12, %v4298_v41, %v11033_v43  ;;  %v4575_v46 = vshll.u32 %v12767_v47, %v4566_v39  ;;  %v4578_v24 = vshll.u32 %v12749_v59, %v4566_v39  ;;  %v4581_v3 = vshll.u32 %v12752_v23, %v4566_v39 }
 0x4a7   : > { %v11057_v0 = vsub.s32 %v4404_v63, %v4407_v44  ;;  %v4570_v7 = vshrl.u32 %v12763_v32, %v4567_v55  ;;  %v4300_v5 = vadd.s32 %v4299_v9, %v4295_v14  ;;  %v4573_v60 = vshrl.u32 %v12767_v47, %v4567_v55 }
 0x4a8   : > { %v4576_v33 = vshrl.u32 %v12749_v59, %v4567_v55  ;;  %v4579_v58 = vshrl.u32 %v12752_v23, %v4567_v55  ;;  %v4582_v63 = vshrl.u32 %v12744_v18, %v4567_v55  ;;  %v4568_v11 = vshrl.u32 %v12759_v12, %v4567_v55 }
 0x4a9   : > { %v4410_v8 = vsub.s32 0, %v11057_v0  ;;  %v4571_v21 = vor.u32 %v4570_v7, %v4569_v53  ;;  %v4301_v29 = vadd.s32 536870912, %v4300_v5  ;;  %v4574_v49 = vor.u32 %v4573_v60, %v4572_v52 }
 0x4aa   : > { %v4577_v38 = vor.u32 %v4576_v33, %v4575_v46  ;;  %v4580_v42 = vor.u32 %v4579_v58, %v4578_v24  ;;  %v4458_v2 = vadd.s32 1, %v6293_v62  ;;  %v4583_v37 = vor.u32 %v4582_v63, %v4581_v3 }
 0x4ab   : > { %v6290_v61 = vmin.u32 %v4410_v8, %v11057_v0  ;;  %v11071_v27 = vshrl.u32 %v4301_v29, 30  ;;  %vm4584_vm4 = vcmp.lt.s32.totalorder %v4565_v30, 1  ;;  %vm4587_vm13 = vcmp.lt.s32.totalorder %v4565_v30, 4 }
 0x4ac   : > { %vm4585_vm3 = vcmp.lt.s32.totalorder %v4565_v30, 2  ;;  %v4589_v22 = vsel %vm4587_vm13, %v4577_v38, 2102212464  ;;  %v4592_v43 = vsel %vm4584_vm4, %v4571_v21, %v4574_v49  ;;  %vm4586_vm1 = vcmp.lt.s32.totalorder %v4565_v30, 3 }
 0x4ad   : > { %v4412_v25 = vclz %v6290_v61  ;;  %v4303_v15 = vshll.u32 %v11071_v27, 30  ;;  %v4593_v57 = vsel %vm4587_vm13, %v4580_v42, 920167782  ;;  %v4596_v13 = vsel %vm4584_vm4, %v4574_v49, %v4577_v38 }
 0x4ae   : > { %v4588_v44 = vsel %vm4584_vm4, %v4568_v11, %v4571_v21  ;;  %v4594_v14 = vsel %vm4586_vm1, %v4577_v38, %v4593_v57  ;;  %v4597_v41 = vsel %vm4587_vm13, %v4583_v37, 1326507024  ;;  %v4590_v62 = vsel %vm4586_vm1, %v4574_v49, %v4589_v22  ;;  %v11103_v57 = vpop.f32.mrb[10].mxu1 }
 0x4af   : > { %v6291_v39 = vadd.s32 4294967294, %v4412_v25  ;;  %v11074_v55 = vsub.s32 %v4300_v5, %v4303_v15  ;;  %v4595_v53 = vsel %vm4585_vm3, %v4592_v43, %v4594_v14  ;;  %v4598_v52 = vsel %vm4586_vm1, %v4580_v42, %v4597_v41 }
 0x4b0   : > { %v4599_v9 = vsel %vm4585_vm3, %v4596_v13, %v4598_v52  ;;  %v11079_v7 = vmul.u32.u64.low %v11047_v19, %v4595_v53  ;;  %v11080_v46 = vmul.u32.u64.high %v11047_v19, %v4595_v53, %v11079_v7  ;;  %v4591_v21 = vsel %vm4585_vm3, %v4588_v44, %v4590_v62 }
 0x4b1   : > { %vm6292_vm9 = vcmp.lt.s32.totalorder %v6291_v39, 0  ;;  %v4306_v33 = vsub.s32 0, %v11074_v55  ;;  %v11085_v24 = vmul.u32.u64.low %v11047_v19, %v4599_v9  ;;  %v11086_v8 = vmul.u32.u64.high %v11047_v19, %v4599_v9, %v11085_v24 }
 0x4b2   : > { %v4415_v60 = vsel %vm6292_vm9, 0, %v6291_v39  ;;  %vm4459_vm5 = vcmp.gt.s32.totalorder %v4458_v2, 0  ;;  %v4610_v38 = vadd.s32 1, %v11080_v46  ;;  %v4455_v63 = vand.u32 8388607, %v12670_v48 }
 0x4b3   : > { %v4420_v5 = vsub.s32 4294967266, %v4415_v60  ;;  %v6286_v58 = vmin.u32 %v4306_v33, %v11074_v55  ;;  %v4460_v3 = vsel %vm4459_vm5, %v4458_v2, 0  ;;  %v4416_v29 = vsub.s32 32, %v4415_v60 }
 0x4b4   : > { %v4607_v11 = vmul.u32 %v11047_v19, %v4591_v21  ;;  %vm4609_vm10 = vc.u32 %v11086_v8, %v11079_v7  ;;  %v4462_v42 = vand.u32 31, %v4460_v3  ;;  %v4400_v30 = vadd.s32 %v11003_v45, %v11000_v35 }
 0x4b5   : > { %v4421_v49 = vadd.s32 127, %v4420_v5  ;;  %v4308_v61 = vclz %v6286_v58  ;;  %v4611_v2 = vsel %vm4609_vm10, %v4610_v38, %v11080_v46  ;;  %v11101_v25 = vadd.f32 %v10946_v4, %v10925_v16 }
 0x4b6   : > { %v4612_v43 = vadd.s32 %v4611_v2, %v4607_v11  ;;  %v4463_v15 = vsub.s32 32, %v4462_v42  ;;  %v4418_v19 = vshrl.u32 %v4400_v30, %v4416_v29  ;;  %v4456_v44 = vor.u32 8388608, %v4455_v63 }
 0x4b7   : > { %v4422_v37 = vshll.u32 %v4421_v49, 23  ;;  %v6287_v22 = vadd.s32 4294967294, %v4308_v61  ;;  %v4417_v14 = vshll.u32 %v11057_v0, %v4415_v60  ;;  %v12669_v35 = vand.u32 2147483647, %v11101_v25 }
 0x4b8   : > { %v4613_v39 = vadd.s32 536870912, %v4612_v43  ;;  %v4763_v45 = vand.u32 2139095040, %v11101_v25  ;;  %v4461_v4 = vshrl.u32 %v4460_v3, 5  ;;  %v4466_v62 = vshrl.u32 %v12763_v32, %v4463_v15 }
 0x4b9   : > { %v4423_v13 = vor.u32 4788187, %v4422_v37  ;;  %vm6288_vm2 = vcmp.lt.s32.totalorder %v6287_v22, 0  ;;  %v4469_v53 = vshrl.u32 %v12767_v47, %v4463_v15  ;;  %v4419_v52 = vor.u32 %v4418_v19, %v4417_v14 }
 0x4ba   : > { %v11108_v41 = vshrl.u32 %v4613_v39, 30  ;;  %v4465_v9 = vshll.u32 %v12759_v12, %v4462_v42  ;;  %v4468_v46 = vshll.u32 %v12763_v32, %v4462_v42  ;;  %v4472_v33 = vshrl.u32 %v12749_v59, %v4463_v15 }
 0x4bb   : > { %v4424_v0 = vand.u32 2147483647, %v4423_v13  ;;  %v11115_v60 = vsel %vm6288_vm2, 0, %v6287_v22  ;;  %v4471_v5 = vshll.u32 %v12767_v47, %v4462_v42  ;;  %v4474_v21 = vshll.u32 %v12749_v59, %v4462_v42 }
 0x4bc   : > { %12996 = vst [vmem:[#allocation36_spill] sm:$0xff] %v11108_v41  ;;  %v4615_v24 = vshll.u32 %v11108_v41, 30  ;;  %v4475_v58 = vshrl.u32 %v12752_v23, %v4463_v15  ;;  %v4477_v3 = vshll.u32 %v12752_v23, %v4462_v42  ;;  %v4478_v29 = vshrl.u32 %v12744_v18, %v4463_v15 }
 0x4bd   : > { %v4296_v49 = vadd.s32 %v11032_v54, %v11040_v20  ;;  %v4467_v63 = vor.u32 %v4466_v62, %v4465_v9  ;;  %v4470_v61 = vor.u32 %v4469_v53, %v4468_v46  ;;  %v4426_v11 = vcvt.s32.f32 %v4419_v52  ;;  %v11131_v54 = vpop.f32.mrb[11].mxu1 }
 0x4be   : > { %v11125_v38 = vsub.s32 %v4612_v43, %v4615_v24  ;;  %v4473_v30 = vor.u32 %v4472_v33, %v4471_v5  ;;  %v4476_v37 = vor.u32 %v4475_v58, %v4474_v21  ;;  %v4479_v2 = vor.u32 %v4478_v29, %v4477_v3 }
 0x4bf   : > { %v4316_v22 = vsub.s32 4294967266, %v11115_v60  ;;  %v4496_v13 = vshll.u32 %v4456_v44, 8  ;;  %v4764_v39 = vshrl.u32 %v4763_v45, 23  ;;  %v4427_v42 = vmul.f32 %v4426_v11, %v4424_v0 }
 0x4c0   : > { %v4618_v19 = vsub.s32 0, %v11125_v38  ;;  %v4312_v14 = vsub.s32 32, %v11115_v60  ;;  %v4464_v26 = vshrl.u32 %v12759_v12, %v4463_v15  ;;  %vm4480_vm7 = vcmp.lt.s32.totalorder %v4461_v4, 1 }
 0x4c1   : > { %vm4482_vm11 = vcmp.lt.s32.totalorder %v4461_v4, 3  ;;  %vm4483_vm0 = vcmp.lt.s32.totalorder %v4461_v4, 4  ;;  %v4488_v43 = vsel %vm4480_vm7, %v4467_v63, %v4470_v61  ;;  %v4492_v52 = vsel %vm4480_vm7, %v4470_v61, %v4473_v30 }
 0x4c2   : > { %v6298_v20 = vmin.u32 %v4618_v19, %v11125_v38  ;;  %v4485_v62 = vsel %vm4483_vm0, %v4473_v30, 2102212464  ;;  %v4489_v53 = vsel %vm4483_vm0, %v4476_v37, 920167782  ;;  %v4493_v44 = vsel %vm4483_vm0, %v4479_v2, 1326507024 }
 0x4c3   : > { %v4317_v45 = vadd.s32 127, %v4316_v22  ;;  %vm4481_vm6 = vcmp.lt.s32.totalorder %v4461_v4, 2  ;;  %v4490_v46 = vsel %vm4482_vm11, %v4473_v30, %v4489_v53  ;;  %v4428_v15 = vxor.u32 2147483648, %v4427_v42 }
 0x4c4   : > { %v4620_v9 = vclz %v6298_v20  ;;  %v4491_v33 = vsel %vm4481_vm6, %v4488_v43, %v4490_v46  ;;  %v4494_v0 = vsel %vm4482_vm11, %v4476_v37, %v4493_v44  ;;  %v6305_v24 = vadd.s32 4294967169, %v4764_v39 }
 0x4c5   : > { %v4484_v21 = vsel %vm4480_vm7, %v4464_v26, %v4467_v63  ;;  %v4486_v58 = vsel %vm4482_vm11, %v4470_v61, %v4485_v62  ;;  %v4495_v3 = vsel %vm4481_vm6, %v4492_v52, %v4494_v0  ;;  %vm4346_vm8 = vcmp.lt.s32.totalorder %v10928_v1, 0 }
 0x4c6   : > { %v6299_v5 = vadd.s32 4294967294, %v4620_v9  ;;  %v11142_v29 = vmul.u32.u64.low %v4496_v13, %v4495_v3  ;;  %v11143_v11 = vmul.u32.u64.high %v4496_v13, %v4495_v3, %v11142_v29  ;;  %v4770_v30 = vadd.s32 1, %v6305_v24 }
 0x4c7   : > { %v11145_v2 = vmul.u32.u64.low %v4496_v13, %v4491_v33  ;;  %v11146_v22 = vmul.u32.u64.high %v4496_v13, %v4491_v33, %v11145_v2  ;;  %v4314_v19 = vshrl.u32 %v4296_v49, %v4312_v14  ;;  %v4487_v37 = vsel %vm4481_vm6, %v4484_v21, %v4486_v58 }
 0x4c8   : > { %vm6300_vm14 = vcmp.lt.s32.totalorder %v6299_v5, 0  ;;  %v4429_v26 = vsel %vm4346_vm8, %v4428_v15, %v4427_v42  ;;  %v4318_v63 = vshll.u32 %v4317_v45, 23  ;;  %v4767_v61 = vand.u32 8388607, %v12669_v35 }
 0x4c9   : > { %vm4771_vm15 = vcmp.gt.s32.totalorder %v4770_v30, 0  ;;  %v4313_v39 = vshll.u32 %v11074_v55, %v11115_v60  ;;  %vm4505_vm12 = vc.u32 %v11143_v11, %v11145_v2  ;;  %v4506_v20 = vadd.s32 1, %v11146_v22 }
 0x4ca   : > { %v4772_v49 = vsel %vm4771_vm15, %v4770_v30, 0  ;;  %vm11162_vm4 = vcmp.le.f32.partialorder %v4344_v36, 0.7853982  ;;  %v12997_v4 = vmov 0  ;;  %v11166_v42 = vsel %vm6300_vm14, 0, %v6299_v5 }
 0x4cb   : > { %v12998_v4 = vsel %vm11162_vm4, 4294967295, %v12997_v4  ;;  %v4503_v14 = vmul.u32 %v4496_v13, %v4487_v37  ;;  %v4774_v43 = vand.u32 31, %v4772_v49  ;;  %v11171_v55 = vsel %vm11162_vm4, %v10928_v1, %v4429_v26 }
 0x4cc   : > { %12999 = vst [vmem:[#allocation9_spill] sm:$0xff] %v12998_v4  ;;  %v11173_v60 = vor.u32 %v4314_v19, %v4313_v39  ;;  %v4608_v62 = vadd.s32 %v11079_v7, %v11086_v8  ;;  %v4507_v53 = vsel %vm4505_vm12, %v4506_v20, %v11146_v22  ;;  %v11178_v36 = vor.u32 4788187, %v4318_v63 }
 0x4cd   : > { %v4508_v52 = vadd.s32 %v4507_v53, %v4503_v14  ;;  %v4768_v44 = vor.u32 8388608, %v4767_v61  ;;  %v4775_v45 = vsub.s32 32, %v4774_v43  ;;  %v4628_v13 = vsub.s32 4294967266, %v11166_v42 }
 0x4ce   : > { %v4773_v9 = vshrl.u32 %v4772_v49, 5  ;;  %v4777_v46 = vshll.u32 %v12759_v12, %v4774_v43  ;;  %v11184_v15 = vadd.f32 %v10925_v16, %v10948_v56  ;;  %v4780_v0 = vshll.u32 %v12763_v32, %v4774_v43 }
 0x4cf   : > { %v4509_v33 = vadd.s32 536870912, %v4508_v52  ;;  %v4783_v7 = vshll.u32 %v12767_v47, %v4774_v43  ;;  %v4786_v8 = vshll.u32 %v12749_v59, %v4774_v43  ;;  %v4778_v24 = vshrl.u32 %v12763_v32, %v4775_v45 }
 0x4d0   : > { %v4781_v5 = vshrl.u32 %v12767_v47, %v4775_v45  ;;  %v4784_v21 = vshrl.u32 %v12749_v59, %v4775_v45  ;;  %v4787_v58 = vshrl.u32 %v12752_v23, %v4775_v45  ;;  %v4789_v56 = vshll.u32 %v12752_v23, %v4774_v43 }
 0x4d1   : > { %v11193_v3 = vshrl.u32 %v4509_v33, 30  ;;  %v4790_v29 = vshrl.u32 %v12744_v18, %v4775_v45  ;;  %v11199_v22 = vadd.f32 %v10959_v28, %v10925_v16  ;;  %v4779_v30 = vor.u32 %v4778_v24, %v4777_v46 }
 0x4d2   : > { %v4782_v19 = vor.u32 %v4781_v5, %v4780_v0  ;;  %v4785_v37 = vor.u32 %v4784_v21, %v4783_v7  ;;  %v4788_v26 = vor.u32 %v4787_v58, %v4786_v8  ;;  %v4624_v63 = vsub.s32 32, %v11166_v42 }
 0x4d3   : > { %13000 = vst [vmem:[#allocation41_spill] sm:$0xff] %v11193_v3  ;;  %v4629_v61 = vadd.s32 127, %v4628_v13  ;;  %v4511_v39 = vshll.u32 %v11193_v3, 30  ;;  %v4791_v20 = vor.u32 %v4790_v29, %v4789_v56  ;;  %vm4792_vm13 = vcmp.lt.s32.totalorder %v4773_v9, 1 }
 0x4d4   : > { %vm4795_vm3 = vcmp.lt.s32.totalorder %v4773_v9, 4  ;;  %v4808_v49 = vshll.u32 %v4768_v44, 8  ;;  %v12672_v14 = vand.u32 2147483647, %v11184_v15  ;;  %v4776_v28 = vshrl.u32 %v12759_v12, %v4775_v45 }
 0x4d5   : > { %v11204_v43 = vsub.s32 %v4508_v52, %v4511_v39  ;;  %v4797_v53 = vsel %vm4795_vm3, %v4785_v37, 2102212464  ;;  %v4800_v46 = vsel %vm4792_vm13, %v4779_v30, %v4782_v19  ;;  %vm4794_vm1 = vcmp.lt.s32.totalorder %v4773_v9, 3 }
 0x4d6   : > { %v4801_v33 = vsel %vm4795_vm3, %v4788_v26, 920167782  ;;  %v4804_v0 = vsel %vm4792_vm13, %v4782_v19, %v4785_v37  ;;  %v4805_v7 = vsel %vm4795_vm3, %v4791_v20, 1326507024  ;;  %vm4793_vm9 = vcmp.lt.s32.totalorder %v4773_v9, 2 }
 0x4d7   : > { %v4514_v13 = vsub.s32 0, %v11204_v43  ;;  %v4796_v8 = vsel %vm4792_vm13, %v4776_v28, %v4779_v30  ;;  %v4802_v24 = vsel %vm4794_vm1, %v4785_v37, %v4801_v33  ;;  %v4798_v5 = vsel %vm4794_vm1, %v4782_v19, %v4797_v53 }
 0x4d8   : > { %v4803_v21 = vsel %vm4793_vm9, %v4800_v46, %v4802_v24  ;;  %v4806_v44 = vsel %vm4794_vm1, %v4788_v26, %v4805_v7  ;;  %v4659_v58 = vand.u32 2139095040, %v11184_v15  ;;  %v4626_v39 = vshrl.u32 %v4608_v62, %v4624_v63 }
 0x4d9   : > { %v6294_v52 = vmin.u32 %v4514_v13, %v11204_v43  ;;  %v4807_v56 = vsel %vm4793_vm9, %v4804_v0, %v4806_v44  ;;  %v11210_v45 = vmul.u32.u64.low %v4808_v49, %v4803_v21  ;;  %v11211_v29 = vmul.u32.u64.high %v4808_v49, %v4803_v21, %v11210_v45  ;;  %v11233_v13 = vpop.f32.mrb[12].mxu1 }
 0x4da   : > { %v11214_v35 = vmul.u32.u64.low %v4808_v49, %v4807_v56  ;;  %v11215_v20 = vmul.u32.u64.high %v4808_v49, %v4807_v56, %v11214_v35  ;;  %v4660_v48 = vshrl.u32 %v4659_v58, 23  ;;  %v4630_v9 = vshll.u32 %v4629_v61, 23  ;;  %v11273_v6 = vpop.f32.mrb[13].mxu1 }
 0x4db   : > { %v4516_v30 = vclz %v6294_v52  ;;  %v4799_v37 = vsel %vm4793_vm9, %v4796_v8, %v4798_v5  ;;  %v4663_v19 = vand.u32 8388607, %v12672_v14  ;;  %v4625_v26 = vshll.u32 %v11125_v38, %v11166_v42 }
 0x4dc   : > { %v6301_v28 = vadd.s32 4294967169, %v4660_v48  ;;  %v12671_v53 = vand.u32 2147483647, %v11199_v22  ;;  %v4971_v46 = vand.u32 2139095040, %v11199_v22  ;;  %v4320_v62 = vand.u32 2147483647, %v11178_v36 }
 0x4dd   : > { %v4322_v63 = vcvt.s32.f32 %v11173_v60  ;;  %v6295_v35 = vadd.s32 4294967294, %v4516_v30  ;;  %v4818_v61 = vadd.s32 1, %v11211_v29  ;;  %v11226_v33 = vor.u32 %v4626_v39, %v4625_v26 }
 0x4de   : > { %v4815_v0 = vmul.u32 %v4808_v49, %v4799_v37  ;;  %vm4817_vm5 = vc.u32 %v11215_v20, %v11210_v45  ;;  %v4666_v7 = vadd.s32 1, %v6301_v28  ;;  %v11230_v38 = vor.u32 4788187, %v4630_v9 }
 0x4df   : > { %vm6296_vm10 = vcmp.lt.s32.totalorder %v6295_v35, 0  ;;  %v4819_v48 = vsel %vm4817_vm5, %v4818_v61, %v11211_v29  ;;  %v4664_v42 = vor.u32 8388608, %v4663_v19  ;;  %v4972_v60 = vshrl.u32 %v4971_v46, 23 }
 0x4e0   : > { %v4820_v36 = vadd.s32 %v4819_v48, %v4815_v0  ;;  %vm4667_vm2 = vcmp.gt.s32.totalorder %v4666_v7, 0  ;;  %v11237_v8 = vand.u32 8388607, %v12671_v53  ;;  %7082 = vcosq.f32 %v11171_v55 }
 0x4e1   : > { %v4668_v49 = vsel %vm4667_vm2, %v4666_v7, 0  ;;  %v11242_v24 = vadd.f32 %v10925_v16, %v10963_v34  ;;  %v11244_v5 = vmul.f32 %v4322_v63, %v4320_v62  ;;  %v11246_v21 = vsel %vm6296_vm10, 0, %v6295_v35 }
 0x4e2   : > { %v4821_v44 = vadd.s32 536870912, %v4820_v36  ;;  %v4670_v58 = vand.u32 31, %v4668_v49  ;;  %v4504_v29 = vadd.s32 %v11145_v2, %v11143_v11  ;;  %v11252_v39 = vshll.u32 %v4664_v42, 8 }
 0x4e3   : > { %v6313_v16 = vadd.s32 4294967169, %v4972_v60  ;;  %v4520_v37 = vsub.s32 32, %v11246_v21  ;;  %v4669_v19 = vshrl.u32 %v4668_v49, 5  ;;  %v4867_v28 = vand.u32 2139095040, %v11242_v24 }
 0x4e4   : > { %v11254_v9 = vshrl.u32 %v4821_v44, 30  ;;  %v4671_v30 = vsub.s32 32, %v4670_v58  ;;  %v4673_v26 = vshll.u32 %v12759_v12, %v4670_v58  ;;  %v4676_v11 = vshll.u32 %v12763_v32, %v4670_v58 }
 0x4e5   : > { %v4679_v63 = vshll.u32 %v12767_v47, %v4670_v58  ;;  %v4682_v61 = vshll.u32 %v12749_v59, %v4670_v58  ;;  %v4524_v7 = vsub.s32 4294967266, %v11246_v21  ;;  %v4685_v53 = vshll.u32 %v12752_v23, %v4670_v58 }
 0x4e6   : > { %13001 = vst [vmem:[#allocation43_spill] sm:$0xff] %v11254_v9  ;;  %v4823_v46 = vshll.u32 %v11254_v9, 30  ;;  %v4674_v62 = vshrl.u32 %v12763_v32, %v4671_v30  ;;  %v4677_v2 = vshrl.u32 %v12767_v47, %v4671_v30  ;;  %v4680_v35 = vshrl.u32 %v12749_v59, %v4671_v30 }
 0x4e7   : > { %v4683_v0 = vshrl.u32 %v12752_v23, %v4671_v30  ;;  %v4686_v14 = vshrl.u32 %v12744_v18, %v4671_v30  ;;  %v4522_v34 = vshrl.u32 %v4504_v29, %v4520_v37  ;;  %v4672_v52 = vshrl.u32 %v12759_v12, %v4671_v30 }
 0x4e8   : > { %v11269_v48 = vsub.s32 %v4820_v36, %v4823_v46  ;;  %v4675_v42 = vor.u32 %v4674_v62, %v4673_v26  ;;  %v4678_v60 = vor.u32 %v4677_v2, %v4676_v11  ;;  %v4681_v49 = vor.u32 %v4680_v35, %v4679_v63 }
 0x4e9   : > { %v4684_v44 = vor.u32 %v4683_v0, %v4682_v61  ;;  %v4978_v9 = vadd.s32 1, %v6313_v16  ;;  %v4687_v36 = vor.u32 %v4686_v14, %v4685_v53  ;;  %vm4688_vm7 = vcmp.lt.s32.totalorder %v4669_v19, 1 }
 0x4ea   : > { %v4826_v56 = vsub.s32 0, %v11269_v48  ;;  %v11277_v41 = vpop.eup %7082  ;;  %vm4690_vm11 = vcmp.lt.s32.totalorder %v4669_v19, 3  ;;  %vm4691_vm0 = vcmp.lt.s32.totalorder %v4669_v19, 4  ;;  %v4696_v58 = vsel %vm4688_vm7, %v4675_v42, %v4678_v60 }
 0x4eb   : > { %13002 = vst [vmem:[#allocation52_spill] sm:$0xff] %v11277_v41  ;;  %v4693_v46 = vsel %vm4691_vm0, %v4681_v49, 2102212464  ;;  %v4697_v62 = vsel %vm4691_vm0, %v4684_v44, 920167782  ;;  %v4525_v11 = vadd.s32 127, %v4524_v7  ;;  %v4700_v29 = vsel %vm4688_vm7, %v4678_v60, %v4681_v49 }
 0x4ec   : > { %v6306_v26 = vmin.u32 %v4826_v56, %v11269_v48  ;;  %vm4689_vm6 = vcmp.lt.s32.totalorder %v4669_v19, 2  ;;  %v4698_v2 = vsel %vm4690_vm11, %v4681_v49, %v4697_v62  ;;  %v4692_v63 = vsel %vm4688_vm7, %v4672_v52, %v4675_v42 }
 0x4ed   : > { %v4699_v30 = vsel %vm4689_vm6, %v4696_v58, %v4698_v2  ;;  %v4701_v16 = vsel %vm4691_vm0, %v4687_v36, 1326507024  ;;  %v4694_v35 = vsel %vm4690_vm11, %v4678_v60, %v4693_v46  ;;  %v4521_v56 = vshll.u32 %v11204_v43, %v11246_v21 }
 0x4ee   : > { %v4828_v37 = vclz %v6306_v26  ;;  %v4702_v61 = vsel %vm4690_vm11, %v4684_v44, %v4701_v16  ;;  %v11282_v14 = vmul.u32.u64.low %v11252_v39, %v4699_v30  ;;  %v11283_v53 = vmul.u32.u64.high %v11252_v39, %v4699_v30, %v11282_v14 }
 0x4ef   : > { %v4703_v0 = vsel %vm4689_vm6, %v4700_v29, %v4702_v61  ;;  %vm4979_vm14 = vcmp.gt.s32.totalorder %v4978_v9, 0  ;;  %v4868_v7 = vshrl.u32 %v4867_v28, 23  ;;  %v4526_v49 = vshll.u32 %v4525_v11, 23 }
 0x4f0   : > { %v11290_v52 = vmul.u32.u64.low %v11252_v39, %v4703_v0  ;;  %v11291_v42 = vmul.u32.u64.high %v11252_v39, %v4703_v0, %v11290_v52  ;;  %v4980_v36 = vsel %vm4979_vm14, %v4978_v9, 0  ;;  %v11293_v60 = vor.u32 %v4522_v34, %v4521_v56 }
 0x4f1   : > { %v6307_v44 = vadd.s32 4294967294, %v4828_v37  ;;  %v4695_v26 = vsel %vm4689_vm6, %v4692_v63, %v4694_v35  ;;  %v4982_v46 = vand.u32 31, %v4980_v36  ;;  %7084 = vsinq.f32 %v11171_v55 }
 0x4f2   : > { %v4714_v43 = vadd.s32 1, %v11283_v53  ;;  %v13003_v28 = vand.u32 2147483647, %v11230_v38  ;;  %v13004_v58 = vcvt.s32.f32 %v11226_v33  ;;  %v12678_v9 = vand.u32 2147483647, %v11242_v24 }
 0x4f3   : > { %v4983_v11 = vsub.s32 32, %v4982_v46  ;;  %v11306_v34 = vor.u32 4788187, %v4526_v49  ;;  %v4711_v19 = vmul.u32 %v11252_v39, %v4695_v26  ;;  %vm4713_vm15 = vc.u32 %v11291_v42, %v11282_v14 }
 0x4f4   : > { %v11303_v62 = vmul.f32 %v13004_v58, %v13003_v28  ;;  %v13005_v55 = vor.u32 8388608, %v11237_v8  ;;  %v4530_v38 = vcvt.s32.f32 %v11293_v60  ;;  %vm6308_vm12 = vcmp.lt.s32.totalorder %v6307_v44, 0 }
 0x4f5   : > { %v4715_v33 = vsel %vm4713_vm15, %v4714_v43, %v11283_v53  ;;  %v6309_v29 = vadd.s32 4294967169, %v4868_v7  ;;  %v4981_v63 = vshrl.u32 %v4980_v36, 5  ;;  %v4986_v30 = vshrl.u32 %v12763_v32, %v4983_v11 }
 0x4f6   : > { %v11313_v2 = vshll.u32 %v13005_v55, 8  ;;  %v4716_v37 = vadd.s32 %v4715_v33, %v4711_v19  ;;  %v4989_v16 = vshrl.u32 %v12767_v47, %v4983_v11  ;;  %v4985_v39 = vshll.u32 %v12759_v12, %v4982_v46 }
 0x4f7   : > { %v4988_v35 = vshll.u32 %v12763_v32, %v4982_v46  ;;  %v4991_v8 = vshll.u32 %v12767_v47, %v4982_v46  ;;  %v4992_v61 = vshrl.u32 %v12749_v59, %v4983_v11  ;;  %v4528_v56 = vand.u32 2147483647, %v11306_v34 }
 0x4f8   : > { %v4717_v0 = vadd.s32 536870912, %v4716_v37  ;;  %v4994_v53 = vshll.u32 %v12749_v59, %v4982_v46  ;;  %v4995_v7 = vshrl.u32 %v12752_v23, %v4983_v11  ;;  %v11326_v49 = vsel %vm6308_vm12, 0, %v6307_v44 }
 0x4f9   : > { %v4987_v52 = vor.u32 %v4986_v30, %v4985_v39  ;;  %v4990_v36 = vor.u32 %v4989_v16, %v4988_v35  ;;  %v4993_v60 = vor.u32 %v4992_v61, %v4991_v8  ;;  %v4997_v28 = vshll.u32 %v12752_v23, %v4982_v46 }
 0x4fa   : > { %v11328_v26 = vshrl.u32 %v4717_v0, 30  ;;  %v4996_v43 = vor.u32 %v4995_v7, %v4994_v53  ;;  %v4998_v58 = vshrl.u32 %v12744_v18, %v4983_v11  ;;  %v4984_v19 = vshrl.u32 %v12759_v12, %v4983_v11 }
 0x4fb   : > { %vm5000_vm13 = vcmp.lt.s32.totalorder %v4981_v63, 1  ;;  %vm5003_vm3 = vcmp.lt.s32.totalorder %v4981_v63, 4  ;;  %v4874_v34 = vadd.s32 1, %v6309_v29  ;;  %v11333_v55 = vpop.eup %7084  ;;  %vm5001_vm1 = vcmp.lt.s32.totalorder %v4981_v63, 2 }
 0x4fc   : > { %13006 = vst [vmem:[#allocation53_spill] sm:$0xff] %v11328_v26  ;;  %13007 = vst [vmem:[#allocation50_spill] sm:$0xff] %v11333_v55  ;;  %v4719_v44 = vshll.u32 %v11328_v26, 30  ;;  %v4999_v33 = vor.u32 %v4998_v58, %v4997_v28  ;;  %v5005_v30 = vsel %vm5003_vm3, %v4993_v60, 2102212464  ;;  %vm5002_vm9 = vcmp.lt.s32.totalorder %v4981_v63, 3 }
 0x4fd   : > { %v5004_v16 = vsel %vm5000_vm13, %v4984_v19, %v4987_v52  ;;  %v5008_v39 = vsel %vm5000_vm13, %v4987_v52, %v4990_v36  ;;  %v5009_v46 = vsel %vm5003_vm3, %v4996_v43, 920167782  ;;  %v5006_v8 = vsel %vm5002_vm9, %v4990_v36, %v5005_v30 }
 0x4fe   : > { %v11338_v35 = vsub.s32 %v4716_v37, %v4719_v44  ;;  %v5010_v11 = vsel %vm5002_vm9, %v4993_v60, %v5009_v46  ;;  %v5012_v61 = vsel %vm5000_vm13, %v4990_v36, %v4993_v60  ;;  %v4832_v29 = vsub.s32 32, %v11326_v49  ;;  %v11354_v44 = vpop.f32.mrb[14].mxu1 }
 0x4ff   : > { %v5011_v0 = vsel %vm5001_vm1, %v5008_v39, %v5010_v11  ;;  %v5013_v53 = vsel %vm5003_vm3, %v4999_v33, 1326507024  ;;  %v4871_v7 = vand.u32 8388607, %v12678_v9  ;;  %v4836_v37 = vsub.s32 4294967266, %v11326_v49 }
 0x500   : > { %v4722_v28 = vsub.s32 0, %v11338_v35  ;;  %v5014_v58 = vsel %vm5002_vm9, %v4996_v43, %v5013_v53  ;;  %v11347_v52 = vmul.u32.u64.low %v11313_v2, %v5011_v0  ;;  %v11348_v19 = vmul.u32.u64.high %v11313_v2, %v5011_v0, %v11347_v52  ;;  %v11372_v53 = vld [vmem:[%s12525_s6] ss:$0 sm:$0xff] }
 0x501   : > { %v5007_v36 = vsel %vm5001_vm1, %v5004_v16, %v5006_v8  ;;  %v5015_v60 = vsel %vm5001_vm1, %v5012_v61, %v5014_v58  ;;  %vm4875_vm5 = vcmp.gt.s32.totalorder %v4874_v34, 0  ;;  %v11362_v11 = vmul.f32 %v4530_v38, %v4528_v56 }
 0x502   : > { %v6302_v33 = vmin.u32 %v4722_v28, %v11338_v35  ;;  %v11358_v30 = vmul.u32.u64.low %v11313_v2, %v5015_v60  ;;  %v11359_v39 = vmul.u32.u64.high %v11313_v2, %v5015_v60, %v11358_v30  ;;  %v4876_v43 = vsel %vm4875_vm5, %v4874_v34, 0 }
 0x503   : > { %v4816_v0 = vadd.s32 %v11210_v45, %v11215_v20  ;;  %v4878_v16 = vand.u32 31, %v4876_v43  ;;  %v4833_v63 = vshll.u32 %v11269_v48, %v11326_v49  ;;  %v5026_v61 = vadd.s32 1, %v11348_v19 }
 0x504   : > { %v4724_v8 = vclz %v6302_v33  ;;  %v11376_v34 = vadd.f32 %v11372_v53, %v10983_v10  ;;  %v11378_v56 = vadd.s32 127, %v4836_v37  ;;  %v5023_v45 = vmul.u32 %v11313_v2, %v5007_v36 }
 0x505   : > { %v4834_v38 = vshrl.u32 %v4816_v0, %v4832_v29  ;;  %v4879_v20 = vsub.s32 32, %v4878_v16  ;;  %vm5025_vm10 = vc.u32 %v11359_v39, %v11347_v52  ;;  %v4872_v48 = vor.u32 8388608, %v4871_v7 }
 0x506   : > { %13008 = vst [vmem:[#allocation6_spill] sm:$0xff] %v11376_v34  ;;  %v6303_v28 = vadd.s32 4294967294, %v4724_v8  ;;  %v4881_v49 = vshll.u32 %v12759_v12, %v4878_v16  ;;  %v5027_v58 = vsel %vm5025_vm10, %v5026_v61, %v11348_v19  ;;  %v4884_v10 = vshll.u32 %v12763_v32, %v4878_v16 }
 0x507   : > { %v4882_v60 = vshrl.u32 %v12763_v32, %v4879_v20  ;;  %v4885_v29 = vshrl.u32 %v12767_v47, %v4879_v20  ;;  %v5028_v37 = vadd.s32 %v5027_v58, %v5023_v45  ;;  %v4888_v2 = vshrl.u32 %v12749_v59, %v4879_v20 }
 0x508   : > { %vm6304_vm2 = vcmp.lt.s32.totalorder %v6303_v28, 0  ;;  %v4891_v36 = vshrl.u32 %v12752_v23, %v4879_v20  ;;  %v4877_v30 = vshrl.u32 %v4876_v43, 5  ;;  %v4887_v7 = vshll.u32 %v12767_v47, %v4878_v16 }
 0x509   : > { %v11390_v33 = vsel %vm6304_vm2, 0, %v6303_v28  ;;  %v4890_v0 = vshll.u32 %v12749_v59, %v4878_v16  ;;  %v5029_v8 = vadd.s32 536870912, %v5028_v37  ;;  %v4883_v61 = vor.u32 %v4882_v60, %v4881_v49 }
 0x50a   : > { %v4732_v19 = vsub.s32 4294967266, %v11390_v33  ;;  %v4886_v9 = vor.u32 %v4885_v29, %v4884_v10  ;;  %v4889_v46 = vor.u32 %v4888_v2, %v4887_v7  ;;  %v4893_v45 = vshll.u32 %v12752_v23, %v4878_v16  ;;  %v11411_v2 = vpop.f32.mrb[15].mxu1 }
 0x50b   : > { %v4892_v21 = vor.u32 %v4891_v36, %v4890_v0  ;;  %v4894_v58 = vshrl.u32 %v12744_v18, %v4879_v20  ;;  %v11397_v26 = vor.u32 %v4834_v38, %v4833_v63  ;;  %v4838_v28 = vshll.u32 %v11378_v56, 23 }
 0x50c   : > { %v11400_v43 = vshrl.u32 %v5029_v8, 30  ;;  %v11402_v3 = vshll.u32 %v4872_v48, 8  ;;  %v4733_v41 = vadd.s32 127, %v4732_v19  ;;  %v5179_v49 = vand.u32 2139095040, %v11376_v34 }
 0x50d   : > { %v4895_v55 = vor.u32 %v4894_v58, %v4893_v45  ;;  %v4880_v16 = vshrl.u32 %v12759_v12, %v4879_v20  ;;  %vm4896_vm7 = vcmp.lt.s32.totalorder %v4877_v30, 1  ;;  %vm4899_vm11 = vcmp.lt.s32.totalorder %v4877_v30, 4 }
 0x50e   : > { %13009 = vst [vmem:[#allocation31_spill] sm:$0xff] %v11400_v43  ;;  %v5031_v60 = vshll.u32 %v11400_v43, 30  ;;  %v4728_v63 = vsub.s32 32, %v11390_v33  ;;  %v4901_v38 = vsel %vm4899_vm11, %v4889_v46, 2102212464  ;;  %v4904_v56 = vsel %vm4896_vm7, %v4883_v61, %v4886_v9 }
 0x50f   : > { %v4905_v10 = vsel %vm4899_vm11, %v4892_v21, 920167782  ;;  %vm4897_vm0 = vcmp.lt.s32.totalorder %v4877_v30, 2  ;;  %vm4898_vm6 = vcmp.lt.s32.totalorder %v4877_v30, 3  ;;  %v4908_v48 = vsel %vm4896_vm7, %v4886_v9, %v4889_v46 }
 0x510   : > { %v11409_v29 = vsub.s32 %v5028_v37, %v5031_v60  ;;  %v4734_v36 = vshll.u32 %v4733_v41, 23  ;;  %v4900_v7 = vsel %vm4896_vm7, %v4880_v16, %v4883_v61  ;;  %v4906_v0 = vsel %vm4898_vm6, %v4889_v46, %v4905_v10  ;;  %v5904_v41 = vld [vmem:[%s12526_s7] sm:$0xff] }
 0x511   : > { %v4909_v19 = vsel %vm4899_vm11, %v4895_v55, 1326507024  ;;  %v4902_v8 = vsel %vm4898_vm6, %v4886_v9, %v4901_v38  ;;  %v4907_v45 = vsel %vm4897_vm0, %v4904_v56, %v4906_v0  ;;  %v5180_v43 = vshrl.u32 %v5179_v49, 23  ;;  %v5905_v55 = vld [vmem:[%s12526_s7 + $0x8] sm:$0xff] }
 0x512   : > { %v5034_v20 = vsub.s32 0, %v11409_v29  ;;  %v4910_v58 = vsel %vm4898_vm6, %v4892_v21, %v4909_v19  ;;  %v11417_v37 = vmul.u32.u64.low %v11402_v3, %v4907_v45  ;;  %v11418_v60 = vmul.u32.u64.high %v11402_v3, %v4907_v45, %v11417_v37 }
 0x513   : > { %v4911_v4 = vsel %vm4897_vm0, %v4908_v48, %v4910_v58  ;;  %v4712_v16 = vadd.s32 %v11282_v14, %v11291_v42  ;;  %v4903_v49 = vsel %vm4897_vm0, %v4900_v7, %v4902_v8  ;;  %v6321_v38 = vadd.s32 4294967169, %v5180_v43 }
 0x514   : > { %v6314_v21 = vmin.u32 %v5034_v20, %v11409_v29  ;;  %v11430_v46 = vmul.u32.u64.low %v11402_v3, %v4911_v4  ;;  %v11431_v61 = vmul.u32.u64.high %v11402_v3, %v4911_v4, %v11430_v46  ;;  %v13010_v56 = vand.u32 2147483647, %v11376_v34 }
 0x515   : > { %v11438_v48 = vor.u32 4788187, %v4838_v28  ;;  %v6680_v45 = vpack.c.bf16 %v5905_v55, %v5904_v41  ;;  %v4730_v20 = vshrl.u32 %v4712_v16, %v4728_v63  ;;  %v11441_v58 = vor.u32 4788187, %v4734_v36 }
 0x516   : > { %v5183_v10 = vand.u32 8388607, %v13010_v56  ;;  %v5036_v19 = vclz %v6314_v21  ;;  %v4922_v4 = vadd.s32 1, %v11418_v60  ;;  %v5186_v46 = vadd.s32 1, %v6321_v38 }
 0x517   : > { %v4919_v14 = vmul.u32 %v11402_v3, %v4903_v49  ;;  %vm4921_vm14 = vc.u32 %v11431_v61, %v11417_v37  ;;  %v11449_v42 = vadd.f32 %v11372_v53, %v11013_v17  ;;  %6681 = vmatprep.subr.bf16.mxu0 %v6680_v45  ;;  %6712 = vmatprep.subr.bf16.mxu1 %v6680_v45  ;;  %vm4242_vm13 = vcmp.lt.s32.totalorder %v10931_v31, 0 }
 0x518   : > { %v6315_v9 = vadd.s32 4294967294, %v5036_v19  ;;  %v4729_v30 = vshll.u32 %v11338_v35, %v11390_v33  ;;  %v4923_v28 = vsel %vm4921_vm14, %v4922_v4, %v11418_v60  ;;  %v5184_v43 = vor.u32 8388608, %v5183_v10  ;;  %6683 = vmatpush3.bf16.msra.mxu0 %v6680_v45  ;;  %6720 = vmatpush3.bf16.msra.mxu1 %v6680_v45 }
 0x519   : > { %vm5187_vm15 = vcmp.gt.s32.totalorder %v5186_v46, 0  ;;  %v4924_v63 = vadd.s32 %v4923_v28, %v4919_v14  ;;  %v5024_v17 = vadd.s32 %v11347_v52, %v11359_v39  ;;  %v12694_v55 = vand.u32 2147483647, %v11449_v42 }
 0x51a   : > { %vm6316_vm12 = vcmp.lt.s32.totalorder %v6315_v9, 0  ;;  %v5188_v36 = vsel %vm5187_vm15, %v5186_v46, 0  ;;  %v11455_v7 = vor.u32 %v4730_v20, %v4729_v30  ;;  %v11461_v49 = vshll.u32 %v5184_v43, 8 }
 0x51b   : > { %v5039_v8 = vsel %vm6316_vm12, 0, %v6315_v9  ;;  %v5190_v41 = vand.u32 31, %v5188_v36  ;;  %v4925_v60 = vadd.s32 536870912, %v4924_v63  ;;  %v5075_v38 = vand.u32 2139095040, %v11449_v42 }
 0x51c   : > { %v5044_v33 = vsub.s32 4294967266, %v5039_v8  ;;  %v5040_v21 = vsub.s32 32, %v5039_v8  ;;  %v5189_v46 = vshrl.u32 %v5188_v36, 5  ;;  %v5041_v35 = vshll.u32 %v11409_v29, %v5039_v8 }
 0x51d   : > { %v5191_v16 = vsub.s32 32, %v5190_v41  ;;  %v11464_v10 = vshrl.u32 %v4925_v60, 30  ;;  %v5193_v19 = vshll.u32 %v12759_v12, %v5190_v41  ;;  %v5196_v52 = vshll.u32 %v12763_v32, %v5190_v41 }
 0x51e   : > { %v5045_v56 = vadd.s32 127, %v5044_v33  ;;  %v5199_v45 = vshll.u32 %v12767_v47, %v5190_v41  ;;  %v5202_v14 = vshll.u32 %v12749_v59, %v5190_v41  ;;  %v11477_v60 = vand.u32 8388607, %v12694_v55 }
 0x51f   : > { %13011 = vst [vmem:[#allocation24_spill] sm:$0xff] %v11464_v10  ;;  %v5194_v39 = vshrl.u32 %v12763_v32, %v5191_v16  ;;  %v5197_v9 = vshrl.u32 %v12767_v47, %v5191_v16  ;;  %v5200_v20 = vshrl.u32 %v12749_v59, %v5191_v16  ;;  %v4927_v4 = vshll.u32 %v11464_v10, 30 }
 0x520   : > { %v5203_v30 = vshrl.u32 %v12752_v23, %v5191_v16  ;;  %v5046_v0 = vshll.u32 %v5045_v56, 23  ;;  %v5042_v36 = vshrl.u32 %v5024_v17, %v5040_v21  ;;  %v5192_v1 = vshrl.u32 %v12759_v12, %v5191_v16 }
 0x521   : > { %v5195_v28 = vor.u32 %v5194_v39, %v5193_v19  ;;  %v5198_v43 = vor.u32 %v5197_v9, %v5196_v52  ;;  %v5201_v33 = vor.u32 %v5200_v20, %v5199_v45  ;;  %v11481_v3 = vsub.s32 %v4924_v63, %v4927_v4 }
 0x522   : > { %v5204_v10 = vor.u32 %v5203_v30, %v5202_v14  ;;  %v5205_v51 = vshll.u32 %v12752_v23, %v5190_v41  ;;  %v5206_v19 = vshrl.u32 %v12744_v18, %v5191_v16  ;;  %vm5208_vm3 = vcmp.lt.s32.totalorder %v5189_v46, 1 }
 0x523   : > { %v4930_v52 = vsub.s32 0, %v11481_v3  ;;  %vm5210_vm1 = vcmp.lt.s32.totalorder %v5189_v46, 3  ;;  %vm5211_vm9 = vcmp.lt.s32.totalorder %v5189_v46, 4  ;;  %vm4554_vm5 = vcmp.lt.s32.totalorder %v10940_v40, 0 }
 0x524   : > { %vm4450_vm10 = vcmp.lt.s32.totalorder %v10955_v50, 0  ;;  %v5207_v29 = vor.u32 %v5206_v19, %v5205_v51  ;;  %v5213_v63 = vsel %vm5211_vm9, %v5201_v33, 2102212464  ;;  %v5216_v8 = vsel %vm5208_vm3, %v5195_v28, %v5198_v43 }
 0x525   : > { %v5217_v17 = vsel %vm5211_vm9, %v5204_v10, 920167782  ;;  %v5047_v21 = vor.u32 4788187, %v5046_v0  ;;  %v6310_v56 = vmin.u32 %v4930_v52, %v11481_v3  ;;  %vm5209_vm2 = vcmp.lt.s32.totalorder %v5189_v46, 2 }
 0x526   : > { %v5218_v41 = vsel %vm5210_vm1, %v5201_v33, %v5217_v17  ;;  %v5043_v16 = vor.u32 %v5042_v36, %v5041_v35  ;;  %v5220_v9 = vsel %vm5208_vm3, %v5198_v43, %v5201_v33  ;;  %v5221_v45 = vsel %vm5211_vm9, %v5207_v29, 1326507024 }
 0x527   : > { %v5219_v39 = vsel %vm5209_vm2, %v5216_v8, %v5218_v41  ;;  %v4932_v20 = vclz %v6310_v56  ;;  %v5212_v4 = vsel %vm5208_vm3, %v5192_v1, %v5195_v28  ;;  %v5214_v51 = vsel %vm5210_vm1, %v5198_v43, %v5213_v63 }
 0x528   : > { %v5222_v14 = vsel %vm5210_vm1, %v5204_v10, %v5221_v45  ;;  %v11499_v30 = vmul.u32.u64.low %v11461_v49, %v5219_v39  ;;  %v11500_v19 = vmul.u32.u64.high %v11461_v49, %v5219_v39, %v11499_v30  ;;  %v5076_v35 = vshrl.u32 %v5075_v38, 23 }
 0x529   : > { %v5223_v0 = vsel %vm5209_vm2, %v5220_v9, %v5222_v14  ;;  %v5048_v36 = vand.u32 2147483647, %v5047_v21  ;;  %v6311_v52 = vadd.s32 4294967294, %v4932_v20  ;;  %v13012_v1 = vxor.u32 2147483648, %v11244_v5 }
 0x52a   : > { %v11504_v33 = vmul.u32.u64.low %v11461_v49, %v5223_v0  ;;  %v11505_v29 = vmul.u32.u64.high %v11461_v49, %v5223_v0, %v11504_v33  ;;  %v4738_v28 = vcvt.s32.f32 %v11455_v7  ;;  %v6317_v43 = vadd.s32 4294967169, %v5076_v35 }
 0x52b   : > { %v11512_v10 = vsel %vm4242_vm13, %v13012_v1, %v11244_v5  ;;  %v11517_v63 = vadd.f32 %v11372_v53, %v11103_v57  ;;  %v13014_v38 = vand.u32 2147483647, %v11438_v48  ;;  %v13015_v8 = vcvt.s32.f32 %v11397_v26 }
 0x52c   : > { %v5050_v21 = vcvt.s32.f32 %v5043_v16  ;;  %vm6312_vm7 = vcmp.lt.s32.totalorder %v6311_v52, 0  ;;  %v5215_v56 = vsel %vm5209_vm2, %v5212_v4, %v5214_v51  ;;  %v13016_v5 = vand.u32 2147483647, %v11441_v58 }
 0x52d   : > { %13013 = vst [vmem:[#allocation30_spill] sm:$0xff] %v11517_v63  ;;  %v11523_v17 = vmul.f32 %v13015_v8, %v13014_v38  ;;  %v11530_v7 = vsel %vm6312_vm7, 0, %v6311_v52  ;;  %v5234_v39 = vadd.s32 1, %v11500_v19  ;;  %v5082_v57 = vadd.s32 1, %v6317_v43 }
 0x52e   : > { %v11528_v41 = vmul.f32 %v4738_v28, %v13016_v5  ;;  %v13017_v48 = vxor.u32 2147483648, %v11303_v62  ;;  %v13019_v46 = vxor.u32 2147483648, %v11362_v11  ;;  %v11547_v16 = vmul.f32 %v5050_v21, %v5048_v36 }
 0x52f   : > { %v5080_v9 = vor.u32 8388608, %v11477_v60  ;;  %v5231_v45 = vmul.u32 %v11461_v49, %v5215_v56  ;;  %vm5233_vm11 = vc.u32 %v11505_v29, %v11499_v30  ;;  %vm5083_vm0 = vcmp.gt.s32.totalorder %v5082_v57, 0 }
 0x530   : > { %v11538_v26 = vsel %vm4554_vm5, %v13017_v48, %v11303_v62  ;;  %v11545_v58 = vsel %vm4450_vm10, %v13019_v46, %v11362_v11  ;;  %v5387_v62 = vand.u32 2139095040, %v11517_v63  ;;  %v4940_v4 = vsub.s32 4294967266, %v11530_v7 }
 0x531   : > { %13018 = vst [vmem:[#allocation14_spill] sm:$0xff] %v11538_v26  ;;  %v5235_v51 = vsel %vm5233_vm11, %v5234_v39, %v11500_v19  ;;  %v5084_v11 = vsel %vm5083_vm0, %v5082_v57, 0  ;;  %v11560_v49 = vadd.f32 %v11372_v53, %v11131_v54  ;;  %v4920_v36 = vadd.s32 %v11417_v37, %v11431_v61 }
 0x532   : > { %v5236_v0 = vadd.s32 %v5235_v51, %v5231_v45  ;;  %v5086_v35 = vand.u32 31, %v5084_v11  ;;  %v11565_v52 = vshll.u32 %v5080_v9, 8  ;;  %v12695_v33 = vand.u32 2147483647, %v11517_v63 }
 0x533   : > { %v4936_v19 = vsub.s32 32, %v11530_v7  ;;  %v5388_v43 = vshrl.u32 %v5387_v62, 23  ;;  %v4941_v38 = vadd.s32 127, %v4940_v4  ;;  %v5085_v8 = vshrl.u32 %v5084_v11, 5 }
 0x534   : > { %v5237_v1 = vadd.s32 536870912, %v5236_v0  ;;  %v5087_v28 = vsub.s32 32, %v5086_v35  ;;  %v5089_v21 = vshll.u32 %v12759_v12, %v5086_v35  ;;  %v5092_v54 = vshll.u32 %v12763_v32, %v5086_v35 }
 0x535   : > { %v5095_v61 = vshll.u32 %v12767_v47, %v5086_v35  ;;  %v5098_v57 = vshll.u32 %v12749_v59, %v5086_v35  ;;  %v5101_v46 = vshll.u32 %v12752_v23, %v5086_v35  ;;  %v5391_v55 = vand.u32 8388607, %v12695_v33 }
 0x536   : > { %v11571_v56 = vshrl.u32 %v5237_v1, 30  ;;  %v5090_v5 = vshrl.u32 %v12763_v32, %v5087_v28  ;;  %v5093_v37 = vshrl.u32 %v12767_v47, %v5087_v28  ;;  %v5096_v39 = vshrl.u32 %v12749_v59, %v5087_v28 }
 0x537   : > { %v5099_v48 = vshrl.u32 %v12752_v23, %v5087_v28  ;;  %v5102_v4 = vshrl.u32 %v12744_v18, %v5087_v28  ;;  %v6329_v1 = vadd.s32 4294967169, %v5388_v43  ;;  %v4942_v60 = vshll.u32 %v4941_v38, 23 }
 0x538   : > { %13020 = vst [vmem:[#allocation48_spill] sm:$0xff] %v11571_v56  ;;  %v5239_v9 = vshll.u32 %v11571_v56, 30  ;;  %v5091_v45 = vor.u32 %v5090_v5, %v5089_v21  ;;  %v5094_v62 = vor.u32 %v5093_v37, %v5092_v54  ;;  %v5097_v51 = vor.u32 %v5096_v39, %v5095_v61 }
 0x539   : > { %v5100_v11 = vor.u32 %v5099_v48, %v5098_v57  ;;  %v5103_v20 = vor.u32 %v5102_v4, %v5101_v46  ;;  %vm5104_vm6 = vcmp.lt.s32.totalorder %v5085_v8, 1  ;;  %v5088_v26 = vshrl.u32 %v12759_v12, %v5087_v28 }
 0x53a   : > { %v11584_v14 = vsub.s32 %v5236_v0, %v5239_v9  ;;  %vm5106_vm14 = vcmp.lt.s32.totalorder %v5085_v8, 3  ;;  %vm5107_vm15 = vcmp.lt.s32.totalorder %v5085_v8, 4  ;;  %v5112_v35 = vsel %vm5104_vm6, %v5091_v45, %v5094_v62 }
 0x53b   : > { %v5109_v54 = vsel %vm5107_vm15, %v5097_v51, 2102212464  ;;  %v5113_v5 = vsel %vm5107_vm15, %v5100_v11, 920167782  ;;  %v5116_v37 = vsel %vm5104_vm6, %v5094_v62, %v5097_v51  ;;  %vm5105_vm12 = vcmp.lt.s32.totalorder %v5085_v8, 2 }
 0x53c   : > { %v5242_v21 = vsub.s32 0, %v11584_v14  ;;  %v5108_v43 = vsel %vm5104_vm6, %v5088_v26, %v5091_v45  ;;  %v5114_v61 = vsel %vm5106_vm14, %v5097_v51, %v5113_v5  ;;  %v5117_v39 = vsel %vm5107_vm15, %v5103_v20, 1326507024  ;;  %v5906_v26 = vld [vmem:[%s12526_s7 + $0x10] sm:$0xff]  ;;  %v5907_v20 = vld [vmem:[%s12526_s7 + $0x18] sm:$0xff] }
 0x53d   : > { %v5110_v0 = vsel %vm5106_vm14, %v5094_v62, %v5109_v54  ;;  %v5115_v57 = vsel %vm5105_vm12, %v5112_v35, %v5114_v61  ;;  %v5118_v48 = vsel %vm5106_vm14, %v5100_v11, %v5117_v39  ;;  %v5283_v4 = vand.u32 2139095040, %v11560_v49 }
 0x53e   : > { %v6322_v38 = vmin.u32 %v5242_v21, %v11584_v14  ;;  %v5119_v28 = vsel %vm5105_vm12, %v5116_v37, %v5118_v48  ;;  %v11592_v46 = vmul.u32.u64.low %v11565_v52, %v5115_v57  ;;  %v11593_v9 = vmul.u32.u64.high %v11565_v52, %v5115_v57, %v11592_v46 }
 0x53f   : > { %v11604_v62 = vmul.u32.u64.low %v11565_v52, %v5119_v28  ;;  %v11605_v51 = vmul.u32.u64.high %v11565_v52, %v5119_v28, %v11604_v62  ;;  %v5394_v11 = vadd.s32 1, %v6329_v1  ;;  %v4938_v35 = vshrl.u32 %v4920_v36, %v4936_v19 }
 0x540   : > { %v5244_v45 = vclz %v6322_v38  ;;  %v5111_v21 = vsel %vm5105_vm12, %v5108_v43, %v5110_v0  ;;  %v5392_v54 = vor.u32 8388608, %v5391_v55  ;;  %v11609_v37 = vor.u32 4788187, %v4942_v60 }
 0x541   : > { %vm5395_vm3 = vcmp.gt.s32.totalorder %v5394_v11, 0  ;;  %v6684_v39 = vpack.c.bf16 %v5907_v20, %v5906_v26  ;;  %v4937_v57 = vshll.u32 %v11481_v3, %v11530_v7  ;;  %v5130_v38 = vadd.s32 1, %v11593_v9 }
 0x542   : > { %v6323_v61 = vadd.s32 4294967294, %v5244_v45  ;;  %v5396_v48 = vsel %vm5395_vm3, %v5394_v11, 0  ;;  %v5284_v28 = vshrl.u32 %v5283_v4, 23  ;;  %v5232_v36 = vadd.s32 %v11499_v30, %v11505_v29 }
 0x543   : > { %v5127_v55 = vmul.u32 %v11565_v52, %v5111_v21  ;;  %vm5129_vm9 = vc.u32 %v11605_v51, %v11592_v46  ;;  %6685 = vmatprep.subr.bf16.mxu0 %v6684_v39  ;;  %6713 = vmatprep.subr.bf16.mxu1 %v6684_v39  ;;  %v11619_v60 = vor.u32 %v4938_v35, %v4937_v57  ;;  %v5398_v7 = vand.u32 31, %v5396_v48 }
 0x544   : > { %vm6324_vm1 = vcmp.lt.s32.totalorder %v6323_v61, 0  ;;  %v5131_v3 = vsel %vm5129_vm9, %v5130_v38, %v11593_v9  ;;  %6687 = vmatpush3.bf16.msra.mxu0 %v6684_v39  ;;  %6721 = vmatpush3.bf16.msra.mxu1 %v6684_v39  ;;  %v11623_v29 = vshll.u32 %v5392_v54, 8  ;;  %v5397_v43 = vshrl.u32 %v5396_v48, 5 }
 0x545   : > { %v5247_v19 = vsel %vm6324_vm1, 0, %v6323_v61  ;;  %v5132_v30 = vadd.s32 %v5131_v3, %v5127_v55  ;;  %v5399_v0 = vsub.s32 32, %v5398_v7  ;;  %v6325_v4 = vadd.s32 4294967169, %v5284_v28 }
 0x546   : > { %v5252_v1 = vsub.s32 4294967266, %v5247_v19  ;;  %v5248_v52 = vsub.s32 32, %v5247_v19  ;;  %v5401_v45 = vshll.u32 %v12759_v12, %v5398_v7  ;;  %v5404_v62 = vshll.u32 %v12763_v32, %v5398_v7 }
 0x547   : > { %v5133_v20 = vadd.s32 536870912, %v5132_v30  ;;  %v5402_v9 = vshrl.u32 %v12763_v32, %v5399_v0  ;;  %v5405_v11 = vshrl.u32 %v12767_v47, %v5399_v0  ;;  %v5407_v35 = vshll.u32 %v12767_v47, %v5398_v7 }
 0x548   : > { %v5253_v26 = vadd.s32 127, %v5252_v1  ;;  %v5408_v21 = vshrl.u32 %v12749_v59, %v5399_v0  ;;  %v5410_v39 = vshll.u32 %v12749_v59, %v5398_v7  ;;  %v5411_v57 = vshrl.u32 %v12752_v23, %v5399_v0 }
 0x549   : > { %v11631_v61 = vshrl.u32 %v5133_v20, 30  ;;  %v5403_v38 = vor.u32 %v5402_v9, %v5401_v45  ;;  %v5406_v48 = vor.u32 %v5405_v11, %v5404_v62  ;;  %v5290_v55 = vadd.s32 1, %v6325_v4 }
 0x54a   : > { %v5254_v54 = vshll.u32 %v5253_v26, 23  ;;  %v5409_v28 = vor.u32 %v5408_v21, %v5407_v35  ;;  %vm4762_vm2 = vcmp.lt.s32.totalorder %v11101_v25, 0  ;;  %v5249_v3 = vshll.u32 %v11584_v14, %v5247_v19 }
 0x54b   : > { %v5250_v1 = vshrl.u32 %v5232_v36, %v5248_v52  ;;  %v5135_v33 = vshll.u32 %v11631_v61, 30  ;;  %v5412_v8 = vor.u32 %v5411_v57, %v5410_v39  ;;  %v5400_v26 = vshrl.u32 %v12759_v12, %v5399_v0 }
 0x54c   : > { %v5255_v5 = vor.u32 4788187, %v5254_v54  ;;  %v5413_v20 = vshll.u32 %v12752_v23, %v5398_v7  ;;  %v5414_v56 = vshrl.u32 %v12744_v18, %v5399_v0  ;;  %vm4658_vm7 = vcmp.lt.s32.totalorder %v11184_v15, 0 }
 0x54d   : > { %vm4970_vm11 = vcmp.lt.s32.totalorder %v11199_v22, 0  ;;  %v11643_v4 = vsub.s32 %v5132_v30, %v5135_v33  ;;  %vm5416_vm0 = vcmp.lt.s32.totalorder %v5397_v43, 1  ;;  %vm5418_vm6 = vcmp.lt.s32.totalorder %v5397_v43, 3 }
 0x54e   : > { %vm5419_vm14 = vcmp.lt.s32.totalorder %v5397_v43, 4  ;;  %v5415_v14 = vor.u32 %v5414_v56, %v5413_v20  ;;  %v5424_v19 = vsel %vm5416_vm0, %v5403_v38, %v5406_v48  ;;  %v5251_v45 = vor.u32 %v5250_v1, %v5249_v3 }
 0x54f   : > { %v5421_v36 = vsel %vm5419_vm14, %v5409_v28, 2102212464  ;;  %v5425_v52 = vsel %vm5419_vm14, %v5412_v8, 920167782  ;;  %v5138_v62 = vsub.s32 0, %v11643_v4  ;;  %vm5417_vm15 = vcmp.lt.s32.totalorder %v5397_v43, 2 }
 0x550   : > { %v5426_v7 = vsel %vm5418_vm6, %v5409_v28, %v5425_v52  ;;  %v5256_v0 = vand.u32 2147483647, %v5255_v5  ;;  %v5428_v33 = vsel %vm5416_vm0, %v5406_v48, %v5409_v28  ;;  %v5429_v30 = vsel %vm5419_vm14, %v5415_v14, 1326507024 }
 0x551   : > { %v5427_v9 = vsel %vm5417_vm15, %v5424_v19, %v5426_v7  ;;  %v6318_v11 = vmin.u32 %v5138_v62, %v11643_v4  ;;  %v5420_v56 = vsel %vm5416_vm0, %v5400_v26, %v5403_v38  ;;  %v5422_v35 = vsel %vm5418_vm6, %v5406_v48, %v5421_v36 }
 0x552   : > { %v5430_v21 = vsel %vm5418_vm6, %v5412_v8, %v5429_v30  ;;  %v11656_v39 = vmul.u32.u64.low %v11623_v29, %v5427_v9  ;;  %v11657_v57 = vmul.u32.u64.high %v11623_v29, %v5427_v9, %v11656_v39  ;;  %vm5291_vm12 = vcmp.gt.s32.totalorder %v5290_v55, 0 }
 0x553   : > { %v5431_v54 = vsel %vm5417_vm15, %v5428_v33, %v5430_v21  ;;  %v5258_v5 = vcvt.s32.f32 %v5251_v45  ;;  %v5140_v3 = vclz %v6318_v11  ;;  %v13021_v38 = vxor.u32 2147483648, %v11523_v17 }
 0x554   : > { %v11661_v28 = vmul.u32.u64.low %v11623_v29, %v5431_v54  ;;  %v11662_v1 = vmul.u32.u64.high %v11623_v29, %v5431_v54, %v11661_v28  ;;  %v4946_v48 = vcvt.s32.f32 %v11619_v60  ;;  %v5423_v26 = vsel %vm5417_vm15, %v5420_v56, %v5422_v35 }
 0x555   : > { %v11669_v8 = vsel %vm4762_vm2, %v13021_v38, %v11523_v17  ;;  %v5292_v20 = vsel %vm5291_vm12, %v5290_v55, 0  ;;  %v11673_v14 = vmul.f32 %v5258_v5, %v5256_v0  ;;  %v6319_v36 = vadd.s32 4294967294, %v5140_v3 }
 0x556   : > { %v13022_v19 = vand.u32 2147483647, %v11560_v49  ;;  %v5294_v45 = vand.u32 31, %v5292_v20  ;;  %v13023_v62 = vxor.u32 2147483648, %v11528_v41  ;;  %v13024_v17 = vxor.u32 2147483648, %v11547_v16 }
 0x557   : > { %v13025_v43 = vand.u32 2147483647, %v11609_v37  ;;  %v5442_v0 = vadd.s32 1, %v11657_v57  ;;  %vm6320_vm3 = vcmp.lt.s32.totalorder %v6319_v36, 0  ;;  %v5439_v9 = vmul.u32 %v11623_v29, %v5423_v26 }
 0x558   : > { %v5287_v52 = vand.u32 8388607, %v13022_v19  ;;  %v11682_v7 = vsel %vm4658_vm7, %v13023_v62, %v11528_v41  ;;  %v11689_v60 = vsel %vm4970_vm11, %v13024_v17, %v11547_v16  ;;  %vm5441_vm1 = vc.u32 %v11662_v1, %v11656_v39 }
 0x559   : > { %v11693_v55 = vmul.f32 %v4946_v48, %v13025_v43  ;;  %v5295_v41 = vsub.s32 32, %v5294_v45  ;;  %v11699_v33 = vsel %vm6320_vm3, 0, %v6319_v36  ;;  %v5443_v30 = vsel %vm5441_vm1, %v5442_v0, %v11657_v57 }
 0x55a   : > { %v11704_v16 = vadd.f32 %v11372_v53, %v11233_v13  ;;  %v11708_v37 = vadd.f32 %v11372_v53, %v11273_v6  ;;  %v5128_v29 = vadd.s32 %v11592_v46, %v11605_v51  ;;  %v5444_v56 = vadd.s32 %v5443_v30, %v5439_v9 }
 0x55b   : > { %v5288_v35 = vor.u32 8388608, %v5287_v52  ;;  %v11713_v21 = vshrl.u32 %v5292_v20, 5  ;;  %v5297_v54 = vshll.u32 %v12759_v12, %v5294_v45  ;;  %v5298_v57 = vshrl.u32 %v12763_v32, %v5295_v41 }
 0x55c   : > { %13026 = vst [vmem:[#allocation45_spill] sm:$0xff] %v11704_v16  ;;  %13027 = vst [vmem:[#allocation51_spill] sm:$0xff] %v11708_v37  ;;  %v5301_v13 = vshrl.u32 %v12767_v47, %v5295_v41  ;;  %v5148_v5 = vsub.s32 4294967266, %v11699_v33  ;;  %v5445_v3 = vadd.s32 536870912, %v5444_v56  ;;  %v5300_v6 = vshll.u32 %v12763_v32, %v5294_v45 }
 0x55d   : > { %v5304_v28 = vshrl.u32 %v12749_v59, %v5295_v41  ;;  %v5144_v38 = vsub.s32 32, %v11699_v33  ;;  %v5303_v46 = vshll.u32 %v12767_v47, %v5294_v45  ;;  %v5306_v51 = vshll.u32 %v12749_v59, %v5294_v45 }
 0x55e   : > { %v5307_v48 = vshrl.u32 %v12752_v23, %v5295_v41  ;;  %v11725_v26 = vshrl.u32 %v5445_v3, 30  ;;  %v5299_v20 = vor.u32 %v5298_v57, %v5297_v54  ;;  %v5302_v36 = vor.u32 %v5301_v13, %v5300_v6 }
 0x55f   : > { %v11727_v19 = vshll.u32 %v5288_v35, 8  ;;  %v5305_v52 = vor.u32 %v5304_v28, %v5303_v46  ;;  %v5309_v17 = vshll.u32 %v12752_v23, %v5294_v45  ;;  %v5310_v43 = vshrl.u32 %v12744_v18, %v5295_v41 }
 0x560   : > { %13028 = vst [vmem:[#allocation54_spill] sm:$0xff] %v11725_v26  ;;  %v5308_v62 = vor.u32 %v5307_v48, %v5306_v51  ;;  %vm12709_vm9 = vcmp.lt.s32.totalorder %v11376_v34, 0  ;;  %v5149_v0 = vadd.s32 127, %v5148_v5  ;;  %v5447_v9 = vshll.u32 %v11725_v26, 30 }
 0x561   : > { %v12698_v30 = vand.u32 2147483647, %v11704_v16  ;;  %v5595_v3 = vand.u32 2139095040, %v11704_v16  ;;  %v5146_v11 = vshrl.u32 %v5128_v29, %v5144_v38  ;;  %v5296_v54 = vshrl.u32 %v12759_v12, %v5295_v41 }
 0x562   : > { %v5311_v35 = vor.u32 %v5310_v43, %v5309_v17  ;;  %vm5312_vm0 = vcmp.lt.s32.totalorder %v11713_v21, 1  ;;  %v11737_v57 = vsub.s32 %v5444_v56, %v5447_v9  ;;  %vm5314_vm6 = vcmp.lt.s32.totalorder %v11713_v21, 3 }
 0x563   : > { %vm5315_vm14 = vcmp.lt.s32.totalorder %v11713_v21, 4  ;;  %v5320_v45 = vsel %vm5312_vm0, %v5299_v20, %v5302_v36  ;;  %v5324_v6 = vsel %vm5312_vm0, %v5302_v36, %v5305_v52  ;;  %v5150_v46 = vshll.u32 %v5149_v0, 23 }
 0x564   : > { %v5317_v13 = vsel %vm5315_vm14, %v5305_v52, 2102212464  ;;  %v5321_v5 = vsel %vm5315_vm14, %v5308_v62, 920167782  ;;  %v5325_v28 = vsel %vm5315_vm14, %v5311_v35, 1326507024  ;;  %v5316_v38 = vsel %vm5312_vm0, %v5296_v54, %v5299_v20 }
 0x565   : > { %v5450_v51 = vsub.s32 0, %v11737_v57  ;;  %vm5313_vm15 = vcmp.lt.s32.totalorder %v11713_v21, 2  ;;  %v5322_v41 = vsel %vm5314_vm6, %v5305_v52, %v5321_v5  ;;  %v13029_v29 = vand.u32 2147483647, %v11376_v34  ;;  %v5908_v20 = vld [vmem:[%s12526_s7 + $0x20] sm:$0xff]  ;;  %v5911_v5 = vld [vmem:[%s12526_s7 + $0x38] sm:$0xff] }
 0x566   : > { %v13030_v56 = vmov 0  ;;  %v5323_v48 = vsel %vm5313_vm15, %v5320_v45, %v5322_v41  ;;  %v5326_v17 = vsel %vm5314_vm6, %v5308_v62, %v5325_v28  ;;  %v5596_v43 = vshrl.u32 %v5595_v3, 23  ;;  %v5909_v62 = vld [vmem:[%s12526_s7 + $0x28] sm:$0xff] }
 0x567   : > { %vm11747_vm12 = vcmp.le.f32.partialorder %v13029_v29, 0.7853982  ;;  %v6330_v0 = vmin.u32 %v5450_v51, %v11737_v57  ;;  %v5318_v9 = vsel %vm5314_vm6, %v5302_v36, %v5317_v13  ;;  %v5327_v52 = vsel %vm5313_vm15, %v5324_v6, %v5326_v17  ;;  %v5910_v13 = vld [vmem:[%s12526_s7 + $0x30] sm:$0xff] }
 0x568   : > { %v13031_v56 = vsel %vm11747_vm12, 4294967295, %v13030_v56  ;;  %v5599_v35 = vand.u32 8388607, %v12698_v30  ;;  %v11769_v3 = vmul.u32.u64.low %v11727_v19, %v5327_v52  ;;  %v11770_v54 = vmul.u32.u64.high %v11727_v19, %v5327_v52, %v11769_v3 }
 0x569   : > { %13032 = vst [vmem:[#allocation42_spill] sm:$0xff] %v13031_v56  ;;  %v11773_v36 = vmul.u32.u64.low %v11727_v19, %v5323_v48  ;;  %v11774_v45 = vmul.u32.u64.high %v11727_v19, %v5323_v48, %v11773_v36  ;;  %v5145_v28 = vshll.u32 %v11643_v4, %v11699_v33  ;;  %v5452_v51 = vclz %v6330_v0 }
 0x56a   : > { %v6337_v41 = vadd.s32 4294967169, %v5596_v43  ;;  %v13033_v29 = vxor.u32 2147483648, %v11673_v14  ;;  %v5319_v17 = vsel %vm5313_vm15, %v5316_v38, %v5318_v9  ;;  %v5491_v52 = vand.u32 2139095040, %v11708_v37 }
 0x56b   : > { %v6688_v3 = vpack.c.bf16 %v5909_v62, %v5908_v20  ;;  %v11794_v30 = vor.u32 %v5146_v11, %v5145_v28  ;;  %v6331_v6 = vadd.s32 4294967294, %v5452_v51  ;;  %v6692_v16 = vpack.c.bf16 %v5911_v5, %v5910_v13 }
 0x56c   : > { %v5261_v48 = vsel %vm12709_vm9, %v13033_v29, %v11673_v14  ;;  %v5602_v26 = vadd.s32 1, %v6337_v41  ;;  %v11796_v4 = vor.u32 4788187, %v5150_v46  ;;  %vm5337_vm3 = vc.u32 %v11770_v54, %v11773_v36 }
 0x56d   : > { %v5338_v33 = vadd.s32 1, %v11774_v45  ;;  %v5600_v43 = vor.u32 8388608, %v5599_v35  ;;  %6689 = vmatprep.subr.bf16.mxu0 %v6688_v3  ;;  %6714 = vmatprep.subr.bf16.mxu1 %v6688_v3  ;;  %vm6332_vm1 = vcmp.lt.s32.totalorder %v6331_v6, 0  ;;  %v5335_v14 = vmul.u32 %v11727_v19, %v5319_v17 }
 0x56e   : > { %vm5603_vm0 = vcmp.gt.s32.totalorder %v5602_v26, 0  ;;  %v12703_v11 = vand.u32 2147483647, %v11708_v37  ;;  %6691 = vmatpush3.bf16.msra.mxu0 %v6688_v3  ;;  %6722 = vmatpush3.bf16.msra.mxu1 %v6688_v3  ;;  %v5455_v21 = vsel %vm6332_vm1, 0, %v6331_v6  ;;  %v5492_v0 = vshrl.u32 %v5491_v52, 23 }
 0x56f   : > { %v5339_v46 = vsel %vm5337_vm3, %v5338_v33, %v11774_v45  ;;  %v5604_v38 = vsel %vm5603_vm0, %v5602_v26, 0  ;;  %6693 = vmatprep.subr.bf16.mxu0 %v6692_v16  ;;  %6715 = vmatprep.subr.bf16.mxu1 %v6692_v16  ;;  %v11807_v9 = vsel %vm11747_vm12, %v11376_v34, %v5261_v48  ;;  %v5440_v19 = vadd.s32 %v11656_v39, %v11662_v1 }
 0x570   : > { %v5460_v35 = vsub.s32 4294967266, %v5455_v21  ;;  %v5340_v20 = vadd.s32 %v5339_v46, %v5335_v14  ;;  %v5606_v5 = vand.u32 31, %v5604_v38  ;;  %v11813_v45 = vshll.u32 %v5600_v43, 8 }
 0x571   : > { %v11817_v28 = vand.u32 8388607, %v12703_v11  ;;  %v11821_v51 = vadd.f32 %v11372_v53, %v11354_v44  ;;  %v5456_v39 = vsub.s32 32, %v5455_v21  ;;  %v5457_v1 = vshll.u32 %v11737_v57, %v5455_v21 }
 0x572   : > { %v5461_v26 = vadd.s32 127, %v5460_v35  ;;  %v5341_v6 = vadd.s32 536870912, %v5340_v20  ;;  %6695 = vmatpush3.bf16.msra.mxu0 %v6692_v16  ;;  %6723 = vmatpush3.bf16.msra.mxu1 %v6692_v16  ;;  %v5607_v41 = vsub.s32 32, %v5606_v5  ;;  %v6333_v29 = vadd.s32 4294967169, %v5492_v0 }
 0x573   : > { %13034 = vst [vmem:[#allocation46_spill] sm:$0xff] %v11821_v51  ;;  %v5609_v17 = vshll.u32 %v12759_v12, %v5606_v5  ;;  %v5612_v52 = vshll.u32 %v12763_v32, %v5606_v5  ;;  %v5615_v3 = vshll.u32 %v12767_v47, %v5606_v5  ;;  %v5605_v57 = vshrl.u32 %v5604_v38, 5 }
 0x574   : > { %v11824_v48 = vshrl.u32 %v5341_v6, 30  ;;  %v5462_v33 = vshll.u32 %v5461_v26, 23  ;;  %v5610_v43 = vshrl.u32 %v12763_v32, %v5607_v41  ;;  %v5613_v44 = vshrl.u32 %v12767_v47, %v5607_v41 }
 0x575   : > { %v5616_v53 = vshrl.u32 %v12749_v59, %v5607_v41  ;;  %v5618_v14 = vshll.u32 %v12749_v59, %v5606_v5  ;;  %v5619_v21 = vshrl.u32 %v12752_v23, %v5607_v41  ;;  %v5496_v6 = vor.u32 8388608, %v11817_v28 }
 0x576   : > { %13035 = vst [vmem:[#allocation7_spill] sm:$0xff] %v11824_v48  ;;  %v5343_v16 = vshll.u32 %v11824_v48, 30  ;;  %v5611_v46 = vor.u32 %v5610_v43, %v5609_v17  ;;  %v5614_v0 = vor.u32 %v5613_v44, %v5612_v52  ;;  %vm4866_vm6 = vcmp.lt.s32.totalorder %v11242_v24, 0 }
 0x577   : > { %v5617_v35 = vor.u32 %v5616_v53, %v5615_v3  ;;  %v5620_v11 = vor.u32 %v5619_v21, %v5618_v14  ;;  %v5621_v13 = vshll.u32 %v12752_v23, %v5606_v5  ;;  %v5622_v62 = vshrl.u32 %v12744_v18, %v5607_v41 }
 0x578   : > { %v11837_v26 = vsub.s32 %v5340_v20, %v5343_v16  ;;  %v5458_v37 = vshrl.u32 %v5440_v19, %v5456_v39  ;;  %v5463_v38 = vor.u32 4788187, %v5462_v33  ;;  %v5608_v56 = vshrl.u32 %v12759_v12, %v5607_v41 }
 0x579   : > { %v5498_v48 = vadd.s32 1, %v6333_v29  ;;  %v5623_v52 = vor.u32 %v5622_v62, %v5621_v13  ;;  %vm5624_vm14 = vcmp.lt.s32.totalorder %v5605_v57, 1  ;;  %vm5627_vm15 = vcmp.lt.s32.totalorder %v5605_v57, 4 }
 0x57a   : > { %v5346_v17 = vsub.s32 0, %v11837_v26  ;;  %vm5626_vm3 = vcmp.lt.s32.totalorder %v5605_v57, 3  ;;  %v5629_v28 = vsel %vm5627_vm15, %v5617_v35, 2102212464  ;;  %v5632_v3 = vsel %vm5624_vm14, %v5611_v46, %v5614_v0 }
 0x57b   : > { %v5633_v20 = vsel %vm5627_vm15, %v5620_v11, 920167782  ;;  %vm5625_vm1 = vcmp.lt.s32.totalorder %v5605_v57, 2  ;;  %v5636_v44 = vsel %vm5624_vm14, %v5614_v0, %v5617_v35  ;;  %v5459_v53 = vor.u32 %v5458_v37, %v5457_v1 }
 0x57c   : > { %v6326_v43 = vmin.u32 %v5346_v17, %v11837_v26  ;;  %v5634_v5 = vsel %vm5626_vm3, %v5617_v35, %v5633_v20  ;;  %v5637_v39 = vsel %vm5627_vm15, %v5623_v52, 1326507024  ;;  %vm5499_vm0 = vcmp.gt.s32.totalorder %v5498_v48, 0 }
 0x57d   : > { %v5635_v19 = vsel %vm5625_vm1, %v5632_v3, %v5634_v5  ;;  %v5628_v29 = vsel %vm5624_vm14, %v5608_v56, %v5611_v46  ;;  %v5630_v33 = vsel %vm5626_vm3, %v5614_v0, %v5629_v28  ;;  %v5638_v62 = vsel %vm5626_vm3, %v5620_v11, %v5637_v39 }
 0x57e   : > { %v5348_v41 = vclz %v6326_v43  ;;  %v5639_v13 = vsel %vm5625_vm1, %v5636_v44, %v5638_v62  ;;  %v11847_v16 = vmul.u32.u64.low %v11813_v45, %v5635_v19  ;;  %v11848_v14 = vmul.u32.u64.high %v11813_v45, %v5635_v19, %v11847_v16 }
 0x57f   : > { %v5500_v21 = vsel %vm5499_vm0, %v5498_v48, 0  ;;  %v5464_v17 = vand.u32 2147483647, %v5463_v38  ;;  %v11852_v37 = vmul.u32.u64.low %v11813_v45, %v5639_v13  ;;  %v11853_v1 = vmul.u32.u64.high %v11813_v45, %v5639_v13, %v11852_v37 }
 0x580   : > { %v6327_v20 = vadd.s32 4294967294, %v5348_v41  ;;  %v13036_v35 = vxor.u32 2147483648, %v11693_v55  ;;  %v5631_v11 = vsel %vm5625_vm1, %v5628_v29, %v5630_v33  ;;  %v11863_v46 = vshrl.u32 %v5500_v21, 5 }
 0x581   : > { %v5502_v0 = vand.u32 31, %v5500_v21  ;;  %7086 = vcosq.f32 %v11807_v9  ;;  %v13037_v48 = vand.u32 2147483647, %v11796_v4  ;;  %v13038_v38 = vcvt.s32.f32 %v11794_v30 }
 0x582   : > { %v11860_v56 = vsel %vm4866_vm6, %v13036_v35, %v11693_v55  ;;  %v5466_v28 = vcvt.s32.f32 %v5459_v53  ;;  %vm6328_vm14 = vcmp.lt.s32.totalorder %v6327_v20, 0  ;;  %v5336_v3 = vadd.s32 %v11773_v36, %v11770_v54 }
 0x583   : > { %v11870_v52 = vmul.f32 %v13038_v38, %v13037_v48  ;;  %v5650_v55 = vadd.s32 1, %v11848_v14  ;;  %v5503_v57 = vsub.s32 32, %v5502_v0  ;;  %v12710_v43 = vand.u32 2147483647, %v11821_v51 }
 0x584   : > { %v11876_v5 = vmul.f32 %v5466_v28, %v5464_v17  ;;  %v5647_v44 = vmul.u32 %v11813_v45, %v5631_v11  ;;  %v11879_v19 = vshll.u32 %v5496_v6, 8  ;;  %v5803_v30 = vand.u32 2139095040, %v11821_v51 }
 0x585   : > { %v11882_v4 = vsel %vm6328_vm14, 0, %v6327_v20  ;;  %vm5649_vm15 = vc.u32 %v11853_v1, %v11847_v16  ;;  %v5506_v54 = vshrl.u32 %v12763_v32, %v5503_v57  ;;  %vm5520_vm3 = vcmp.lt.s32.totalorder %v11863_v46, 1 }
 0x586   : > { %v5651_v36 = vsel %vm5649_vm15, %v5650_v55, %v11848_v14  ;;  %v5505_v53 = vshll.u32 %v12759_v12, %v5502_v0  ;;  %v5508_v39 = vshll.u32 %v12763_v32, %v5502_v0  ;;  %v5509_v45 = vshrl.u32 %v12767_v47, %v5503_v57 }
 0x587   : > { %v5652_v6 = vadd.s32 %v5651_v36, %v5647_v44  ;;  %v5511_v41 = vshll.u32 %v12767_v47, %v5502_v0  ;;  %v5512_v29 = vshrl.u32 %v12749_v59, %v5503_v57  ;;  %vm5521_vm1 = vcmp.lt.s32.totalorder %v11863_v46, 2 }
 0x588   : > { %v5352_v33 = vsub.s32 32, %v11882_v4  ;;  %v5356_v62 = vsub.s32 4294967266, %v11882_v4  ;;  %v5507_v13 = vor.u32 %v5506_v54, %v5505_v53  ;;  %v5510_v21 = vor.u32 %v5509_v45, %v5508_v39 }
 0x589   : > { %v5653_v14 = vadd.s32 536870912, %v5652_v6  ;;  %v5513_v17 = vor.u32 %v5512_v29, %v5511_v41  ;;  %v5514_v20 = vshll.u32 %v12749_v59, %v5502_v0  ;;  %v5515_v37 = vshrl.u32 %v12752_v23, %v5503_v57 }
 0x58a   : > { %v5504_v35 = vshrl.u32 %v12759_v12, %v5503_v57  ;;  %v5517_v11 = vshll.u32 %v12752_v23, %v5502_v0  ;;  %v5518_v48 = vshrl.u32 %v12744_v18, %v5503_v57  ;;  %vm5523_vm0 = vcmp.lt.s32.totalorder %v11863_v46, 4 }
 0x58b   : > { %v11903_v38 = vshrl.u32 %v5653_v14, 30  ;;  %v5516_v28 = vor.u32 %v5515_v37, %v5514_v20  ;;  %vm5522_vm14 = vcmp.lt.s32.totalorder %v11863_v46, 3  ;;  %v5525_v55 = vsel %vm5523_vm0, %v5513_v17, 2102212464  ;;  %v11908_v44 = vpop.eup %7086 }
 0x58c   : > { %13040 = vst [vmem:[#allocation37_spill] sm:$0xff] %v11908_v44  ;;  %v5353_v54 = vshll.u32 %v11837_v26, %v11882_v4  ;;  %v5519_v36 = vor.u32 %v5518_v48, %v5517_v11  ;;  %v5524_v0 = vsel %vm5520_vm3, %v5504_v35, %v5507_v13  ;;  %v5528_v57 = vsel %vm5520_vm3, %v5507_v13, %v5510_v21  ;;  %v5915_v11 = vld [vmem:[%s12526_s7 + $0x58] sm:$0xff] }
 0x58d   : > { %13039 = vst [vmem:[#allocation33_spill] sm:$0xff] %v11903_v38  ;;  %vm5074_vm15 = vcmp.lt.s32.totalorder %v11449_v42, 0  ;;  %v5655_v53 = vshll.u32 %v11903_v38, 30  ;;  %v5526_v39 = vsel %vm5522_vm14, %v5510_v21, %v5525_v55  ;;  %v5529_v45 = vsel %vm5523_vm0, %v5516_v28, 920167782 }
 0x58e   : > { %v5532_v26 = vsel %vm5520_vm3, %v5510_v21, %v5513_v17  ;;  %vm12723_vm9 = vcmp.lt.s32.totalorder %v11517_v63, 0  ;;  %v5354_v4 = vshrl.u32 %v5336_v3, %v5352_v33  ;;  %v5357_v41 = vadd.s32 127, %v5356_v62  ;;  %v5912_v3 = vld [vmem:[%s12526_s7 + $0x40] sm:$0xff]  ;;  %v5913_v33 = vld [vmem:[%s12526_s7 + $0x48] sm:$0xff] }
 0x58f   : > { %v5530_v29 = vsel %vm5522_vm14, %v5513_v17, %v5529_v45  ;;  %v5533_v13 = vsel %vm5523_vm0, %v5519_v36, 1326507024  ;;  %v11929_v14 = vsub.s32 %v5652_v6, %v5655_v53  ;;  %v5804_v35 = vshrl.u32 %v5803_v30, 23  ;;  %v5914_v30 = vld [vmem:[%s12526_s7 + $0x50] sm:$0xff] }
 0x590   : > { %v5531_v20 = vsel %vm5521_vm1, %v5528_v57, %v5530_v29  ;;  %v5534_v37 = vsel %vm5522_vm14, %v5516_v28, %v5533_v13  ;;  %v5527_v62 = vsel %vm5521_vm1, %v5524_v0, %v5526_v39  ;;  %7088 = vsinq.f32 %v11807_v9  ;;  %v5916_v29 = vld [vmem:[%s12526_s7 + $0x60] sm:$0xff]  ;;  %v5917_v13 = vld [vmem:[%s12526_s7 + $0x68] sm:$0xff] }
 0x591   : > { %v5535_v6 = vsel %vm5521_vm1, %v5532_v26, %v5534_v37  ;;  %v11946_v21 = vmul.u32.u64.low %v11879_v19, %v5531_v20  ;;  %v11947_v17 = vmul.u32.u64.high %v11879_v19, %v5531_v20, %v11946_v21  ;;  %v5658_v48 = vsub.s32 0, %v11929_v14 }
 0x592   : > { %v11958_v28 = vmul.u32.u64.low %v11879_v19, %v5535_v6  ;;  %v11959_v55 = vmul.u32.u64.high %v11879_v19, %v5535_v6, %v11958_v28  ;;  %v6345_v46 = vadd.s32 4294967169, %v5804_v35  ;;  %v5156_v36 = vxor.u32 2147483648, %v11870_v52  ;;  %v7149_v35 = vld [vmem:[%s12525_s6] ss:$0 sm:$0xff] }
 0x593   : > { %v5468_v0 = vxor.u32 2147483648, %v11876_v5  ;;  %v6696_v57 = vpack.c.bf16 %v5913_v33, %v5912_v3  ;;  %v11964_v53 = vor.u32 %v5354_v4, %v5353_v54  ;;  %v6338_v39 = vmin.u32 %v5658_v48, %v11929_v14  ;;  %v5918_v48 = vld [vmem:[%s12526_s7 + $0x70] sm:$0xff] }
 0x594   : > { %v5810_v45 = vadd.s32 1, %v6345_v46  ;;  %v6700_v26 = vpack.c.bf16 %v5915_v11, %v5914_v30  ;;  %v5358_v9 = vshll.u32 %v5357_v41, 23  ;;  %v5543_v20 = vmul.u32 %v11879_v19, %v5527_v62 }
 0x595   : > { %v5546_v37 = vadd.s32 1, %v11947_v17  ;;  %v5807_v54 = vand.u32 8388607, %v12710_v43  ;;  %6697 = vmatprep.subr.bf16.mxu0 %v6696_v57  ;;  %6716 = vmatprep.subr.bf16.mxu1 %v6696_v57  ;;  %v5660_v4 = vclz %v6338_v39  ;;  %vm5545_vm3 = vc.u32 %v11959_v55, %v11946_v21 }
 0x596   : > { %vm5811_vm1 = vcmp.gt.s32.totalorder %v5810_v45, 0  ;;  %v11983_v41 = vadd.f32 %v7149_v35, %v11411_v2  ;;  %6699 = vmatpush3.bf16.msra.mxu0 %v6696_v57  ;;  %6724 = vmatpush3.bf16.msra.mxu1 %v6696_v57  ;;  %v11988_v19 = vsel %vm5074_vm15, %v5156_v36, %v11870_v52  ;;  %v6704_v62 = vpack.c.bf16 %v5917_v13, %v5916_v29  ;;  %v5919_v52 = vld [vmem:[%s12526_s7 + $0x78] sm:$0xff] }
 0x597   : > { %v5547_v3 = vsel %vm5545_vm3, %v5546_v37, %v11947_v17  ;;  %v5812_v33 = vsel %vm5811_vm1, %v5810_v45, 0  ;;  %6701 = vmatprep.subr.bf16.mxu0 %v6700_v26  ;;  %6717 = vmatprep.subr.bf16.mxu1 %v6700_v26  ;;  %v11994_v6 = vsel %vm12723_vm9, %v5468_v0, %v11876_v5  ;;  %v6339_v2 = vadd.s32 4294967294, %v5660_v4 }
 0x598   : > { %13041 = vst [vmem:[#allocation38_spill] sm:$0xff] %v11994_v6  ;;  %v5548_v30 = vadd.s32 %v5547_v3, %v5543_v20  ;;  %v5814_v11 = vand.u32 31, %v5812_v33  ;;  %v12002_v17 = vor.u32 4788187, %v5358_v9  ;;  %v5648_v46 = vadd.s32 %v11847_v16, %v11853_v1 }
 0x599   : > { %v5808_v5 = vor.u32 8388608, %v5807_v54  ;;  %vm6340_vm0 = vcmp.lt.s32.totalorder %v6339_v2, 0  ;;  %v12010_v45 = vshrl.u32 %v5812_v33, 5  ;;  %v5699_v29 = vand.u32 2139095040, %v11983_v41 }
 0x59a   : > { %v5549_v36 = vadd.s32 536870912, %v5548_v30  ;;  %v5815_v0 = vsub.s32 32, %v5814_v11  ;;  %6703 = vmatpush3.bf16.msra.mxu0 %v6700_v26  ;;  %6725 = vmatpush3.bf16.msra.mxu1 %v6700_v26  ;;  %v12008_v39 = vsel %vm6340_vm0, 0, %v6339_v2  ;;  %v6708_v13 = vpack.c.bf16 %v5919_v52, %v5918_v48  ;;  %v12018_v37 = vpop.eup %7088 }
 0x59b   : > { %6705 = vmatprep.subr.bf16.mxu0 %v6704_v62  ;;  %6718 = vmatprep.subr.bf16.mxu1 %v6704_v62  ;;  %v5668_v9 = vsub.s32 4294967266, %v12008_v39  ;;  %v5817_v1 = vshll.u32 %v12759_v12, %v5814_v11  ;;  %v5820_v20 = vshll.u32 %v12763_v32, %v5814_v11  ;;  %13043 = vst [vmem:[#allocation49_spill] sm:$0xff] %v12018_v37  ;;  %v5664_v3 = vsub.s32 32, %v12008_v39 }
 0x59c   : > { %v12014_v16 = vshrl.u32 %v5549_v36, 30  ;;  %v5818_v26 = vshrl.u32 %v12763_v32, %v5815_v0  ;;  %v5821_v54 = vshrl.u32 %v12767_v47, %v5815_v0  ;;  %v5823_v4 = vshll.u32 %v12767_v47, %v5814_v11 }
 0x59d   : > { %v5824_v35 = vshrl.u32 %v12749_v59, %v5815_v0  ;;  %v5826_v2 = vshll.u32 %v12749_v59, %v5814_v11  ;;  %v5827_v48 = vshrl.u32 %v12752_v23, %v5815_v0  ;;  %v5360_v52 = vand.u32 2147483647, %v12002_v17 }
 0x59e   : > { %13042 = vst [vmem:[#allocation47_spill] sm:$0xff] %v12014_v16  ;;  %v5551_v33 = vshll.u32 %v12014_v16, 30  ;;  %6707 = vmatpush3.bf16.msra.mxu0 %v6704_v62  ;;  %6726 = vmatpush3.bf16.msra.mxu1 %v6704_v62  ;;  %v5669_v36 = vadd.s32 127, %v5668_v9  ;;  %v5819_v43 = vor.u32 %v5818_v26, %v5817_v1  ;;  %v5822_v28 = vor.u32 %v5821_v54, %v5820_v20 }
 0x59f   : > { %6709 = vmatprep.subr.bf16.mxu0 %v6708_v13  ;;  %v5825_v51 = vor.u32 %v5824_v35, %v5823_v4  ;;  %v5828_v38 = vor.u32 %v5827_v48, %v5826_v2  ;;  %v5848_v6 = vshll.u32 %v5808_v5, 8  ;;  %6719 = vmatprep.subr.bf16.mxu1 %v6708_v13  ;;  %v5829_v16 = vshll.u32 %v12752_v23, %v5814_v11 }
 0x5a0   : > { %v12029_v57 = vsub.s32 %v5548_v30, %v5551_v33  ;;  %v5830_v63 = vshrl.u32 %v12744_v18, %v5815_v0  ;;  %v5700_v34 = vshrl.u32 %v5699_v29, 23  ;;  %v13044_v44 = vand.u32 2147483647, %v11983_v41 }
 0x5a1   : > { %v5666_v37 = vshrl.u32 %v5648_v46, %v5664_v3  ;;  %v5816_v9 = vshrl.u32 %v12759_v12, %v5815_v0  ;;  %vm5832_vm14 = vcmp.lt.s32.totalorder %v12010_v45, 1  ;;  %v5670_v30 = vshll.u32 %v5669_v36, 23 }
 0x5a2   : > { %v5703_v62 = vand.u32 8388607, %v13044_v44  ;;  %v5554_v17 = vsub.s32 0, %v12029_v57  ;;  %6711 = vmatpush3.bf16.msra.mxu0 %v6708_v13  ;;  %6727 = vmatpush3.bf16.msra.mxu1 %v6708_v13  ;;  %v5831_v5 = vor.u32 %v5830_v63, %v5829_v16  ;;  %vm5835_vm3 = vcmp.lt.s32.totalorder %v12010_v45, 4 }
 0x5a3   : > { %v5840_v11 = vsel %vm5832_vm14, %v5819_v43, %v5822_v28  ;;  %vm5834_vm1 = vcmp.lt.s32.totalorder %v12010_v45, 3  ;;  %v5837_v44 = vsel %vm5835_vm3, %v5825_v51, 2102212464  ;;  %v5841_v46 = vsel %vm5835_vm3, %v5828_v38, 920167782 }
 0x5a4   : > { %v6334_v29 = vmin.u32 %v5554_v17, %v12029_v57  ;;  %vm5833_vm0 = vcmp.lt.s32.totalorder %v12010_v45, 2  ;;  %v5842_v0 = vsel %vm5834_vm1, %v5825_v51, %v5841_v46  ;;  %v5844_v1 = vsel %vm5832_vm14, %v5822_v28, %v5825_v51 }
 0x5a5   : > { %v5845_v13 = vsel %vm5835_vm3, %v5831_v5, 1326507024  ;;  %v5836_v63 = vsel %vm5832_vm14, %v5816_v9, %v5819_v43  ;;  %v5843_v16 = vsel %vm5833_vm0, %v5840_v11, %v5842_v0  ;;  %v5838_v54 = vsel %vm5834_vm1, %v5822_v28, %v5837_v44 }
 0x5a6   : > { %v5556_v20 = vclz %v6334_v29  ;;  %v5846_v26 = vsel %vm5834_vm1, %v5828_v38, %v5845_v13  ;;  %v12052_v35 = vmul.u32.u64.low %v5848_v6, %v5843_v16  ;;  %v12053_v3 = vmul.u32.u64.high %v5848_v6, %v5843_v16, %v12052_v35 }
 0x5a7   : > { %v5847_v4 = vsel %vm5833_vm0, %v5844_v1, %v5846_v26  ;;  %v5665_v51 = vshll.u32 %v11929_v14, %v12008_v39  ;;  %v13045_v43 = vcvt.s32.f32 %v11964_v53  ;;  %v5544_v38 = vadd.s32 %v11946_v21, %v11959_v55 }
 0x5a8   : > { %v6335_v33 = vadd.s32 4294967294, %v5556_v20  ;;  %v12058_v2 = vmul.u32.u64.low %v5848_v6, %v5847_v4  ;;  %v12059_v48 = vmul.u32.u64.high %v5848_v6, %v5847_v4, %v12058_v2  ;;  %v6341_v28 = vadd.s32 4294967169, %v5700_v34 }
 0x5a9   : > { %v12063_v36 = vmul.f32 %v13045_v43, %v5360_v52  ;;  %v4326_v17 = vsub.s32 4, %v11071_v27  ;;  %v12068_v9 = vor.u32 %v5666_v37, %v5665_v51  ;;  %v5839_v14 = vsel %vm5833_vm0, %v5836_v63, %v5838_v54 }
 0x5aa   : > { %vm6336_vm14 = vcmp.lt.s32.totalorder %v6335_v33, 0  ;;  %v13046_v39 = vand.u32 2147483647, %v10931_v31  ;;  %v12078_v53 = vor.u32 4788187, %v5670_v30  ;;  %v5858_v21 = vadd.s32 1, %v12053_v3 }
 0x5ab   : > { %v5559_v52 = vsel %vm6336_vm14, 0, %v6335_v33  ;;  %v5706_v34 = vadd.s32 1, %v6341_v28  ;;  %v5704_v37 = vor.u32 8388608, %v5703_v62  ;;  %v5855_v29 = vmul.u32 %v5848_v6, %v5839_v14 }
 0x5ac   : > { %vm12074_vm3 = vcmp.le.f32.partialorder %v13046_v39, 0.7853982  ;;  %v5560_v55 = vsub.s32 32, %v5559_v52  ;;  %v5564_v11 = vsub.s32 4294967266, %v5559_v52  ;;  %vm5857_vm1 = vc.u32 %v12059_v48, %v12052_v35 }
 0x5ad   : > { %v4328_v45 = vsel %vm12074_vm3, %v10931_v31, %v11512_v10  ;;  %vm5707_vm0 = vcmp.gt.s32.totalorder %v5706_v34, 0  ;;  %v4327_v30 = vsel %vm4242_vm13, %v4326_v17, %v11071_v27  ;;  %v5859_v0 = vsel %vm5857_vm1, %v5858_v21, %v12053_v3 }
 0x5ae   : > { %v5562_v44 = vshrl.u32 %v5544_v38, %v5560_v55  ;;  %v5565_v46 = vadd.s32 127, %v5564_v11  ;;  %v5708_v1 = vsel %vm5707_vm0, %v5706_v34, 0  ;;  %v5674_v62 = vcvt.s32.f32 %v12068_v9  ;;  %v13057_v9 = vld [vmem:[#allocation41_spill] sm:$0xff] }
 0x5af   : > { %v5860_v13 = vadd.s32 %v5859_v0, %v5855_v29  ;;  %v5710_v20 = vand.u32 31, %v5708_v1  ;;  %7090 = vcosq.f32 %v4328_v45  ;;  %v5672_v10 = vand.u32 2147483647, %v12078_v53 }
 0x5b0   : > { %v5561_v6 = vshll.u32 %v12029_v57, %v5559_v52  ;;  %v12094_v63 = vshll.u32 %v5704_v37, 8  ;;  %7092 = vsinq.f32 %v4328_v45  ;;  %v5709_v26 = vshrl.u32 %v5708_v1, 5  ;;  %v13049_v37 = vld [vmem:[#allocation40_spill] sm:$0xff] }
 0x5b1   : > { %v5861_v16 = vadd.s32 536870912, %v5860_v13  ;;  %v5711_v27 = vsub.s32 32, %v5710_v20  ;;  %v4329_v54 = vsel %vm12074_vm3, 0, %v4327_v30  ;;  %v5566_v3 = vshll.u32 %v5565_v46, 23 }
 0x5b2   : > { %v12098_v4 = vor.u32 %v5562_v44, %v5561_v6  ;;  %v5713_v51 = vshll.u32 %v12759_v12, %v5710_v20  ;;  %v5716_v33 = vshll.u32 %v12763_v32, %v5710_v20  ;;  %v5719_v38 = vshll.u32 %v12767_v47, %v5710_v20 }
 0x5b3   : > { %v12102_v2 = vshrl.u32 %v5861_v16, 30  ;;  %v5714_v57 = vshrl.u32 %v12763_v32, %v5711_v27  ;;  %v5717_v43 = vshrl.u32 %v12767_v47, %v5711_v27  ;;  %v5720_v28 = vshrl.u32 %v12749_v59, %v5711_v27 }
 0x5b4   : > { %v5722_v17 = vshll.u32 %v12749_v59, %v5710_v20  ;;  %v5723_v14 = vshrl.u32 %v12752_v23, %v5711_v27  ;;  %v5725_v39 = vshll.u32 %v12752_v23, %v5710_v20  ;;  %v5726_v34 = vshrl.u32 %v12744_v18, %v5711_v27 }
 0x5b5   : > { %v5863_v5 = vshll.u32 %v12102_v2, 30  ;;  %v5715_v52 = vor.u32 %v5714_v57, %v5713_v51  ;;  %v5718_v21 = vor.u32 %v5717_v43, %v5716_v33  ;;  %v5721_v55 = vor.u32 %v5720_v28, %v5719_v38 }
 0x5b6   : > { %v5724_v32 = vor.u32 %v5723_v14, %v5722_v17  ;;  %v4333_v11 = vadd.s32 3, %v4329_v54  ;;  %v4430_v45 = vsub.s32 4, %v13049_v37  ;;  %v12114_v47 = vor.u32 4788187, %v5566_v3 }
 0x5b7   : > { %v12116_v29 = vsub.s32 %v5860_v13, %v5863_v5  ;;  %v5727_v59 = vor.u32 %v5726_v34, %v5725_v39  ;;  %vm5728_vm13 = vcmp.lt.s32.totalorder %v5709_v26, 1  ;;  %v5712_v30 = vshrl.u32 %v12759_v12, %v5711_v27 }
 0x5b8   : > { %vm5730_vm14 = vcmp.lt.s32.totalorder %v5709_v26, 3  ;;  %vm5731_vm3 = vcmp.lt.s32.totalorder %v5709_v26, 4  ;;  %v5736_v23 = vsel %vm5728_vm13, %v5715_v52, %v5718_v21  ;;  %v5740_v1 = vsel %vm5728_vm13, %v5718_v21, %v5721_v55 }
 0x5b9   : > { %v7091_v44 = vpop.eup %7090  ;;  %v5866_v46 = vsub.s32 0, %v12116_v29  ;;  %v5733_v18 = vsel %vm5731_vm3, %v5721_v55, 2102212464  ;;  %v5737_v0 = vsel %vm5731_vm3, %v5724_v32, 920167782  ;;  %vm4332_vm1 = vweird.f32 %v10931_v31 }
 0x5ba   : > { %v7093_v20 = vpop.eup %7092  ;;  %vm5729_vm0 = vcmp.lt.s32.totalorder %v5709_v26, 2  ;;  %v5732_v6 = vsel %vm5728_vm13, %v5712_v30, %v5715_v52  ;;  %v5738_v13 = vsel %vm5730_vm14, %v5721_v55, %v5737_v0  ;;  %v5741_v16 = vsel %vm5731_vm3, %v5727_v59, 1326507024  ;;  %v13050_v26 = vld [vmem:[#allocation39_spill] sm:$0xff] }
 0x5bb   : > { %v6346_v54 = vmin.u32 %v5866_v46, %v12116_v29  ;;  %v5734_v12 = vsel %vm5730_vm14, %v5718_v21, %v5733_v18  ;;  %v5739_v27 = vsel %vm5729_vm0, %v5736_v23, %v5738_v13  ;;  %v5742_v3 = vsel %vm5730_vm14, %v5724_v32, %v5741_v16  ;;  %v13052_v13 = vld [vmem:[#allocation50_spill] sm:$0xff]  ;;  %v13053_v16 = vld [vmem:[#allocation52_spill] sm:$0xff] }
 0x5bc   : > { %v5568_v51 = vand.u32 2147483647, %v12114_v47  ;;  %v5743_v33 = vsel %vm5729_vm0, %v5740_v1, %v5742_v3  ;;  %v12127_v57 = vmul.u32.u64.low %v12094_v63, %v5739_v27  ;;  %v12128_v43 = vmul.u32.u64.high %v12094_v63, %v5739_v27, %v12127_v57 }
 0x5bd   : > { %v5868_v38 = vclz %v6346_v54  ;;  %v12132_v28 = vmul.u32.u64.low %v12094_v63, %v5743_v33  ;;  %v12133_v17 = vmul.u32.u64.high %v12094_v63, %v5743_v33, %v12132_v28  ;;  %v4334_v14 = vand.u32 3, %v4333_v11 }
 0x5be   : > { %v5735_v39 = vsel %vm5729_vm0, %v5732_v6, %v5734_v12  ;;  %v4337_v5 = vxor.u32 2147483648, %v7093_v20  ;;  %v4340_v52 = vxor.u32 2147483648, %v7091_v44  ;;  %v4431_v21 = vsel %vm4346_vm8, %v4430_v45, %v13049_v37 }
 0x5bf   : > { %v6347_v34 = vadd.s32 4294967294, %v5868_v38  ;;  %vm4335_vm13 = vcmp.lt.s32.totalorder %v4334_v14, 2  ;;  %vm4336_vm14 = vcmp.eq.s32.totalorder %v4334_v14, 0  ;;  %vm4339_vm3 = vcmp.eq.s32.totalorder %v4334_v14, 2 }
 0x5c0   : > { %v5754_v55 = vadd.s32 1, %v12128_v43  ;;  %v4338_v32 = vsel %vm4336_vm14, %v7091_v44, %v4337_v5  ;;  %v4341_v47 = vsel %vm4339_vm3, %v4340_v52, %v7093_v20  ;;  %v4433_v30 = vsel %vm11162_vm4, 0, %v4431_v21 }
 0x5c1   : > { %vm6348_vm9 = vcmp.lt.s32.totalorder %v6347_v34, 0  ;;  %v5751_v11 = vmul.u32 %v12094_v63, %v5735_v39  ;;  %vm5753_vm0 = vc.u32 %v12133_v17, %v12127_v57  ;;  %v4342_v23 = vsel %vm4335_vm13, %v4338_v32, %v4341_v47  ;;  %v13061_v47 = vld [vmem:[#allocation36_spill] sm:$0xff] }
 0x5c2   : > { %v5871_v46 = vsel %vm6348_vm9, 0, %v6347_v34  ;;  %v5755_v37 = vsel %vm5753_vm0, %v5754_v55, %v12128_v43  ;;  %v4343_v45 = vsel %vm4332_vm1, nan, %v4342_v23  ;;  %v4437_v18 = vadd.s32 3, %v4433_v30  ;;  %v13062_v30 = vld [vmem:[#allocation14_spill] sm:$0xff]  ;;  %v13063_v23 = vld [vmem:[#allocation53_spill] sm:$0xff] }
 0x5c3   : > { %vm5282_vm8 = vcmp.lt.s32.totalorder %v11560_v49, 0  ;;  %v5364_v44 = vxor.u32 2147483648, %v12063_v36  ;;  %v12153_v63 = vmul.f32 %v5674_v62, %v5672_v10  ;;  %v5876_v0 = vsub.s32 4294967266, %v5871_v46  ;;  %6592 = vmatprep.mubr.f32.mxu0 %v4343_v45 }
 0x5c4   : > { %v5756_v1 = vadd.s32 %v5755_v37, %v5751_v11  ;;  %v5570_v20 = vcvt.s32.f32 %v12098_v4  ;;  %v4438_v6 = vand.u32 3, %v4437_v18  ;;  %v4441_v31 = vxor.u32 2147483648, %v13052_v13 }
 0x5c5   : > { %v4444_v54 = vxor.u32 2147483648, %v13053_v16  ;;  %v5872_v12 = vsub.s32 32, %v5871_v46  ;;  %v13054_v3 = vand.u32 2147483647, %v10955_v50  ;;  %v4534_v62 = vsub.s32 4, %v13057_v9 }
 0x5c6   : > { %v5757_v27 = vadd.s32 536870912, %v5756_v1  ;;  %v12165_v10 = vmul.f32 %v5570_v20, %v5568_v51  ;;  %v5856_v4 = vadd.s32 %v12052_v35, %v12059_v48  ;;  %vm4440_vm9 = vcmp.eq.s32.totalorder %v4438_v6, 0 }
 0x5c7   : > { %vm12160_vm4 = vcmp.le.f32.partialorder %v13054_v3, 0.7853982  ;;  %v5877_v43 = vadd.s32 127, %v5876_v0  ;;  %v4442_v28 = vsel %vm4440_vm9, %v13053_v16, %v4441_v31  ;;  %vm4443_vm1 = vcmp.eq.s32.totalorder %v4438_v6, 2 }
 0x5c8   : > { %v4536_v33 = vsel %vm12160_vm4, %v10955_v50, %v11545_v58  ;;  %v12173_v38 = vshrl.u32 %v5757_v27, 30  ;;  %vm4439_vm13 = vcmp.lt.s32.totalorder %v4438_v6, 2  ;;  %v4445_v14 = vsel %vm4443_vm1, %v4444_v54, %v13052_v13 }
 0x5c9   : > { %v4535_v51 = vsel %vm4450_vm10, %v4534_v62, %v13057_v9  ;;  %7094 = vcosq.f32 %v4536_v33  ;;  %v5874_v35 = vshrl.u32 %v5856_v4, %v5872_v12  ;;  %vm4436_vm14 = vweird.f32 %v13050_v26 }
 0x5ca   : > { %v5759_v48 = vshll.u32 %v12173_v38, 30  ;;  %v4446_v58 = vsel %vm4439_vm13, %v4442_v28, %v4445_v14  ;;  %v5873_v39 = vshll.u32 %v12116_v29, %v5871_v46  ;;  %v4537_v52 = vsel %vm12160_vm4, 0, %v4535_v51  ;;  %v13070_v51 = vld [vmem:[#allocation43_spill] sm:$0xff] }
 0x5cb   : > { %v4447_v5 = vsel %vm4436_vm14, nan, %v4446_v58  ;;  %7096 = vsinq.f32 %v4536_v33  ;;  %v5878_v21 = vshll.u32 %v5877_v43, 23  ;;  %v13058_v55 = vand.u32 2147483647, %v10940_v40 }
 0x5cc   : > { %v12185_v34 = vsub.s32 %v5756_v1, %v5759_v48  ;;  %6593 = vmatmul.mubr.f32.vlgmr.msra.gmra.mrb[16].mxu0 %v4447_v5  ;;  %v4638_v26 = vsub.s32 4, %v13061_v47  ;;  %v12197_v29 = vsel %vm5282_vm8, %v5364_v44, %v12063_v36  ;;  %v4541_v59 = vadd.s32 3, %v4537_v52  ;;  %v13071_v36 = vld [vmem:[#allocation24_spill] sm:$0xff] }
 0x5cd   : > { %vm12189_vm10 = vcmp.le.f32.partialorder %v13058_v55, 0.7853982  ;;  %v4742_v46 = vsub.s32 4, %v13063_v23  ;;  %v12204_v37 = vor.u32 %v5874_v35, %v5873_v39  ;;  %v13064_v0 = vand.u32 2147483647, %v11184_v15 }
 0x5ce   : > { %v4640_v11 = vsel %vm12189_vm10, %v10940_v40, %v13062_v30  ;;  %v5762_v45 = vsub.s32 0, %v12185_v34  ;;  %v4639_v18 = vsel %vm4554_vm5, %v4638_v26, %v13061_v47  ;;  %v5676_v6 = vxor.u32 2147483648, %v12153_v63 }
 0x5cf   : > { %vm12212_vm3 = vcmp.le.f32.partialorder %v13064_v0, 0.7853982  ;;  %v4641_v44 = vsel %vm12189_vm10, 0, %v4639_v18  ;;  %7098 = vcosq.f32 %v4640_v11  ;;  %v4743_v1 = vsel %vm4658_vm7, %v4742_v46, %v13063_v23 }
 0x5d0   : > { %v4744_v20 = vsel %vm12212_vm3, %v11184_v15, %v11682_v7  ;;  %v5572_v13 = vxor.u32 2147483648, %v12165_v10  ;;  %v12227_v31 = vor.u32 4788187, %v5878_v21  ;;  %v6342_v16 = vmin.u32 %v5762_v45, %v12185_v34 }
 0x5d1   : > { %v4542_v54 = vand.u32 3, %v4541_v59  ;;  %7100 = vsinq.f32 %v4640_v11  ;;  %v4645_v12 = vadd.s32 3, %v4641_v44  ;;  %v4745_v27 = vsel %vm12212_vm3, 0, %v4743_v1 }
 0x5d2   : > { %v5752_v3 = vadd.s32 %v12127_v57, %v12133_v17  ;;  %v5764_v53 = vclz %v6342_v16  ;;  %vm4540_vm5 = vweird.f32 %v10955_v50  ;;  %7102 = vcosq.f32 %v4744_v20 }
 0x5d3   : > { %v7095_v7 = vpop.eup %7094  ;;  %v5882_v9 = vcvt.s32.f32 %v12204_v37  ;;  %v4646_v62 = vand.u32 3, %v4645_v12  ;;  %7104 = vsinq.f32 %v4744_v20  ;;  %v4749_v4 = vadd.s32 3, %v4745_v27 }
 0x5d4   : > { %v6343_v33 = vadd.s32 4294967294, %v5764_v53  ;;  %v4548_v43 = vxor.u32 2147483648, %v7095_v7  ;;  %v13067_v28 = vand.u32 2147483647, %v11101_v25  ;;  %v4846_v57 = vsub.s32 4, %v13070_v51 }
 0x5d5   : > { %v7097_v17 = vpop.eup %7096  ;;  %v5880_v35 = vand.u32 2147483647, %v12227_v31  ;;  %vm4543_vm0 = vcmp.lt.s32.totalorder %v4542_v54, 2  ;;  %vm4547_vm4 = vcmp.eq.s32.totalorder %v4542_v54, 2  ;;  %vm4544_vm1 = vcmp.eq.s32.totalorder %v4542_v54, 0 }
 0x5d6   : > { %vm12238_vm7 = vcmp.le.f32.partialorder %v13067_v28, 0.7853982  ;;  %vm6344_vm9 = vcmp.lt.s32.totalorder %v6343_v33, 0  ;;  %v4545_v58 = vxor.u32 2147483648, %v7097_v17  ;;  %v4549_v39 = vsel %vm4547_vm4, %v4548_v43, %v7097_v17 }
 0x5d7   : > { %v4848_v48 = vsel %vm12238_vm7, %v11101_v25, %v11669_v8  ;;  %v4847_v5 = vsel %vm4762_vm2, %v4846_v57, %v13070_v51  ;;  %v5767_v52 = vsel %vm6344_vm9, 0, %v6343_v33  ;;  %vm4644_vm13 = vweird.f32 %v10940_v40 }
 0x5d8   : > { %vm4647_vm14 = vcmp.lt.s32.totalorder %v4646_v62, 2  ;;  %vm4648_vm10 = vcmp.eq.s32.totalorder %v4646_v62, 0  ;;  %v5768_v21 = vsub.s32 32, %v5767_v52  ;;  %v5772_v55 = vsub.s32 4294967266, %v5767_v52 }
 0x5d9   : > { %v4546_v32 = vsel %vm4544_vm1, %v7095_v7, %v4545_v58  ;;  %v4750_v47 = vand.u32 3, %v4749_v4  ;;  %v7099_v26 = vpop.eup %7098  ;;  %vm4651_vm3 = vcmp.eq.s32.totalorder %v4646_v62, 2  ;;  %v4849_v59 = vsel %vm12238_vm7, 0, %v4847_v5 }
 0x5da   : > { %v4550_v8 = vsel %vm4543_vm0, %v4546_v32, %v4549_v39  ;;  %7106 = vcosq.f32 %v4848_v48  ;;  %v5770_v30 = vshrl.u32 %v5752_v3, %v5768_v21  ;;  %v5773_v11 = vadd.s32 127, %v5772_v55  ;;  %v13078_v21 = vld [vmem:[#allocation31_spill] sm:$0xff] }
 0x5db   : > { %v4551_v23 = vsel %vm4540_vm5, nan, %v4550_v8  ;;  %v4652_v46 = vxor.u32 2147483648, %v7099_v26  ;;  %v7101_v45 = vpop.eup %7100  ;;  %v5769_v18 = vshll.u32 %v12185_v34, %v5767_v52  ;;  %7108 = vsinq.f32 %v4848_v48 }
 0x5dc   : > { %6595 = vmatprep.mubr.f32.mxu0 %v4551_v23  ;;  %v4853_v0 = vadd.s32 3, %v4849_v59  ;;  %v4950_v44 = vsub.s32 4, %v13071_v36  ;;  %v7103_v1 = vpop.eup %7102  ;;  %v5774_v20 = vshll.u32 %v5773_v11, 23  ;;  %v4649_v31 = vxor.u32 2147483648, %v7101_v45 }
 0x5dd   : > { %v4653_v16 = vsel %vm4651_vm3, %v4652_v46, %v7101_v45  ;;  %vm4755_vm2 = vcmp.eq.s32.totalorder %v4750_v47, 2  ;;  %v7105_v54 = vpop.eup %7104  ;;  %v5771_v12 = vor.u32 %v5770_v30, %v5769_v18  ;;  %v4756_v27 = vxor.u32 2147483648, %v7103_v1 }
 0x5de   : > { %v13072_v50 = vand.u32 2147483647, %v11242_v24  ;;  %v4951_v34 = vsel %vm4866_vm6, %v4950_v44, %v13071_v36  ;;  %v5775_v53 = vor.u32 4788187, %v5774_v20  ;;  %v4650_v7 = vsel %vm4648_vm10, %v7099_v26, %v4649_v31 }
 0x5df   : > { %v4753_v4 = vxor.u32 2147483648, %v7105_v54  ;;  %v4654_v43 = vsel %vm4647_vm14, %v4650_v7, %v4653_v16  ;;  %vm4752_vm7 = vcmp.eq.s32.totalorder %v4750_v47, 0  ;;  %v4757_v28 = vsel %vm4755_vm2, %v4756_v27, %v7105_v54  ;;  %v13082_v16 = vld [vmem:[#allocation48_spill] sm:$0xff] }
 0x5e0   : > { %vm12262_vm5 = vcmp.le.f32.partialorder %v13072_v50, 0.7853982  ;;  %v4854_v14 = vand.u32 3, %v4853_v0  ;;  %v5776_v51 = vand.u32 2147483647, %v5775_v53  ;;  %v4655_v57 = vsel %vm4644_vm13, nan, %v4654_v43 }
 0x5e1   : > { %v4952_v33 = vsel %vm12262_vm5, %v11242_v24, %v11860_v56  ;;  %vm4751_vm0 = vcmp.lt.s32.totalorder %v4750_v47, 2  ;;  %v4754_v17 = vsel %vm4752_vm7, %v7103_v1, %v4753_v4  ;;  %6596 = vmatmul.mubr.f32.gmra.mrb[18].mxu0 %v4655_v57  ;;  %vm4748_vm6 = vweird.f32 %v11184_v15  ;;  %v13088_v43 = vld [vmem:[#allocation6_spill] sm:$0xff] }
 0x5e2   : > { %v4758_v48 = vsel %vm4751_vm0, %v4754_v17, %v4757_v28  ;;  %v4953_v58 = vsel %vm12262_vm5, 0, %v4951_v34  ;;  %7110 = vcosq.f32 %v4952_v33  ;;  %v12282_v56 = vmul.f32 %v5882_v9, %v5880_v35  ;;  %v13084_v34 = vld [vmem:[#allocation37_spill] sm:$0xff] }
 0x5e3   : > { %v5778_v62 = vcvt.s32.f32 %v5771_v12  ;;  %v4759_v39 = vsel %vm4748_vm6, nan, %v4758_v48  ;;  %7112 = vsinq.f32 %v4952_v33  ;;  %vm4859_vm4 = vcmp.eq.s32.totalorder %v4854_v14, 2 }
 0x5e4   : > { %v7107_v5 = vpop.eup %7106  ;;  %6598 = vmatprep.mubr.f32.mxu0 %v4759_v39  ;;  %v4957_v40 = vadd.s32 3, %v4953_v58  ;;  %v13075_v52 = vand.u32 2147483647, %v11199_v22  ;;  %v5054_v55 = vsub.s32 4, %v13078_v21  ;;  %v13079_v35 = vand.u32 2147483647, %v11449_v42 }
 0x5e5   : > { %v12291_v32 = vmul.f32 %v5778_v62, %v5776_v51  ;;  %v4860_v37 = vxor.u32 2147483648, %v7107_v5  ;;  %v7109_v26 = vpop.eup %7108  ;;  %v5158_v59 = vsub.s32 4, %v11631_v61  ;;  %vm4852_vm13 = vweird.f32 %v11101_v25  ;;  %v13092_v39 = vld [vmem:[#allocation51_spill] sm:$0xff] }
 0x5e6   : > { %vm12286_vm9 = vcmp.le.f32.partialorder %v13075_v52, 0.7853982  ;;  %vm12299_vm1 = vcmp.le.f32.partialorder %v13079_v35, 0.7853982  ;;  %v5055_v8 = vsel %vm4970_vm11, %v5054_v55, %v13078_v21  ;;  %vm4855_vm14 = vcmp.lt.s32.totalorder %v4854_v14, 2 }
 0x5e7   : > { %v5056_v9 = vsel %vm12286_vm9, %v11199_v22, %v11689_v60  ;;  %v5160_v30 = vsel %vm12299_vm1, %v11449_v42, %v11988_v19  ;;  %v4857_v60 = vxor.u32 2147483648, %v7109_v26  ;;  %v4861_v11 = vsel %vm4859_vm4, %v4860_v37, %v7109_v26 }
 0x5e8   : > { %7114 = vcosq.f32 %v5056_v9  ;;  %vm4856_vm10 = vcmp.eq.s32.totalorder %v4854_v14, 0  ;;  %v4958_v23 = vand.u32 3, %v4957_v40  ;;  %v5057_v46 = vsel %vm12286_vm9, 0, %v5055_v8  ;;  %v13090_v14 = vld [vmem:[#allocation7_spill] sm:$0xff] }
 0x5e9   : > { %7116 = vsinq.f32 %v5056_v9  ;;  %v4858_v45 = vsel %vm4856_vm10, %v7107_v5, %v4857_v60  ;;  %vm4956_vm11 = vweird.f32 %v11242_v24  ;;  %v5061_v18 = vadd.s32 3, %v5057_v46  ;;  %v13098_v46 = vld [vmem:[#allocation54_spill] sm:$0xff] }
 0x5ea   : > { %v5159_v19 = vsel %vm5074_vm15, %v5158_v59, %v11631_v61  ;;  %7118 = vcosq.f32 %v5160_v30  ;;  %v5780_v0 = vxor.u32 2147483648, %v12291_v32  ;;  %v4862_v36 = vsel %vm4855_vm14, %v4858_v45, %v4861_v11  ;;  %v13083_v61 = vld [vmem:[#allocation49_spill] sm:$0xff]  ;;  %v13094_v11 = vld [vmem:[#allocation30_spill] sm:$0xff] }
 0x5eb   : > { %v5161_v44 = vsel %vm12299_vm1, 0, %v5159_v19  ;;  %7120 = vsinq.f32 %v5160_v30  ;;  %v4863_v1 = vsel %vm4852_vm13, nan, %v4862_v36  ;;  %v5062_v20 = vand.u32 3, %v5061_v18  ;;  %v13099_v36 = vld [vmem:[#allocation38_spill] sm:$0xff] }
 0x5ec   : > { %v5165_v31 = vadd.s32 3, %v5161_v44  ;;  %v5262_v54 = vsub.s32 4, %v13082_v16  ;;  %v7111_v12 = vpop.eup %7110  ;;  %6599 = vmatmul.mubr.f32.gmra.mrb[20].mxu0 %v4863_v1  ;;  %vm4959_vm3 = vcmp.lt.s32.totalorder %v4958_v23, 2  ;;  %vm4960_vm2 = vcmp.eq.s32.totalorder %v4958_v23, 0 }
 0x5ed   : > { %vm4963_vm15 = vcmp.eq.s32.totalorder %v4958_v23, 2  ;;  %v5273_v27 = vxor.u32 2147483648, %v13083_v61  ;;  %v7113_v50 = vpop.eup %7112  ;;  %v4964_v3 = vxor.u32 2147483648, %v7111_v12  ;;  %vm5063_vm5 = vcmp.lt.s32.totalorder %v5062_v20, 2 }
 0x5ee   : > { %v5276_v53 = vxor.u32 2147483648, %v13084_v34  ;;  %v13085_v7 = vand.u32 2147483647, %v11560_v49  ;;  %v4961_v4 = vxor.u32 2147483648, %v7113_v50  ;;  %vm5060_vm0 = vweird.f32 %v11199_v22 }
 0x5ef   : > { %v5166_v33 = vand.u32 3, %v5165_v31  ;;  %vm13089_vm6 = vcmp.lt.s32.totalorder %v13088_v43, 0  ;;  %v5366_v51 = vsub.s32 4, %v13090_v14  ;;  %v4965_v57 = vsel %vm4963_vm15, %v4964_v3, %v7113_v50 }
 0x5f0   : > { %vm12329_vm7 = vcmp.le.f32.partialorder %v13085_v7, 0.7853982  ;;  %v5263_v28 = vsel %vm13089_vm6, %v5262_v54, %v13082_v16  ;;  %vm5064_vm4 = vcmp.eq.s32.totalorder %v5062_v20, 0  ;;  %vm5490_vm9 = vcmp.lt.s32.totalorder %v13092_v39, 0 }
 0x5f1   : > { %v5265_v48 = vsel %vm11747_vm12, 0, %v5263_v28  ;;  %v5368_v58 = vsel %vm12329_vm7, %v11560_v49, %v12197_v29  ;;  %v4962_v5 = vsel %vm4960_vm2, %v7111_v12, %v4961_v4  ;;  %vm5067_vm1 = vcmp.eq.s32.totalorder %v5062_v20, 2  ;;  %v13093_v29 = vld [vmem:[#allocation45_spill] sm:$0xff]  ;;  %v13104_v4 = vld [vmem:[#allocation47_spill] sm:$0xff] }
 0x5f2   : > { %v7115_v62 = vpop.eup %7114  ;;  %vm5164_vm13 = vweird.f32 %v11449_v42  ;;  %vm5167_vm14 = vcmp.lt.s32.totalorder %v5166_v33, 2  ;;  %vm5168_vm10 = vcmp.eq.s32.totalorder %v5166_v33, 0  ;;  %v4966_v40 = vsel %vm4959_vm3, %v4962_v5, %v4965_v57 }
 0x5f3   : > { %v5068_v52 = vxor.u32 2147483648, %v7115_v62  ;;  %v5269_v15 = vadd.s32 3, %v5265_v48  ;;  %v5367_v21 = vsel %vm5282_vm8, %v5366_v51, %v13090_v14  ;;  %v7117_v55 = vpop.eup %7116  ;;  %vm5594_vm12 = vcmp.lt.s32.totalorder %v13093_v29, 0 }
 0x5f4   : > { %v4967_v37 = vsel %vm4956_vm11, nan, %v4966_v40  ;;  %vm5171_vm2 = vcmp.eq.s32.totalorder %v5166_v33, 2  ;;  %v5369_v9 = vsel %vm12329_vm7, 0, %v5367_v21  ;;  %7122 = vcosq.f32 %v5368_v58  ;;  %v7119_v35 = vpop.eup %7118 }
 0x5f5   : > { %6601 = vmatprep.mubr.f32.mxu0 %v4967_v37  ;;  %v5065_v47 = vxor.u32 2147483648, %v7117_v55  ;;  %v5069_v26 = vsel %vm5067_vm1, %v5068_v52, %v7117_v55  ;;  %v5270_v8 = vand.u32 3, %v5269_v15  ;;  %7124 = vsinq.f32 %v5368_v58  ;;  %v7121_v59 = vpop.eup %7120 }
 0x5f6   : > { %v5172_v30 = vxor.u32 2147483648, %v7119_v35  ;;  %v5373_v60 = vadd.s32 3, %v5369_v9  ;;  %v13095_v23 = vand.u32 2147483647, %v13094_v11  ;;  %v5470_v45 = vsub.s32 4, %v13098_v46 }
 0x5f7   : > { %v5066_v18 = vsel %vm5064_vm4, %v7115_v62, %v5065_v47  ;;  %v5169_v19 = vxor.u32 2147483648, %v7121_v59  ;;  %vm5272_vm11 = vcmp.eq.s32.totalorder %v5270_v8, 0  ;;  %vm5275_vm3 = vcmp.eq.s32.totalorder %v5270_v8, 2 }
 0x5f8   : > { %vm12359_vm8 = vcmp.le.f32.partialorder %v13095_v23, 0.7853982  ;;  %v5070_v1 = vsel %vm5063_vm5, %v5066_v18, %v5069_v26  ;;  %v5173_v31 = vsel %vm5171_vm2, %v5172_v30, %v7121_v59  ;;  %v5274_v16 = vsel %vm5272_vm11, %v13084_v34, %v5273_v27  ;;  %v13112_v59 = vld [vmem:[#allocation46_spill] sm:$0xff] }
 0x5f9   : > { %v5472_v44 = vsel %vm12359_vm8, %v13094_v11, %v13099_v36  ;;  %v5071_v54 = vsel %vm5060_vm0, nan, %v5070_v1  ;;  %v5170_v12 = vsel %vm5168_vm10, %v7119_v35, %v5169_v19  ;;  %vm5271_vm15 = vcmp.lt.s32.totalorder %v5270_v8, 2 }
 0x5fa   : > { %v5277_v50 = vsel %vm5275_vm3, %v5276_v53, %v13083_v61  ;;  %6602 = vmatmul.mubr.f32.gmra.mrb[22].mxu0 %v5071_v54  ;;  %v5174_v3 = vsel %vm5167_vm14, %v5170_v12, %v5173_v31  ;;  %vm13100_vm5 = vcmp.lt.s32.totalorder %v13094_v11, 0  ;;  %7126 = vcosq.f32 %v5472_v44 }
 0x5fb   : > { %v5278_v7 = vsel %vm5271_vm15, %v5274_v16, %v5277_v50  ;;  %v5471_v20 = vsel %vm13100_vm5, %v5470_v45, %v13098_v46  ;;  %v5573_v22 = vsel %vm5490_vm9, %v5572_v13, %v12165_v10  ;;  %v5175_v27 = vsel %vm5164_vm13, nan, %v5174_v3 }
 0x5fc   : > { %vm5268_vm7 = vweird.f32 %v13088_v43  ;;  %v5374_v61 = vand.u32 3, %v5373_v60  ;;  %vm5698_vm0 = vcmp.lt.s32.totalorder %v11983_v41, 0  ;;  %6604 = vmatprep.mubr.f32.mxu1 %v5175_v27  ;;  %v5473_v53 = vsel %vm12359_vm8, 0, %v5471_v20 }
 0x5fd   : > { %v5279_v34 = vsel %vm5268_vm7, nan, %v5278_v7  ;;  %7128 = vsinq.f32 %v5472_v44  ;;  %v5677_v10 = vsel %vm5594_vm12, %v5676_v6, %v12153_v63  ;;  %v5884_v42 = vxor.u32 2147483648, %v12282_v56  ;;  %v13105_v6 = vld [vmem:[#allocation33_spill] sm:$0xff] }
 0x5fe   : > { %6605 = vmatmul.mubr.f32.vlgmr.msra.gmra.mrb[16].mxu1 %v5279_v34  ;;  %v13101_v13 = vand.u32 2147483647, %v13092_v39  ;;  %v5574_v33 = vsub.s32 4, %v13104_v4  ;;  %v7123_v43 = vpop.eup %7122  ;;  %v5781_v28 = vsel %vm5698_vm0, %v5780_v0, %v12291_v32  ;;  %v5477_v14 = vadd.s32 3, %v5473_v53 }
 0x5ff   : > { %v5678_v51 = vsub.s32 4, %v13105_v6  ;;  %v7125_v57 = vpop.eup %7124  ;;  %vm5379_vm4 = vcmp.eq.s32.totalorder %v5374_v61, 2  ;;  %v5380_v17 = vxor.u32 2147483648, %v7123_v43  ;;  %vm5372_vm1 = vweird.f32 %v11560_v49 }
 0x600   : > { %vm12399_vm6 = vcmp.le.f32.partialorder %v13101_v13, 0.7853982  ;;  %v5575_v48 = vsel %vm5490_vm9, %v5574_v33, %v13104_v4  ;;  %v5377_v58 = vxor.u32 2147483648, %v7125_v57  ;;  %vm5376_vm13 = vcmp.eq.s32.totalorder %v5374_v61, 0 }
 0x601   : > { %v5576_v63 = vsel %vm12399_vm6, %v13092_v39, %v5573_v22  ;;  %v5577_v62 = vsel %vm12399_vm6, 0, %v5575_v48  ;;  %v5679_v32 = vsel %vm5594_vm12, %v5678_v51, %v13105_v6  ;;  %v5381_v0 = vsel %vm5379_vm4, %v5380_v17, %v7125_v57 }
 0x602   : > { %7130 = vcosq.f32 %v5576_v63  ;;  %v13106_v5 = vand.u32 2147483647, %v13093_v29  ;;  %vm5375_vm9 = vcmp.lt.s32.totalorder %v5374_v61, 2  ;;  %v5378_v52 = vsel %vm5376_vm13, %v7123_v43, %v5377_v58 }
 0x603   : > { %7132 = vsinq.f32 %v5576_v63  ;;  %v5478_v15 = vand.u32 3, %v5477_v14  ;;  %v5382_v55 = vsel %vm5375_vm9, %v5378_v52, %v5381_v0  ;;  %v5581_v37 = vadd.s32 3, %v5577_v62 }
 0x604   : > { %vm12424_vm14 = vcmp.le.f32.partialorder %v13106_v5, 0.7853982  ;;  %v7127_v9 = vpop.eup %7126  ;;  %v5383_v35 = vsel %vm5372_vm1, nan, %v5382_v55  ;;  %v13109_v47 = vand.u32 2147483647, %v11983_v41  ;;  %v5782_v8 = vsub.s32 4, %v12173_v38 }
 0x605   : > { %v5680_v21 = vsel %vm12424_vm14, %v13093_v29, %v5677_v10  ;;  %v5681_v49 = vsel %vm12424_vm14, 0, %v5679_v32  ;;  %vm5802_vm12 = vcmp.lt.s32.totalorder %v13112_v59, 0  ;;  %6607 = vmatprep.mubr.f32.mxu1 %v5383_v35  ;;  %v5484_v30 = vxor.u32 2147483648, %v7127_v9 }
 0x606   : > { %7134 = vcosq.f32 %v5680_v21  ;;  %vm12435_vm10 = vcmp.le.f32.partialorder %v13109_v47, 0.7853982  ;;  %v5885_v24 = vsel %vm5802_vm12, %v5884_v42, %v12282_v56  ;;  %vm5483_vm2 = vcmp.eq.s32.totalorder %v5478_v15, 2 }
 0x607   : > { %7136 = vsinq.f32 %v5680_v21  ;;  %v5784_v60 = vsel %vm12435_vm10, %v11983_v41, %v5781_v28  ;;  %v7129_v23 = vpop.eup %7128  ;;  %v5685_v46 = vadd.s32 3, %v5681_v49  ;;  %v5783_v45 = vsel %vm5698_vm0, %v5782_v8, %v12173_v38 }
 0x608   : > { %vm5476_vm8 = vweird.f32 %v13094_v11  ;;  %v5481_v18 = vxor.u32 2147483648, %v7129_v23  ;;  %v5485_v19 = vsel %vm5483_vm2, %v5484_v30, %v7129_v23  ;;  %v5582_v36 = vand.u32 3, %v5581_v37 }
 0x609   : > { %vm5479_vm11 = vcmp.lt.s32.totalorder %v5478_v15, 2  ;;  %vm5480_vm3 = vcmp.eq.s32.totalorder %v5478_v15, 0  ;;  %v5785_v44 = vsel %vm12435_vm10, 0, %v5783_v45  ;;  %7138 = vcosq.f32 %v5784_v60 }
 0x60a   : > { %v5482_v31 = vsel %vm5480_vm3, %v7127_v9, %v5481_v18  ;;  %7140 = vsinq.f32 %v5784_v60  ;;  %v13113_v56 = vand.u32 2147483647, %v13112_v59  ;;  %v5886_v38 = vsub.s32 4, %v12102_v2 }
 0x60b   : > { %v5486_v12 = vsel %vm5479_vm11, %v5482_v31, %v5485_v19  ;;  %v5686_v3 = vand.u32 3, %v5685_v46  ;;  %vm5587_vm5 = vcmp.eq.s32.totalorder %v5582_v36, 2  ;;  %vm5584_vm7 = vcmp.eq.s32.totalorder %v5582_v36, 0 }
 0x60c   : > { %v7131_v1 = vpop.eup %7130  ;;  %vm12455_vm15 = vcmp.le.f32.partialorder %v13113_v56, 0.7853982  ;;  %v5487_v20 = vsel %vm5476_vm8, nan, %v5486_v12  ;;  %v5887_v27 = vsel %vm5802_vm12, %v5886_v38, %v12102_v2  ;;  %v5789_v34 = vadd.s32 3, %v5785_v44 }
 0x60d   : > { %v7133_v54 = vpop.eup %7132  ;;  %v5588_v50 = vxor.u32 2147483648, %v7131_v1  ;;  %v5888_v7 = vsel %vm12455_vm15, %v13112_v59, %v5885_v24  ;;  %6608 = vmatmul.mubr.f32.gmra.mrb[18].mxu1 %v5487_v20  ;;  %vm5583_vm0 = vcmp.lt.s32.totalorder %v5582_v36, 2  ;;  %v5889_v42 = vsel %vm12455_vm15, 0, %v5887_v27 }
 0x60e   : > { %v5585_v22 = vxor.u32 2147483648, %v7133_v54  ;;  %7142 = vcosq.f32 %v5888_v7  ;;  %vm5580_vm6 = vweird.f32 %v13092_v39  ;;  %vm5691_vm4 = vcmp.eq.s32.totalorder %v5686_v3, 2 }
 0x60f   : > { %v5589_v61 = vsel %vm5587_vm5, %v5588_v50, %v7133_v54  ;;  %7144 = vsinq.f32 %v5888_v7  ;;  %vm5688_vm1 = vcmp.eq.s32.totalorder %v5686_v3, 0  ;;  %v5790_v43 = vand.u32 3, %v5789_v34 }
 0x610   : > { %v7135_v53 = vpop.eup %7134  ;;  %v5586_v10 = vsel %vm5584_vm7, %v7131_v1, %v5585_v22  ;;  %v5893_v28 = vadd.s32 3, %v5889_v42  ;;  %vm5687_vm13 = vcmp.lt.s32.totalorder %v5686_v3, 2  ;;  %vm5684_vm14 = vweird.f32 %v13093_v29 }
 0x611   : > { %v7137_v13 = vpop.eup %7136  ;;  %v5590_v11 = vsel %vm5583_vm0, %v5586_v10, %v5589_v61  ;;  %v5692_v25 = vxor.u32 2147483648, %v7135_v53  ;;  %vm5795_vm9 = vcmp.eq.s32.totalorder %v5790_v43, 2  ;;  %vm5792_vm10 = vcmp.eq.s32.totalorder %v5790_v43, 0 }
 0x612   : > { %v5591_v4 = vsel %vm5580_vm6, nan, %v5590_v11  ;;  %v5689_v33 = vxor.u32 2147483648, %v7137_v13  ;;  %v5894_v48 = vand.u32 3, %v5893_v28  ;;  %vm5791_vm12 = vcmp.lt.s32.totalorder %v5790_v43, 2 }
 0x613   : > { %6610 = vmatprep.mubr.f32.mxu1 %v5591_v4  ;;  %v5693_v2 = vsel %vm5691_vm4, %v5692_v25, %v7137_v13  ;;  %v7139_v63 = vpop.eup %7138  ;;  %vm5788_vm2 = vweird.f32 %v11983_v41  ;;  %vm5892_vm15 = vweird.f32 %v13112_v59  ;;  %v6349_v41 = vld [vmem:[%s12527_s8] ss:$0 sm:$0xff]  ;;  %vm6072_vm5 = vcmask 23552  }
 0x614   : > { %v5690_v14 = vsel %vm5688_vm1, %v7135_v53, %v5689_v33  ;;  %v7141_v51 = vpop.eup %7140  ;;  %v5796_v39 = vxor.u32 2147483648, %v7139_v63  ;;  %vm5899_vm8 = vcmp.eq.s32.totalorder %v5894_v48, 2  ;;  %vm5896_vm11 = vcmp.eq.s32.totalorder %v5894_v48, 0 }
 0x615   : > { %v5694_v6 = vsel %vm5687_vm13, %v5690_v14, %v5693_v2  ;;  %v5793_v17 = vxor.u32 2147483648, %v7141_v51  ;;  %vm5895_vm3 = vcmp.lt.s32.totalorder %v5894_v48, 2 }
 0x616   : > { %v5695_v57 = vsel %vm5684_vm14, nan, %v5694_v6  ;;  %v5797_v58 = vsel %vm5795_vm9, %v5796_v39, %v7141_v51 }
 0x617   : > { %6611 = vmatmul.mubr.f32.gmra.mrb[20].mxu1 %v5695_v57  ;;  %v5794_v32 = vsel %vm5792_vm10, %v7139_v63, %v5793_v17 }
 0x618   : > { %v7143_v62 = vpop.eup %7142  ;;  %v5798_v0 = vsel %vm5791_vm12, %v5794_v32, %v5797_v58 }
 0x619   : > { %v5900_v5 = vxor.u32 2147483648, %v7143_v62  ;;  %v7145_v40 = vpop.eup %7144  ;;  %v5799_v29 = vsel %vm5788_vm2, nan, %v5798_v0 }
 0x61a   : > { %6613 = vmatprep.mubr.f32.mxu1 %v5799_v29  ;;  %v5897_v52 = vxor.u32 2147483648, %v7145_v40 }
 0x61b   : > { %v5901_v15 = vsel %vm5899_vm8, %v5900_v5, %v7145_v40 }
 0x61c   : > { %v5898_v21 = vsel %vm5896_vm11, %v7143_v62, %v5897_v52 }
 0x61d   : > { %v5902_v55 = vsel %vm5895_vm3, %v5898_v21, %v5901_v15 }
 0x61e   : > { %v5903_v37 = vsel %vm5892_vm15, nan, %v5902_v55 }
 0x61f   : > { %6614 = vmatmul.mubr.f32.gmra.mrb[22].mxu1 %v5903_v37 }
 0x69f   : > { %v6594_v49 = vpop.f32.mrb[16].mxu0 }
 0x6a0   : > { %v5999_v9 = vadd.f32 %v6594_v49, %v6349_v41  ;;  %v5993_v35 = vpop.f32.mrb[17].mxu0 }
 0x6a1   : > { %v5994_v47 = vadd.f32 %v6349_v41, %v5993_v35 }
 0x6a2   : > { %6074 = vst.msk [vmem:[%s12482_s24 + $0x8] sm:$0xff] %vm6072_vm5, %v5999_v9 }
 0x6a3   : > { %6073 = vst.msk [vmem:[%s12482_s24] sm:$0xff] %vm6072_vm5, %v5994_v47 }
 0x6b4   : > { %v6597_v26 = vpop.f32.mrb[18].mxu0 }
 0x6b5   : > { %v6009_v8 = vadd.f32 %v6597_v26, %v6349_v41  ;;  %v6003_v59 = vpop.f32.mrb[19].mxu0 }
 0x6b6   : > { %v6004_v30 = vadd.f32 %v6349_v41, %v6003_v59 }
 0x6b7   : > { %6076 = vst.msk [vmem:[%s12482_s24 + $0x18] sm:$0xff] %vm6072_vm5, %v6009_v8 }
 0x6b8   : > { %6075 = vst.msk [vmem:[%s12482_s24 + $0x10] sm:$0xff] %vm6072_vm5, %v6004_v30 }
 0x6bf   : > { %v6600_v60 = vpop.f32.mrb[20].mxu0 }
 0x6c0   : > { %v6019_v23 = vadd.f32 %v6600_v60, %v6349_v41  ;;  %v6013_v24 = vpop.f32.mrb[21].mxu0 }
 0x6c1   : > { %v6014_v46 = vadd.f32 %v6349_v41, %v6013_v24 }
 0x6c2   : > { %6078 = vst.msk [vmem:[%s12482_s24 + $0x28] sm:$0xff] %vm6072_vm5, %v6019_v23 }
 0x6c3   : > { %6077 = vst.msk [vmem:[%s12482_s24 + $0x20] sm:$0xff] %vm6072_vm5, %v6014_v46 }
 0x6cd   : > { %v6603_v45 = vpop.f32.mrb[22].mxu0 }
 0x6ce   : > { %v6029_v18 = vadd.f32 %v6603_v45, %v6349_v41  ;;  %v6023_v19 = vpop.f32.mrb[23].mxu0 }
 0x6cf   : > { %v6024_v36 = vadd.f32 %v6349_v41, %v6023_v19 }
 0x6d0   : > { %6080 = vst.msk [vmem:[%s12482_s24 + $0x38] sm:$0xff] %vm6072_vm5, %v6029_v18 }
 0x6d1   : > { %v6606_v44 = vpop.f32.mrb[16].mxu1  ;;  %6079 = vst.msk [vmem:[%s12482_s24 + $0x30] sm:$0xff] %vm6072_vm5, %v6024_v36 }
 0x6d2   : > { %v6039_v1 = vadd.f32 %v6606_v44, %v6349_v41  ;;  %v6033_v31 = vpop.f32.mrb[17].mxu1 }
 0x6d3   : > { %v6034_v56 = vadd.f32 %v6349_v41, %v6033_v31 }
 0x6d4   : > { %6082 = vst.msk [vmem:[%s12482_s24 + $0x48] sm:$0xff] %vm6072_vm5, %v6039_v1 }
 0x6d5   : > { %6081 = vst.msk [vmem:[%s12482_s24 + $0x40] sm:$0xff] %vm6072_vm5, %v6034_v56 }
 0x6e0   : > { %v6609_v16 = vpop.f32.mrb[18].mxu1 }
 0x6e1   : > { %v6049_v38 = vadd.f32 %v6609_v16, %v6349_v41  ;;  %v6043_v54 = vpop.f32.mrb[19].mxu1 }
 0x6e2   : > { %v6044_v12 = vadd.f32 %v6349_v41, %v6043_v54 }
 0x6e3   : > { %6084 = vst.msk [vmem:[%s12482_s24 + $0x58] sm:$0xff] %vm6072_vm5, %v6049_v38 }
 0x6e4   : > { %6083 = vst.msk [vmem:[%s12482_s24 + $0x50] sm:$0xff] %vm6072_vm5, %v6044_v12 }
 0x6ea   : > { %v6612_v50 = vpop.f32.mrb[20].mxu1 }
 0x6eb   : > { %v6059_v3 = vadd.f32 %v6612_v50, %v6349_v41  ;;  %v6053_v7 = vpop.f32.mrb[21].mxu1 }
 0x6ec   : > { %v6054_v20 = vadd.f32 %v6349_v41, %v6053_v7 }
 0x6ed   : > { %6086 = vst.msk [vmem:[%s12482_s24 + $0x68] sm:$0xff] %vm6072_vm5, %v6059_v3 }
 0x6ee   : > { %6085 = vst.msk [vmem:[%s12482_s24 + $0x60] sm:$0xff] %vm6072_vm5, %v6054_v20 }
 0x6f2   : > { %v6615_v22 = vpop.f32.mrb[22].mxu1 }
 0x6f3   : > { %v6069_v27 = vadd.f32 %v6615_v22, %v6349_v41  ;;  %v6063_v61 = vpop.f32.mrb[23].mxu1 }
 0x6f4   : > { %v6064_v34 = vadd.f32 %v6349_v41, %v6063_v61 }
 0x6f5   : > { %6088 = vst.msk [vmem:[%s12482_s24 + $0x78] sm:$0xff] %vm6072_vm5, %v6069_v27 }
 0x6f6   : > { %6087 = vst.msk [vmem:[%s12482_s24 + $0x70] sm:$0xff] %vm6072_vm5, %v6064_v34 }
 0x6f7 PF: > { %s19_s30 = sadd.s32 1, %s7156_s30  }
 0x6f8   : > { %p16_p4 = scmp.ge.s32.totalorder %s19_s30, 4  }
 0x6fa   :  { %18 = sbr.rel (!%p16_p4) target bundleno = 1 (0x1), region = 86 }

</bundles_post_ra>
